<compile_context>
chip_gen: v7x
topology: tpu7x:2x2x1
jax: 0.10.0
libtpu: 0.0.40
codegen_flags: <defaults>
</compile_context>

<pallas_src>
import jax
import jax.numpy as jnp
from jax.experimental import pallas as pl
from jax.experimental.pallas import tpu as pltpu

_LANE = 128
# Conservative cross-generation budget for a VMEM-resident bf16 adjacency
# (v7x has only 64 MiB physical / 32 MiB scoped-default per TensorCore).
_MAX_RESIDENT_A_BYTES = 24 << 20


def _round_up(x, m):
    return (x + m - 1) // m * m


# --------------------------------------------------------------------------
# Fused kernel: 3 GCN layers + MLP head + 2-class log_softmax, one grid step.
# --------------------------------------------------------------------------
def _fused_mgcn_kernel(a_ref, xg_ref, xl_ref,
                       w1_ref, b1_ref, w2_ref, b2_ref, w3_ref, b3_ref,
                       wl1_ref, bl1_ref, wl2a_ref, wl2b_ref, bl2_ref,
                       wl25_ref, bl25_ref, wl3_ref, bl3_ref,
                       out_ref):
    f32, bf16 = jnp.float32, jnp.bfloat16
    a = a_ref[...]                                              # (Np, Np) bf16

    # --- GCN layer 1: h1 = relu((A @ X) @ W1 + b1) -------------------------
    ax = jnp.dot(a, xg_ref[...], preferred_element_type=f32)    # (Np, F_in)
    h1 = jnp.dot(ax.astype(bf16), w1_ref[...], preferred_element_type=f32)
    h1 = jnp.maximum(h1 + b1_ref[...], 0.0)

    # --- GCN layer 2: h2 = relu(A @ (h1 @ W2) + b2) -------------------------
    t2 = jnp.dot(h1.astype(bf16), w2_ref[...], preferred_element_type=f32)
    h2 = jnp.dot(a, t2.astype(bf16), preferred_element_type=f32)
    h2 = jnp.maximum(h2 + b2_ref[...], 0.0)

    # --- GCN layer 3: x3 = (A @ h2) @ W3 + b3 -------------------------------
    ah2 = jnp.dot(a, h2.astype(bf16), preferred_element_type=f32)
    x3 = (jnp.dot(ah2.astype(bf16), w3_ref[...], preferred_element_type=f32)
          + b3_ref[...])

    # --- MLP head (all row-local) -------------------------------------------
    xloc = (jnp.dot(xl_ref[...], wl1_ref[...], preferred_element_type=f32)
            + bl1_ref[...])
    # relu(cat([x3, xloc], 1)) @ Wl2 == relu(x3) @ Wl2[:150] + relu(xloc) @ Wl2[150:]
    x3r = jnp.maximum(x3, 0.0).astype(bf16)
    xlr = jnp.maximum(xloc, 0.0).astype(bf16)
    h = (jnp.dot(x3r, wl2a_ref[...], preferred_element_type=f32)
         + jnp.dot(xlr, wl2b_ref[...], preferred_element_type=f32)
         + bl2_ref[...])
    h = jnp.maximum(h, 0.0).astype(bf16)
    h = jnp.dot(h, wl25_ref[...], preferred_element_type=f32) + bl25_ref[...]
    h = jnp.maximum(h, 0.0).astype(bf16)
    logits = jnp.dot(h, wl3_ref[...], preferred_element_type=f32) + bl3_ref[...]

    # 2-class log_softmax computed from the two columns (no cross-lane reduce).
    l0 = logits[:, 0:1]
    l1 = logits[:, 1:2]
    m = jnp.maximum(l0, l1)
    lse = m + jnp.log(jnp.exp(l0 - m) + jnp.exp(l1 - m))
    out_ref[...] = logits - lse


# --------------------------------------------------------------------------
# Wrapper
# --------------------------------------------------------------------------
@jax.jit
def mgcn_forward(a_pad, xg_pad, xl_pad, p):
    """Forward pass on pre-padded bf16 inputs (see prepare_inputs).  Returns
    (n_pad, 2) f32 log-probabilities; caller slices away padded rows."""
    n_pad = a_pad.shape[0]
    f_in = xg_pad.shape[1]
    f_loc = xl_pad.shape[1]
    h1_dim = p["w1"].shape[1]
    h2_dim = p["w2"].shape[1]

    a_bytes = 2 * n_pad * n_pad
    param_bytes = sum(int(v.size) * v.dtype.itemsize for v in p.values())
    prop_flops = 2 * n_pad * n_pad * (f_in + 2 * h2_dim)
    dense_flops = 2 * n_pad * (f_in * h1_dim + h1_dim * h2_dim + h2_dim * 150
                               + f_loc * 100 + 150 * 100 + 100 * 100
                               + 100 * 81 + 81 * 2)

    # Resident-A footprint + generous activation headroom, clamped to a range
    # safe on all of v5e/v6e/v7x.
    vmem_limit = min(max(32 << 20, 2 * a_bytes + (8 << 20)), 60 << 20)

    inputs = (a_pad, xg_pad, xl_pad,
              p["w1"], p["b1"], p["w2"], p["b2"], p["w3"], p["b3"],
              p["wl1"], p["bl1"], p["wl2a"], p["wl2b"], p["bl2"],
              p["wl25"], p["bl25"], p["wl3"], p["bl3"])
    vmem_spec = pl.BlockSpec(memory_space=pltpu.MemorySpace.VMEM)

    out = pl.pallas_call(
        _fused_mgcn_kernel,
        out_shape=jax.ShapeDtypeStruct((n_pad, 2), jnp.float32),
        in_specs=[vmem_spec] * len(inputs),
        out_specs=vmem_spec,
        compiler_params=pltpu.CompilerParams(vmem_limit_bytes=vmem_limit),
        cost_estimate=pl.CostEstimate(
            flops=prop_flops + dense_flops,
            transcendentals=2 * n_pad,
            bytes_accessed=a_bytes + 2 * n_pad * (f_in + f_loc)
                           + param_bytes + 8 * n_pad),
    )(*inputs)
    return out


# --------------------------------------------------------------------------
# One-time input / parameter preparation (hoisted out of the hot path)
# --------------------------------------------------------------------------
def prepare_inputs(a_hat, x_graph, x_linear):
    """Pad node count to a multiple of 128 and cast matmul operands to bf16.
    Zero-padded A columns guarantee padded-row garbage never leaks into real
    rows of any propagation."""
    n = a_hat.shape[0]
    n_pad = _round_up(n, _LANE)
    if 2 * n_pad * n_pad > _MAX_RESIDENT_A_BYTES:
        # TODO(synk): tiled-K streaming path for graphs too large for
        # VMEM-resident A (n_pad > ~3.5k).
        raise NotImplementedError("graph too large for VMEM-resident adjacency")
    bf16 = jnp.bfloat16
    a = jnp.pad(a_hat, ((0, n_pad - n), (0, n_pad - n))).astype(bf16)
    xg = jnp.pad(x_graph, ((0, n_pad - n), (0, 0))).astype(bf16)
    xl = jnp.pad(x_linear, ((0, n_pad - n), (0, 0))).astype(bf16)
    return a, xg, xl, n


def prepare_params(params):
    """One-time prep: split linear2's weight at the concat boundary (150|100)
    and cast matmul weights to bf16 (biases stay f32)."""
    p = {k: v for k, v in params.items() if k != "wl2"}
    p["wl2a"] = params["wl2"][:150, :]
    p["wl2b"] = params["wl2"][150:, :]
    return {k: (v.astype(jnp.bfloat16) if k.startswith("w") else v)
            for k, v in p.items()}


# --------------------------------------------------------------------------
# Graph helpers / parameters / reference
# --------------------------------------------------------------------------
def normalized_adjacency(edge_index, num_nodes):
    """Dense D^{-1/2} (A + I) D^{-1/2} (GCNConv default normalization).
    Note: duplicate edges (if any) collapse to weight 1."""
    src, dst = edge_index
    a = jnp.zeros((num_nodes, num_nodes), jnp.float32)
    a = a.at[dst, src].set(1.0)
    diag = jnp.arange(num_nodes)
    a = a.at[diag, diag].set(1.0)
    deg = a.sum(axis=1)
    d_inv_sqrt = jnp.where(deg > 0, 1.0 / jnp.sqrt(deg), 0.0)
    return d_inv_sqrt[:, None] * a * d_inv_sqrt[None, :]


def init_params(key, num_node_features, hidden_channels):
    h1, h2 = hidden_channels
    shapes = {
        "w1": (num_node_features, h1), "b1": (1, h1),
        "w2": (h1, h2),                "b2": (1, h2),
        "w3": (h2, 150),               "b3": (1, 150),
        "wl1": (94, 100),              "bl1": (1, 100),
        "wl2": (250, 100),             "bl2": (1, 100),
        "wl25": (100, 81),             "bl25": (1, 81),
        "wl3": (81, 2),                "bl3": (1, 2),
    }
    keys = jax.random.split(key, len(shapes))
    return {name: 0.1 * jax.random.normal(k, shape, jnp.float32)
            for k, (name, shape) in zip(keys, sorted(shapes.items()))}


def mgcn_reference(a_hat, x_graph, x_linear, params):
    """Pure-JAX f32 reference of MGCN.forward (eval mode, use_skip=False)."""
    h = jnp.maximum(a_hat @ (x_graph @ params["w1"]) + params["b1"], 0.0)
    h = jnp.maximum(a_hat @ (h @ params["w2"]) + params["b2"], 0.0)
    h3 = a_hat @ (h @ params["w3"]) + params["b3"]
    xl = x_linear @ params["wl1"] + params["bl1"]
    h = jnp.maximum(jnp.concatenate([h3, xl], axis=1), 0.0)
    h = jnp.maximum(h @ params["wl2"] + params["bl2"], 0.0)
    h = jnp.maximum(h @ params["wl25"] + params["bl25"], 0.0)
    logits = h @ params["wl3"] + params["bl3"]
    return jax.nn.log_softmax(logits, axis=1)


if __name__ == "__main__":
    N = 300                      # graph nodes (padded to 384 in prepare_inputs)
    NUM_NODE_FEATURES = 16
    HIDDEN = (32, 24)

    root = jax.random.PRNGKey(0)
    k_xg, k_xl, k_p = jax.random.split(root, 3)

    # data.x[0]: graph node features, data.x[1]: "local" linear features
    x_graph = jax.random.normal(k_xg, (N, NUM_NODE_FEATURES), jnp.float32)
    x_linear = jax.random.normal(k_xl, (N, 94), jnp.float32)

    # deterministic bidirectional ring graph
    fwd = jnp.stack([jnp.arange(N), (jnp.arange(N) + 1) % N])
    edge_index = jnp.concatenate([fwd, fwd[::-1]], axis=1)         # (2, 2N)
    a_hat = normalized_adjacency(edge_index, N)

    params = init_params(k_p, NUM_NODE_FEATURES, HIDDEN)
    prepared = prepare_params(params)

    # One-time prep (outside the hot forward path).
    a_pad, xg_pad, xl_pad, n = prepare_inputs(a_hat, x_graph, x_linear)

    out_pad = mgcn_forward(a_pad, xg_pad, xl_pad, prepared)
    out_pad = jax.block_until_ready(out_pad)
    out = out_pad[:n]
    assert out.shape == (N, 2)
    # rows of log_softmax should exp-sum to 1
    assert jnp.allclose(jnp.exp(out).sum(axis=1), 1.0, atol=1e-4)

    # loose tolerance: kernel runs bf16 operands with f32 accumulation
    ref = mgcn_reference(a_hat, x_graph, x_linear, params)
    err = float(jnp.max(jnp.abs(out - ref)))
    assert err < 0.15, f"max |kernel - reference| too large: {err}"
    print("KERNEL_OK")
</pallas_src>

<mosaic_0001>
module attributes {stable_mosaic.version = 11 : i64} {
  func.func @_fused_mgcn_kernel(%arg0: memref<384x384xbf16, #tpu.memory_space<vmem>>, %arg1: memref<384x16xbf16, #tpu.memory_space<vmem>>, %arg2: memref<384x94xbf16, #tpu.memory_space<vmem>>, %arg3: memref<16x32xbf16, #tpu.memory_space<vmem>>, %arg4: memref<1x32xf32, #tpu.memory_space<vmem>>, %arg5: memref<32x24xbf16, #tpu.memory_space<vmem>>, %arg6: memref<1x24xf32, #tpu.memory_space<vmem>>, %arg7: memref<24x150xbf16, #tpu.memory_space<vmem>>, %arg8: memref<1x150xf32, #tpu.memory_space<vmem>>, %arg9: memref<94x100xbf16, #tpu.memory_space<vmem>>, %arg10: memref<1x100xf32, #tpu.memory_space<vmem>>, %arg11: memref<150x100xbf16, #tpu.memory_space<vmem>>, %arg12: memref<100x100xbf16, #tpu.memory_space<vmem>>, %arg13: memref<1x100xf32, #tpu.memory_space<vmem>>, %arg14: memref<100x81xbf16, #tpu.memory_space<vmem>>, %arg15: memref<1x81xf32, #tpu.memory_space<vmem>>, %arg16: memref<81x2xbf16, #tpu.memory_space<vmem>>, %arg17: memref<1x2xf32, #tpu.memory_space<vmem>>, %arg18: memref<384x2xf32, #tpu.memory_space<vmem>>) attributes {dimension_semantics = [], scalar_prefetch = 0 : i64, scratch_operands = 0 : i64, tpu.core_type = #tpu.core_type<tc>} {
    %c0 = arith.constant 0 : index
    %c0_0 = arith.constant 0 : index
    %0 = vector.load %arg0[%c0, %c0_0] : memref<384x384xbf16, #tpu.memory_space<vmem>>, vector<384x384xbf16>
    %c0_1 = arith.constant 0 : index
    %c0_2 = arith.constant 0 : index
    %1 = vector.load %arg1[%c0_1, %c0_2] : memref<384x16xbf16, #tpu.memory_space<vmem>>, vector<384x16xbf16>
    %cst = arith.constant dense<0.000000e+00> : vector<384x16xf32>
    %2 = tpu.matmul %0, %1, %cst {dimension_numbers = #tpu.dot_dimension_numbers<[1], [0], [0], [1], [0, 0, 1, 1], [], []>} : vector<384x384xbf16>, vector<384x16xbf16>, vector<384x16xf32> -> vector<384x16xf32>
    %3 = arith.truncf %2 : vector<384x16xf32> to vector<384x16xbf16>
    %c0_3 = arith.constant 0 : index
    %c0_4 = arith.constant 0 : index
    %4 = vector.load %arg3[%c0_3, %c0_4] : memref<16x32xbf16, #tpu.memory_space<vmem>>, vector<16x32xbf16>
    %cst_5 = arith.constant dense<0.000000e+00> : vector<384x32xf32>
    %5 = tpu.matmul %3, %4, %cst_5 {dimension_numbers = #tpu.dot_dimension_numbers<[1], [0], [0], [1], [0, 0, 1, 1], [], []>} : vector<384x16xbf16>, vector<16x32xbf16>, vector<384x32xf32> -> vector<384x32xf32>
    %c0_6 = arith.constant 0 : index
    %c0_7 = arith.constant 0 : index
    %6 = vector.load %arg4[%c0_6, %c0_7] : memref<1x32xf32, #tpu.memory_space<vmem>>, vector<1x32xf32>
    %7 = vector.broadcast %6 : vector<1x32xf32> to vector<384x32xf32>
    %8 = arith.addf %5, %7 : vector<384x32xf32>
    %cst_8 = arith.constant 0.000000e+00 : f32
    %9 = vector.broadcast %cst_8 : f32 to vector<384x32xf32>
    %10 = arith.maximumf %8, %9 : vector<384x32xf32>
    %11 = arith.truncf %10 : vector<384x32xf32> to vector<384x32xbf16>
    %c0_9 = arith.constant 0 : index
    %c0_10 = arith.constant 0 : index
    %12 = vector.load %arg5[%c0_9, %c0_10] : memref<32x24xbf16, #tpu.memory_space<vmem>>, vector<32x24xbf16>
    %cst_11 = arith.constant dense<0.000000e+00> : vector<384x24xf32>
    %13 = tpu.matmul %11, %12, %cst_11 {dimension_numbers = #tpu.dot_dimension_numbers<[1], [0], [0], [1], [0, 0, 1, 1], [], []>} : vector<384x32xbf16>, vector<32x24xbf16>, vector<384x24xf32> -> vector<384x24xf32>
    %14 = arith.truncf %13 : vector<384x24xf32> to vector<384x24xbf16>
    %cst_12 = arith.constant dense<0.000000e+00> : vector<384x24xf32>
    %15 = tpu.matmul %0, %14, %cst_12 {dimension_numbers = #tpu.dot_dimension_numbers<[1], [0], [0], [1], [0, 0, 1, 1], [], []>} : vector<384x384xbf16>, vector<384x24xbf16>, vector<384x24xf32> -> vector<384x24xf32>
    %c0_13 = arith.constant 0 : index
    %c0_14 = arith.constant 0 : index
    %16 = vector.load %arg6[%c0_13, %c0_14] : memref<1x24xf32, #tpu.memory_space<vmem>>, vector<1x24xf32>
    %17 = vector.broadcast %16 : vector<1x24xf32> to vector<384x24xf32>
    %18 = arith.addf %15, %17 : vector<384x24xf32>
    %cst_15 = arith.constant 0.000000e+00 : f32
    %19 = vector.broadcast %cst_15 : f32 to vector<384x24xf32>
    %20 = arith.maximumf %18, %19 : vector<384x24xf32>
    %21 = arith.truncf %20 : vector<384x24xf32> to vector<384x24xbf16>
    %cst_16 = arith.constant dense<0.000000e+00> : vector<384x24xf32>
    %22 = tpu.matmul %0, %21, %cst_16 {dimension_numbers = #tpu.dot_dimension_numbers<[1], [0], [0], [1], [0, 0, 1, 1], [], []>} : vector<384x384xbf16>, vector<384x24xbf16>, vector<384x24xf32> -> vector<384x24xf32>
    %23 = arith.truncf %22 : vector<384x24xf32> to vector<384x24xbf16>
    %c0_17 = arith.constant 0 : index
    %c0_18 = arith.constant 0 : index
    %24 = vector.load %arg7[%c0_17, %c0_18] : memref<24x150xbf16, #tpu.memory_space<vmem>>, vector<24x150xbf16>
    %cst_19 = arith.constant dense<0.000000e+00> : vector<384x150xf32>
    %25 = tpu.matmul %23, %24, %cst_19 {dimension_numbers = #tpu.dot_dimension_numbers<[1], [0], [0], [1], [0, 0, 1, 1], [], []>} : vector<384x24xbf16>, vector<24x150xbf16>, vector<384x150xf32> -> vector<384x150xf32>
    %c0_20 = arith.constant 0 : index
    %c0_21 = arith.constant 0 : index
    %26 = vector.load %arg8[%c0_20, %c0_21] : memref<1x150xf32, #tpu.memory_space<vmem>>, vector<1x150xf32>
    %27 = vector.broadcast %26 : vector<1x150xf32> to vector<384x150xf32>
    %28 = arith.addf %25, %27 : vector<384x150xf32>
    %c0_22 = arith.constant 0 : index
    %c0_23 = arith.constant 0 : index
    %29 = vector.load %arg2[%c0_22, %c0_23] : memref<384x94xbf16, #tpu.memory_space<vmem>>, vector<384x94xbf16>
    %c0_24 = arith.constant 0 : index
    %c0_25 = arith.constant 0 : index
    %30 = vector.load %arg9[%c0_24, %c0_25] : memref<94x100xbf16, #tpu.memory_space<vmem>>, vector<94x100xbf16>
    %cst_26 = arith.constant dense<0.000000e+00> : vector<384x100xf32>
    %31 = tpu.matmul %29, %30, %cst_26 {dimension_numbers = #tpu.dot_dimension_numbers<[1], [0], [0], [1], [0, 0, 1, 1], [], []>} : vector<384x94xbf16>, vector<94x100xbf16>, vector<384x100xf32> -> vector<384x100xf32>
    %c0_27 = arith.constant 0 : index
    %c0_28 = arith.constant 0 : index
    %32 = vector.load %arg10[%c0_27, %c0_28] : memref<1x100xf32, #tpu.memory_space<vmem>>, vector<1x100xf32>
    %33 = vector.broadcast %32 : vector<1x100xf32> to vector<384x100xf32>
    %34 = arith.addf %31, %33 : vector<384x100xf32>
    %cst_29 = arith.constant 0.000000e+00 : f32
    %35 = vector.broadcast %cst_29 : f32 to vector<384x150xf32>
    %36 = arith.maximumf %28, %35 : vector<384x150xf32>
    %37 = arith.truncf %36 : vector<384x150xf32> to vector<384x150xbf16>
    %cst_30 = arith.constant 0.000000e+00 : f32
    %38 = vector.broadcast %cst_30 : f32 to vector<384x100xf32>
    %39 = arith.maximumf %34, %38 : vector<384x100xf32>
    %40 = arith.truncf %39 : vector<384x100xf32> to vector<384x100xbf16>
    %c0_31 = arith.constant 0 : index
    %c0_32 = arith.constant 0 : index
    %41 = vector.load %arg11[%c0_31, %c0_32] : memref<150x100xbf16, #tpu.memory_space<vmem>>, vector<150x100xbf16>
    %cst_33 = arith.constant dense<0.000000e+00> : vector<384x100xf32>
    %42 = tpu.matmul %37, %41, %cst_33 {dimension_numbers = #tpu.dot_dimension_numbers<[1], [0], [0], [1], [0, 0, 1, 1], [], []>} : vector<384x150xbf16>, vector<150x100xbf16>, vector<384x100xf32> -> vector<384x100xf32>
    %c0_34 = arith.constant 0 : index
    %c0_35 = arith.constant 0 : index
    %43 = vector.load %arg12[%c0_34, %c0_35] : memref<100x100xbf16, #tpu.memory_space<vmem>>, vector<100x100xbf16>
    %cst_36 = arith.constant dense<0.000000e+00> : vector<384x100xf32>
    %44 = tpu.matmul %40, %43, %cst_36 {dimension_numbers = #tpu.dot_dimension_numbers<[1], [0], [0], [1], [0, 0, 1, 1], [], []>} : vector<384x100xbf16>, vector<100x100xbf16>, vector<384x100xf32> -> vector<384x100xf32>
    %45 = arith.addf %42, %44 : vector<384x100xf32>
    %c0_37 = arith.constant 0 : index
    %c0_38 = arith.constant 0 : index
    %46 = vector.load %arg13[%c0_37, %c0_38] : memref<1x100xf32, #tpu.memory_space<vmem>>, vector<1x100xf32>
    %47 = vector.broadcast %46 : vector<1x100xf32> to vector<384x100xf32>
    %48 = arith.addf %45, %47 : vector<384x100xf32>
    %cst_39 = arith.constant 0.000000e+00 : f32
    %49 = vector.broadcast %cst_39 : f32 to vector<384x100xf32>
    %50 = arith.maximumf %48, %49 : vector<384x100xf32>
    %51 = arith.truncf %50 : vector<384x100xf32> to vector<384x100xbf16>
    %c0_40 = arith.constant 0 : index
    %c0_41 = arith.constant 0 : index
    %52 = vector.load %arg14[%c0_40, %c0_41] : memref<100x81xbf16, #tpu.memory_space<vmem>>, vector<100x81xbf16>
    %cst_42 = arith.constant dense<0.000000e+00> : vector<384x81xf32>
    %53 = tpu.matmul %51, %52, %cst_42 {dimension_numbers = #tpu.dot_dimension_numbers<[1], [0], [0], [1], [0, 0, 1, 1], [], []>} : vector<384x100xbf16>, vector<100x81xbf16>, vector<384x81xf32> -> vector<384x81xf32>
    %c0_43 = arith.constant 0 : index
    %c0_44 = arith.constant 0 : index
    %54 = vector.load %arg15[%c0_43, %c0_44] : memref<1x81xf32, #tpu.memory_space<vmem>>, vector<1x81xf32>
    %55 = vector.broadcast %54 : vector<1x81xf32> to vector<384x81xf32>
    %56 = arith.addf %53, %55 : vector<384x81xf32>
    %cst_45 = arith.constant 0.000000e+00 : f32
    %57 = vector.broadcast %cst_45 : f32 to vector<384x81xf32>
    %58 = arith.maximumf %56, %57 : vector<384x81xf32>
    %59 = arith.truncf %58 : vector<384x81xf32> to vector<384x81xbf16>
    %c0_46 = arith.constant 0 : index
    %c0_47 = arith.constant 0 : index
    %60 = vector.load %arg16[%c0_46, %c0_47] : memref<81x2xbf16, #tpu.memory_space<vmem>>, vector<81x2xbf16>
    %cst_48 = arith.constant dense<0.000000e+00> : vector<384x2xf32>
    %61 = tpu.matmul %59, %60, %cst_48 {dimension_numbers = #tpu.dot_dimension_numbers<[1], [0], [0], [1], [0, 0, 1, 1], [], []>} : vector<384x81xbf16>, vector<81x2xbf16>, vector<384x2xf32> -> vector<384x2xf32>
    %c0_49 = arith.constant 0 : index
    %c0_50 = arith.constant 0 : index
    %62 = vector.load %arg17[%c0_49, %c0_50] : memref<1x2xf32, #tpu.memory_space<vmem>>, vector<1x2xf32>
    %63 = vector.broadcast %62 : vector<1x2xf32> to vector<384x2xf32>
    %64 = arith.addf %61, %63 : vector<384x2xf32>
    %65 = vector.extract_strided_slice %64 {offsets = [0, 0], sizes = [384, 1], strides = [1, 1]} : vector<384x2xf32> to vector<384x1xf32>
    %66 = vector.extract_strided_slice %64 {offsets = [0, 1], sizes = [384, 1], strides = [1, 1]} : vector<384x2xf32> to vector<384x1xf32>
    %67 = arith.maximumf %65, %66 : vector<384x1xf32>
    %68 = arith.subf %65, %67 : vector<384x1xf32>
    %69 = math.exp %68 : vector<384x1xf32>
    %70 = arith.subf %66, %67 : vector<384x1xf32>
    %71 = math.exp %70 : vector<384x1xf32>
    %72 = arith.addf %69, %71 : vector<384x1xf32>
    %73 = math.log %72 : vector<384x1xf32>
    %74 = arith.addf %67, %73 : vector<384x1xf32>
    %75 = vector.broadcast %74 : vector<384x1xf32> to vector<384x2xf32>
    %76 = arith.subf %64, %75 : vector<384x2xf32>
    %c0_51 = arith.constant 0 : index
    %c0_52 = arith.constant 0 : index
    %77 = vector.load %arg18[%c0_51, %c0_52] : memref<384x2xf32, #tpu.memory_space<vmem>>, vector<384x2xf32>
    tpu.vector_store %arg18[%c0_51, %c0_52], %76 {strides = array<i32>} : memref<384x2xf32, #tpu.memory_space<vmem>>, vector<384x2xf32>,
    return
  }
}

</mosaic_0001>

<bundles_post_ra>
// kernel: mgcn_forward.1
= control target key start
LH: loop header
LB: loop body
LE: loop exit
PB: predicated region body
PF: predicated region fallthrough
CT: control target
= control target key end

     0   :  { %s12435_s0 = inlined_call_operand.vmem [shape: bf16[384,384], index: 0, kind: input, shape index: {}]   ;;  %s12436_s1 = inlined_call_operand.vmem [shape: bf16[384,16], index: 1, kind: input, shape index: {}]   ;;  %s12437_s2 = inlined_call_operand.vmem [shape: bf16[384,94], index: 2, kind: input, shape index: {}]   ;;  %s12438_s3 = inlined_call_operand.hbm [shape: bf16[16,32], index: 3, kind: input, shape index: {}]   ;;  %s12439_s4 = inlined_call_operand.vmem [shape: f32[1,32], index: 4, kind: input, shape index: {}]   ;;  %s12440_s5 = inlined_call_operand.vmem [shape: bf16[32,24], index: 5, kind: input, shape index: {}]   ;;  %s12441_s6 = inlined_call_operand.vmem [shape: f32[1,24], index: 6, kind: input, shape index: {}]   ;;  %s12442_s7 = inlined_call_operand.hbm [shape: bf16[24,150], index: 7, kind: input, shape index: {}]   ;;  %s12443_s8 = inlined_call_operand.vmem [shape: f32[1,150], index: 8, kind: input, shape index: {}]   ;;  %s12444_s9 = inlined_call_operand.hbm [shape: bf16[94,100], index: 9, kind: input, shape index: {}]   ;;  %s12445_s10 = inlined_call_operand.hbm [shape: f32[1,100], index: 10, kind: input, shape index: {}]   ;;  %s12446_s11 = inlined_call_operand.hbm [shape: bf16[150,100], index: 11, kind: input, shape index: {}]   ;;  %s12447_s12 = inlined_call_operand.vmem [shape: bf16[100,100], index: 12, kind: input, shape index: {}]   ;;  %s12448_s13 = inlined_call_operand.hbm [shape: f32[1,100], index: 13, kind: input, shape index: {}]   ;;  %s12449_s14 = inlined_call_operand.vmem [shape: bf16[100,81], index: 14, kind: input, shape index: {}]   ;;  %s12450_s15 = inlined_call_operand.hbm [shape: f32[1,81], index: 15, kind: input, shape index: {}]   ;;  %s12451_s16 = inlined_call_operand.vmem [shape: bf16[81,2], index: 16, kind: input, shape index: {}]   ;;  %s12452_s17 = inlined_call_operand.hbm [shape: f32[1,2], index: 17, kind: input, shape index: {}]   ;;  %s12453_s18 = inlined_call_operand.vmem [shape: f32[384,2], index: 18, kind: output, shape index: {}]  }
   0x1   :  { %12644 = sst [smem:[#allocation91_spill]] %s12435_s0 }
   0x2   :  { %12645 = sst [smem:[#allocation92_spill]] %s12436_s1 }
   0x3   :  { %12646 = sst [smem:[#allocation93_spill]] %s12437_s2 }
   0x4   :  { %12647 = sst [smem:[#allocation94_spill]] %s12453_s18 }
   0x5   :  { %23 = vsyncpa [#allocation3], 0 }
   0x6   :  { %24 = vsyncpa [#allocation5], 0 }
   0x7   :  { %25 = vsyncpa [#allocation8], 0 }
   0x8   :  { %26 = vsyncpa [#allocation11], 0 }
   0x9   :  { %27 = vsyncpa [#allocation14], 0  ;;  %s9191_s27 = smov [#allocation4]   ;;  %s9005_s0 = scalar_lea.hbm %s12442_s7, 384 }
   0xa   :  { %s57_s28 = sshll.u32 %s9191_s27, 4  ;;  %p9006_p0 = scmp.ne.s32.totalorder %s12442_s7, %s9005_s0  ;;  %s58_s28 = int_to_ptr.vmem [resolvable:$true] %s57_s28 }
   0xb   :  { %p9009_p1 = scmp.lt.u32.totalorder %s9005_s0, %s12442_s7 }
   0xd   :  { %p9011_p2 = pnand %p9009_p1, %p9006_p0 }
   0xf   :  { %9014 = shalt.err (!%p9011_p2)
}
  0x10   :  { %s9015_s22 = scalar_lea.vmem %s58_s28, 384  ;;  %p9020_p4 = scmp.lt.s32.totalorder %s58_s28, %s58_s28 }
  0x11   :  { %p9016_p3 = scmp.ne.s32.totalorder %s58_s28, %s9015_s22  ;;  %p9021_p5 = scmp.lt.s32.totalorder %s9015_s22, %s9015_s22 }
  0x13   :  { %p9022_p6 = por %p9021_p5, %p9020_p4 }
  0x15   :  { %p9023_p7 = pnand %p9022_p6, %p9016_p3 }
  0x17   :  { %9026 = shalt.err (!%p9023_p7)
}
  0x18   :  { %s9192_s2 = smov 128   ;;  %s9193_s23 = smov 8  }
  0x19   :  { %63 = dma.hbm_to_vmem [thread:$0]  %s12442_s7, 384, %s58_s28, [#allocation5], %s9192_s2, %s9192_s2, %s9193_s23  }
  0x1a   :  { %s9194_s26 = smov [#allocation7]   ;;  %s9195_s29 = smov [#allocation10]  }
  0x1b   :  { %s84_s27 = sshll.u32 %s9194_s26, 4  ;;  %s108_s30 = sshll.u32 %s9195_s29, 4  ;;  %s85_s27 = int_to_ptr.vmem [resolvable:$true] %s84_s27  ;;  %s109_s30 = int_to_ptr.vmem [resolvable:$true] %s108_s30 }
  0x1c   :  { %s9027_s1 = scalar_lea.hbm %s12445_s10, 16 }
  0x1d   :  { %p9028_p8 = scmp.ne.s32.totalorder %s12445_s10, %s9027_s1  ;;  %p9031_p9 = scmp.lt.u32.totalorder %s9027_s1, %s12445_s10 }
  0x1f   :  { %p9033_p10 = pnand %p9031_p9, %p9028_p8 }
  0x21   :  { %9036 = shalt.err (!%p9033_p10)
}
  0x22   :  { %s9037_s7 = scalar_lea.vmem %s85_s27, 16  ;;  %s9041_s28 = scalar_lea.vmem %s85_s27, 32 }
  0x23   :  { %p9038_p11 = scmp.ne.s32.totalorder %s85_s27, %s9037_s7  ;;  %p9042_p12 = scmp.lt.s32.totalorder %s85_s27, %s85_s27 }
  0x24   :  { %p9043_p13 = scmp.lt.s32.totalorder %s9041_s28, %s9037_s7 }
  0x26   :  { %p9044_p0 = por %p9043_p13, %p9042_p12 }
  0x28   :  { %p9045_p1 = pnand %p9044_p0, %p9038_p11 }
  0x2a   :  { %9048 = shalt.err (!%p9045_p1)
}
  0x2b   :  { %87 = dma.hbm_to_vmem [thread:$0]  %s12445_s10, 16, %s85_s27, [#allocation8]  }
  0x2c   :  { %s9049_s18 = scalar_lea.hbm %s12448_s13, 16 }
  0x2d   :  { %p9050_p2 = scmp.ne.s32.totalorder %s12448_s13, %s9049_s18  ;;  %p9053_p3 = scmp.lt.u32.totalorder %s9049_s18, %s12448_s13 }
  0x2f   :  { %p9055_p4 = pnand %p9053_p3, %p9050_p2 }
  0x31   :  { %9058 = shalt.err (!%p9055_p4)
}
  0x32   :  { %s9059_s1 = scalar_lea.vmem %s109_s30, 16  ;;  %s9063_s20 = scalar_lea.vmem %s109_s30, 32 }
  0x33   :  { %p9060_p5 = scmp.ne.s32.totalorder %s109_s30, %s9059_s1  ;;  %p9064_p6 = scmp.lt.s32.totalorder %s109_s30, %s109_s30 }
  0x34   :  { %p9065_p7 = scmp.lt.s32.totalorder %s9063_s20, %s9059_s1 }
  0x36   :  { %p9066_p8 = por %p9065_p7, %p9064_p6 }
  0x38   :  { %p9067_p9 = pnand %p9066_p8, %p9060_p5 }
  0x3a   :  { %9070 = shalt.err (!%p9067_p9)
}
  0x3b   :  { %111 = dma.hbm_to_vmem [thread:$0]  %s12448_s13, 16, %s109_s30, [#allocation11]  }
  0x3c   :  { %s9196_s21 = smov [#allocation2]   ;;  %s9071_s2 = scalar_lea.hbm %s12438_s3, 128 }
  0x3d   :  { %s39_s22 = sshll.u32 %s9196_s21, 4  ;;  %p9072_p10 = scmp.ne.s32.totalorder %s12438_s3, %s9071_s2  ;;  %s40_s22 = int_to_ptr.vmem [resolvable:$true] %s39_s22 }
  0x3e   :  { %p9075_p11 = scmp.lt.u32.totalorder %s9071_s2, %s12438_s3 }
  0x40   :  { %p9077_p12 = pnand %p9075_p11, %p9072_p10 }
  0x42   :  { %9080 = shalt.err (!%p9077_p12)
}
  0x43   :  { %s9081_s26 = scalar_lea.vmem %s40_s22, 128  ;;  %p9086_p0 = scmp.lt.s32.totalorder %s40_s22, %s40_s22 }
  0x44   :  { %p9082_p13 = scmp.ne.s32.totalorder %s40_s22, %s9081_s26  ;;  %p9087_p1 = scmp.lt.s32.totalorder %s9081_s26, %s9081_s26 }
  0x46   :  { %p9088_p2 = por %p9087_p1, %p9086_p0 }
  0x48   :  { %p9089_p3 = pnand %p9088_p2, %p9082_p13 }
  0x4a   :  { %9092 = shalt.err (!%p9089_p3)
}
  0x4b   :  { %s9197_s13 = smov 64   ;;  %s9198_s30 = smov 4  }
  0x4c   :  { %45 = dma.hbm_to_vmem [thread:$0]  %s12438_s3, 128, %s40_s22, [#allocation3], %s9197_s13, %s9197_s13, %s9198_s30  }
  0x4d   :  { %s9199_s19 = smov [#allocation6]   ;;  %s9200_s20 = smov [#allocation9]  }
  0x4e   :  { %s71_s1 = sshll.u32 %s9199_s19, 4  ;;  %s93_s10 = sshll.u32 %s9200_s20, 4  ;;  %s72_s1 = int_to_ptr.vmem [resolvable:$true] %s71_s1  ;;  %s9352_s10 = int_to_ptr.vmem [resolvable:$true] %s93_s10 }
  0x4f   :  { %s9093_s7 = scalar_lea.hbm %s12444_s9, 768 }
  0x50   :  { %p9094_p4 = scmp.ne.s32.totalorder %s12444_s9, %s9093_s7  ;;  %p9097_p5 = scmp.lt.u32.totalorder %s9093_s7, %s12444_s9 }
  0x52   :  { %p9099_p6 = pnand %p9097_p5, %p9094_p4 }
  0x54   :  { %9102 = shalt.err (!%p9099_p6)
}
  0x55   :  { %s9103_s3 = scalar_lea.vmem %s72_s1, 768  ;;  %p9108_p8 = scmp.lt.s32.totalorder %s72_s1, %s72_s1 }
  0x56   :  { %p9104_p7 = scmp.ne.s32.totalorder %s72_s1, %s9103_s3  ;;  %p9109_p9 = scmp.lt.s32.totalorder %s9103_s3, %s9103_s3 }
  0x58   :  { %p9110_p10 = por %p9109_p9, %p9108_p8 }
  0x5a   :  { %p9111_p11 = pnand %p9110_p10, %p9104_p7 }
  0x5c   :  { %9114 = shalt.err (!%p9111_p11)
}
  0x5d   :  { %77 = dma.hbm_to_vmem [thread:$0]  %s12444_s9, 768, %s72_s1, [#allocation5], %s9197_s13, %s9197_s13, %s9198_s30  }
  0x5e   :  { %s9115_s29 = scalar_lea.hbm %s12446_s11, 1216 }
  0x5f   :  { %p9116_p12 = scmp.ne.s32.totalorder %s12446_s11, %s9115_s29  ;;  %p9119_p13 = scmp.lt.u32.totalorder %s9115_s29, %s12446_s11 }
  0x61   :  { %p9121_p0 = pnand %p9119_p13, %p9116_p12 }
  0x63   :  { %9124 = shalt.err (!%p9121_p0)
}
  0x64   :  { %s9125_s21 = scalar_lea.vmem %s9352_s10, 1216  ;;  %p9130_p2 = scmp.lt.s32.totalorder %s9352_s10, %s9352_s10 }
  0x65   :  { %p9126_p1 = scmp.ne.s32.totalorder %s9352_s10, %s9125_s21  ;;  %p9131_p3 = scmp.lt.s32.totalorder %s9125_s21, %s9125_s21 }
  0x67   :  { %p9132_p4 = por %p9131_p3, %p9130_p2 }
  0x69   :  { %p9133_p5 = pnand %p9132_p4, %p9126_p1 }
  0x6b   :  { %9136 = shalt.err (!%p9133_p5)
}
  0x6c   :  { %99 = dma.hbm_to_vmem [thread:$0]  %s12446_s11, 1216, %s9352_s10, [#allocation8], %s9197_s13, %s9197_s13, %s9198_s30  }
  0x6d   :  { %s9201_s7 = smov [#allocation12]   ;;  %s9202_s2 = smov [#allocation13]  }
  0x6e   :  { %s120_s28 = sshll.u32 %s9201_s7, 4  ;;  %s132_s23 = sshll.u32 %s9202_s2, 4  ;;  %s121_s28 = int_to_ptr.vmem [resolvable:$true] %s120_s28  ;;  %s133_s23 = int_to_ptr.vmem [resolvable:$true] %s132_s23 }
  0x6f   :  { %s9137_s22 = scalar_lea.hbm %s12450_s15, 16 }
  0x70   :  { %p9138_p6 = scmp.ne.s32.totalorder %s12450_s15, %s9137_s22  ;;  %p9141_p7 = scmp.lt.u32.totalorder %s9137_s22, %s12450_s15 }
  0x72   :  { %p9143_p8 = pnand %p9141_p7, %p9138_p6 }
  0x74   :  { %9146 = shalt.err (!%p9143_p8)
}
  0x75   :  { %s9147_s11 = scalar_lea.vmem %s121_s28, 16  ;;  %s9151_s13 = scalar_lea.vmem %s121_s28, 32 }
  0x76   :  { %p9148_p9 = scmp.ne.s32.totalorder %s121_s28, %s9147_s11  ;;  %p9152_p10 = scmp.lt.s32.totalorder %s121_s28, %s121_s28 }
  0x77   :  { %p9153_p11 = scmp.lt.s32.totalorder %s9151_s13, %s9147_s11 }
  0x79   :  { %p9154_p12 = por %p9153_p11, %p9152_p10 }
  0x7b   :  { %p9155_p13 = pnand %p9154_p12, %p9148_p9 }
  0x7d   :  { %9158 = shalt.err (!%p9155_p13)
}
  0x7e   :  { %123 = dma.hbm_to_vmem [thread:$0]  %s12450_s15, 16, %s121_s28, [#allocation11]  }
  0x7f   :  { %s9159_s20 = scalar_lea.hbm %s12452_s17, 16 }
  0x80   :  { %p9160_p0 = scmp.ne.s32.totalorder %s12452_s17, %s9159_s20  ;;  %p9163_p1 = scmp.lt.u32.totalorder %s9159_s20, %s12452_s17 }
  0x82   :  { %p9165_p2 = pnand %p9163_p1, %p9160_p0 }
  0x84   :  { %9168 = shalt.err (!%p9165_p2)
}
  0x85   :  { %s9169_s7 = scalar_lea.vmem %s133_s23, 16  ;;  %s9173_s2 = scalar_lea.vmem %s133_s23, 32 }
  0x86   :  { %p9170_p3 = scmp.ne.s32.totalorder %s133_s23, %s9169_s7  ;;  %p9174_p4 = scmp.lt.s32.totalorder %s133_s23, %s133_s23 }
  0x87   :  { %p9175_p5 = scmp.lt.s32.totalorder %s9173_s2, %s9169_s7 }
  0x89   :  { %p9176_p6 = por %p9175_p5, %p9174_p4 }
  0x8b   :  { %p9177_p7 = pnand %p9176_p6, %p9170_p3 }
  0x8d   :  { %9180 = shalt.err (!%p9177_p7)
}
  0x8e   :  { %135 = dma.hbm_to_vmem [thread:$0]  %s12452_s17, 16, %s133_s23, [#allocation14]  }
  0x8f   :  { %9181 = dma.done.wait [#allocation3], 128  }
  0x90   :  { %9182 = vsyncadd [#allocation3], 4294967168 }
  0x91   :  { %9183 = dma.done.wait [#allocation5], 1152  }
  0x92   :  { %9184 = vsyncadd [#allocation5], 4294966144 }
  0x93   :  { %9185 = dma.done.wait [#allocation8], 1232  }
  0x94   :  { %9186 = vsyncadd [#allocation8], 4294966064 }
  0x95   :  { %9187 = dma.done.wait [#allocation11], 32  }
  0x96   :  { %9188 = vsyncadd [#allocation11], 4294967264 }
  0x97   :  { %9189 = dma.done.wait [#allocation14], 16  }
  0x98   :  { %9190 = vsyncadd [#allocation14], 4294967280  ;;  %v12458_v0 = vmov 0   ;;  %s12648_s17 = sld [smem:[#allocation92_spill]]  ;;  %s12649_s18 = sld [smem:[#allocation91_spill]]  ;;  %vm1322_vm0 = vcmask 130048  }
  0x99   :  { %833 = vmatprep.subr.bf16.mxu0 %v12458_v0  ;;  %8454 = vset.pattern.permute.xlu1 %v12458_v0  ;;  %vm1708_vm1 = vcmask 261120   ;;  %vm3711_vm2 = vcmask 1046528   ;;  %vm3136_vm3 = vcmask 1043456   ;;  %vm3638_vm4 = vcmask 769024   ;;  %s9205_s1 = smov 1   ;;  %s12898_s2 = sld [smem:[#allocation94_spill]] }
  0x9a   :  { %8455 = vset.pattern.permute.xlu0 %v12458_v0  ;;  %vm3063_vm5 = vcmask 195584   ;;  %vm4300_vm6 = vcmask 1041408   ;;  %vm4659_vm7 = vcmask 1042432   ;;  %vm4227_vm8 = vcmask 818176  }
  0x9b   :  { %vm4586_vm9 = vcmask 179200   ;;  %vm5570_vm10 = vcmask 1040384   ;;  %vm5497_vm11 = vcmask 662528   ;;  %vm7193_vm12 = vcmask 15360  }
  0x9e   :  { %v8456_v1 = vld [vmem:[%s12648_s17] sm:$0xff]   ;;  %v8457_v2 = vld [vmem:[%s12648_s17 + $0x8] sm:$0xff]   ;;  %v8458_v3 = vld [vmem:[%s12648_s17 + $0x10] sm:$0xff]  }
  0x9f   :  { %834 = vmatpush1.bf16.msra.mxu0 %v8456_v1  ;;  %v8464_v4 = vld [vmem:[%s12648_s17 + $0x80] sm:$0xff]   ;;  %v8459_v5 = vld [vmem:[%s12648_s17 + $0x18] sm:$0xff]   ;;  %v8466_v6 = vld [vmem:[%s12648_s17 + $0x88] sm:$0xff]  }
  0xa0   :  { %835 = vmatprep.subr.bf16.mxu0 %v12458_v0  ;;  %7882 = vmatprep.subr.bf16.mxu1 %v8464_v4  ;;  %v8468_v7 = vld [vmem:[%s12648_s17 + $0x90] sm:$0xff]   ;;  %v8460_v8 = vld [vmem:[%s12648_s17 + $0x20] sm:$0xff]   ;;  %v8470_v9 = vld [vmem:[%s12648_s17 + $0x98] sm:$0xff]  }
  0xa1   :  { %7883 = vmatpush3.bf16.msra.mxu1 %v8464_v4  ;;  %v8461_v10 = vld [vmem:[%s12648_s17 + $0x28] sm:$0xff]   ;;  %v8472_v11 = vld [vmem:[%s12648_s17 + $0xa0] sm:$0xff]   ;;  %v8462_v12 = vld [vmem:[%s12648_s17 + $0x30] sm:$0xff]  }
  0xa2   :  { %7884 = vmatprep.subr.bf16.mxu1 %v8466_v6  ;;  %v8474_v13 = vld [vmem:[%s12648_s17 + $0xa8] sm:$0xff]   ;;  %v9467_v15 = vld [vmem:[%s12649_s18 + $0x4] ss:$12 sps:$4 sm:$0xff]   ;;  %v8463_v16 = vld [vmem:[%s12648_s17 + $0x38] sm:$0xff]  }
  0xa3   :  { %836 = vmatpush1.bf16.msra.mxu0 %v8457_v2  ;;  %v8480_v14 = vld [vmem:[%s12649_s18 + $0x8] ss:$12 sps:$4 sm:$0xff]   ;;  %865 = vmatprep.mubr.bf16.mxu0 %v9467_v15  ;;  %v8465_v18 = vld [vmem:[%s12648_s17 + $0x40] sm:$0xff]   ;;  %v8478_v19 = vld [vmem:[%s12648_s17 + $0xb8] sm:$0xff]  }
  0xa4   :  { %837 = vmatprep.subr.bf16.mxu0 %v12458_v0  ;;  %7898 = vmatprep.mubr.bf16.mxu1 %v8480_v14  ;;  %v8476_v17 = vld [vmem:[%s12648_s17 + $0xb0] sm:$0xff]   ;;  %v8467_v20 = vld [vmem:[%s12648_s17 + $0x48] sm:$0xff]   ;;  %v8491_v23 = vld [vmem:[%s12649_s18 + $0x38] ss:$12 sps:$4 sm:$0xff]  }
  0xa5   :  { %7885 = vmatpush3.bf16.msra.mxu1 %v8466_v6  ;;  %v8469_v21 = vld [vmem:[%s12648_s17 + $0x50] sm:$0xff]   ;;  %v8483_v22 = vld [vmem:[%s12649_s18 + $0x20] ss:$12 sps:$4 sm:$0xff]   ;;  %v8471_v24 = vld [vmem:[%s12648_s17 + $0x58] sm:$0xff]  }
  0xa6   :  { %7886 = vmatprep.subr.bf16.mxu1 %v8468_v7  ;;  %v8473_v25 = vld [vmem:[%s12648_s17 + $0x60] sm:$0xff]   ;;  %v8492_v26 = vld [vmem:[%s12649_s18 + $0x50] ss:$12 sps:$4 sm:$0xff]   ;;  %v8499_v27 = vld [vmem:[%s12649_s18 + $0x68] ss:$12 sps:$4 sm:$0xff]  }
  0xa7   :  { %838 = vmatpush1.bf16.msra.mxu0 %v8458_v3  ;;  %v8475_v28 = vld [vmem:[%s12648_s17 + $0x68] sm:$0xff]   ;;  %v8477_v29 = vld [vmem:[%s12648_s17 + $0x70] sm:$0xff]   ;;  %v8510_v31 = vld [vmem:[%s12649_s18 + $0x98] ss:$12 sps:$4 sm:$0xff]  }
  0xa8   :  { %839 = vmatprep.subr.bf16.mxu0 %v12458_v0  ;;  %v8502_v30 = vld [vmem:[%s12649_s18 + $0x80] ss:$12 sps:$4 sm:$0xff]   ;;  %v8479_v32 = vld [vmem:[%s12648_s17 + $0x78] sm:$0xff]   ;;  %v8521_v36 = vld [vmem:[%s12649_s18 + $0xc8] ss:$12 sps:$4 sm:$0xff]  }
  0xa9   :  { %7887 = vmatpush3.bf16.msra.mxu1 %v8468_v7  ;;  %v8484_v33 = vld [vmem:[%s12649_s18] ss:$12 sps:$4 sm:$0xff]   ;;  %v8485_v34 = vld [vmem:[%s12649_s18 + $0x1c] ss:$12 sps:$4 sm:$0xff]   ;;  %v8487_v37 = vld [vmem:[%s12649_s18 + $0x18] ss:$12 sps:$4 sm:$0xff]  }
  0xaa   :  { %7888 = vmatprep.subr.bf16.mxu1 %v8470_v9  ;;  %v8513_v35 = vld [vmem:[%s12649_s18 + $0xb0] ss:$12 sps:$4 sm:$0xff]   ;;  %v8488_v38 = vld [vmem:[%s12649_s18 + $0x34] ss:$12 sps:$4 sm:$0xff]   ;;  %v8529_v40 = vld [vmem:[%s12649_s18 + $0xf8] ss:$12 sps:$4 sm:$0xff]  }
  0xab   :  { %840 = vmatpush1.bf16.msra.mxu0 %v8459_v5  ;;  %v8524_v39 = vld [vmem:[%s12649_s18 + $0xe0] ss:$12 sps:$4 sm:$0xff]   ;;  %v8490_v41 = vld [vmem:[%s12649_s18 + $0x30] ss:$12 sps:$4 sm:$0xff]   ;;  %v8534_v44 = vld [vmem:[%s12649_s18 + $0x128] ss:$12 sps:$4 sm:$0xff]  }
  0xac   :  { %841 = vmatprep.subr.bf16.mxu0 %v12458_v0  ;;  %v8493_v42 = vld [vmem:[%s12649_s18 + $0x4c] ss:$12 sps:$4 sm:$0xff]   ;;  %v8530_v43 = vld [vmem:[%s12649_s18 + $0x110] ss:$12 sps:$4 sm:$0xff]   ;;  %v8495_v45 = vld [vmem:[%s12649_s18 + $0x48] ss:$12 sps:$4 sm:$0xff]  }
  0xad   :  { %7889 = vmatpush3.bf16.msra.mxu1 %v8470_v9  ;;  %v8496_v46 = vld [vmem:[%s12649_s18 + $0x64] ss:$12 sps:$4 sm:$0xff]   ;;  %v8535_v47 = vld [vmem:[%s12649_s18 + $0x140] ss:$12 sps:$4 sm:$0xff]   ;;  %v8500_v50 = vld [vmem:[%s12649_s18 + $0x7c] ss:$12 sps:$4 sm:$0xff]  }
  0xae   :  { %7890 = vmatprep.subr.bf16.mxu1 %v8472_v11  ;;  %v8539_v48 = vld [vmem:[%s12649_s18 + $0x158] ss:$12 sps:$4 sm:$0xff]   ;;  %v8498_v49 = vld [vmem:[%s12649_s18 + $0x60] ss:$12 sps:$4 sm:$0xff]   ;;  %v8540_v51 = vld [vmem:[%s12649_s18 + $0x170] ss:$12 sps:$4 sm:$0xff]  }
  0xaf   :  { %842 = vmatpush1.bf16.msra.mxu0 %v8460_v8  ;;  %v8550_v52 = vld [vmem:[%s12649_s18 + $0x188] ss:$12 sps:$4 sm:$0xff]   ;;  %v8503_v53 = vld [vmem:[%s12649_s18 + $0x78] ss:$12 sps:$4 sm:$0xff]   ;;  %v8551_v55 = vld [vmem:[%s12649_s18 + $0x1a0] ss:$12 sps:$4 sm:$0xff]  }
  0xb0   :  { %843 = vmatprep.subr.bf16.mxu0 %v12458_v0  ;;  %v8504_v54 = vld [vmem:[%s12649_s18 + $0x94] ss:$12 sps:$4 sm:$0xff]   ;;  %v8558_v56 = vld [vmem:[%s12649_s18 + $0x1b8] ss:$12 sps:$4 sm:$0xff]   ;;  %v8506_v57 = vld [vmem:[%s12649_s18 + $0x90] ss:$12 sps:$4 sm:$0xff]  }
  0xb1   :  { %7891 = vmatpush3.bf16.msra.mxu1 %v8472_v11  ;;  %v8507_v58 = vld [vmem:[%s12649_s18 + $0xac] ss:$12 sps:$4 sm:$0xff]   ;;  %v8559_v59 = vld [vmem:[%s12649_s18 + $0x1d0] ss:$12 sps:$4 sm:$0xff]   ;;  %v8566_v60 = vld [vmem:[%s12649_s18 + $0x1e8] ss:$12 sps:$4 sm:$0xff]  }
  0xb2   :  { %7892 = vmatprep.subr.bf16.mxu1 %v8474_v13  ;;  %v8509_v61 = vld [vmem:[%s12649_s18 + $0xa8] ss:$12 sps:$4 sm:$0xff]   ;;  %v8511_v62 = vld [vmem:[%s12649_s18 + $0xc4] ss:$12 sps:$4 sm:$0xff]   ;;  %v8567_v63 = vld [vmem:[%s12649_s18 + $0x200] ss:$12 sps:$4 sm:$0xff]  }
  0xb3   :  { %844 = vmatpush1.bf16.msra.mxu0 %v8461_v10  ;;  %v8571_v1 = vld [vmem:[%s12649_s18 + $0x218] ss:$12 sps:$4 sm:$0xff]   ;;  %v8514_v2 = vld [vmem:[%s12649_s18 + $0xc0] ss:$12 sps:$4 sm:$0xff]   ;;  %v8515_v3 = vld [vmem:[%s12649_s18 + $0xdc] ss:$12 sps:$4 sm:$0xff]  }
  0xb4   :  { %845 = vmatprep.subr.bf16.mxu0 %v12458_v0  ;;  %v8572_v4 = vld [vmem:[%s12649_s18 + $0x230] ss:$12 sps:$4 sm:$0xff]   ;;  %v8517_v5 = vld [vmem:[%s12649_s18 + $0xd8] ss:$12 sps:$4 sm:$0xff]   ;;  %v8518_v6 = vld [vmem:[%s12649_s18 + $0xf4] ss:$12 sps:$4 sm:$0xff]  }
  0xb5   :  { %7893 = vmatpush3.bf16.msra.mxu1 %v8474_v13  ;;  %v8520_v7 = vld [vmem:[%s12649_s18 + $0xf0] ss:$12 sps:$4 sm:$0xff]   ;;  %v8522_v8 = vld [vmem:[%s12649_s18 + $0x10c] ss:$12 sps:$4 sm:$0xff]   ;;  %v8525_v9 = vld [vmem:[%s12649_s18 + $0x108] ss:$12 sps:$4 sm:$0xff]  }
  0xb6   :  { %7894 = vmatprep.subr.bf16.mxu1 %v8476_v17  ;;  %v8526_v10 = vld [vmem:[%s12649_s18 + $0x124] ss:$12 sps:$4 sm:$0xff]   ;;  %v8528_v11 = vld [vmem:[%s12649_s18 + $0x120] ss:$12 sps:$4 sm:$0xff]   ;;  %v8531_v13 = vld [vmem:[%s12649_s18 + $0x13c] ss:$12 sps:$4 sm:$0xff]  }
  0xb7   :  { %846 = vmatpush1.bf16.msra.mxu0 %v8462_v12  ;;  %v8576_v12 = vld [vmem:[#allocation2] sm:$0xff]  }
  0xb8   :  { %847 = vmatprep.subr.bf16.mxu0 %v12458_v0  ;;  %v8533_v14 = vld [vmem:[%s12649_s18 + $0x138] ss:$12 sps:$4 sm:$0xff]  }
  0xb9   :  { %7895 = vmatpush3.bf16.msra.mxu1 %v8476_v17  ;;  %v8538_v17 = vld [vmem:[%s12649_s18 + $0x150] ss:$12 sps:$4 sm:$0xff]  }
  0xba   :  { %7896 = vmatprep.subr.bf16.mxu1 %v8478_v19 }
  0xbb   :  { %848 = vmatpush1.bf16.msra.mxu0 %v8463_v16  ;;  %v8536_v16 = vld [vmem:[%s12649_s18 + $0x154] ss:$12 sps:$4 sm:$0xff]  }
  0xbc   :  { %849 = vmatprep.subr.bf16.mxu0 %v12458_v0 }
  0xbd   :  { %7897 = vmatpush3.bf16.msra.mxu1 %v8478_v19  ;;  %v8543_v19 = vld [vmem:[%s12649_s18 + $0x168] ss:$12 sps:$4 sm:$0xff]  }
  0xbe   :  { %7946 = vmatprep.subr.bf16.mxu1 %v8576_v12 }
  0xbf   :  { %850 = vmatpush1.bf16.msra.mxu0 %v8465_v18  ;;  %v8541_v18 = vld [vmem:[%s12649_s18 + $0x16c] ss:$12 sps:$4 sm:$0xff]  }
  0xc0   :  { %851 = vmatprep.subr.bf16.mxu0 %v12458_v0  ;;  %7899 = vmatmul.mubr.bf16.vlgmr.msra.gmra.mrb[0].mxu1 %v8483_v22  ;;  %v8547_v22 = vld [vmem:[%s12649_s18 + $0x19c] ss:$12 sps:$4 sm:$0xff]  }
  0xc1   :  { %7902 = vmatprep.mubr.bf16.mxu1 %v8491_v23  ;;  %7947 = vmatpush3.bf16.msra.mxu1 %v8576_v12  ;;  %v8549_v23 = vld [vmem:[%s12649_s18 + $0x198] ss:$12 sps:$4 sm:$0xff]  }
  0xc3   :  { %852 = vmatpush1.bf16.msra.mxu0 %v8467_v20  ;;  %v8544_v20 = vld [vmem:[%s12649_s18 + $0x184] ss:$12 sps:$4 sm:$0xff]  }
  0xc4   :  { %853 = vmatprep.subr.bf16.mxu0 %v12458_v0 }
  0xc7   :  { %854 = vmatpush1.bf16.msra.mxu0 %v8469_v21  ;;  %v8546_v21 = vld [vmem:[%s12649_s18 + $0x180] ss:$12 sps:$4 sm:$0xff]  }
  0xc8   :  { %855 = vmatprep.subr.bf16.mxu0 %v12458_v0  ;;  %7903 = vmatmul.mubr.bf16.gmra.mrb[4].mxu1 %v8492_v26  ;;  %v8555_v26 = vld [vmem:[%s12649_s18 + $0x1cc] ss:$12 sps:$4 sm:$0xff]  }
  0xc9   :  { %7906 = vmatprep.mubr.bf16.mxu1 %v8499_v27  ;;  %v8557_v27 = vld [vmem:[%s12649_s18 + $0x1c8] ss:$12 sps:$4 sm:$0xff]  }
  0xcb   :  { %856 = vmatpush1.bf16.msra.mxu0 %v8471_v24  ;;  %v8552_v24 = vld [vmem:[%s12649_s18 + $0x1b4] ss:$12 sps:$4 sm:$0xff]  }
  0xcc   :  { %857 = vmatprep.subr.bf16.mxu0 %v12458_v0 }
  0xcf   :  { %858 = vmatpush1.bf16.msra.mxu0 %v8473_v25  ;;  %v8554_v25 = vld [vmem:[%s12649_s18 + $0x1b0] ss:$12 sps:$4 sm:$0xff]  }
  0xd0   :  { %859 = vmatprep.subr.bf16.mxu0 %v12458_v0  ;;  %7907 = vmatmul.mubr.bf16.gmra.mrb[8].mxu1 %v8502_v30  ;;  %v8563_v30 = vld [vmem:[%s12649_s18 + $0x1fc] ss:$12 sps:$4 sm:$0xff]  }
  0xd1   :  { %7910 = vmatprep.mubr.bf16.mxu1 %v8510_v31  ;;  %v8565_v31 = vld [vmem:[%s12649_s18 + $0x1f8] ss:$12 sps:$4 sm:$0xff]  }
  0xd3   :  { %860 = vmatpush1.bf16.msra.mxu0 %v8475_v28  ;;  %v8560_v28 = vld [vmem:[%s12649_s18 + $0x1e4] ss:$12 sps:$4 sm:$0xff]  }
  0xd4   :  { %861 = vmatprep.subr.bf16.mxu0 %v12458_v0 }
  0xd7   :  { %862 = vmatpush1.bf16.msra.mxu0 %v8477_v29  ;;  %v8562_v29 = vld [vmem:[%s12649_s18 + $0x1e0] ss:$12 sps:$4 sm:$0xff]  }
  0xd8   :  { %863 = vmatprep.subr.bf16.mxu0 %v12458_v0  ;;  %7911 = vmatmul.mubr.bf16.gmra.mrb[12].mxu1 %v8513_v35  ;;  %v8575_v35 = vld [vmem:[%s12649_s18 + $0x228] ss:$12 sps:$4 sm:$0xff]  }
  0xd9   :  { %7914 = vmatprep.mubr.bf16.mxu1 %v8521_v36 }
  0xdb   :  { %864 = vmatpush1.bf16.msra.mxu0 %v8479_v32  ;;  %v8568_v32 = vld [vmem:[%s12649_s18 + $0x214] ss:$12 sps:$4 sm:$0xff]  }
  0xdc   :  { %2037 = vmatprep.subr.bf16.mxu0 %v12458_v0 }
  0xde   :  { %866 = vmatmul.mubr.bf16.vlgmr.msra.gmra.mrb[0].mxu0 %v8484_v33  ;;  %v8570_v33 = vld [vmem:[%s12649_s18 + $0x210] ss:$12 sps:$4 sm:$0xff]  }
  0xdf   :  { %873 = vmatprep.mubr.bf16.mxu0 %v8485_v34  ;;  %v8573_v34 = vld [vmem:[%s12649_s18 + $0x22c] ss:$12 sps:$4 sm:$0xff]  }
  0xe0   :  { %7915 = vmatmul.mubr.bf16.gmra.mrb[16].mxu1 %v8524_v39 }
  0xe1   :  { %7918 = vmatprep.mubr.bf16.mxu1 %v8529_v40 }
  0xe6   :  { %874 = vmatmul.mubr.bf16.gmra.mrb[4].mxu0 %v8487_v37 }
  0xe7   :  { %881 = vmatprep.mubr.bf16.mxu0 %v8488_v38 }
  0xe8   :  { %7919 = vmatmul.mubr.bf16.gmra.mrb[20].mxu1 %v8530_v43 }
  0xe9   :  { %7922 = vmatprep.mubr.bf16.mxu1 %v8534_v44 }
  0xee   :  { %882 = vmatmul.mubr.bf16.gmra.mrb[8].mxu0 %v8490_v41 }
  0xef   :  { %889 = vmatprep.mubr.bf16.mxu0 %v8493_v42 }
  0xf0   :  { %7923 = vmatmul.mubr.bf16.gmra.mrb[24].mxu1 %v8535_v47 }
  0xf1   :  { %7926 = vmatprep.mubr.bf16.mxu1 %v8539_v48 }
  0xf6   :  { %890 = vmatmul.mubr.bf16.gmra.mrb[12].mxu0 %v8495_v45 }
  0xf7   :  { %897 = vmatprep.mubr.bf16.mxu0 %v8496_v46 }
  0xf8   :  { %7927 = vmatmul.mubr.bf16.gmra.mrb[28].mxu1 %v8540_v51 }
  0xf9   :  { %7930 = vmatprep.mubr.bf16.mxu1 %v8550_v52 }
  0xfe   :  { %898 = vmatmul.mubr.bf16.gmra.mrb[16].mxu0 %v8498_v49 }
  0xff   :  { %905 = vmatprep.mubr.bf16.mxu0 %v8500_v50 }
 0x100   :  { %7931 = vmatmul.mubr.bf16.gmra.mrb[32].mxu1 %v8551_v55 }
 0x101   :  { %7934 = vmatprep.mubr.bf16.mxu1 %v8558_v56 }
 0x106   :  { %906 = vmatmul.mubr.bf16.gmra.mrb[20].mxu0 %v8503_v53 }
 0x107   :  { %913 = vmatprep.mubr.bf16.mxu0 %v8504_v54 }
 0x108   :  { %7935 = vmatmul.mubr.bf16.gmra.mrb[36].mxu1 %v8559_v59 }
 0x109   :  { %7938 = vmatprep.mubr.bf16.mxu1 %v8566_v60 }
 0x10e   :  { %914 = vmatmul.mubr.bf16.gmra.mrb[24].mxu0 %v8506_v57 }
 0x10f   :  { %921 = vmatprep.mubr.bf16.mxu0 %v8507_v58 }
 0x110   :  { %7939 = vmatmul.mubr.bf16.gmra.mrb[40].mxu1 %v8567_v63 }
 0x111   :  { %7942 = vmatprep.mubr.bf16.mxu1 %v8571_v1 }
 0x116   :  { %922 = vmatmul.mubr.bf16.gmra.mrb[28].mxu0 %v8509_v61 }
 0x117   :  { %929 = vmatprep.mubr.bf16.mxu0 %v8511_v62 }
 0x118   :  { %7943 = vmatmul.mubr.bf16.gmra.mrb[44].mxu1 %v8572_v4 }
 0x11e   :  { %930 = vmatmul.mubr.bf16.gmra.mrb[32].mxu0 %v8514_v2 }
 0x11f   :  { %937 = vmatprep.mubr.bf16.mxu0 %v8515_v3 }
 0x126   :  { %938 = vmatmul.mubr.bf16.gmra.mrb[36].mxu0 %v8517_v5 }
 0x127   :  { %945 = vmatprep.mubr.bf16.mxu0 %v8518_v6 }
 0x12e   :  { %946 = vmatmul.mubr.bf16.gmra.mrb[40].mxu0 %v8520_v7 }
 0x12f   :  { %953 = vmatprep.mubr.bf16.mxu0 %v8522_v8 }
 0x136   :  { %954 = vmatmul.mubr.bf16.gmra.mrb[44].mxu0 %v8525_v9 }
 0x137   :  { %961 = vmatprep.mubr.bf16.mxu0 %v8526_v10 }
 0x13e   :  { %962 = vmatmul.mubr.bf16.gmra.mrb[48].mxu0 %v8528_v11 }
 0x13f   :  { %969 = vmatprep.mubr.bf16.mxu0 %v8531_v13 }
 0x146   :  { %970 = vmatmul.mubr.bf16.gmra.mrb[52].mxu0 %v8533_v14 }
 0x147   :  { %977 = vmatprep.mubr.bf16.mxu0 %v8536_v16 }
 0x14e   :  { %978 = vmatmul.mubr.bf16.gmra.mrb[56].mxu0 %v8538_v17 }
 0x14f   :  { %985 = vmatprep.mubr.bf16.mxu0 %v8541_v18 }
 0x156   :  { %986 = vmatmul.mubr.bf16.gmra.mrb[60].mxu0 %v8543_v19 }
 0x157   :  { %993 = vmatprep.mubr.bf16.mxu0 %v8544_v20 }
 0x15e   :  { %994 = vmatmul.mubr.bf16.gmra.mrb[64].mxu0 %v8546_v21 }
 0x15f   :  { %1001 = vmatprep.mubr.bf16.mxu0 %v8547_v22 }
 0x166   :  { %1002 = vmatmul.mubr.bf16.gmra.mrb[68].mxu0 %v8549_v23 }
 0x167   :  { %1009 = vmatprep.mubr.bf16.mxu0 %v8552_v24 }
 0x16e   :  { %1010 = vmatmul.mubr.bf16.gmra.mrb[72].mxu0 %v8554_v25 }
 0x16f   :  { %1017 = vmatprep.mubr.bf16.mxu0 %v8555_v26 }
 0x176   :  { %1018 = vmatmul.mubr.bf16.gmra.mrb[76].mxu0 %v8557_v27 }
 0x177   :  { %1025 = vmatprep.mubr.bf16.mxu0 %v8560_v28 }
 0x17e   :  { %1026 = vmatmul.mubr.bf16.gmra.mrb[80].mxu0 %v8562_v29 }
 0x17f   :  { %1033 = vmatprep.mubr.bf16.mxu0 %v8563_v30 }
 0x186   :  { %1034 = vmatmul.mubr.bf16.gmra.mrb[84].mxu0 %v8565_v31 }
 0x187   :  { %1041 = vmatprep.mubr.bf16.mxu0 %v8568_v32 }
 0x18e   :  { %1042 = vmatmul.mubr.bf16.gmra.mrb[88].mxu0 %v8570_v33 }
 0x18f   :  { %1049 = vmatprep.mubr.bf16.mxu0 %v8573_v34 }
 0x193   :  { %v7900_v36 = vpop.f32.mrb[0].mxu1 }
 0x194   :  { %v1092_v37 = vpop.f32.mrb[1].mxu1 }
 0x195   :  { %v7901_v38 = vpop.f32.mrb[2].mxu1 }
 0x196   :  { %1050 = vmatmul.mubr.bf16.gmra.mrb[92].mxu0 %v8575_v35  ;;  %v1095_v39 = vpop.f32.mrb[3].mxu1 }
 0x197   :  { %2069 = vmatprep.mubr.bf16.mxu0 %v9467_v15 }
 0x19b   :  { %v7904_v40 = vpop.f32.mrb[4].mxu1 }
 0x19c   :  { %v1108_v41 = vpop.f32.mrb[5].mxu1 }
 0x19d   :  { %v7905_v42 = vpop.f32.mrb[6].mxu1 }
 0x19e   :  { %v1111_v43 = vpop.f32.mrb[7].mxu1 }
 0x1a3   :  { %v9724_v44 = vpop.f32.mrb[8].mxu1 }
 0x1a4   :  { %v1124_v45 = vpop.f32.mrb[9].mxu1 }
 0x1a5   :  { %v9726_v46 = vpop.f32.mrb[10].mxu1 }
 0x1a6   :  { %v1127_v47 = vpop.f32.mrb[11].mxu1 }
 0x1ab   :  { %v9728_v51 = vpop.f32.mrb[12].mxu1 }
 0x1ac   :  { %v9730_v52 = vpop.f32.mrb[13].mxu1 }
 0x1ad   :  { %v9732_v55 = vpop.f32.mrb[14].mxu1 }
 0x1ae   :  { %v9734_v56 = vpop.f32.mrb[15].mxu1 }
 0x1b1   :  { %v867_v48 = vpop.f32.mrb[0].mxu0 }
 0x1b2   :  { %v1093_v49 = vadd.f32 %v1092_v37, %v867_v48  ;;  %v869_v50 = vpop.f32.mrb[1].mxu0 }
 0x1b3   :  { %v870_v15 = vpop.f32.mrb[2].mxu0  ;;  %v9737_v61 = vpop.f32.mrb[16].mxu1 }
 0x1b4   :  { %v1096_v53 = vadd.f32 %v1095_v39, %v870_v15  ;;  %v872_v54 = vpop.f32.mrb[3].mxu0  ;;  %v9739_v63 = vpop.f32.mrb[17].mxu1 }
 0x1b5   :  { %v9741_v3 = vpop.f32.mrb[18].mxu1 }
 0x1b6   :  { %v1283_v57 = vpack.c.bf16 %v1096_v53, %v1093_v49  ;;  %v9743_v4 = vpop.f32.mrb[19].mxu1 }
 0x1b8   :  { %7948 = vmatprep.mubr.msk.bf16.mxu1 %vm1322_vm0, %v1283_v57 }
 0x1b9   :  { %v875_v58 = vpop.f32.mrb[4].mxu0 }
 0x1ba   :  { %v1101_v59 = vadd.f32 %v7900_v36, %v875_v58  ;;  %v877_v60 = vpop.f32.mrb[5].mxu0 }
 0x1bb   :  { %v878_v62 = vpop.f32.mrb[6].mxu0  ;;  %v9746_v9 = vpop.f32.mrb[20].mxu1 }
 0x1bc   :  { %v1104_v1 = vadd.f32 %v7901_v38, %v878_v62  ;;  %v880_v2 = vpop.f32.mrb[7].mxu0  ;;  %v9748_v11 = vpop.f32.mrb[21].mxu1 }
 0x1bd   :  { %v9750_v14 = vpop.f32.mrb[22].mxu1 }
 0x1be   :  { %v1284_v5 = vpack.c.bf16 %v1104_v1, %v1101_v59  ;;  %v9752_v16 = vpop.f32.mrb[23].mxu1 }
 0x1c0   :  { %7949 = vmatmul.mubr.msk.bf16.vlgmr.msra.gmra.mrb[48].mxu1 %vm1322_vm0, %v1284_v5 }
 0x1c1   :  { %v883_v6 = vpop.f32.mrb[8].mxu0 }
 0x1c2   :  { %v885_v7 = vpop.f32.mrb[9].mxu0  ;;  %v1109_v8 = vadd.f32 %v1108_v41, %v883_v6 }
 0x1c3   :  { %v886_v10 = vpop.f32.mrb[10].mxu0  ;;  %v9755_v21 = vpop.f32.mrb[24].mxu1 }
 0x1c4   :  { %v888_v12 = vpop.f32.mrb[11].mxu0  ;;  %v1112_v13 = vadd.f32 %v1111_v43, %v886_v10  ;;  %v9757_v23 = vpop.f32.mrb[25].mxu1 }
 0x1c5   :  { %v9759_v26 = vpop.f32.mrb[26].mxu1 }
 0x1c6   :  { %v1285_v17 = vpack.c.bf16 %v1112_v13, %v1109_v8  ;;  %v9761_v27 = vpop.f32.mrb[27].mxu1 }
 0x1c8   :  { %7952 = vmatprep.mubr.msk.bf16.mxu1 %vm1322_vm0, %v1285_v17 }
 0x1c9   :  { %v891_v18 = vpop.f32.mrb[12].mxu0 }
 0x1ca   :  { %v1117_v19 = vadd.f32 %v7904_v40, %v891_v18  ;;  %v893_v20 = vpop.f32.mrb[13].mxu0 }
 0x1cb   :  { %v894_v22 = vpop.f32.mrb[14].mxu0  ;;  %v9764_v32 = vpop.f32.mrb[28].mxu1 }
 0x1cc   :  { %v1120_v24 = vadd.f32 %v7905_v42, %v894_v22  ;;  %v896_v25 = vpop.f32.mrb[15].mxu0  ;;  %v9766_v34 = vpop.f32.mrb[29].mxu1 }
 0x1cd   :  { %v9768_v37 = vpop.f32.mrb[30].mxu1 }
 0x1ce   :  { %v1286_v28 = vpack.c.bf16 %v1120_v24, %v1117_v19  ;;  %v9770_v38 = vpop.f32.mrb[31].mxu1 }
 0x1d0   :  { %7953 = vmatmul.mubr.msk.bf16.gmra.mrb[52].mxu1 %vm1322_vm0, %v1286_v28 }
 0x1d1   :  { %v899_v29 = vpop.f32.mrb[16].mxu0 }
 0x1d2   :  { %v901_v30 = vpop.f32.mrb[17].mxu0  ;;  %v1125_v31 = vadd.f32 %v1124_v45, %v899_v29 }
 0x1d3   :  { %v902_v33 = vpop.f32.mrb[18].mxu0  ;;  %v9774_v43 = vpop.f32.mrb[32].mxu1 }
 0x1d4   :  { %v904_v35 = vpop.f32.mrb[19].mxu0  ;;  %v1128_v36 = vadd.f32 %v1127_v47, %v902_v33  ;;  %v9776_v48 = vpop.f32.mrb[33].mxu1 }
 0x1d5   :  { %v9779_v47 = vpop.f32.mrb[34].mxu1 }
 0x1d6   :  { %v1287_v39 = vpack.c.bf16 %v1128_v36, %v1125_v31  ;;  %v9781_v15 = vpop.f32.mrb[35].mxu1 }
 0x1d8   :  { %7956 = vmatprep.mubr.msk.bf16.mxu1 %vm1322_vm0, %v1287_v39 }
 0x1d9   :  { %v907_v40 = vpop.f32.mrb[20].mxu0 }
 0x1da   :  { %v1133_v41 = vadd.f32 %v9724_v44, %v907_v40  ;;  %v909_v42 = vpop.f32.mrb[21].mxu0 }
 0x1db   :  { %v910_v45 = vpop.f32.mrb[22].mxu0  ;;  %v9785_v58 = vpop.f32.mrb[36].mxu1 }
 0x1dc   :  { %v1136_v49 = vadd.f32 %v9726_v46, %v910_v45  ;;  %v912_v50 = vpop.f32.mrb[23].mxu0  ;;  %v9787_v60 = vpop.f32.mrb[37].mxu1 }
 0x1dd   :  { %v9790_v1 = vpop.f32.mrb[38].mxu1 }
 0x1de   :  { %v1288_v53 = vpack.c.bf16 %v1136_v49, %v1133_v41  ;;  %v9792_v2 = vpop.f32.mrb[39].mxu1 }
 0x1e0   :  { %7957 = vmatmul.mubr.msk.bf16.gmra.mrb[56].mxu1 %vm1322_vm0, %v1288_v53 }
 0x1e1   :  { %v915_v54 = vpop.f32.mrb[24].mxu0 }
 0x1e2   :  { %v917_v57 = vpop.f32.mrb[25].mxu0  ;;  %v1141_v44 = vadd.f32 %v9730_v52, %v915_v54 }
 0x1e3   :  { %v918_v59 = vpop.f32.mrb[26].mxu0  ;;  %v9796_v52 = vpop.f32.mrb[40].mxu1 }
 0x1e4   :  { %v920_v62 = vpop.f32.mrb[27].mxu0  ;;  %v1144_v46 = vadd.f32 %v9734_v56, %v918_v59  ;;  %v9798_v12 = vpop.f32.mrb[41].mxu1 }
 0x1e5   :  { %v9801_v56 = vpop.f32.mrb[42].mxu1 }
 0x1e6   :  { %v1289_v5 = vpack.c.bf16 %v1144_v46, %v1141_v44  ;;  %v9803_v18 = vpop.f32.mrb[43].mxu1 }
 0x1e8   :  { %7960 = vmatprep.mubr.msk.bf16.mxu1 %vm1322_vm0, %v1289_v5 }
 0x1e9   :  { %v923_v6 = vpop.f32.mrb[28].mxu0 }
 0x1ea   :  { %v1149_v7 = vadd.f32 %v9728_v51, %v923_v6  ;;  %v925_v8 = vpop.f32.mrb[29].mxu0 }
 0x1eb   :  { %v926_v10 = vpop.f32.mrb[30].mxu0  ;;  %v9807_v24 = vpop.f32.mrb[44].mxu1 }
 0x1ec   :  { %v1152_v13 = vadd.f32 %v9732_v55, %v926_v10  ;;  %v928_v17 = vpop.f32.mrb[31].mxu0  ;;  %v9809_v28 = vpop.f32.mrb[45].mxu1 }
 0x1ed   :  { %v9812_v30 = vpop.f32.mrb[46].mxu1 }
 0x1ee   :  { %v1290_v19 = vpack.c.bf16 %v1152_v13, %v1149_v7  ;;  %v9814_v31 = vpop.f32.mrb[47].mxu1 }
 0x1f0   :  { %7961 = vmatmul.mubr.msk.bf16.gmra.mrb[60].mxu1 %vm1322_vm0, %v1290_v19 }
 0x1f1   :  { %v931_v20 = vpop.f32.mrb[32].mxu0 }
 0x1f2   :  { %v933_v22 = vpop.f32.mrb[33].mxu0  ;;  %v1157_v51 = vadd.f32 %v9739_v63, %v931_v20 }
 0x1f3   :  { %v934_v25 = vpop.f32.mrb[34].mxu0 }
 0x1f4   :  { %v936_v29 = vpop.f32.mrb[35].mxu0  ;;  %v1160_v55 = vadd.f32 %v9743_v4, %v934_v25 }
 0x1f6   :  { %v1291_v33 = vpack.c.bf16 %v1160_v55, %v1157_v51 }
 0x1f8   :  { %7964 = vmatprep.mubr.msk.bf16.mxu1 %vm1322_vm0, %v1291_v33 }
 0x1f9   :  { %v939_v35 = vpop.f32.mrb[36].mxu0 }
 0x1fa   :  { %v1165_v36 = vadd.f32 %v9737_v61, %v939_v35  ;;  %v941_v39 = vpop.f32.mrb[37].mxu0 }
 0x1fb   :  { %v942_v63 = vpop.f32.mrb[38].mxu0 }
 0x1fc   :  { %v1168_v40 = vadd.f32 %v9741_v3, %v942_v63  ;;  %v944_v41 = vpop.f32.mrb[39].mxu0 }
 0x1fe   :  { %v1292_v42 = vpack.c.bf16 %v1168_v40, %v1165_v36 }
 0x200   :  { %7965 = vmatmul.mubr.msk.bf16.gmra.mrb[64].mxu1 %vm1322_vm0, %v1292_v42 }
 0x201   :  { %v947_v45 = vpop.f32.mrb[40].mxu0 }
 0x202   :  { %v949_v4 = vpop.f32.mrb[41].mxu0  ;;  %v1173_v49 = vadd.f32 %v9748_v11, %v947_v45 }
 0x203   :  { %v950_v50 = vpop.f32.mrb[42].mxu0 }
 0x204   :  { %v952_v53 = vpop.f32.mrb[43].mxu0  ;;  %v1176_v54 = vadd.f32 %v9752_v16, %v950_v50 }
 0x206   :  { %v1293_v57 = vpack.c.bf16 %v1176_v54, %v1173_v49 }
 0x208   :  { %7968 = vmatprep.mubr.msk.bf16.mxu1 %vm1322_vm0, %v1293_v57 }
 0x209   :  { %v955_v61 = vpop.f32.mrb[44].mxu0 }
 0x20a   :  { %v1181_v44 = vadd.f32 %v9746_v9, %v955_v61  ;;  %v957_v59 = vpop.f32.mrb[45].mxu0  ;;  %v8577_v9 = vld [vmem:[%s12440_s5] sm:$0xff]  }
 0x20b   :  { %v958_v3 = vpop.f32.mrb[46].mxu0  ;;  %7996 = vmatprep.subr.bf16.mxu1 %v8577_v9 }
 0x20c   :  { %v1184_v62 = vadd.f32 %v9750_v14, %v958_v3  ;;  %v960_v46 = vpop.f32.mrb[47].mxu0  ;;  %7997 = vmatpush3.bf16.msra.mxu1 %v8577_v9  ;;  %v8578_v14 = vld [vmem:[%s12440_s5 + $0x8] sm:$0xff]   ;;  %s12778_s5 = sld [smem:[#allocation93_spill]] }
 0x20d   :  { %7998 = vmatprep.subr.bf16.mxu1 %v8578_v14 }
 0x20e   :  { %v1294_v5 = vpack.c.bf16 %v1184_v62, %v1181_v44 }
 0x210   :  { %7969 = vmatmul.mubr.msk.bf16.gmra.mrb[68].mxu1 %vm1322_vm0, %v1294_v5 }
 0x211   :  { %v963_v6 = vpop.f32.mrb[48].mxu0  ;;  %7999 = vmatpush3.bf16.msra.mxu1 %v8578_v14 }
 0x212   :  { %v965_v11 = vpop.f32.mrb[49].mxu0  ;;  %v1189_v7 = vadd.f32 %v9757_v23, %v963_v6 }
 0x213   :  { %v966_v8 = vpop.f32.mrb[50].mxu0 }
 0x214   :  { %v968_v16 = vpop.f32.mrb[51].mxu0  ;;  %v1192_v10 = vadd.f32 %v9761_v27, %v966_v8 }
 0x216   :  { %v1295_v13 = vpack.c.bf16 %v1192_v10, %v1189_v7 }
 0x218   :  { %7972 = vmatprep.mubr.msk.bf16.mxu1 %vm1322_vm0, %v1295_v13 }
 0x219   :  { %v971_v17 = vpop.f32.mrb[52].mxu0 }
 0x21a   :  { %v1197_v23 = vadd.f32 %v9755_v21, %v971_v17  ;;  %v973_v19 = vpop.f32.mrb[53].mxu0 }
 0x21b   :  { %v974_v20 = vpop.f32.mrb[54].mxu0 }
 0x21c   :  { %v1200_v27 = vadd.f32 %v9759_v26, %v974_v20  ;;  %v976_v22 = vpop.f32.mrb[55].mxu0 }
 0x21e   :  { %v1296_v51 = vpack.c.bf16 %v1200_v27, %v1197_v23 }
 0x220   :  { %7973 = vmatmul.mubr.msk.bf16.gmra.mrb[72].mxu1 %vm1322_vm0, %v1296_v51 }
 0x221   :  { %v979_v25 = vpop.f32.mrb[56].mxu0 }
 0x222   :  { %v981_v29 = vpop.f32.mrb[57].mxu0  ;;  %v1205_v55 = vadd.f32 %v9766_v34, %v979_v25 }
 0x223   :  { %v982_v33 = vpop.f32.mrb[58].mxu0 }
 0x224   :  { %v984_v35 = vpop.f32.mrb[59].mxu0  ;;  %v1208_v36 = vadd.f32 %v9770_v38, %v982_v33 }
 0x226   :  { %v1297_v39 = vpack.c.bf16 %v1208_v36, %v1205_v55 }
 0x228   :  { %7976 = vmatprep.mubr.msk.bf16.mxu1 %vm1322_vm0, %v1297_v39 }
 0x229   :  { %v987_v21 = vpop.f32.mrb[60].mxu0 }
 0x22a   :  { %v1213_v63 = vadd.f32 %v9764_v32, %v987_v21  ;;  %v989_v40 = vpop.f32.mrb[61].mxu0 }
 0x22b   :  { %v990_v26 = vpop.f32.mrb[62].mxu0 }
 0x22c   :  { %v1216_v41 = vadd.f32 %v9768_v37, %v990_v26  ;;  %v992_v42 = vpop.f32.mrb[63].mxu0 }
 0x22e   :  { %v1298_v45 = vpack.c.bf16 %v1216_v41, %v1213_v63 }
 0x230   :  { %7977 = vmatmul.mubr.msk.bf16.gmra.mrb[76].mxu1 %vm1322_vm0, %v1298_v45 }
 0x231   :  { %v995_v4 = vpop.f32.mrb[64].mxu0 }
 0x232   :  { %v997_v34 = vpop.f32.mrb[65].mxu0  ;;  %v1221_v49 = vadd.f32 %v9776_v48, %v995_v4 }
 0x233   :  { %v998_v50 = vpop.f32.mrb[66].mxu0 }
 0x234   :  { %v1000_v38 = vpop.f32.mrb[67].mxu0  ;;  %v1224_v53 = vadd.f32 %v9781_v15, %v998_v50 }
 0x236   :  { %v1299_v54 = vpack.c.bf16 %v1224_v53, %v1221_v49 }
 0x238   :  { %7980 = vmatprep.mubr.msk.bf16.mxu1 %vm1322_vm0, %v1299_v54 }
 0x239   :  { %v1003_v32 = vpop.f32.mrb[68].mxu0 }
 0x23a   :  { %v1229_v57 = vadd.f32 %v9774_v43, %v1003_v32  ;;  %v1005_v61 = vpop.f32.mrb[69].mxu0 }
 0x23b   :  { %v1006_v37 = vpop.f32.mrb[70].mxu0 }
 0x23c   :  { %v1232_v44 = vadd.f32 %v9779_v47, %v1006_v37  ;;  %v1008_v59 = vpop.f32.mrb[71].mxu0 }
 0x23e   :  { %v1300_v3 = vpack.c.bf16 %v1232_v44, %v1229_v57 }
 0x240   :  { %7981 = vmatmul.mubr.msk.bf16.gmra.mrb[80].mxu1 %vm1322_vm0, %v1300_v3 }
 0x241   :  { %v1011_v62 = vpop.f32.mrb[72].mxu0 }
 0x242   :  { %v1013_v48 = vpop.f32.mrb[73].mxu0  ;;  %v1237_v46 = vadd.f32 %v9787_v60, %v1011_v62 }
 0x243   :  { %v1014_v5 = vpop.f32.mrb[74].mxu0 }
 0x244   :  { %v1016_v15 = vpop.f32.mrb[75].mxu0  ;;  %v1240_v6 = vadd.f32 %v9792_v2, %v1014_v5 }
 0x246   :  { %v1301_v11 = vpack.c.bf16 %v1240_v6, %v1237_v46 }
 0x248   :  { %7984 = vmatprep.mubr.msk.bf16.mxu1 %vm1322_vm0, %v1301_v11 }
 0x249   :  { %v1019_v43 = vpop.f32.mrb[76].mxu0 }
 0x24a   :  { %v1245_v7 = vadd.f32 %v9785_v58, %v1019_v43  ;;  %v1021_v8 = vpop.f32.mrb[77].mxu0 }
 0x24b   :  { %v1022_v47 = vpop.f32.mrb[78].mxu0 }
 0x24c   :  { %v1248_v16 = vadd.f32 %v9790_v1, %v1022_v47  ;;  %v1024_v10 = vpop.f32.mrb[79].mxu0 }
 0x24e   :  { %v1302_v9 = vpack.c.bf16 %v1248_v16, %v1245_v7 }
 0x250   :  { %7985 = vmatmul.mubr.msk.bf16.gmra.mrb[84].mxu1 %vm1322_vm0, %v1302_v9 }
 0x251   :  { %v1027_v13 = vpop.f32.mrb[80].mxu0 }
 0x252   :  { %v1029_v60 = vpop.f32.mrb[81].mxu0  ;;  %v1253_v14 = vadd.f32 %v9798_v12, %v1027_v13 }
 0x253   :  { %v1030_v17 = vpop.f32.mrb[82].mxu0 }
 0x254   :  { %v1032_v2 = vpop.f32.mrb[83].mxu0  ;;  %v1256_v23 = vadd.f32 %v9803_v18, %v1030_v17 }
 0x256   :  { %v1303_v19 = vpack.c.bf16 %v1256_v23, %v1253_v14 }
 0x258   :  { %7988 = vmatprep.mubr.msk.bf16.mxu1 %vm1322_vm0, %v1303_v19 }
 0x259   :  { %v1035_v58 = vpop.f32.mrb[84].mxu0 }
 0x25a   :  { %v1261_v20 = vadd.f32 %v9796_v52, %v1035_v58  ;;  %v1037_v27 = vpop.f32.mrb[85].mxu0 }
 0x25b   :  { %v1038_v1 = vpop.f32.mrb[86].mxu0 }
 0x25c   :  { %v1264_v22 = vadd.f32 %v9801_v56, %v1038_v1  ;;  %v1040_v51 = vpop.f32.mrb[87].mxu0 }
 0x25e   :  { %v1304_v25 = vpack.c.bf16 %v1264_v22, %v1261_v20 }
 0x260   :  { %7989 = vmatmul.mubr.msk.bf16.gmra.mrb[88].mxu1 %vm1322_vm0, %v1304_v25 }
 0x261   :  { %v1043_v29 = vpop.f32.mrb[88].mxu0 }
 0x262   :  { %v1045_v12 = vpop.f32.mrb[89].mxu0  ;;  %v1269_v55 = vadd.f32 %v9809_v28, %v1043_v29  ;;  %v9871_v28 = vld [vmem:[%s12439_s4] ss:$0 sm:$0xff] }
 0x263   :  { %v1046_v33 = vpop.f32.mrb[90].mxu0 }
 0x264   :  { %v1048_v18 = vpop.f32.mrb[91].mxu0  ;;  %v1272_v35 = vadd.f32 %v9814_v31, %v1046_v33 }
 0x266   :  { %v1305_v36 = vpack.c.bf16 %v1272_v35, %v1269_v55 }
 0x268   :  { %7992 = vmatprep.mubr.msk.bf16.mxu1 %vm1322_vm0, %v1305_v36 }
 0x269   :  { %v1051_v52 = vpop.f32.mrb[92].mxu0 }
 0x26a   :  { %v1277_v39 = vadd.f32 %v9807_v24, %v1051_v52  ;;  %v1053_v21 = vpop.f32.mrb[93].mxu0 }
 0x26b   :  { %v1054_v56 = vpop.f32.mrb[94].mxu0 }
 0x26c   :  { %v1280_v63 = vadd.f32 %v9812_v30, %v1054_v56  ;;  %v1056_v40 = vpop.f32.mrb[95].mxu0 }
 0x26e   :  { %v1306_v26 = vpack.c.bf16 %v1280_v63, %v1277_v39 }
 0x270   :  { %7993 = vmatmul.mubr.msk.bf16.gmra.mrb[92].mxu1 %vm1322_vm0, %v1306_v26 }
 0x293   :  { %v7950_v31 = vpop.f32.mrb[48].mxu1 }
 0x294   :  { %v1438_v41 = vadd.f32 %v7950_v31, %v9871_v28  ;;  %v1429_v42 = vpop.f32.mrb[49].mxu1 }
 0x295   :  { %v1430_v45 = vadd.f32 %v9871_v28, %v1429_v42  ;;  %v7951_v24 = vpop.f32.mrb[50].mxu1 }
 0x296   :  { %v1441_v4 = vadd.f32 %v7951_v24, %v9871_v28  ;;  %v1432_v34 = vpop.f32.mrb[51].mxu1  ;;  %v1622_v49 = vmax.f32 %v1438_v41, 0.0 }
 0x297   :  { %v1433_v30 = vadd.f32 %v9871_v28, %v1432_v34  ;;  %v1620_v38 = vmax.f32 %v1430_v45, 0.0 }
 0x298   :  { %v1623_v50 = vmax.f32 %v1441_v4, 0.0 }
 0x299   :  { %v1621_v53 = vmax.f32 %v1433_v30, 0.0 }
 0x29a   :  { %v1669_v54 = vpack.c.bf16 %v1623_v50, %v1622_v49 }
 0x29b   :  { %v1668_v32 = vpack.c.bf16 %v1621_v53, %v1620_v38 }
 0x29d   :  { %8000 = vmatprep.mubr.msk.bf16.mxu1 %vm1708_vm1, %v1668_v32 }
 0x29e   :  { %8001 = vmatmul.mubr.msk.bf16.vlgmr.msra.gmra.mrb[96].mxu1 %vm1708_vm1, %v1669_v54 }
 0x2a3   :  { %v7954_v57 = vpop.f32.mrb[52].mxu1 }
 0x2a4   :  { %v1454_v61 = vadd.f32 %v7954_v57, %v9871_v28  ;;  %v1445_v37 = vpop.f32.mrb[53].mxu1 }
 0x2a5   :  { %v1446_v44 = vadd.f32 %v9871_v28, %v1445_v37  ;;  %v7955_v59 = vpop.f32.mrb[54].mxu1 }
 0x2a6   :  { %v1457_v3 = vadd.f32 %v7955_v59, %v9871_v28  ;;  %v1448_v62 = vpop.f32.mrb[55].mxu1  ;;  %v1626_v46 = vmax.f32 %v1454_v61, 0.0 }
 0x2a7   :  { %v1449_v48 = vadd.f32 %v9871_v28, %v1448_v62  ;;  %v1624_v15 = vmax.f32 %v1446_v44, 0.0 }
 0x2a8   :  { %v1627_v5 = vmax.f32 %v1457_v3, 0.0 }
 0x2a9   :  { %v1625_v6 = vmax.f32 %v1449_v48, 0.0 }
 0x2aa   :  { %v1671_v11 = vpack.c.bf16 %v1627_v5, %v1626_v46 }
 0x2ab   :  { %v1670_v43 = vpack.c.bf16 %v1625_v6, %v1624_v15 }
 0x2ad   :  { %8004 = vmatprep.mubr.msk.bf16.mxu1 %vm1708_vm1, %v1670_v43 }
 0x2ae   :  { %8005 = vmatmul.mubr.msk.bf16.gmra.mrb[100].mxu1 %vm1708_vm1, %v1671_v11 }
 0x2b3   :  { %v7958_v7 = vpop.f32.mrb[56].mxu1 }
 0x2b4   :  { %v1470_v8 = vadd.f32 %v7958_v7, %v9871_v28  ;;  %v1461_v47 = vpop.f32.mrb[57].mxu1 }
 0x2b5   :  { %v1462_v16 = vadd.f32 %v9871_v28, %v1461_v47  ;;  %v7959_v10 = vpop.f32.mrb[58].mxu1 }
 0x2b6   :  { %v1473_v9 = vadd.f32 %v7959_v10, %v9871_v28  ;;  %v1464_v13 = vpop.f32.mrb[59].mxu1  ;;  %v1630_v14 = vmax.f32 %v1470_v8, 0.0 }
 0x2b7   :  { %v1465_v60 = vadd.f32 %v9871_v28, %v1464_v13  ;;  %v1628_v2 = vmax.f32 %v1462_v16, 0.0 }
 0x2b8   :  { %v1631_v17 = vmax.f32 %v1473_v9, 0.0 }
 0x2b9   :  { %v1629_v23 = vmax.f32 %v1465_v60, 0.0 }
 0x2ba   :  { %v1673_v19 = vpack.c.bf16 %v1631_v17, %v1630_v14 }
 0x2bb   :  { %v1672_v58 = vpack.c.bf16 %v1629_v23, %v1628_v2 }
 0x2bd   :  { %8008 = vmatprep.mubr.msk.bf16.mxu1 %vm1708_vm1, %v1672_v58 }
 0x2be   :  { %8009 = vmatmul.mubr.msk.bf16.gmra.mrb[104].mxu1 %vm1708_vm1, %v1673_v19 }
 0x2c3   :  { %v7962_v20 = vpop.f32.mrb[60].mxu1 }
 0x2c4   :  { %v1486_v27 = vadd.f32 %v7962_v20, %v9871_v28  ;;  %v1477_v1 = vpop.f32.mrb[61].mxu1 }
 0x2c5   :  { %v1478_v22 = vadd.f32 %v9871_v28, %v1477_v1  ;;  %v7963_v51 = vpop.f32.mrb[62].mxu1 }
 0x2c6   :  { %v1489_v25 = vadd.f32 %v7963_v51, %v9871_v28  ;;  %v1480_v29 = vpop.f32.mrb[63].mxu1  ;;  %v1634_v55 = vmax.f32 %v1486_v27, 0.0 }
 0x2c7   :  { %v1481_v12 = vadd.f32 %v9871_v28, %v1480_v29  ;;  %v1632_v18 = vmax.f32 %v1478_v22, 0.0 }
 0x2c8   :  { %v1635_v33 = vmax.f32 %v1489_v25, 0.0 }
 0x2c9   :  { %v1633_v35 = vmax.f32 %v1481_v12, 0.0 }
 0x2ca   :  { %v1675_v36 = vpack.c.bf16 %v1635_v33, %v1634_v55 }
 0x2cb   :  { %v1674_v52 = vpack.c.bf16 %v1633_v35, %v1632_v18 }
 0x2cd   :  { %8012 = vmatprep.mubr.msk.bf16.mxu1 %vm1708_vm1, %v1674_v52 }
 0x2ce   :  { %8013 = vmatmul.mubr.msk.bf16.gmra.mrb[108].mxu1 %vm1708_vm1, %v1675_v36 }
 0x2d3   :  { %v7966_v39 = vpop.f32.mrb[64].mxu1 }
 0x2d4   :  { %v1502_v21 = vadd.f32 %v7966_v39, %v9871_v28  ;;  %v1493_v56 = vpop.f32.mrb[65].mxu1 }
 0x2d5   :  { %v1494_v63 = vadd.f32 %v9871_v28, %v1493_v56  ;;  %v7967_v40 = vpop.f32.mrb[66].mxu1 }
 0x2d6   :  { %v1505_v26 = vadd.f32 %v7967_v40, %v9871_v28  ;;  %v1496_v31 = vpop.f32.mrb[67].mxu1  ;;  %v1638_v42 = vmax.f32 %v1502_v21, 0.0 }
 0x2d7   :  { %v1497_v41 = vadd.f32 %v9871_v28, %v1496_v31  ;;  %v1636_v24 = vmax.f32 %v1494_v63, 0.0 }
 0x2d8   :  { %v1639_v45 = vmax.f32 %v1505_v26, 0.0 }
 0x2d9   :  { %v1637_v4 = vmax.f32 %v1497_v41, 0.0 }
 0x2da   :  { %v1677_v34 = vpack.c.bf16 %v1639_v45, %v1638_v42 }
 0x2db   :  { %v1676_v30 = vpack.c.bf16 %v1637_v4, %v1636_v24 }
 0x2dd   :  { %8016 = vmatprep.mubr.msk.bf16.mxu1 %vm1708_vm1, %v1676_v30 }
 0x2de   :  { %8017 = vmatmul.mubr.msk.bf16.gmra.mrb[112].mxu1 %vm1708_vm1, %v1677_v34 }
 0x2e3   :  { %v7970_v49 = vpop.f32.mrb[68].mxu1 }
 0x2e4   :  { %v1518_v50 = vadd.f32 %v7970_v49, %v9871_v28  ;;  %v1509_v38 = vpop.f32.mrb[69].mxu1 }
 0x2e5   :  { %v1510_v53 = vadd.f32 %v9871_v28, %v1509_v38  ;;  %v7971_v54 = vpop.f32.mrb[70].mxu1 }
 0x2e6   :  { %v1521_v32 = vadd.f32 %v7971_v54, %v9871_v28  ;;  %v1512_v57 = vpop.f32.mrb[71].mxu1  ;;  %v1642_v37 = vmax.f32 %v1518_v50, 0.0 }
 0x2e7   :  { %v1513_v61 = vadd.f32 %v9871_v28, %v1512_v57  ;;  %v1640_v59 = vmax.f32 %v1510_v53, 0.0 }
 0x2e8   :  { %v1643_v44 = vmax.f32 %v1521_v32, 0.0 }
 0x2e9   :  { %v1641_v3 = vmax.f32 %v1513_v61, 0.0 }
 0x2ea   :  { %v1679_v62 = vpack.c.bf16 %v1643_v44, %v1642_v37 }
 0x2eb   :  { %v1678_v48 = vpack.c.bf16 %v1641_v3, %v1640_v59 }
 0x2ed   :  { %8020 = vmatprep.mubr.msk.bf16.mxu1 %vm1708_vm1, %v1678_v48 }
 0x2ee   :  { %8021 = vmatmul.mubr.msk.bf16.gmra.mrb[116].mxu1 %vm1708_vm1, %v1679_v62 }
 0x2f3   :  { %v7974_v46 = vpop.f32.mrb[72].mxu1 }
 0x2f4   :  { %v1534_v5 = vadd.f32 %v7974_v46, %v9871_v28  ;;  %v1525_v15 = vpop.f32.mrb[73].mxu1 }
 0x2f5   :  { %v1526_v6 = vadd.f32 %v9871_v28, %v1525_v15  ;;  %v7975_v11 = vpop.f32.mrb[74].mxu1 }
 0x2f6   :  { %v1537_v43 = vadd.f32 %v7975_v11, %v9871_v28  ;;  %v1528_v7 = vpop.f32.mrb[75].mxu1  ;;  %v1646_v47 = vmax.f32 %v1534_v5, 0.0 }
 0x2f7   :  { %v1529_v8 = vadd.f32 %v9871_v28, %v1528_v7  ;;  %v1644_v10 = vmax.f32 %v1526_v6, 0.0 }
 0x2f8   :  { %v1647_v16 = vmax.f32 %v1537_v43, 0.0 }
 0x2f9   :  { %v1645_v9 = vmax.f32 %v1529_v8, 0.0 }
 0x2fa   :  { %v1681_v13 = vpack.c.bf16 %v1647_v16, %v1646_v47 }
 0x2fb   :  { %v1680_v60 = vpack.c.bf16 %v1645_v9, %v1644_v10 }
 0x2fd   :  { %8024 = vmatprep.mubr.msk.bf16.mxu1 %vm1708_vm1, %v1680_v60 }
 0x2fe   :  { %8025 = vmatmul.mubr.msk.bf16.gmra.mrb[120].mxu1 %vm1708_vm1, %v1681_v13 }
 0x303   :  { %v7978_v14 = vpop.f32.mrb[76].mxu1 }
 0x304   :  { %v1550_v17 = vadd.f32 %v7978_v14, %v9871_v28  ;;  %v1541_v2 = vpop.f32.mrb[77].mxu1 }
 0x305   :  { %v1542_v23 = vadd.f32 %v9871_v28, %v1541_v2  ;;  %v7979_v19 = vpop.f32.mrb[78].mxu1 }
 0x306   :  { %v1553_v58 = vadd.f32 %v7979_v19, %v9871_v28  ;;  %v1544_v20 = vpop.f32.mrb[79].mxu1  ;;  %v1650_v1 = vmax.f32 %v1550_v17, 0.0 }
 0x307   :  { %v1545_v27 = vadd.f32 %v9871_v28, %v1544_v20  ;;  %v1648_v51 = vmax.f32 %v1542_v23, 0.0 }
 0x308   :  { %v1651_v22 = vmax.f32 %v1553_v58, 0.0 }
 0x309   :  { %v1649_v25 = vmax.f32 %v1545_v27, 0.0 }
 0x30a   :  { %v1683_v29 = vpack.c.bf16 %v1651_v22, %v1650_v1  ;;  %v8932_v1 = vld [vmem:[%s12649_s18 + $0xc8] ss:$12 sps:$4 sm:$0xff]  }
 0x30b   :  { %v1682_v12 = vpack.c.bf16 %v1649_v25, %v1648_v51 }
 0x30d   :  { %8028 = vmatprep.mubr.msk.bf16.mxu1 %vm1708_vm1, %v1682_v12 }
 0x30e   :  { %8029 = vmatmul.mubr.msk.bf16.gmra.mrb[124].mxu1 %vm1708_vm1, %v1683_v29 }
 0x313   :  { %v7982_v55 = vpop.f32.mrb[80].mxu1 }
 0x314   :  { %v1566_v33 = vadd.f32 %v7982_v55, %v9871_v28  ;;  %v1557_v18 = vpop.f32.mrb[81].mxu1 }
 0x315   :  { %v1558_v35 = vadd.f32 %v9871_v28, %v1557_v18  ;;  %v7983_v36 = vpop.f32.mrb[82].mxu1 }
 0x316   :  { %v1654_v52 = vmax.f32 %v1566_v33, 0.0  ;;  %v1569_v39 = vadd.f32 %v7983_v36, %v9871_v28  ;;  %v1560_v21 = vpop.f32.mrb[83].mxu1 }
 0x317   :  { %v1652_v56 = vmax.f32 %v1558_v35, 0.0  ;;  %v1561_v63 = vadd.f32 %v9871_v28, %v1560_v21 }
 0x318   :  { %v1655_v40 = vmax.f32 %v1569_v39, 0.0 }
 0x319   :  { %v1653_v26 = vmax.f32 %v1561_v63, 0.0 }
 0x31a   :  { %v1685_v31 = vpack.c.bf16 %v1655_v40, %v1654_v52 }
 0x31b   :  { %v1684_v41 = vpack.c.bf16 %v1653_v26, %v1652_v56 }
 0x31d   :  { %8032 = vmatprep.mubr.msk.bf16.mxu1 %vm1708_vm1, %v1684_v41 }
 0x31e   :  { %8033 = vmatmul.mubr.msk.bf16.gmra.mrb[128].mxu1 %vm1708_vm1, %v1685_v31 }
 0x323   :  { %v7986_v42 = vpop.f32.mrb[84].mxu1 }
 0x324   :  { %v1582_v45 = vadd.f32 %v7986_v42, %v9871_v28  ;;  %v1573_v24 = vpop.f32.mrb[85].mxu1 }
 0x325   :  { %v1574_v4 = vadd.f32 %v9871_v28, %v1573_v24  ;;  %v7987_v34 = vpop.f32.mrb[86].mxu1 }
 0x326   :  { %v1658_v30 = vmax.f32 %v1582_v45, 0.0  ;;  %v1585_v49 = vadd.f32 %v7987_v34, %v9871_v28  ;;  %v1576_v50 = vpop.f32.mrb[87].mxu1 }
 0x327   :  { %v1656_v38 = vmax.f32 %v1574_v4, 0.0  ;;  %v1577_v53 = vadd.f32 %v9871_v28, %v1576_v50 }
 0x328   :  { %v1659_v54 = vmax.f32 %v1585_v49, 0.0 }
 0x329   :  { %v1657_v32 = vmax.f32 %v1577_v53, 0.0 }
 0x32a   :  { %v1687_v57 = vpack.c.bf16 %v1659_v54, %v1658_v30 }
 0x32b   :  { %v1686_v61 = vpack.c.bf16 %v1657_v32, %v1656_v38 }
 0x32d   :  { %8036 = vmatprep.mubr.msk.bf16.mxu1 %vm1708_vm1, %v1686_v61 }
 0x32e   :  { %8037 = vmatmul.mubr.msk.bf16.gmra.mrb[132].mxu1 %vm1708_vm1, %v1687_v57 }
 0x333   :  { %v7990_v37 = vpop.f32.mrb[88].mxu1 }
 0x334   :  { %v1598_v44 = vadd.f32 %v7990_v37, %v9871_v28  ;;  %v1589_v59 = vpop.f32.mrb[89].mxu1 }
 0x335   :  { %v1590_v3 = vadd.f32 %v9871_v28, %v1589_v59  ;;  %v7991_v62 = vpop.f32.mrb[90].mxu1 }
 0x336   :  { %v1662_v48 = vmax.f32 %v1598_v44, 0.0  ;;  %v1601_v46 = vadd.f32 %v7991_v62, %v9871_v28  ;;  %v1592_v5 = vpop.f32.mrb[91].mxu1 }
 0x337   :  { %v1660_v15 = vmax.f32 %v1590_v3, 0.0  ;;  %v1593_v6 = vadd.f32 %v9871_v28, %v1592_v5 }
 0x338   :  { %v1663_v11 = vmax.f32 %v1601_v46, 0.0 }
 0x339   :  { %v1661_v43 = vmax.f32 %v1593_v6, 0.0 }
 0x33a   :  { %v1689_v7 = vpack.c.bf16 %v1663_v11, %v1662_v48 }
 0x33b   :  { %v1688_v8 = vpack.c.bf16 %v1661_v43, %v1660_v15 }
 0x33d   :  { %8040 = vmatprep.mubr.msk.bf16.mxu1 %vm1708_vm1, %v1688_v8 }
 0x33e   :  { %8041 = vmatmul.mubr.msk.bf16.gmra.mrb[136].mxu1 %vm1708_vm1, %v1689_v7 }
 0x343   :  { %v7994_v47 = vpop.f32.mrb[92].mxu1 }
 0x344   :  { %v1614_v16 = vadd.f32 %v7994_v47, %v9871_v28  ;;  %v1605_v10 = vpop.f32.mrb[93].mxu1  ;;  %v9966_v47 = vld [vmem:[%s12649_s18] ss:$12 sps:$4 sm:$0xff]  }
 0x345   :  { %v1606_v9 = vadd.f32 %v9871_v28, %v1605_v10  ;;  %v7995_v13 = vpop.f32.mrb[94].mxu1  ;;  %12650 = vst [vmem:[#allocation20_spill] sm:$0xff] %v9966_v47 }
 0x346   :  { %v1666_v60 = vmax.f32 %v1614_v16, 0.0  ;;  %v1617_v14 = vadd.f32 %v7995_v13, %v9871_v28  ;;  %v1608_v17 = vpop.f32.mrb[95].mxu1  ;;  %v9972_v16 = vld [vmem:[%s12649_s18 + $0x1c] ss:$12 sps:$4 sm:$0xff]  }
 0x347   :  { %v1664_v2 = vmax.f32 %v1606_v9, 0.0  ;;  %v1609_v23 = vadd.f32 %v9871_v28, %v1608_v17  ;;  %12651 = vst [vmem:[#allocation21_spill] sm:$0xff] %v9972_v16 }
 0x348   :  { %v1667_v19 = vmax.f32 %v1617_v14, 0.0 }
 0x349   :  { %v1665_v58 = vmax.f32 %v1609_v23, 0.0  ;;  %v9984_v23 = vld [vmem:[%s12649_s18 + $0x34] ss:$12 sps:$4 sm:$0xff]  }
 0x34a   :  { %v1691_v20 = vpack.c.bf16 %v1667_v19, %v1666_v60  ;;  %12653 = vst [vmem:[#allocation23_spill] sm:$0xff] %v9984_v23  ;;  %v9990_v19 = vld [vmem:[%s12649_s18 + $0x30] ss:$12 sps:$4 sm:$0xff]  }
 0x34b   :  { %v1690_v27 = vpack.c.bf16 %v1665_v58, %v1664_v2  ;;  %v9978_v2 = vld [vmem:[%s12649_s18 + $0x18] ss:$12 sps:$4 sm:$0xff]   ;;  %12654 = vst [vmem:[#allocation24_spill] sm:$0xff] %v9990_v19 }
 0x34c   :  { %12652 = vst [vmem:[#allocation22_spill] sm:$0xff] %v9978_v2  ;;  %v9996_v58 = vld [vmem:[%s12649_s18 + $0x4c] ss:$12 sps:$4 sm:$0xff]  }
 0x34d   :  { %8044 = vmatprep.mubr.msk.bf16.mxu1 %vm1708_vm1, %v1690_v27  ;;  %12655 = vst [vmem:[#allocation25_spill] sm:$0xff] %v9996_v58 }
 0x34e   :  { %8045 = vmatmul.mubr.msk.bf16.gmra.mrb[140].mxu1 %vm1708_vm1, %v1691_v20 }
 0x34f   :  { %8080 = vmatprep.mubr.bf16.mxu1 %v8932_v1 }
 0x371   :  { %v8002_v22 = vpop.f32.mrb[96].mxu1 }
 0x372   :  { %v1815_v51 = vpop.f32.mrb[97].mxu1 }
 0x373   :  { %v8003_v25 = vpop.f32.mrb[98].mxu1 }
 0x374   :  { %v2007_v29 = vpack.c.bf16 %v8003_v25, %v8002_v22  ;;  %v1818_v12 = vpop.f32.mrb[99].mxu1 }
 0x375   :  { %v2006_v55 = vpack.c.bf16 %v1818_v12, %v1815_v51  ;;  %v10008_v12 = vld [vmem:[%s12649_s18 + $0x64] ss:$12 sps:$4 sm:$0xff]  }
 0x376   :  { %12657 = vst [vmem:[#allocation27_spill] sm:$0xff] %v10008_v12 }
 0x377   :  { %2038 = vmatpush1.bf16.msra.mxu0 %v2006_v55  ;;  %v10014_v55 = vld [vmem:[%s12649_s18 + $0x60] ss:$12 sps:$4 sm:$0xff]  }
 0x378   :  { %2039 = vmatprep.subr.bf16.mxu0 %v12458_v0  ;;  %12658 = vst [vmem:[#allocation28_spill] sm:$0xff] %v10014_v55 }
 0x37b   :  { %2040 = vmatpush1.bf16.msra.mxu0 %v2007_v29  ;;  %v10002_v29 = vld [vmem:[%s12649_s18 + $0x48] ss:$12 sps:$4 sm:$0xff]  }
 0x37c   :  { %2041 = vmatprep.subr.bf16.mxu0 %v12458_v0  ;;  %12656 = vst [vmem:[#allocation26_spill] sm:$0xff] %v10002_v29 }
 0x381   :  { %v8006_v28 = vpop.f32.mrb[100].mxu1 }
 0x382   :  { %v1831_v33 = vpop.f32.mrb[101].mxu1 }
 0x383   :  { %v8007_v18 = vpop.f32.mrb[102].mxu1 }
 0x384   :  { %v2009_v35 = vpack.c.bf16 %v8007_v18, %v8006_v28  ;;  %v1834_v36 = vpop.f32.mrb[103].mxu1  ;;  %v10020_v28 = vld [vmem:[%s12649_s18 + $0x7c] ss:$12 sps:$4 sm:$0xff]  }
 0x385   :  { %v2008_v52 = vpack.c.bf16 %v1834_v36, %v1831_v33  ;;  %12659 = vst [vmem:[#allocation29_spill] sm:$0xff] %v10020_v28 }
 0x387   :  { %2042 = vmatpush1.bf16.msra.mxu0 %v2008_v52 }
 0x388   :  { %2043 = vmatprep.subr.bf16.mxu0 %v12458_v0 }
 0x38b   :  { %2044 = vmatpush1.bf16.msra.mxu0 %v2009_v35 }
 0x38c   :  { %2045 = vmatprep.subr.bf16.mxu0 %v12458_v0 }
 0x391   :  { %v8010_v39 = vpop.f32.mrb[104].mxu1 }
 0x392   :  { %v1847_v21 = vpop.f32.mrb[105].mxu1 }
 0x393   :  { %v8011_v56 = vpop.f32.mrb[106].mxu1 }
 0x394   :  { %v2011_v63 = vpack.c.bf16 %v8011_v56, %v8010_v39  ;;  %v1850_v40 = vpop.f32.mrb[107].mxu1  ;;  %v10032_v56 = vld [vmem:[%s12649_s18 + $0x94] ss:$12 sps:$4 sm:$0xff]  }
 0x395   :  { %v2010_v26 = vpack.c.bf16 %v1850_v40, %v1847_v21  ;;  %v10026_v21 = vld [vmem:[%s12649_s18 + $0x78] ss:$12 sps:$4 sm:$0xff]   ;;  %12661 = vst [vmem:[#allocation31_spill] sm:$0xff] %v10032_v56 }
 0x396   :  { %12660 = vst [vmem:[#allocation30_spill] sm:$0xff] %v10026_v21  ;;  %v10044_v40 = vld [vmem:[%s12649_s18 + $0xac] ss:$12 sps:$4 sm:$0xff]  }
 0x397   :  { %2046 = vmatpush1.bf16.msra.mxu0 %v2010_v26  ;;  %12663 = vst [vmem:[#allocation33_spill] sm:$0xff] %v10044_v40 }
 0x398   :  { %2047 = vmatprep.subr.bf16.mxu0 %v12458_v0 }
 0x39b   :  { %2048 = vmatpush1.bf16.msra.mxu0 %v2011_v63  ;;  %v10038_v63 = vld [vmem:[%s12649_s18 + $0x90] ss:$12 sps:$4 sm:$0xff]  }
 0x39c   :  { %2049 = vmatprep.subr.bf16.mxu0 %v12458_v0  ;;  %12662 = vst [vmem:[#allocation32_spill] sm:$0xff] %v10038_v63 }
 0x3a1   :  { %v8014_v31 = vpop.f32.mrb[108].mxu1 }
 0x3a2   :  { %v1863_v41 = vpop.f32.mrb[109].mxu1 }
 0x3a3   :  { %v8015_v42 = vpop.f32.mrb[110].mxu1 }
 0x3a4   :  { %v2013_v45 = vpack.c.bf16 %v8015_v42, %v8014_v31  ;;  %v1866_v24 = vpop.f32.mrb[111].mxu1 }
 0x3a5   :  { %v2012_v4 = vpack.c.bf16 %v1866_v24, %v1863_v41 }
 0x3a7   :  { %2050 = vmatpush1.bf16.msra.mxu0 %v2012_v4  ;;  %v10050_v4 = vld [vmem:[%s12649_s18 + $0xa8] ss:$12 sps:$4 sm:$0xff]  }
 0x3a8   :  { %2051 = vmatprep.subr.bf16.mxu0 %v12458_v0  ;;  %12664 = vst [vmem:[#allocation34_spill] sm:$0xff] %v10050_v4 }
 0x3ab   :  { %2052 = vmatpush1.bf16.msra.mxu0 %v2013_v45 }
 0x3ac   :  { %2053 = vmatprep.subr.bf16.mxu0 %v12458_v0 }
 0x3b1   :  { %v8018_v34 = vpop.f32.mrb[112].mxu1 }
 0x3b2   :  { %v1879_v30 = vpop.f32.mrb[113].mxu1 }
 0x3b3   :  { %v8019_v49 = vpop.f32.mrb[114].mxu1 }
 0x3b4   :  { %v2015_v50 = vpack.c.bf16 %v8019_v49, %v8018_v34  ;;  %v1882_v38 = vpop.f32.mrb[115].mxu1  ;;  %v10056_v34 = vld [vmem:[%s12649_s18 + $0xc4] ss:$12 sps:$4 sm:$0xff]   ;;  %v10069_v49 = vld [vmem:[%s12649_s18 + $0xdc] ss:$12 sps:$4 sm:$0xff]  }
 0x3b5   :  { %v2014_v53 = vpack.c.bf16 %v1882_v38, %v1879_v30  ;;  %12665 = vst [vmem:[#allocation35_spill] sm:$0xff] %v10056_v34  ;;  %v10062_v30 = vld [vmem:[%s12649_s18 + $0xc0] ss:$12 sps:$4 sm:$0xff]   ;;  %12667 = vst [vmem:[#allocation37_spill] sm:$0xff] %v10069_v49  ;;  %v10081_v38 = vld [vmem:[%s12649_s18 + $0xf8] ss:$12 sps:$4 sm:$0xff]  }
 0x3b6   :  { %12666 = vst [vmem:[#allocation36_spill] sm:$0xff] %v10062_v30 }
 0x3b7   :  { %2054 = vmatpush1.bf16.msra.mxu0 %v2014_v53  ;;  %v10087_v53 = vld [vmem:[%s12649_s18 + $0xd8] ss:$12 sps:$4 sm:$0xff]  }
 0x3b8   :  { %2055 = vmatprep.subr.bf16.mxu0 %v12458_v0  ;;  %12668 = vst [vmem:[#allocation38_spill] sm:$0xff] %v10087_v53 }
 0x3bb   :  { %2056 = vmatpush1.bf16.msra.mxu0 %v2015_v50  ;;  %v10075_v50 = vld [vmem:[%s12649_s18 + $0xe0] ss:$12 sps:$4 sm:$0xff]  }
 0x3bc   :  { %2057 = vmatprep.subr.bf16.mxu0 %v12458_v0 }
 0x3c1   :  { %v8022_v54 = vpop.f32.mrb[116].mxu1 }
 0x3c2   :  { %v1895_v32 = vpop.f32.mrb[117].mxu1 }
 0x3c3   :  { %v8023_v57 = vpop.f32.mrb[118].mxu1 }
 0x3c4   :  { %v2017_v61 = vpack.c.bf16 %v8023_v57, %v8022_v54  ;;  %v1898_v37 = vpop.f32.mrb[119].mxu1  ;;  %v10093_v54 = vld [vmem:[%s12649_s18 + $0xf4] ss:$12 sps:$4 sm:$0xff]  }
 0x3c5   :  { %v2016_v44 = vpack.c.bf16 %v1898_v37, %v1895_v32  ;;  %12669 = vst [vmem:[#allocation39_spill] sm:$0xff] %v10093_v54  ;;  %v10099_v32 = vld [vmem:[%s12649_s18 + $0x110] ss:$12 sps:$4 sm:$0xff]   ;;  %v10105_v57 = vld [vmem:[%s12649_s18 + $0x128] ss:$12 sps:$4 sm:$0xff]  }
 0x3c6   :  { %12670 = vst [vmem:[#allocation40_spill] sm:$0xff] %v10105_v57  ;;  %v10117_v37 = vld [vmem:[%s12649_s18 + $0x10c] ss:$12 sps:$4 sm:$0xff]  }
 0x3c7   :  { %2058 = vmatpush1.bf16.msra.mxu0 %v2016_v44  ;;  %12672 = vst [vmem:[#allocation42_spill] sm:$0xff] %v10117_v37  ;;  %v10123_v44 = vld [vmem:[%s12649_s18 + $0x140] ss:$12 sps:$4 sm:$0xff]  }
 0x3c8   :  { %2059 = vmatprep.subr.bf16.mxu0 %v12458_v0  ;;  %12673 = vst [vmem:[#allocation43_spill] sm:$0xff] %v10123_v44 }
 0x3cb   :  { %2060 = vmatpush1.bf16.msra.mxu0 %v2017_v61  ;;  %v10111_v61 = vld [vmem:[%s12649_s18 + $0xf0] ss:$12 sps:$4 sm:$0xff]  }
 0x3cc   :  { %2061 = vmatprep.subr.bf16.mxu0 %v12458_v0  ;;  %12671 = vst [vmem:[#allocation41_spill] sm:$0xff] %v10111_v61 }
 0x3d1   :  { %v8026_v59 = vpop.f32.mrb[120].mxu1 }
 0x3d2   :  { %v1911_v3 = vpop.f32.mrb[121].mxu1 }
 0x3d3   :  { %v8027_v62 = vpop.f32.mrb[122].mxu1 }
 0x3d4   :  { %v2019_v48 = vpack.c.bf16 %v8027_v62, %v8026_v59  ;;  %v1914_v46 = vpop.f32.mrb[123].mxu1  ;;  %v10129_v59 = vld [vmem:[%s12649_s18 + $0x158] ss:$12 sps:$4 sm:$0xff]  }
 0x3d5   :  { %v2018_v5 = vpack.c.bf16 %v1914_v46, %v1911_v3  ;;  %12674 = vst [vmem:[#allocation44_spill] sm:$0xff] %v10129_v59  ;;  %v10135_v3 = vld [vmem:[%s12649_s18 + $0x108] ss:$12 sps:$4 sm:$0xff]   ;;  %v10141_v62 = vld [vmem:[%s12649_s18 + $0x124] ss:$12 sps:$4 sm:$0xff]  }
 0x3d6   :  { %12675 = vst [vmem:[#allocation45_spill] sm:$0xff] %v10135_v3  ;;  %12676 = vst [vmem:[#allocation46_spill] sm:$0xff] %v10141_v62  ;;  %v10153_v46 = vld [vmem:[%s12649_s18 + $0x188] ss:$12 sps:$4 sm:$0xff]  }
 0x3d7   :  { %2062 = vmatpush1.bf16.msra.mxu0 %v2018_v5  ;;  %12678 = vst [vmem:[#allocation48_spill] sm:$0xff] %v10153_v46  ;;  %v10159_v5 = vld [vmem:[%s12649_s18 + $0x120] ss:$12 sps:$4 sm:$0xff]  }
 0x3d8   :  { %2063 = vmatprep.subr.bf16.mxu0 %v12458_v0  ;;  %12679 = vst [vmem:[#allocation49_spill] sm:$0xff] %v10159_v5 }
 0x3db   :  { %2064 = vmatpush1.bf16.msra.mxu0 %v2019_v48  ;;  %v10147_v48 = vld [vmem:[%s12649_s18 + $0x170] ss:$12 sps:$4 sm:$0xff]  }
 0x3dc   :  { %2065 = vmatprep.subr.bf16.mxu0 %v12458_v0  ;;  %12677 = vst [vmem:[#allocation47_spill] sm:$0xff] %v10147_v48 }
 0x3e1   :  { %v8030_v15 = vpop.f32.mrb[124].mxu1 }
 0x3e2   :  { %v1927_v6 = vpop.f32.mrb[125].mxu1 }
 0x3e3   :  { %v8031_v11 = vpop.f32.mrb[126].mxu1 }
 0x3e4   :  { %v2021_v43 = vpack.c.bf16 %v8031_v11, %v8030_v15  ;;  %v1930_v7 = vpop.f32.mrb[127].mxu1  ;;  %v10165_v15 = vld [vmem:[%s12649_s18 + $0x13c] ss:$12 sps:$4 sm:$0xff]   ;;  %v10177_v11 = vld [vmem:[%s12649_s18 + $0x1b8] ss:$12 sps:$4 sm:$0xff]  }
 0x3e5   :  { %v2020_v8 = vpack.c.bf16 %v1930_v7, %v1927_v6  ;;  %12680 = vst [vmem:[#allocation50_spill] sm:$0xff] %v10165_v15  ;;  %v10171_v6 = vld [vmem:[%s12649_s18 + $0x1a0] ss:$12 sps:$4 sm:$0xff]   ;;  %12682 = vst [vmem:[#allocation52_spill] sm:$0xff] %v10177_v11 }
 0x3e6   :  { %12681 = vst [vmem:[#allocation51_spill] sm:$0xff] %v10171_v6  ;;  %v10189_v7 = vld [vmem:[%s12649_s18 + $0x154] ss:$12 sps:$4 sm:$0xff]  }
 0x3e7   :  { %2066 = vmatpush1.bf16.msra.mxu0 %v2020_v8  ;;  %12684 = vst [vmem:[#allocation54_spill] sm:$0xff] %v10189_v7  ;;  %v10195_v8 = vld [vmem:[%s12649_s18 + $0x1d0] ss:$12 sps:$4 sm:$0xff]  }
 0x3e8   :  { %2067 = vmatprep.subr.bf16.mxu0 %v12458_v0  ;;  %12685 = vst [vmem:[#allocation55_spill] sm:$0xff] %v10195_v8 }
 0x3eb   :  { %2068 = vmatpush1.bf16.msra.mxu0 %v2021_v43  ;;  %v10183_v43 = vld [vmem:[%s12649_s18 + $0x138] ss:$12 sps:$4 sm:$0xff]  }
 0x3ec   :  { %12683 = vst [vmem:[#allocation53_spill] sm:$0xff] %v10183_v43 }
 0x3ee   :  { %2070 = vmatmul.mubr.bf16.vlgmr.msra.gmra.mrb[96].mxu0 %v9966_v47 }
 0x3ef   :  { %2077 = vmatprep.mubr.bf16.mxu0 %v9972_v16 }
 0x3f1   :  { %v8034_v10 = vpop.f32.mrb[128].mxu1 }
 0x3f2   :  { %v1943_v9 = vpop.f32.mrb[129].mxu1 }
 0x3f3   :  { %v8035_v13 = vpop.f32.mrb[130].mxu1 }
 0x3f4   :  { %v2023_v60 = vpack.c.bf16 %v8035_v13, %v8034_v10  ;;  %v1946_v14 = vpop.f32.mrb[131].mxu1  ;;  %v10201_v10 = vld [vmem:[%s12649_s18 + $0x1e8] ss:$12 sps:$4 sm:$0xff]   ;;  %v10213_v13 = vld [vmem:[%s12649_s18 + $0x16c] ss:$12 sps:$4 sm:$0xff]  }
 0x3f5   :  { %v2022_v17 = vpack.c.bf16 %v1946_v14, %v1943_v9  ;;  %12686 = vst [vmem:[#allocation56_spill] sm:$0xff] %v10201_v10  ;;  %v10207_v9 = vld [vmem:[%s12649_s18 + $0x150] ss:$12 sps:$4 sm:$0xff]   ;;  %12688 = vst [vmem:[#allocation58_spill] sm:$0xff] %v10213_v13  ;;  %v10225_v14 = vld [vmem:[%s12649_s18 + $0x218] ss:$12 sps:$4 sm:$0xff]  }
 0x3f6   :  { %2078 = vmatmul.mubr.bf16.gmra.mrb[100].mxu0 %v9978_v2  ;;  %12687 = vst [vmem:[#allocation57_spill] sm:$0xff] %v10207_v9  ;;  %12690 = vst [vmem:[#allocation60_spill] sm:$0xff] %v10225_v14 }
 0x3f7   :  { %2085 = vmatprep.mubr.bf16.mxu0 %v9984_v23  ;;  %8048 = vmatprep.subr.bf16.mxu0 %v2022_v17 }
 0x3f8   :  { %8420 = vmatprep.subr.bf16.mxu1 %v2022_v17  ;;  %8049 = vmatpush3.bf16.msra.mxu0 %v2022_v17 }
 0x3f9   :  { %8428 = vmatpush3.bf16.msra.mxu1 %v2022_v17  ;;  %8050 = vmatprep.subr.bf16.mxu0 %v2023_v60  ;;  %v10231_v17 = vld [vmem:[%s12649_s18 + $0x168] ss:$12 sps:$4 sm:$0xff]  }
 0x3fa   :  { %8421 = vmatprep.subr.bf16.mxu1 %v2023_v60  ;;  %12691 = vst [vmem:[#allocation61_spill] sm:$0xff] %v10231_v17 }
 0x3fc   :  { %8051 = vmatpush3.bf16.msra.mxu0 %v2023_v60 }
 0x3fd   :  { %8429 = vmatpush3.bf16.msra.mxu1 %v2023_v60  ;;  %v10219_v60 = vld [vmem:[%s12649_s18 + $0x200] ss:$12 sps:$4 sm:$0xff]  }
 0x3fe   :  { %2086 = vmatmul.mubr.bf16.gmra.mrb[104].mxu0 %v9990_v19  ;;  %12689 = vst [vmem:[#allocation59_spill] sm:$0xff] %v10219_v60 }
 0x3ff   :  { %2093 = vmatprep.mubr.bf16.mxu0 %v9996_v58 }
 0x401   :  { %v8038_v20 = vpop.f32.mrb[132].mxu1 }
 0x402   :  { %v1959_v27 = vpop.f32.mrb[133].mxu1 }
 0x403   :  { %v8039_v1 = vpop.f32.mrb[134].mxu1 }
 0x404   :  { %v2025_v22 = vpack.c.bf16 %v8039_v1, %v8038_v20  ;;  %v1962_v51 = vpop.f32.mrb[135].mxu1  ;;  %v10237_v20 = vld [vmem:[%s12649_s18 + $0x184] ss:$12 sps:$4 sm:$0xff]  }
 0x405   :  { %v2024_v25 = vpack.c.bf16 %v1962_v51, %v1959_v27  ;;  %12692 = vst [vmem:[#allocation62_spill] sm:$0xff] %v10237_v20  ;;  %v10243_v27 = vld [vmem:[%s12649_s18 + $0x230] ss:$12 sps:$4 sm:$0xff]  }
 0x406   :  { %2094 = vmatmul.mubr.bf16.gmra.mrb[108].mxu0 %v10002_v29  ;;  %12693 = vst [vmem:[#allocation63_spill] sm:$0xff] %v10243_v27  ;;  %v8980_v1 = vld [vmem:[%s12649_s18 + $0x4] ss:$12 sps:$4 sm:$0xff]   ;;  %v10258_v51 = vld [vmem:[%s12649_s18 + $0x19c] ss:$12 sps:$4 sm:$0xff]  }
 0x407   :  { %2101 = vmatprep.mubr.bf16.mxu0 %v10008_v12  ;;  %8052 = vmatprep.subr.bf16.mxu0 %v2024_v25  ;;  %12695 = vst [vmem:[#allocation65_spill] sm:$0xff] %v10258_v51 }
 0x408   :  { %8422 = vmatprep.subr.bf16.mxu1 %v2024_v25  ;;  %8053 = vmatpush3.bf16.msra.mxu0 %v2024_v25 }
 0x409   :  { %8430 = vmatpush3.bf16.msra.mxu1 %v2024_v25  ;;  %8054 = vmatprep.subr.bf16.mxu0 %v2025_v22  ;;  %v10264_v25 = vld [vmem:[%s12649_s18 + $0x198] ss:$12 sps:$4 sm:$0xff]  }
 0x40a   :  { %8423 = vmatprep.subr.bf16.mxu1 %v2025_v22  ;;  %12696 = vst [vmem:[#allocation66_spill] sm:$0xff] %v10264_v25 }
 0x40c   :  { %8055 = vmatpush3.bf16.msra.mxu0 %v2025_v22 }
 0x40d   :  { %8431 = vmatpush3.bf16.msra.mxu1 %v2025_v22  ;;  %v10252_v22 = vld [vmem:[%s12649_s18 + $0x180] ss:$12 sps:$4 sm:$0xff]  }
 0x40e   :  { %2102 = vmatmul.mubr.bf16.gmra.mrb[112].mxu0 %v10014_v55  ;;  %12694 = vst [vmem:[#allocation64_spill] sm:$0xff] %v10252_v22 }
 0x40f   :  { %2109 = vmatprep.mubr.bf16.mxu0 %v10020_v28 }
 0x411   :  { %v8042_v33 = vpop.f32.mrb[136].mxu1 }
 0x412   :  { %v1975_v18 = vpop.f32.mrb[137].mxu1 }
 0x413   :  { %v8043_v35 = vpop.f32.mrb[138].mxu1 }
 0x414   :  { %v2027_v36 = vpack.c.bf16 %v8043_v35, %v8042_v33  ;;  %v1978_v52 = vpop.f32.mrb[139].mxu1  ;;  %v10270_v33 = vld [vmem:[%s12649_s18 + $0x1b4] ss:$12 sps:$4 sm:$0xff]   ;;  %v10282_v35 = vld [vmem:[%s12649_s18 + $0x1cc] ss:$12 sps:$4 sm:$0xff]  }
 0x415   :  { %v2026_v39 = vpack.c.bf16 %v1978_v52, %v1975_v18  ;;  %12697 = vst [vmem:[#allocation67_spill] sm:$0xff] %v10270_v33  ;;  %v10276_v18 = vld [vmem:[%s12649_s18 + $0x1b0] ss:$12 sps:$4 sm:$0xff]   ;;  %12699 = vst [vmem:[#allocation69_spill] sm:$0xff] %v10282_v35 }
 0x416   :  { %2110 = vmatmul.mubr.bf16.gmra.mrb[116].mxu0 %v10026_v21  ;;  %12698 = vst [vmem:[#allocation68_spill] sm:$0xff] %v10276_v18  ;;  %v10294_v52 = vld [vmem:[%s12649_s18 + $0x1e4] ss:$12 sps:$4 sm:$0xff]  }
 0x417   :  { %2117 = vmatprep.mubr.bf16.mxu0 %v10032_v56  ;;  %8056 = vmatprep.subr.bf16.mxu0 %v2026_v39  ;;  %12701 = vst [vmem:[#allocation71_spill] sm:$0xff] %v10294_v52 }
 0x418   :  { %8424 = vmatprep.subr.bf16.mxu1 %v2026_v39  ;;  %8057 = vmatpush3.bf16.msra.mxu0 %v2026_v39 }
 0x419   :  { %8432 = vmatpush3.bf16.msra.mxu1 %v2026_v39  ;;  %8058 = vmatprep.subr.bf16.mxu0 %v2027_v36  ;;  %v10300_v39 = vld [vmem:[%s12649_s18 + $0x1e0] ss:$12 sps:$4 sm:$0xff]  }
 0x41a   :  { %8425 = vmatprep.subr.bf16.mxu1 %v2027_v36  ;;  %12702 = vst [vmem:[#allocation72_spill] sm:$0xff] %v10300_v39 }
 0x41c   :  { %8059 = vmatpush3.bf16.msra.mxu0 %v2027_v36 }
 0x41d   :  { %8433 = vmatpush3.bf16.msra.mxu1 %v2027_v36  ;;  %v10288_v36 = vld [vmem:[%s12649_s18 + $0x1c8] ss:$12 sps:$4 sm:$0xff]  }
 0x41e   :  { %2118 = vmatmul.mubr.bf16.gmra.mrb[120].mxu0 %v10038_v63  ;;  %12700 = vst [vmem:[#allocation70_spill] sm:$0xff] %v10288_v36 }
 0x41f   :  { %2125 = vmatprep.mubr.bf16.mxu0 %v10044_v40 }
 0x421   :  { %v8046_v26 = vpop.f32.mrb[140].mxu1 }
 0x422   :  { %v1991_v31 = vpop.f32.mrb[141].mxu1 }
 0x423   :  { %v8047_v41 = vpop.f32.mrb[142].mxu1 }
 0x424   :  { %v2029_v42 = vpack.c.bf16 %v8047_v41, %v8046_v26  ;;  %v1994_v45 = vpop.f32.mrb[143].mxu1  ;;  %v10306_v26 = vld [vmem:[%s12649_s18 + $0x1fc] ss:$12 sps:$4 sm:$0xff]   ;;  %v10318_v41 = vld [vmem:[%s12649_s18 + $0x214] ss:$12 sps:$4 sm:$0xff]  }
 0x425   :  { %v2028_v24 = vpack.c.bf16 %v1994_v45, %v1991_v31  ;;  %12703 = vst [vmem:[#allocation73_spill] sm:$0xff] %v10306_v26  ;;  %v10312_v31 = vld [vmem:[%s12649_s18 + $0x1f8] ss:$12 sps:$4 sm:$0xff]   ;;  %12705 = vst [vmem:[#allocation75_spill] sm:$0xff] %v10318_v41 }
 0x426   :  { %2126 = vmatmul.mubr.bf16.gmra.mrb[124].mxu0 %v10050_v4  ;;  %12704 = vst [vmem:[#allocation74_spill] sm:$0xff] %v10312_v31  ;;  %v10330_v45 = vld [vmem:[%s12649_s18 + $0x22c] ss:$12 sps:$4 sm:$0xff]  }
 0x427   :  { %2133 = vmatprep.mubr.bf16.mxu0 %v10056_v34  ;;  %8060 = vmatprep.subr.bf16.mxu0 %v2028_v24  ;;  %12707 = vst [vmem:[#allocation77_spill] sm:$0xff] %v10330_v45 }
 0x428   :  { %8426 = vmatprep.subr.bf16.mxu1 %v2028_v24  ;;  %8061 = vmatpush3.bf16.msra.mxu0 %v2028_v24 }
 0x429   :  { %8434 = vmatpush3.bf16.msra.mxu1 %v2028_v24  ;;  %8062 = vmatprep.subr.bf16.mxu0 %v2029_v42  ;;  %v10336_v24 = vld [vmem:[%s12649_s18 + $0x228] ss:$12 sps:$4 sm:$0xff]  }
 0x42a   :  { %8427 = vmatprep.subr.bf16.mxu1 %v2029_v42  ;;  %12708 = vst [vmem:[#allocation78_spill] sm:$0xff] %v10336_v24 }
 0x42c   :  { %8063 = vmatpush3.bf16.msra.mxu0 %v2029_v42 }
 0x42d   :  { %8435 = vmatpush3.bf16.msra.mxu1 %v2029_v42  ;;  %v10324_v42 = vld [vmem:[%s12649_s18 + $0x210] ss:$12 sps:$4 sm:$0xff]  }
 0x42e   :  { %2134 = vmatmul.mubr.bf16.gmra.mrb[128].mxu0 %v10062_v30  ;;  %2559 = vmatprep.subr.bf16.mxu1 %v12458_v0  ;;  %12706 = vst [vmem:[#allocation76_spill] sm:$0xff] %v10324_v42  ;;  %v10345_v0 = vld [vmem:[%s12649_s18 + $0x20] ss:$12 sps:$4 sm:$0xff]  }
 0x42f   :  { %2141 = vmatprep.mubr.bf16.mxu0 %v10069_v49 }
 0x430   :  { %8081 = vmatmul.mubr.bf16.vlgmr.msra.gmra.mrb[144].mxu1 %v10075_v50 }
 0x431   :  { %8084 = vmatprep.mubr.bf16.mxu1 %v10081_v38 }
 0x436   :  { %2142 = vmatmul.mubr.bf16.gmra.mrb[132].mxu0 %v10087_v53 }
 0x437   :  { %2149 = vmatprep.mubr.bf16.mxu0 %v10093_v54 }
 0x438   :  { %8085 = vmatmul.mubr.bf16.gmra.mrb[148].mxu1 %v10099_v32 }
 0x439   :  { %8088 = vmatprep.mubr.bf16.mxu1 %v10105_v57 }
 0x43e   :  { %2150 = vmatmul.mubr.bf16.gmra.mrb[136].mxu0 %v10111_v61 }
 0x43f   :  { %2157 = vmatprep.mubr.bf16.mxu0 %v10117_v37 }
 0x440   :  { %8089 = vmatmul.mubr.bf16.gmra.mrb[152].mxu1 %v10123_v44 }
 0x441   :  { %8092 = vmatprep.mubr.bf16.mxu1 %v10129_v59 }
 0x446   :  { %2158 = vmatmul.mubr.bf16.gmra.mrb[140].mxu0 %v10135_v3 }
 0x447   :  { %2165 = vmatprep.mubr.bf16.mxu0 %v10141_v62 }
 0x448   :  { %8093 = vmatmul.mubr.bf16.gmra.mrb[156].mxu1 %v10147_v48 }
 0x449   :  { %8096 = vmatprep.mubr.bf16.mxu1 %v10153_v46 }
 0x44e   :  { %2166 = vmatmul.mubr.bf16.gmra.mrb[144].mxu0 %v10159_v5 }
 0x44f   :  { %2173 = vmatprep.mubr.bf16.mxu0 %v10165_v15 }
 0x450   :  { %8097 = vmatmul.mubr.bf16.gmra.mrb[160].mxu1 %v10171_v6 }
 0x451   :  { %8100 = vmatprep.mubr.bf16.mxu1 %v10177_v11 }
 0x456   :  { %2174 = vmatmul.mubr.bf16.gmra.mrb[148].mxu0 %v10183_v43 }
 0x457   :  { %2181 = vmatprep.mubr.bf16.mxu0 %v10189_v7 }
 0x458   :  { %8101 = vmatmul.mubr.bf16.gmra.mrb[164].mxu1 %v10195_v8 }
 0x459   :  { %8104 = vmatprep.mubr.bf16.mxu1 %v10201_v10 }
 0x45e   :  { %2182 = vmatmul.mubr.bf16.gmra.mrb[152].mxu0 %v10207_v9 }
 0x45f   :  { %2189 = vmatprep.mubr.bf16.mxu0 %v10213_v13 }
 0x460   :  { %8105 = vmatmul.mubr.bf16.gmra.mrb[168].mxu1 %v10219_v60 }
 0x461   :  { %8108 = vmatprep.mubr.bf16.mxu1 %v10225_v14 }
 0x466   :  { %2190 = vmatmul.mubr.bf16.gmra.mrb[156].mxu0 %v10231_v17 }
 0x467   :  { %2197 = vmatprep.mubr.bf16.mxu0 %v10237_v20 }
 0x468   :  { %8109 = vmatmul.mubr.bf16.gmra.mrb[172].mxu1 %v10243_v27 }
 0x469   :  { %2591 = vmatprep.mubr.bf16.mxu1 %v8980_v1  ;;  %v8996_v1 = vld [vmem:[%s12649_s18 + $0x8] ss:$12 sps:$4 sm:$0xff]  }
 0x46e   :  { %2198 = vmatmul.mubr.bf16.gmra.mrb[160].mxu0 %v10252_v22 }
 0x46f   :  { %2205 = vmatprep.mubr.bf16.mxu0 %v10258_v51 }
 0x476   :  { %2206 = vmatmul.mubr.bf16.gmra.mrb[164].mxu0 %v10264_v25 }
 0x477   :  { %2213 = vmatprep.mubr.bf16.mxu0 %v10270_v33 }
 0x47e   :  { %2214 = vmatmul.mubr.bf16.gmra.mrb[168].mxu0 %v10276_v18 }
 0x47f   :  { %2221 = vmatprep.mubr.bf16.mxu0 %v10282_v35  ;;  %v10385_v35 = vld [vmem:[%s12649_s18 + $0xb0] ss:$12 sps:$4 sm:$0xff]  }
 0x486   :  { %2222 = vmatmul.mubr.bf16.gmra.mrb[172].mxu0 %v10288_v36 }
 0x487   :  { %2229 = vmatprep.mubr.bf16.mxu0 %v10294_v52 }
 0x48e   :  { %2230 = vmatmul.mubr.bf16.gmra.mrb[176].mxu0 %v10300_v39 }
 0x48f   :  { %2237 = vmatprep.mubr.bf16.mxu0 %v10306_v26 }
 0x496   :  { %2238 = vmatmul.mubr.bf16.gmra.mrb[180].mxu0 %v10312_v31  ;;  %v10375_v31 = vld [vmem:[%s12649_s18 + $0x98] ss:$12 sps:$4 sm:$0xff]  }
 0x497   :  { %2245 = vmatprep.mubr.bf16.mxu0 %v10318_v41  ;;  %v10369_v41 = vld [vmem:[%s12649_s18 + $0x80] ss:$12 sps:$4 sm:$0xff]  }
 0x49e   :  { %2246 = vmatmul.mubr.bf16.gmra.mrb[184].mxu0 %v10324_v42  ;;  %v10363_v42 = vld [vmem:[%s12649_s18 + $0x68] ss:$12 sps:$4 sm:$0xff]  }
 0x49f   :  { %2253 = vmatprep.mubr.bf16.mxu0 %v10330_v45  ;;  %v10351_v45 = vld [vmem:[%s12649_s18 + $0x38] ss:$12 sps:$4 sm:$0xff]  }
 0x4a6   :  { %2254 = vmatmul.mubr.bf16.gmra.mrb[188].mxu0 %v10336_v24  ;;  %v10357_v24 = vld [vmem:[%s12649_s18 + $0x50] ss:$12 sps:$4 sm:$0xff]  }
 0x4a7   :  { %8064 = vmatprep.mubr.bf16.mxu0 %v8996_v1 }
 0x4ae   :  { %8065 = vmatmul.mubr.bf16.vlgmr.msra.gmra.mrb[192].mxu0 %v10345_v0 }
 0x4af   :  { %8068 = vmatprep.mubr.bf16.mxu0 %v10351_v45 }
 0x4b6   :  { %8069 = vmatmul.mubr.bf16.gmra.mrb[196].mxu0 %v10357_v24 }
 0x4b7   :  { %8072 = vmatprep.mubr.bf16.mxu0 %v10363_v42 }
 0x4be   :  { %8073 = vmatmul.mubr.bf16.gmra.mrb[200].mxu0 %v10369_v41 }
 0x4bf   :  { %8076 = vmatprep.mubr.bf16.mxu0 %v10375_v31 }
 0x4c1   :  { %v10378_v26 = vpop.f32.mrb[96].mxu0 }
 0x4c2   :  { %v2073_v39 = vpop.f32.mrb[97].mxu0 }
 0x4c3   :  { %v10380_v52 = vpop.f32.mrb[98].mxu0 }
 0x4c4   :  { %v2076_v36 = vpop.f32.mrb[99].mxu0 }
 0x4c6   :  { %8077 = vmatmul.mubr.bf16.gmra.mrb[204].mxu0 %v10385_v35 }
 0x4c7   :  { %8128 = vmatprep.mubr.bf16.mxu0 %v8996_v1 }
 0x4c9   :  { %v10388_v18 = vpop.f32.mrb[100].mxu0 }
 0x4ca   :  { %v2081_v33 = vpop.f32.mrb[101].mxu0 }
 0x4cb   :  { %v10390_v25 = vpop.f32.mrb[102].mxu0 }
 0x4cc   :  { %v2084_v51 = vpop.f32.mrb[103].mxu0 }
 0x4d1   :  { %v10392_v22 = vpop.f32.mrb[104].mxu0 }
 0x4d2   :  { %v2089_v39 = vpop.f32.mrb[105].mxu0 }
 0x4d3   :  { %v10394_v20 = vpop.f32.mrb[106].mxu0 }
 0x4d4   :  { %v2092_v36 = vpop.f32.mrb[107].mxu0 }
 0x4d9   :  { %v10396_v17 = vpop.f32.mrb[108].mxu0 }
 0x4da   :  { %v2097_v13 = vpop.f32.mrb[109].mxu0 }
 0x4db   :  { %v10398_v9 = vpop.f32.mrb[110].mxu0 }
 0x4dc   :  { %v2100_v7 = vpop.f32.mrb[111].mxu0 }
 0x4e1   :  { %v10400_v43 = vpop.f32.mrb[112].mxu0 }
 0x4e2   :  { %v2105_v1 = vpop.f32.mrb[113].mxu0 }
 0x4e3   :  { %v10402_v15 = vpop.f32.mrb[114].mxu0 }
 0x4e4   :  { %v2108_v33 = vpop.f32.mrb[115].mxu0 }
 0x4e5   :  { %v10419_v33 = vld [vmem:[%s12441_s6] ss:$0 sm:$0xff] }
 0x4e9   :  { %v10404_v5 = vpop.f32.mrb[116].mxu0 }
 0x4ea   :  { %v2113_v51 = vpop.f32.mrb[117].mxu0 }
 0x4eb   :  { %v10406_v62 = vpop.f32.mrb[118].mxu0 }
 0x4ec   :  { %v2116_v39 = vpop.f32.mrb[119].mxu0 }
 0x4f1   :  { %v10408_v3 = vpop.f32.mrb[120].mxu0 }
 0x4f2   :  { %v2121_v36 = vpop.f32.mrb[121].mxu0 }
 0x4f3   :  { %v10410_v37 = vpop.f32.mrb[122].mxu0 }
 0x4f4   :  { %v2124_v13 = vpop.f32.mrb[123].mxu0 }
 0x4f9   :  { %v10412_v61 = vpop.f32.mrb[124].mxu0 }
 0x4fa   :  { %v2129_v7 = vpop.f32.mrb[125].mxu0 }
 0x4fb   :  { %v10414_v54 = vpop.f32.mrb[126].mxu0 }
 0x4fc   :  { %v2132_v1 = vpop.f32.mrb[127].mxu0 }
 0x501   :  { %v2135_v51 = vpop.f32.mrb[128].mxu0 }
 0x502   :  { %v2136_v39 = vadd.f32 %v10419_v33, %v2135_v51  ;;  %v2137_v53 = vpop.f32.mrb[129].mxu0 }
 0x503   :  { %v2138_v49 = vpop.f32.mrb[130].mxu0  ;;  %v8082_v36 = vpop.f32.mrb[144].mxu1 }
 0x504   :  { %v2139_v30 = vadd.f32 %v10419_v33, %v2138_v49  ;;  %v2140_v13 = vpop.f32.mrb[131].mxu0  ;;  %v2360_v34 = vpop.f32.mrb[145].mxu1 }
 0x505   :  { %v2361_v4 = vadd.f32 %v2360_v34, %v2136_v39  ;;  %v8083_v7 = vpop.f32.mrb[146].mxu1 }
 0x506   :  { %v2363_v40 = vpop.f32.mrb[147].mxu1 }
 0x507   :  { %v2364_v63 = vadd.f32 %v2363_v40, %v2139_v30  ;;  %v2503_v56 = vmax.f32 %v2361_v4, 0.0 }
 0x509   :  { %v2143_v1 = vpop.f32.mrb[132].mxu0  ;;  %v2504_v21 = vmax.f32 %v2364_v63, 0.0 }
 0x50a   :  { %v2144_v28 = vadd.f32 %v10419_v33, %v2143_v1  ;;  %v2145_v55 = vpop.f32.mrb[133].mxu0 }
 0x50b   :  { %v2146_v12 = vpop.f32.mrb[134].mxu0  ;;  %v10424_v29 = vpack.c.bf16 %v2504_v21, %v2503_v56  ;;  %v8086_v53 = vpop.f32.mrb[148].mxu1 }
 0x50c   :  { %v2147_v51 = vadd.f32 %v10419_v33, %v2146_v12  ;;  %v2148_v27 = vpop.f32.mrb[135].mxu0  ;;  %v2369_v49 = vadd.f32 %v8082_v36, %v2144_v28  ;;  %v2376_v13 = vpop.f32.mrb[149].mxu1 }
 0x50d   :  { %v8087_v58 = vpop.f32.mrb[150].mxu1 }
 0x50e   :  { %v2372_v34 = vadd.f32 %v8083_v7, %v2147_v51  ;;  %v2379_v39 = vpop.f32.mrb[151].mxu1  ;;  %v2505_v19 = vmax.f32 %v2369_v49, 0.0 }
 0x510   :  { %v2506_v40 = vmax.f32 %v2372_v34, 0.0 }
 0x511   :  { %v2151_v30 = vpop.f32.mrb[136].mxu0 }
 0x512   :  { %v2152_v63 = vadd.f32 %v10419_v33, %v2151_v30  ;;  %v2153_v4 = vpop.f32.mrb[137].mxu0  ;;  %v10428_v1 = vpack.c.bf16 %v2506_v40, %v2505_v19 }
 0x513   :  { %v2154_v55 = vpop.f32.mrb[138].mxu0  ;;  %v8090_v21 = vpop.f32.mrb[152].mxu1 }
 0x514   :  { %v2155_v56 = vadd.f32 %v10419_v33, %v2154_v55  ;;  %v2156_v14 = vpop.f32.mrb[139].mxu0  ;;  %v2377_v12 = vadd.f32 %v2376_v13, %v2152_v63  ;;  %v2392_v27 = vpop.f32.mrb[153].mxu1 }
 0x515   :  { %v8091_v28 = vpop.f32.mrb[154].mxu1 }
 0x516   :  { %v2380_v36 = vadd.f32 %v2379_v39, %v2155_v56  ;;  %v2395_v60 = vpop.f32.mrb[155].mxu1  ;;  %v2507_v7 = vmax.f32 %v2377_v12, 0.0 }
 0x518   :  { %v2508_v51 = vmax.f32 %v2380_v36, 0.0 }
 0x519   :  { %v2159_v49 = vpop.f32.mrb[140].mxu0 }
 0x51a   :  { %v2160_v34 = vadd.f32 %v10419_v33, %v2159_v49  ;;  %v2161_v23 = vpop.f32.mrb[141].mxu0  ;;  %v10432_v30 = vpack.c.bf16 %v2508_v51, %v2507_v7 }
 0x51b   :  { %v2162_v19 = vpop.f32.mrb[142].mxu0  ;;  %v10434_v40 = vpop.f32.mrb[156].mxu1 }
 0x51c   :  { %12709 = vst [vmem:[#allocation79_spill] sm:$0xff] %v10432_v30  ;;  %v2163_v4 = vadd.f32 %v10419_v33, %v2162_v19  ;;  %v2164_v55 = vpop.f32.mrb[143].mxu0  ;;  %v2385_v14 = vadd.f32 %v8086_v53, %v2160_v34  ;;  %v2408_v13 = vpop.f32.mrb[157].mxu1 }
 0x51d   :  { %v8095_v63 = vpop.f32.mrb[158].mxu1 }
 0x51e   :  { %v2388_v2 = vadd.f32 %v8087_v58, %v2163_v4  ;;  %v2411_v39 = vpop.f32.mrb[159].mxu1  ;;  %v2509_v56 = vmax.f32 %v2385_v14, 0.0 }
 0x520   :  { %v2510_v12 = vmax.f32 %v2388_v2, 0.0 }
 0x521   :  { %v2167_v36 = vpop.f32.mrb[144].mxu0 }
 0x522   :  { %v2168_v10 = vadd.f32 %v10419_v33, %v2167_v36  ;;  %v2169_v49 = vpop.f32.mrb[145].mxu0  ;;  %v10438_v23 = vpack.c.bf16 %v2510_v12, %v2509_v56 }
 0x523   :  { %v2170_v7 = vpop.f32.mrb[146].mxu0  ;;  %v10440_v51 = vpop.f32.mrb[160].mxu1 }
 0x524   :  { %12710 = vst [vmem:[#allocation80_spill] sm:$0xff] %v10438_v23  ;;  %v2171_v8 = vadd.f32 %v10419_v33, %v2170_v7  ;;  %v2172_v19 = vpop.f32.mrb[147].mxu0  ;;  %v2393_v55 = vadd.f32 %v2392_v27, %v2168_v10  ;;  %v2424_v53 = vpop.f32.mrb[161].mxu1 }
 0x525   :  { %v10443_v34 = vpop.f32.mrb[162].mxu1 }
 0x526   :  { %v2396_v58 = vadd.f32 %v2395_v60, %v2171_v8  ;;  %v2427_v4 = vpop.f32.mrb[163].mxu1  ;;  %v2511_v14 = vmax.f32 %v2393_v55, 0.0 }
 0x528   :  { %v2512_v2 = vmax.f32 %v2396_v58, 0.0 }
 0x529   :  { %v2175_v16 = vpop.f32.mrb[148].mxu0 }
 0x52a   :  { %v2176_v36 = vadd.f32 %v10419_v33, %v2175_v16  ;;  %v2177_v49 = vpop.f32.mrb[149].mxu0  ;;  %v10446_v56 = vpack.c.bf16 %v2512_v2, %v2511_v14 }
 0x52b   :  { %v2178_v12 = vpop.f32.mrb[150].mxu0  ;;  %v10448_v47 = vpop.f32.mrb[164].mxu1 }
 0x52c   :  { %12711 = vst [vmem:[#allocation81_spill] sm:$0xff] %v10446_v56  ;;  %v2179_v7 = vadd.f32 %v10419_v33, %v2178_v12  ;;  %v2180_v19 = vpop.f32.mrb[151].mxu0  ;;  %v2401_v10 = vadd.f32 %v8090_v21, %v2176_v36  ;;  %v10451_v27 = vpop.f32.mrb[165].mxu1 }
 0x52d   :  { %v10453_v11 = vpop.f32.mrb[166].mxu1 }
 0x52e   :  { %v2404_v8 = vadd.f32 %v8091_v28, %v2179_v7  ;;  %v10455_v60 = vpop.f32.mrb[167].mxu1  ;;  %v2513_v55 = vmax.f32 %v2401_v10, 0.0 }
 0x530   :  { %v2514_v58 = vmax.f32 %v2404_v8, 0.0 }
 0x531   :  { %v2183_v16 = vpop.f32.mrb[152].mxu0 }
 0x532   :  { %v2184_v14 = vadd.f32 %v10419_v33, %v2183_v16  ;;  %v2185_v2 = vpop.f32.mrb[153].mxu0  ;;  %v10458_v49 = vpack.c.bf16 %v2514_v58, %v2513_v55 }
 0x533   :  { %v2186_v6 = vpop.f32.mrb[154].mxu0  ;;  %v10460_v46 = vpop.f32.mrb[168].mxu1 }
 0x534   :  { %12712 = vst [vmem:[#allocation82_spill] sm:$0xff] %v10458_v49  ;;  %v2187_v21 = vadd.f32 %v10419_v33, %v2186_v6  ;;  %v2188_v36 = vpop.f32.mrb[155].mxu0  ;;  %v2409_v12 = vadd.f32 %v2408_v13, %v2184_v14  ;;  %v10463_v19 = vpop.f32.mrb[169].mxu1 }
 0x535   :  { %v10465_v28 = vpop.f32.mrb[170].mxu1 }
 0x536   :  { %v2412_v7 = vadd.f32 %v2411_v39, %v2187_v21  ;;  %v10467_v10 = vpop.f32.mrb[171].mxu1  ;;  %v2515_v8 = vmax.f32 %v2409_v12, 0.0 }
 0x538   :  { %v2516_v48 = vmax.f32 %v2412_v7, 0.0 }
 0x539   :  { %v2191_v16 = vpop.f32.mrb[156].mxu0 }
 0x53a   :  { %v2192_v55 = vadd.f32 %v10419_v33, %v2191_v16  ;;  %v2193_v58 = vpop.f32.mrb[157].mxu0  ;;  %v10470_v2 = vpack.c.bf16 %v2516_v48, %v2515_v8 }
 0x53b   :  { %v2194_v49 = vpop.f32.mrb[158].mxu0  ;;  %v10472_v56 = vpop.f32.mrb[172].mxu1 }
 0x53c   :  { %12713 = vst [vmem:[#allocation83_spill] sm:$0xff] %v10470_v2  ;;  %v2195_v6 = vadd.f32 %v10419_v33, %v2194_v49  ;;  %v2196_v13 = vpop.f32.mrb[159].mxu0  ;;  %v2417_v14 = vadd.f32 %v10434_v40, %v2192_v55  ;;  %v10476_v36 = vpop.f32.mrb[173].mxu1 }
 0x53d   :  { %v10478_v39 = vpop.f32.mrb[174].mxu1 }
 0x53e   :  { %v2420_v21 = vadd.f32 %v8095_v63, %v2195_v6  ;;  %v10480_v12 = vpop.f32.mrb[175].mxu1  ;;  %v2517_v7 = vmax.f32 %v2417_v14, 0.0 }
 0x540   :  { %v2518_v16 = vmax.f32 %v2420_v21, 0.0 }
 0x541   :  { %v2199_v58 = vpop.f32.mrb[160].mxu0 }
 0x542   :  { %v2200_v48 = vadd.f32 %v10419_v33, %v2199_v58  ;;  %v2201_v8 = vpop.f32.mrb[161].mxu0  ;;  %v10483_v2 = vpack.c.bf16 %v2518_v16, %v2517_v7 }
 0x543   :  { %v2202_v59 = vpop.f32.mrb[162].mxu0 }
 0x544   :  { %v2203_v49 = vadd.f32 %v10419_v33, %v2202_v59  ;;  %v2204_v13 = vpop.f32.mrb[163].mxu0  ;;  %v2425_v40 = vadd.f32 %v2424_v53, %v2200_v48 }
 0x546   :  { %v2428_v55 = vadd.f32 %v2427_v4, %v2203_v49  ;;  %v2519_v44 = vmax.f32 %v2425_v40, 0.0 }
 0x548   :  { %v2520_v23 = vmax.f32 %v2428_v55, 0.0 }
 0x549   :  { %v2207_v30 = vpop.f32.mrb[164].mxu0 }
 0x54a   :  { %v2208_v63 = vadd.f32 %v10419_v33, %v2207_v30  ;;  %v2209_v6 = vpop.f32.mrb[165].mxu0  ;;  %v2551_v14 = vpack.c.bf16 %v2520_v23, %v2519_v44 }
 0x54b   :  { %v2210_v21 = vpop.f32.mrb[166].mxu0 }
 0x54c   :  { %v2211_v57 = vadd.f32 %v10419_v33, %v2210_v21  ;;  %v2212_v58 = vpop.f32.mrb[167].mxu0  ;;  %v2433_v7 = vadd.f32 %v10440_v51, %v2208_v63  ;;  %8112 = vmatprep.subr.bf16.mxu0 %v2551_v14 }
 0x54d   :  { %8113 = vmatpush3.bf16.msra.mxu0 %v2551_v14 }
 0x54e   :  { %v2436_v59 = vadd.f32 %v10443_v34, %v2211_v57  ;;  %v2521_v16 = vmax.f32 %v2433_v7, 0.0 }
 0x550   :  { %v2522_v53 = vmax.f32 %v2436_v59, 0.0 }
 0x551   :  { %v2215_v4 = vpop.f32.mrb[168].mxu0 }
 0x552   :  { %v2216_v48 = vadd.f32 %v10419_v33, %v2215_v4  ;;  %v2217_v8 = vpop.f32.mrb[169].mxu0  ;;  %v2552_v49 = vpack.c.bf16 %v2522_v53, %v2521_v16 }
 0x553   :  { %v2218_v30 = vpop.f32.mrb[170].mxu0 }
 0x554   :  { %v2219_v44 = vadd.f32 %v10419_v33, %v2218_v30  ;;  %v2220_v23 = vpop.f32.mrb[171].mxu0  ;;  %v2441_v13 = vadd.f32 %v10451_v27, %v2216_v48  ;;  %8114 = vmatprep.subr.bf16.mxu0 %v2552_v49 }
 0x555   :  { %8115 = vmatpush3.bf16.msra.mxu0 %v2552_v49 }
 0x556   :  { %v2444_v51 = vadd.f32 %v10455_v60, %v2219_v44  ;;  %v2523_v40 = vmax.f32 %v2441_v13, 0.0 }
 0x558   :  { %v2524_v55 = vmax.f32 %v2444_v51, 0.0 }
 0x559   :  { %v2223_v57 = vpop.f32.mrb[172].mxu0 }
 0x55a   :  { %v2224_v34 = vadd.f32 %v10419_v33, %v2223_v57  ;;  %v2225_v63 = vpop.f32.mrb[173].mxu0  ;;  %v2553_v6 = vpack.c.bf16 %v2524_v55, %v2523_v40 }
 0x55b   :  { %v2226_v14 = vpop.f32.mrb[174].mxu0 }
 0x55c   :  { %v2227_v21 = vadd.f32 %v10419_v33, %v2226_v14  ;;  %v2228_v58 = vpop.f32.mrb[175].mxu0  ;;  %v2449_v7 = vadd.f32 %v10448_v47, %v2224_v34  ;;  %8116 = vmatprep.subr.bf16.mxu0 %v2553_v6 }
 0x55d   :  { %8117 = vmatpush3.bf16.msra.mxu0 %v2553_v6 }
 0x55e   :  { %v2452_v27 = vadd.f32 %v10453_v11, %v2227_v21  ;;  %v2525_v59 = vmax.f32 %v2449_v7, 0.0 }
 0x560   :  { %v2526_v16 = vmax.f32 %v2452_v27, 0.0 }
 0x561   :  { %v2231_v60 = vpop.f32.mrb[176].mxu0 }
 0x562   :  { %v2232_v53 = vadd.f32 %v10419_v33, %v2231_v60  ;;  %v2233_v4 = vpop.f32.mrb[177].mxu0  ;;  %v2554_v48 = vpack.c.bf16 %v2526_v16, %v2525_v59 }
 0x563   :  { %v2234_v8 = vpop.f32.mrb[178].mxu0 }
 0x564   :  { %v2235_v49 = vadd.f32 %v10419_v33, %v2234_v8  ;;  %v2236_v30 = vpop.f32.mrb[179].mxu0  ;;  %v2457_v44 = vadd.f32 %v10463_v19, %v2232_v53  ;;  %8118 = vmatprep.subr.bf16.mxu0 %v2554_v48 }
 0x565   :  { %8119 = vmatpush3.bf16.msra.mxu0 %v2554_v48 }
 0x566   :  { %v2460_v47 = vadd.f32 %v10467_v10, %v2235_v49  ;;  %v2527_v23 = vmax.f32 %v2457_v44, 0.0 }
 0x568   :  { %v2528_v13 = vmax.f32 %v2460_v47, 0.0 }
 0x569   :  { %v2239_v11 = vpop.f32.mrb[180].mxu0 }
 0x56a   :  { %v2240_v51 = vadd.f32 %v10419_v33, %v2239_v11  ;;  %v2241_v40 = vpop.f32.mrb[181].mxu0  ;;  %v2555_v55 = vpack.c.bf16 %v2528_v13, %v2527_v23 }
 0x56b   :  { %v2242_v57 = vpop.f32.mrb[182].mxu0 }
 0x56c   :  { %v2243_v34 = vadd.f32 %v10419_v33, %v2242_v57  ;;  %v2244_v63 = vpop.f32.mrb[183].mxu0  ;;  %v2465_v6 = vadd.f32 %v10460_v46, %v2240_v51  ;;  %8120 = vmatprep.subr.bf16.mxu0 %v2555_v55 }
 0x56d   :  { %8121 = vmatpush3.bf16.msra.mxu0 %v2555_v55  ;;  %v2072_v55 = vadd.f32 %v10419_v33, %v10378_v26  ;;  %v2083_v63 = vadd.f32 %v10419_v33, %v10390_v25 }
 0x56e   :  { %v2468_v19 = vadd.f32 %v10465_v28, %v2243_v34  ;;  %v2529_v14 = vmax.f32 %v2465_v6, 0.0 }
 0x570   :  { %v2530_v21 = vmax.f32 %v2468_v19, 0.0 }
 0x571   :  { %v2247_v10 = vpop.f32.mrb[184].mxu0 }
 0x572   :  { %v2248_v58 = vadd.f32 %v10419_v33, %v2247_v10  ;;  %v2249_v7 = vpop.f32.mrb[185].mxu0  ;;  %v2556_v27 = vpack.c.bf16 %v2530_v21, %v2529_v14 }
 0x573   :  { %v2250_v59 = vpop.f32.mrb[186].mxu0 }
 0x574   :  { %v2251_v16 = vadd.f32 %v10419_v33, %v2250_v59  ;;  %v2252_v60 = vpop.f32.mrb[187].mxu0  ;;  %v2473_v53 = vadd.f32 %v10476_v36, %v2248_v58  ;;  %8122 = vmatprep.subr.bf16.mxu0 %v2556_v27  ;;  %v2096_v59 = vadd.f32 %v10419_v33, %v10396_v17  ;;  %v2091_v17 = vadd.f32 %v10419_v33, %v10394_v20 }
 0x575   :  { %8123 = vmatpush3.bf16.msra.mxu0 %v2556_v27 }
 0x576   :  { %v2476_v46 = vadd.f32 %v10480_v12, %v2251_v16  ;;  %v2531_v4 = vmax.f32 %v2473_v53, 0.0  ;;  %v2080_v12 = vadd.f32 %v10419_v33, %v10388_v18 }
 0x578   :  { %v2532_v48 = vmax.f32 %v2476_v46, 0.0  ;;  %v2099_v46 = vadd.f32 %v10419_v33, %v10398_v9  ;;  %v2112_v9 = vadd.f32 %v10419_v33, %v10404_v5  ;;  %v2107_v5 = vadd.f32 %v10419_v33, %v10402_v15 }
 0x579   :  { %v2255_v28 = vpop.f32.mrb[188].mxu0 }
 0x57a   :  { %v2256_v8 = vadd.f32 %v10419_v33, %v2255_v28  ;;  %v2257_v49 = vpop.f32.mrb[189].mxu0  ;;  %v2557_v30 = vpack.c.bf16 %v2532_v48, %v2531_v4 }
 0x57b   :  { %v2258_v44 = vpop.f32.mrb[190].mxu0 }
 0x57c   :  { %v2259_v47 = vadd.f32 %v10419_v33, %v2258_v44  ;;  %v2260_v23 = vpop.f32.mrb[191].mxu0  ;;  %v2481_v13 = vadd.f32 %v10472_v56, %v2256_v8  ;;  %8124 = vmatprep.subr.bf16.mxu0 %v2557_v30  ;;  %v12714_v8 = vmov 0  }
 0x57d   :  { %8125 = vmatpush3.bf16.msra.mxu0 %v2557_v30 }
 0x57e   :  { %v2484_v36 = vadd.f32 %v10478_v39, %v2259_v47  ;;  %v2533_v11 = vmax.f32 %v2481_v13, 0.0  ;;  %v2075_v39 = vadd.f32 %v10419_v33, %v10380_v52  ;;  %v2088_v52 = vadd.f32 %v10419_v33, %v10392_v22 }
 0x57f   :  { %v2104_v13 = vadd.f32 %v10419_v33, %v10400_v43 }
 0x580   :  { %v2534_v51 = vmax.f32 %v2484_v36, 0.0 }
 0x581   :  { %v8066_v40 = vpop.f32.mrb[192].mxu0 }
 0x582   :  { %v2305_v57 = vadd.f32 %v8066_v40, %v2080_v12  ;;  %v2296_v34 = vpop.f32.mrb[193].mxu0  ;;  %v2558_v6 = vpack.c.bf16 %v2534_v51, %v2533_v11  ;;  %v2115_v11 = vadd.f32 %v10419_v33, %v10406_v62  ;;  %v2128_v62 = vadd.f32 %v10419_v33, %v10412_v61 }
 0x583   :  { %v2297_v56 = vadd.f32 %v2296_v34, %v2072_v55  ;;  %v8067_v19 = vpop.f32.mrb[194].mxu0  ;;  %v2123_v61 = vadd.f32 %v10419_v33, %v10410_v37  ;;  %v9004_v37 = vld [vmem:[%s12649_s18 + $0xc8] ss:$12 sps:$4 sm:$0xff]  }
 0x584   :  { %v2308_v14 = vadd.f32 %v8067_v19, %v2083_v63  ;;  %v2299_v21 = vpop.f32.mrb[195].mxu0  ;;  %8126 = vmatprep.subr.bf16.mxu0 %v2558_v6  ;;  %v2489_v10 = vmax.f32 %v2305_v57, 0.0  ;;  %v2120_v19 = vadd.f32 %v10419_v33, %v10408_v3 }
 0x585   :  { %v2300_v18 = vadd.f32 %v2299_v21, %v2075_v39  ;;  %8127 = vmatpush3.bf16.msra.mxu0 %v2558_v6  ;;  %v2487_v7 = vmax.f32 %v2297_v56, 0.0  ;;  %v2131_v21 = vadd.f32 %v10419_v33, %v10414_v54  ;;  %v12716_v33 = vld [vmem:[#allocation79_spill] sm:$0xff] }
 0x586   :  { %v2490_v58 = vmax.f32 %v2308_v14, 0.0 }
 0x587   :  { %v2488_v26 = vmax.f32 %v2300_v18, 0.0 }
 0x588   :  { %v2536_v27 = vpack.c.bf16 %v2490_v58, %v2489_v10  ;;  %8129 = vmatmul.mubr.bf16.vlgmr.msra.gmra.mrb[208].mxu0 %v10345_v0 }
 0x589   :  { %v2535_v25 = vpack.c.bf16 %v2488_v26, %v2487_v7  ;;  %v8070_v16 = vpop.f32.mrb[196].mxu0  ;;  %8132 = vmatprep.mubr.bf16.mxu0 %v10351_v45 }
 0x58a   :  { %v2321_v60 = vadd.f32 %v8070_v16, %v2096_v59  ;;  %v2312_v53 = vpop.f32.mrb[197].mxu0  ;;  %v12723_v16 = vld [vmem:[#allocation48_spill] sm:$0xff] }
 0x58b   :  { %v2313_v4 = vadd.f32 %v2312_v53, %v2088_v52  ;;  %v8071_v48 = vpop.f32.mrb[198].mxu0  ;;  %2560 = vmatpush1.bf16.msra.mxu1 %v2535_v25  ;;  %v12717_v25 = vld [vmem:[#allocation80_spill] sm:$0xff]  ;;  %v12724_v52 = vld [vmem:[#allocation83_spill] sm:$0xff] }
 0x58c   :  { %v2324_v28 = vadd.f32 %v8071_v48, %v2099_v46  ;;  %v2315_v0 = vpop.f32.mrb[199].mxu0  ;;  %2561 = vmatprep.subr.bf16.mxu1 %v12714_v8  ;;  %v2493_v30 = vmax.f32 %v2321_v60, 0.0  ;;  %v8579_v60 = vld [vmem:[#allocation6] sm:$0xff]   ;;  %v12728_v48 = vld [vmem:[#allocation21_spill] sm:$0xff] }
 0x58d   :  { %v2316_v49 = vadd.f32 %v2315_v0, %v2091_v17  ;;  %v2491_v44 = vmax.f32 %v2313_v4, 0.0  ;;  %v12725_v53 = vld [vmem:[#allocation51_spill] sm:$0xff]  ;;  %v12726_v46 = vld [vmem:[#allocation52_spill] sm:$0xff]  ;;  %v12731_v0 = vld [vmem:[#allocation22_spill] sm:$0xff] }
 0x58e   :  { %v2494_v22 = vmax.f32 %v2324_v28, 0.0  ;;  %v12727_v4 = vld [vmem:[#allocation20_spill] sm:$0xff]  ;;  %v12729_v17 = vld [vmem:[#allocation55_spill] sm:$0xff] }
 0x58f   :  { %v2492_v45 = vmax.f32 %v2316_v49, 0.0  ;;  %2562 = vmatpush1.bf16.msra.mxu1 %v2536_v27  ;;  %v12730_v28 = vld [vmem:[#allocation56_spill] sm:$0xff] }
 0x590   :  { %v2538_v47 = vpack.c.bf16 %v2494_v22, %v2493_v30  ;;  %2563 = vmatprep.subr.bf16.mxu1 %v12714_v8  ;;  %8133 = vmatmul.mubr.bf16.gmra.mrb[212].mxu0 %v10357_v24  ;;  %v8580_v49 = vld [vmem:[#allocation6 + $0x8] sm:$0xff]   ;;  %v12732_v30 = vld [vmem:[#allocation23_spill] sm:$0xff] }
 0x591   :  { %v2537_v23 = vpack.c.bf16 %v2492_v45, %v2491_v44  ;;  %v8074_v20 = vpop.f32.mrb[200].mxu0  ;;  %8136 = vmatprep.mubr.bf16.mxu0 %v10363_v42  ;;  %v12734_v22 = vld [vmem:[#allocation60_spill] sm:$0xff]  ;;  %v12736_v45 = vld [vmem:[#allocation25_spill] sm:$0xff] }
 0x592   :  { %v2337_v36 = vadd.f32 %v8074_v20, %v2112_v9  ;;  %v2328_v12 = vpop.f32.mrb[201].mxu0  ;;  %v12735_v44 = vld [vmem:[#allocation24_spill] sm:$0xff]  ;;  %v12738_v9 = vld [vmem:[#allocation26_spill] sm:$0xff] }
 0x593   :  { %v2329_v51 = vadd.f32 %v2328_v12, %v2104_v13  ;;  %v8075_v40 = vpop.f32.mrb[202].mxu0  ;;  %2564 = vmatpush1.bf16.msra.mxu1 %v2537_v23  ;;  %v12739_v23 = vld [vmem:[#allocation27_spill] sm:$0xff]  ;;  %v12740_v20 = vld [vmem:[#allocation28_spill] sm:$0xff]  ;;  %v12741_v13 = vld [vmem:[#allocation29_spill] sm:$0xff] }
 0x594   :  { %v2340_v55 = vadd.f32 %v8075_v40, %v2115_v11  ;;  %v2331_v24 = vpop.f32.mrb[203].mxu0  ;;  %2565 = vmatprep.subr.bf16.mxu1 %v12714_v8  ;;  %v2497_v34 = vmax.f32 %v2337_v36, 0.0  ;;  %v12742_v36 = vld [vmem:[#allocation30_spill] sm:$0xff]  ;;  %v12743_v11 = vld [vmem:[#allocation31_spill] sm:$0xff]  ;;  %v12745_v40 = vld [vmem:[#allocation33_spill] sm:$0xff] }
 0x595   :  { %v2332_v57 = vadd.f32 %v2331_v24, %v2107_v5  ;;  %v2495_v63 = vmax.f32 %v2329_v51, 0.0  ;;  %v8581_v12 = vld [vmem:[#allocation6 + $0x10] sm:$0xff]   ;;  %v12744_v51 = vld [vmem:[#allocation32_spill] sm:$0xff] }
 0x596   :  { %v2498_v43 = vmax.f32 %v2340_v55, 0.0  ;;  %v12746_v5 = vld [vmem:[#allocation34_spill] sm:$0xff]  ;;  %v8582_v55 = vld [vmem:[#allocation4] ss:$8 sps:$4 sm:$0xff]  }
 0x597   :  { %v2496_v42 = vmax.f32 %v2332_v57, 0.0  ;;  %2566 = vmatpush1.bf16.msra.mxu1 %v2538_v47  ;;  %v12737_v47 = vld [vmem:[#allocation63_spill] sm:$0xff]  ;;  %v8584_v24 = vld [vmem:[#allocation4 + $0x4] ss:$8 sps:$4 sm:$0xff]  }
 0x598   :  { %v2540_v6 = vpack.c.bf16 %v2498_v43, %v2497_v34  ;;  %2567 = vmatprep.subr.bf16.mxu1 %v12714_v8  ;;  %8137 = vmatmul.mubr.bf16.gmra.mrb[216].mxu0 %v10369_v41  ;;  %v8585_v57 = vld [vmem:[#allocation6 + $0x18] sm:$0xff]   ;;  %v12748_v43 = vld [vmem:[#allocation36_spill] sm:$0xff] }
 0x599   :  { %v2539_v56 = vpack.c.bf16 %v2496_v42, %v2495_v63  ;;  %v8078_v15 = vpop.f32.mrb[204].mxu0  ;;  %8140 = vmatprep.mubr.bf16.mxu0 %v10375_v31  ;;  %v12747_v34 = vld [vmem:[#allocation35_spill] sm:$0xff]  ;;  %3143 = vmatprep.subr.bf16.mxu0 %v8584_v24  ;;  %v12749_v63 = vld [vmem:[#allocation37_spill] sm:$0xff]  ;;  %v12750_v42 = vld [vmem:[#allocation38_spill] sm:$0xff] }
 0x59a   :  { %v2353_v39 = vadd.f32 %v8078_v15, %v2128_v62  ;;  %v2344_v14 = vpop.f32.mrb[205].mxu0  ;;  %3144 = vmatpush1.bf16.msra.mxu0 %v8582_v55  ;;  %v12752_v62 = vld [vmem:[#allocation41_spill] sm:$0xff]  ;;  %v12753_v15 = vld [vmem:[#allocation42_spill] sm:$0xff] }
 0x59b   :  { %v2345_v18 = vadd.f32 %v2344_v14, %v2120_v19  ;;  %v8079_v10 = vpop.f32.mrb[206].mxu0  ;;  %2568 = vmatpush1.bf16.msra.mxu1 %v2539_v56  ;;  %v8588_v56 = vld [vmem:[#allocation6 + $0x20] sm:$0xff]   ;;  %v3035_v19 = vld [vmem:[#allocation4 + $0x10] sm:$0xff] }
 0x59c   :  { %v2356_v58 = vadd.f32 %v8079_v10, %v2131_v21  ;;  %v2347_v41 = vpop.f32.mrb[207].mxu0  ;;  %2569 = vmatprep.subr.bf16.mxu1 %v12714_v8  ;;  %v2501_v26 = vmax.f32 %v2353_v39, 0.0  ;;  %v8589_v39 = vld [vmem:[#allocation6 + $0x28] sm:$0x7f]   ;;  %v7403_v14 = vcombine.high %v3035_v19, %v3035_v19  ;;  %v7402_v21 = vcombine.low %v3035_v19, %v3035_v19  ;;  %v8594_v19 = vld [vmem:[%s12778_s5 + $0x20] sm:$0xff]  }
 0x59d   :  { %v2348_v7 = vadd.f32 %v2347_v41, %v2123_v61  ;;  %v2499_v27 = vmax.f32 %v2345_v18, 0.0  ;;  %v3713_v18 = vsel %vm3711_vm2, %v8589_v39, 0  ;;  %v12754_v61 = vld [vmem:[#allocation45_spill] sm:$0xff] }
 0x59e   :  { %v2502_v3 = vmax.f32 %v2356_v58, 0.0  ;;  %7404 = vmatprep.subr.msk.bf16.mxu0 %vm3136_vm3, %v7403_v14  ;;  %v3138_v10 = vsel %vm3136_vm3, %v7402_v21, 0  ;;  %v12755_v58 = vld [vmem:[#allocation46_spill] sm:$0xff]  ;;  %v12756_v41 = vld [vmem:[#allocation49_spill] sm:$0xff] }
 0x59f   :  { %v2500_v31 = vmax.f32 %v2348_v7, 0.0  ;;  %2570 = vmatpush1.bf16.msra.mxu1 %v2540_v6  ;;  %v12751_v6 = vld [vmem:[#allocation39_spill] sm:$0xff]  ;;  %3146 = vmatpush1.bf16.msra.mxu0 %v3138_v10  ;;  %v12757_v7 = vld [vmem:[#allocation50_spill] sm:$0xff] }
 0x5a0   :  { %v2542_v59 = vpack.c.bf16 %v2502_v3, %v2501_v26  ;;  %2571 = vmatprep.subr.bf16.mxu1 %v12714_v8  ;;  %8141 = vmatmul.mubr.bf16.gmra.mrb[220].mxu0 %v10385_v35  ;;  %v12715_v35 = vld [vmem:[#allocation40_spill] sm:$0xff]  ;;  %v12758_v26 = vld [vmem:[#allocation53_spill] sm:$0xff]  ;;  %v12759_v3 = vld [vmem:[#allocation54_spill] sm:$0xff] }
 0x5a1   :  { %v2541_v54 = vpack.c.bf16 %v2500_v31, %v2499_v27  ;;  %8144 = vmatprep.mubr.bf16.mxu0 %v9004_v37  ;;  %4663 = vmatprep.subr.bf16.mxu0 %v12714_v8  ;;  %v12760_v27 = vld [vmem:[#allocation57_spill] sm:$0xff]  ;;  %v12761_v31 = vld [vmem:[#allocation58_spill] sm:$0xff]  ;;  %v12764_v37 = vld [vmem:[#allocation64_spill] sm:$0xff] }
 0x5a3   :  { %2572 = vmatpush1.bf16.msra.mxu1 %v2541_v54  ;;  %v12763_v54 = vld [vmem:[#allocation62_spill] sm:$0xff] }
 0x5a4   :  { %2573 = vmatprep.subr.bf16.mxu1 %v12714_v8 }
 0x5a7   :  { %2574 = vmatpush1.bf16.msra.mxu1 %v2542_v59  ;;  %v12762_v59 = vld [vmem:[#allocation61_spill] sm:$0xff] }
 0x5a8   :  { %2575 = vmatprep.subr.bf16.mxu1 %v12714_v8  ;;  %8145 = vmatmul.mubr.bf16.gmra.mrb[224].mxu0 %v10075_v50  ;;  %v12718_v50 = vld [vmem:[#allocation43_spill] sm:$0xff] }
 0x5a9   :  { %8148 = vmatprep.mubr.bf16.mxu0 %v10081_v38  ;;  %v12720_v38 = vld [vmem:[#allocation81_spill] sm:$0xff] }
 0x5ab   :  { %2576 = vmatpush1.bf16.msra.mxu1 %v10424_v29  ;;  %v12719_v29 = vld [vmem:[#allocation44_spill] sm:$0xff] }
 0x5ac   :  { %2577 = vmatprep.subr.bf16.mxu1 %v12714_v8 }
 0x5af   :  { %2578 = vmatpush1.bf16.msra.mxu1 %v10428_v1  ;;  %v12721_v1 = vld [vmem:[#allocation82_spill] sm:$0xff] }
 0x5b0   :  { %2579 = vmatprep.subr.bf16.mxu1 %v12714_v8  ;;  %8149 = vmatmul.mubr.bf16.gmra.mrb[228].mxu0 %v10099_v32  ;;  %v12722_v32 = vld [vmem:[#allocation47_spill] sm:$0xff] }
 0x5b1   :  { %8152 = vmatprep.mubr.bf16.mxu0 %v12715_v35  ;;  %v12765_v35 = vld [vmem:[#allocation65_spill] sm:$0xff] }
 0x5b3   :  { %2580 = vmatpush1.bf16.msra.mxu1 %v12716_v33  ;;  %v12766_v33 = vld [vmem:[#allocation66_spill] sm:$0xff] }
 0x5b4   :  { %2581 = vmatprep.subr.bf16.mxu1 %v12714_v8 }
 0x5b7   :  { %2582 = vmatpush1.bf16.msra.mxu1 %v12717_v25  ;;  %v12767_v25 = vld [vmem:[#allocation67_spill] sm:$0xff] }
 0x5b8   :  { %2583 = vmatprep.subr.bf16.mxu1 %v12714_v8  ;;  %8153 = vmatmul.mubr.bf16.gmra.mrb[232].mxu0 %v12718_v50  ;;  %v12768_v50 = vld [vmem:[#allocation68_spill] sm:$0xff] }
 0x5b9   :  { %8156 = vmatprep.mubr.bf16.mxu0 %v12719_v29  ;;  %v12769_v29 = vld [vmem:[#allocation69_spill] sm:$0xff] }
 0x5bb   :  { %2584 = vmatpush1.bf16.msra.mxu1 %v12720_v38 }
 0x5bc   :  { %2585 = vmatprep.subr.bf16.mxu1 %v12714_v8 }
 0x5bf   :  { %2586 = vmatpush1.bf16.msra.mxu1 %v12721_v1 }
 0x5c0   :  { %2587 = vmatprep.subr.bf16.mxu1 %v12714_v8  ;;  %8157 = vmatmul.mubr.bf16.gmra.mrb[236].mxu0 %v12722_v32 }
 0x5c1   :  { %8160 = vmatprep.mubr.bf16.mxu0 %v12723_v16 }
 0x5c3   :  { %2588 = vmatpush1.bf16.msra.mxu1 %v12724_v52  ;;  %v12770_v52 = vld [vmem:[#allocation70_spill] sm:$0xff] }
 0x5c4   :  { %2589 = vmatprep.subr.bf16.mxu1 %v12714_v8 }
 0x5c7   :  { %2590 = vmatpush1.bf16.msra.mxu1 %v10483_v2  ;;  %v12733_v2 = vld [vmem:[#allocation59_spill] sm:$0xff] }
 0x5c8   :  { %8176 = vmatprep.subr.bf16.mxu1 %v8579_v60  ;;  %8161 = vmatmul.mubr.bf16.gmra.mrb[240].mxu0 %v12725_v53 }
 0x5c9   :  { %8164 = vmatprep.mubr.bf16.mxu0 %v12726_v46 }
 0x5ca   :  { %2592 = vmatmul.mubr.bf16.vlgmr.msra.gmra.mrb[176].mxu1 %v12727_v4 }
 0x5cb   :  { %2599 = vmatprep.mubr.bf16.mxu1 %v12728_v48  ;;  %8177 = vmatpush3.bf16.msra.mxu1 %v8579_v60  ;;  %v12771_v60 = vld [vmem:[#allocation71_spill] sm:$0xff] }
 0x5cc   :  { %8178 = vmatprep.subr.bf16.mxu1 %v8580_v49 }
 0x5cf   :  { %8179 = vmatpush3.bf16.msra.mxu1 %v8580_v49 }
 0x5d0   :  { %8165 = vmatmul.mubr.bf16.gmra.mrb[244].mxu0 %v12729_v17  ;;  %8180 = vmatprep.subr.bf16.mxu1 %v8581_v12  ;;  %v12772_v17 = vld [vmem:[#allocation72_spill] sm:$0xff] }
 0x5d1   :  { %8168 = vmatprep.mubr.bf16.mxu0 %v12730_v28  ;;  %v12773_v28 = vld [vmem:[#allocation73_spill] sm:$0xff] }
 0x5d2   :  { %2600 = vmatmul.mubr.bf16.gmra.mrb[180].mxu1 %v12731_v0 }
 0x5d3   :  { %2607 = vmatprep.mubr.bf16.mxu1 %v12732_v30  ;;  %8181 = vmatpush3.bf16.msra.mxu1 %v8581_v12 }
 0x5d4   :  { %8182 = vmatprep.subr.bf16.mxu1 %v8585_v57 }
 0x5d7   :  { %8183 = vmatpush3.bf16.msra.mxu1 %v8585_v57 }
 0x5d8   :  { %8169 = vmatmul.mubr.bf16.gmra.mrb[248].mxu0 %v12733_v2  ;;  %8184 = vmatprep.subr.bf16.mxu1 %v8588_v56 }
 0x5d9   :  { %8172 = vmatprep.mubr.bf16.mxu0 %v12734_v22  ;;  %v12774_v22 = vld [vmem:[#allocation74_spill] sm:$0xff] }
 0x5da   :  { %2608 = vmatmul.mubr.bf16.gmra.mrb[184].mxu1 %v12735_v44  ;;  %v12775_v44 = vld [vmem:[#allocation75_spill] sm:$0xff] }
 0x5db   :  { %2615 = vmatprep.mubr.bf16.mxu1 %v12736_v45  ;;  %8185 = vmatpush3.bf16.msra.mxu1 %v8588_v56  ;;  %v8593_v56 = vld [vmem:[%s12778_s5 + $0x18] sm:$0xff]  }
 0x5dc   :  { %8436 = vmatprep.subr.msk.bf16.mxu1 %vm3711_vm2, %v8589_v39 }
 0x5df   :  { %8187 = vmatpush3.bf16.msra.mxu1 %v3713_v18  ;;  %v8595_v18 = vld [vmem:[%s12778_s5 + $0x28] sm:$0xff]  }
 0x5e0   :  { %8173 = vmatmul.mubr.bf16.gmra.mrb[252].mxu0 %v12737_v47 }
 0x5e1   :  { %3175 = vmatprep.mubr.bf16.mxu0 %v12714_v8 }
 0x5e2   :  { %2616 = vmatmul.mubr.bf16.gmra.mrb[188].mxu1 %v12738_v9 }
 0x5e3   :  { %2623 = vmatprep.mubr.bf16.mxu1 %v12739_v23 }
 0x5ea   :  { %2624 = vmatmul.mubr.bf16.gmra.mrb[192].mxu1 %v12740_v20  ;;  %v12776_v20 = vld [vmem:[#allocation76_spill] sm:$0xff] }
 0x5eb   :  { %2631 = vmatprep.mubr.bf16.mxu1 %v12741_v13  ;;  %v12777_v13 = vld [vmem:[#allocation77_spill] sm:$0xff] }
 0x5f2   :  { %2632 = vmatmul.mubr.bf16.gmra.mrb[196].mxu1 %v12742_v36 }
 0x5f3   :  { %2639 = vmatprep.mubr.bf16.mxu1 %v12743_v11 }
 0x5fa   :  { %2640 = vmatmul.mubr.bf16.gmra.mrb[200].mxu1 %v12744_v51 }
 0x5fb   :  { %2647 = vmatprep.mubr.bf16.mxu1 %v12745_v40  ;;  %v8590_v40 = vld [vmem:[%s12778_s5] sm:$0xff]  }
 0x602   :  { %2648 = vmatmul.mubr.bf16.gmra.mrb[204].mxu1 %v12746_v5  ;;  %v12779_v5 = vld [vmem:[#allocation78_spill] sm:$0xff] }
 0x603   :  { %2655 = vmatprep.mubr.bf16.mxu1 %v12747_v34  ;;  %v8591_v34 = vld [vmem:[%s12778_s5 + $0x8] sm:$0xff]  }
 0x60a   :  { %2656 = vmatmul.mubr.bf16.gmra.mrb[208].mxu1 %v12748_v43 }
 0x60b   :  { %2663 = vmatprep.mubr.bf16.mxu1 %v12749_v63  ;;  %v8592_v63 = vld [vmem:[%s12778_s5 + $0x10] sm:$0xff]  }
 0x612   :  { %2664 = vmatmul.mubr.bf16.gmra.mrb[212].mxu1 %v12750_v42 }
 0x613   :  { %2671 = vmatprep.mubr.bf16.mxu1 %v12751_v6 }
 0x61a   :  { %2672 = vmatmul.mubr.bf16.gmra.mrb[216].mxu1 %v12752_v62 }
 0x61b   :  { %2679 = vmatprep.mubr.bf16.mxu1 %v12753_v15 }
 0x622   :  { %2680 = vmatmul.mubr.bf16.gmra.mrb[220].mxu1 %v12754_v61  ;;  %v8596_v61 = vld [vmem:[%s12778_s5 + $0x30] sm:$0xff]  }
 0x623   :  { %2687 = vmatprep.mubr.bf16.mxu1 %v12755_v58 }
 0x62a   :  { %2688 = vmatmul.mubr.bf16.gmra.mrb[224].mxu1 %v12756_v41 }
 0x62b   :  { %2695 = vmatprep.mubr.bf16.mxu1 %v12757_v7 }
 0x632   :  { %2696 = vmatmul.mubr.bf16.gmra.mrb[228].mxu1 %v12758_v26 }
 0x633   :  { %2703 = vmatprep.mubr.bf16.mxu1 %v12759_v3 }
 0x63a   :  { %2704 = vmatmul.mubr.bf16.gmra.mrb[232].mxu1 %v12760_v27 }
 0x63b   :  { %2711 = vmatprep.mubr.bf16.mxu1 %v12761_v31  ;;  %v8597_v31 = vld [vmem:[%s12778_s5 + $0x38] sm:$0xff]  }
 0x642   :  { %2712 = vmatmul.mubr.bf16.gmra.mrb[236].mxu1 %v12762_v59 }
 0x643   :  { %2719 = vmatprep.mubr.bf16.mxu1 %v12763_v54 }
 0x64a   :  { %2720 = vmatmul.mubr.bf16.gmra.mrb[240].mxu1 %v12764_v37  ;;  %v8598_v37 = vld [vmem:[%s12778_s5 + $0x40] sm:$0xff]  }
 0x64b   :  { %2727 = vmatprep.mubr.bf16.mxu1 %v12765_v35 }
 0x652   :  { %2728 = vmatmul.mubr.bf16.gmra.mrb[244].mxu1 %v12766_v33 }
 0x653   :  { %2735 = vmatprep.mubr.bf16.mxu1 %v12767_v25  ;;  %v8604_v25 = vld [vmem:[#allocation9] sm:$0xff]  }
 0x65a   :  { %2736 = vmatmul.mubr.bf16.gmra.mrb[248].mxu1 %v12768_v50 }
 0x65b   :  { %2743 = vmatprep.mubr.bf16.mxu1 %v12769_v29  ;;  %v10634_v38 = vpop.f32.mrb[208].mxu0 }
 0x65c   :  { %v2818_v1 = vpop.f32.mrb[209].mxu0 }
 0x65d   :  { %v10636_v32 = vpop.f32.mrb[210].mxu0 }
 0x65e   :  { %v10638_v16 = vpop.f32.mrb[211].mxu0 }
 0x662   :  { %2744 = vmatmul.mubr.bf16.gmra.mrb[252].mxu1 %v12770_v52 }
 0x663   :  { %2751 = vmatprep.mubr.bf16.mxu1 %v12771_v60  ;;  %v10642_v53 = vpop.f32.mrb[212].mxu0 }
 0x664   :  { %v10644_v46 = vpop.f32.mrb[213].mxu0 }
 0x665   :  { %v10646_v4 = vpop.f32.mrb[214].mxu0 }
 0x666   :  { %v10648_v48 = vpop.f32.mrb[215].mxu0 }
 0x66a   :  { %2752 = vmatmul.mubr.bf16.gmra.mrb[0].mxu1 %v12772_v17 }
 0x66b   :  { %2759 = vmatprep.mubr.bf16.mxu1 %v12773_v28  ;;  %v10652_v0 = vpop.f32.mrb[216].mxu0  ;;  %v8600_v28 = vld [vmem:[%s12778_s5 + $0x50] sm:$0xff]  }
 0x66c   :  { %v10654_v49 = vpop.f32.mrb[217].mxu0 }
 0x66d   :  { %v10656_v30 = vpop.f32.mrb[218].mxu0 }
 0x66e   :  { %v10658_v2 = vpop.f32.mrb[219].mxu0 }
 0x672   :  { %2760 = vmatmul.mubr.bf16.gmra.mrb[4].mxu1 %v12774_v22 }
 0x673   :  { %2767 = vmatprep.mubr.bf16.mxu1 %v12775_v44  ;;  %v10662_v45 = vpop.f32.mrb[220].mxu0 }
 0x674   :  { %v10664_v47 = vpop.f32.mrb[221].mxu0 }
 0x675   :  { %v10666_v9 = vpop.f32.mrb[222].mxu0 }
 0x676   :  { %v10668_v23 = vpop.f32.mrb[223].mxu0 }
 0x67a   :  { %2768 = vmatmul.mubr.bf16.gmra.mrb[8].mxu1 %v12776_v20 }
 0x67b   :  { %2775 = vmatprep.mubr.bf16.mxu1 %v12777_v13  ;;  %v10672_v36 = vpop.f32.mrb[224].mxu0 }
 0x67c   :  { %v10674_v12 = vpop.f32.mrb[225].mxu0 }
 0x67d   :  { %v10676_v11 = vpop.f32.mrb[226].mxu0 }
 0x67e   :  { %v10678_v51 = vpop.f32.mrb[227].mxu0 }
 0x682   :  { %2776 = vmatmul.mubr.bf16.gmra.mrb[12].mxu1 %v12779_v5 }
 0x683   :  { %8188 = vmatprep.mubr.msk.bf16.mxu1 %vm3638_vm4, %v8590_v40  ;;  %v10685_v55 = vpop.f32.mrb[228].mxu0 }
 0x684   :  { %v10687_v24 = vpop.f32.mrb[229].mxu0 }
 0x685   :  { %v10689_v57 = vpop.f32.mrb[230].mxu0 }
 0x686   :  { %v10694_v43 = vpop.f32.mrb[231].mxu0 }
 0x68a   :  { %8189 = vmatmul.mubr.msk.bf16.vlgmr.msra.gmra.mrb[16].mxu1 %vm3638_vm4, %v8591_v34 }
 0x68b   :  { %8192 = vmatprep.mubr.msk.bf16.mxu1 %vm3638_vm4, %v8592_v63  ;;  %v10701_v42 = vpop.f32.mrb[232].mxu0 }
 0x68c   :  { %v10703_v6 = vpop.f32.mrb[233].mxu0 }
 0x68d   :  { %v10705_v62 = vpop.f32.mrb[234].mxu0 }
 0x68e   :  { %v10710_v15 = vpop.f32.mrb[235].mxu0 }
 0x692   :  { %8193 = vmatmul.mubr.msk.bf16.gmra.mrb[20].mxu1 %vm3638_vm4, %v8593_v56  ;;  %v8601_v56 = vld [vmem:[%s12778_s5 + $0x58] sm:$0xff]  }
 0x693   :  { %8196 = vmatprep.mubr.msk.bf16.mxu1 %vm3638_vm4, %v8594_v19  ;;  %v10717_v39 = vpop.f32.mrb[236].mxu0 }
 0x694   :  { %v10719_v14 = vpop.f32.mrb[237].mxu0 }
 0x695   :  { %v10721_v21 = vpop.f32.mrb[238].mxu0 }
 0x696   :  { %v10726_v10 = vpop.f32.mrb[239].mxu0 }
 0x69a   :  { %8197 = vmatmul.mubr.msk.bf16.gmra.mrb[24].mxu1 %vm3638_vm4, %v8595_v18  ;;  %v8602_v18 = vld [vmem:[%s12778_s5 + $0x60] sm:$0xff]  }
 0x69b   :  { %8200 = vmatprep.mubr.msk.bf16.mxu1 %vm3638_vm4, %v8596_v61  ;;  %v10733_v58 = vpop.f32.mrb[240].mxu0 }
 0x69c   :  { %v10735_v41 = vpop.f32.mrb[241].mxu0 }
 0x69d   :  { %v2593_v7 = vpop.f32.mrb[176].mxu1  ;;  %v10737_v26 = vpop.f32.mrb[242].mxu0 }
 0x69e   :  { %v2819_v3 = vadd.f32 %v2818_v1, %v2593_v7  ;;  %v2595_v27 = vpop.f32.mrb[177].mxu1  ;;  %v10742_v59 = vpop.f32.mrb[243].mxu0  ;;  %v8607_v1 = vld [vmem:[#allocation9 + $0x8] sm:$0xff]  }
 0x69f   :  { %v2596_v54 = vpop.f32.mrb[178].mxu1  ;;  %v8610_v27 = vld [vmem:[#allocation9 + $0x10] sm:$0xff]  }
 0x6a0   :  { %v2822_v35 = vadd.f32 %v10638_v16, %v2596_v54  ;;  %v2598_v33 = vpop.f32.mrb[179].mxu1  ;;  %v8599_v16 = vld [vmem:[%s12778_s5 + $0x48] sm:$0xff]  }
 0x6a2   :  { %v3009_v50 = vpack.c.bf16 %v2822_v35, %v2819_v3  ;;  %8201 = vmatmul.mubr.msk.bf16.gmra.mrb[28].mxu1 %vm3638_vm4, %v8597_v31  ;;  %v8605_v35 = vld [vmem:[%s12778_s5 + $0x70] sm:$0xff]  }
 0x6a3   :  { %8204 = vmatprep.mubr.msk.bf16.mxu1 %vm3638_vm4, %v8598_v37 }
 0x6a4   :  { %7405 = vmatmul.mubr.msk.bf16.vlgmr.msra.gmra.mrb[0].mxu0 %vm3063_vm5, %v3009_v50 }
 0x6a5   :  { %v2601_v29 = vpop.f32.mrb[180].mxu1  ;;  %3185 = vmatprep.mubr.bf16.mxu0 %v12714_v8  ;;  %4664 = vmatpush1.bf16.msra.mxu0 %v8604_v25 }
 0x6a6   :  { %v2827_v52 = vadd.f32 %v10634_v38, %v2601_v29  ;;  %v2603_v60 = vpop.f32.mrb[181].mxu1  ;;  %4665 = vmatprep.subr.bf16.mxu0 %v12714_v8  ;;  %v10762_v38 = vpop.f32.mrb[244].mxu0 }
 0x6a7   :  { %v2604_v17 = vpop.f32.mrb[182].mxu1  ;;  %v10766_v13 = vpop.f32.mrb[245].mxu0 }
 0x6a8   :  { %v2830_v22 = vadd.f32 %v10636_v32, %v2604_v17  ;;  %v2606_v44 = vpop.f32.mrb[183].mxu1  ;;  %v10769_v40 = vpop.f32.mrb[246].mxu0  ;;  %v8606_v17 = vld [vmem:[%s12778_s5 + $0x78] sm:$0xff]  }
 0x6a9   :  { %4666 = vmatpush1.bf16.msra.mxu0 %v8607_v1  ;;  %v10772_v32 = vpop.f32.mrb[247].mxu0 }
 0x6aa   :  { %v3010_v20 = vpack.c.bf16 %v2830_v22, %v2827_v52  ;;  %8205 = vmatmul.mubr.msk.bf16.gmra.mrb[32].mxu1 %vm3638_vm4, %v8599_v16  ;;  %4667 = vmatprep.subr.bf16.mxu0 %v12714_v8  ;;  %v8608_v22 = vld [vmem:[%s12778_s5 + $0x80] sm:$0xff]  }
 0x6ab   :  { %8208 = vmatprep.mubr.msk.bf16.mxu1 %vm3638_vm4, %v8600_v28  ;;  %v10796_v29 = vpop.f32.mrb[248].mxu0 }
 0x6ac   :  { %7406 = vmatmul.mubr.msk.bf16.gmra.mrb[4].mxu0 %vm3063_vm5, %v3010_v20 }
 0x6ad   :  { %v2609_v5 = vpop.f32.mrb[184].mxu1  ;;  %3195 = vmatprep.mubr.bf16.mxu0 %v12714_v8  ;;  %4668 = vmatpush1.bf16.msra.mxu0 %v8610_v27 }
 0x6ae   :  { %v2835_v34 = vadd.f32 %v10644_v46, %v2609_v5  ;;  %v2611_v63 = vpop.f32.mrb[185].mxu1  ;;  %4669 = vmatprep.subr.bf16.mxu0 %v12714_v8 }
 0x6af   :  { %v2612_v19 = vpop.f32.mrb[186].mxu1 }
 0x6b0   :  { %v2838_v61 = vadd.f32 %v10648_v48, %v2612_v19  ;;  %v2614_v7 = vpop.f32.mrb[187].mxu1  ;;  %v8603_v48 = vld [vmem:[%s12778_s5 + $0x68] sm:$0xff]  }
 0x6b1   :  { %v8613_v19 = vld [vmem:[#allocation9 + $0x18] sm:$0xff]  }
 0x6b2   :  { %v3011_v3 = vpack.c.bf16 %v2838_v61, %v2835_v34  ;;  %8209 = vmatmul.mubr.msk.bf16.gmra.mrb[36].mxu1 %vm3638_vm4, %v8601_v56  ;;  %v8609_v56 = vld [vmem:[%s12778_s5 + $0x88] sm:$0xff]   ;;  %4670 = vmatpush1.bf16.msra.mxu0 %v8613_v19  ;;  %v8618_v19 = vld [vmem:[%s12778_s5 + $0xb8] sm:$0xff]  }
 0x6b3   :  { %8212 = vmatprep.mubr.msk.bf16.mxu1 %vm3638_vm4, %v8602_v18  ;;  %v8611_v18 = vld [vmem:[%s12778_s5 + $0x90] sm:$0xff]   ;;  %4671 = vmatprep.subr.bf16.mxu0 %v12714_v8 }
 0x6b4   :  { %7407 = vmatmul.mubr.msk.bf16.gmra.mrb[8].mxu0 %vm3063_vm5, %v3011_v3 }
 0x6b5   :  { %v2617_v46 = vpop.f32.mrb[188].mxu1  ;;  %3205 = vmatprep.mubr.bf16.mxu0 %v12714_v8 }
 0x6b6   :  { %v2843_v31 = vadd.f32 %v10642_v53, %v2617_v46  ;;  %v2619_v54 = vpop.f32.mrb[189].mxu1  ;;  %v10799_v53 = vpop.f32.mrb[249].mxu0 }
 0x6b7   :  { %v2620_v37 = vpop.f32.mrb[190].mxu1  ;;  %v10802_v1 = vpop.f32.mrb[250].mxu0  ;;  %v8612_v54 = vld [vmem:[%s12778_s5 + $0x98] sm:$0xff]  }
 0x6b8   :  { %v2846_v33 = vadd.f32 %v10646_v4, %v2620_v37  ;;  %v2622_v25 = vpop.f32.mrb[191].mxu1  ;;  %v10805_v60 = vpop.f32.mrb[251].mxu0 }
 0x6ba   :  { %v3012_v50 = vpack.c.bf16 %v2846_v33, %v2843_v31  ;;  %8213 = vmatmul.mubr.msk.bf16.gmra.mrb[40].mxu1 %vm3638_vm4, %v8603_v48 }
 0x6bb   :  { %8216 = vmatprep.mubr.msk.bf16.mxu1 %vm3638_vm4, %v8605_v35  ;;  %v8614_v35 = vld [vmem:[%s12778_s5 + $0xa0] sm:$0xff]  }
 0x6bc   :  { %7408 = vmatmul.mubr.msk.bf16.gmra.mrb[12].mxu0 %vm3063_vm5, %v3012_v50 }
 0x6bd   :  { %v2625_v52 = vpop.f32.mrb[192].mxu1  ;;  %3215 = vmatprep.mubr.bf16.mxu0 %v12714_v8 }
 0x6be   :  { %v2851_v4 = vadd.f32 %v10654_v49, %v2625_v52  ;;  %v2627_v16 = vpop.f32.mrb[193].mxu1 }
 0x6bf   :  { %v2628_v28 = vpop.f32.mrb[194].mxu1 }
 0x6c0   :  { %v2854_v44 = vadd.f32 %v10658_v2, %v2628_v28  ;;  %v2630_v20 = vpop.f32.mrb[195].mxu1 }
 0x6c2   :  { %v3013_v5 = vpack.c.bf16 %v2854_v44, %v2851_v4  ;;  %8217 = vmatmul.mubr.msk.bf16.gmra.mrb[44].mxu1 %vm3638_vm4, %v8606_v17  ;;  %v8615_v17 = vld [vmem:[%s12778_s5 + $0xa8] sm:$0xff]  }
 0x6c3   :  { %8220 = vmatprep.mubr.msk.bf16.mxu1 %vm3638_vm4, %v8608_v22 }
 0x6c4   :  { %7409 = vmatmul.mubr.msk.bf16.gmra.mrb[16].mxu0 %vm3063_vm5, %v3013_v5  ;;  %v8616_v5 = vld [vmem:[#allocation9 + $0x20] sm:$0xff]  }
 0x6c5   :  { %v2633_v49 = vpop.f32.mrb[196].mxu1  ;;  %3225 = vmatprep.mubr.bf16.mxu0 %v12714_v8  ;;  %4672 = vmatpush1.bf16.msra.mxu0 %v8616_v5  ;;  %v8629_v5 = vld [vmem:[%s12447_s12 + $0x28] sm:$0xff]  }
 0x6c6   :  { %v2859_v34 = vadd.f32 %v10652_v0, %v2633_v49  ;;  %v2635_v63 = vpop.f32.mrb[197].mxu1  ;;  %v10829_v0 = vpop.f32.mrb[252].mxu0  ;;  %v8621_v49 = vld [vmem:[%s12447_s12 + $0x8] sm:$0xff]   ;;  %4673 = vmatprep.subr.bf16.mxu0 %v12714_v8 }
 0x6c7   :  { %v2636_v2 = vpop.f32.mrb[198].mxu1  ;;  %v10834_v46 = vpop.f32.mrb[253].mxu0 }
 0x6c8   :  { %v2862_v61 = vadd.f32 %v10656_v30, %v2636_v2  ;;  %v2638_v7 = vpop.f32.mrb[199].mxu1  ;;  %v10840_v48 = vpop.f32.mrb[254].mxu0 }
 0x6c9   :  { %v10845_v33 = vpop.f32.mrb[255].mxu0  ;;  %v8623_v7 = vld [vmem:[%s12447_s12 + $0x10] sm:$0xff]  }
 0x6ca   :  { %v3014_v3 = vpack.c.bf16 %v2862_v61, %v2859_v34  ;;  %8221 = vmatmul.mubr.msk.bf16.gmra.mrb[48].mxu1 %vm3638_vm4, %v8609_v56 }
 0x6cb   :  { %8224 = vmatprep.mubr.msk.bf16.mxu1 %vm3638_vm4, %v8611_v18 }
 0x6cc   :  { %7410 = vmatmul.mubr.msk.bf16.gmra.mrb[20].mxu0 %vm3063_vm5, %v3014_v3 }
 0x6cd   :  { %v2641_v27 = vpop.f32.mrb[200].mxu1  ;;  %3235 = vmatprep.mubr.bf16.mxu0 %v12714_v8 }
 0x6ce   :  { %v2867_v30 = vadd.f32 %v10664_v47, %v2641_v27  ;;  %v2643_v31 = vpop.f32.mrb[201].mxu1 }
 0x6cf   :  { %v2644_v37 = vpop.f32.mrb[202].mxu1 }
 0x6d0   :  { %v2870_v25 = vadd.f32 %v10668_v23, %v2644_v37  ;;  %v2646_v50 = vpop.f32.mrb[203].mxu1  ;;  %v8617_v23 = vld [vmem:[%s12778_s5 + $0xb0] sm:$0xff]  }
 0x6d2   :  { %v3015_v52 = vpack.c.bf16 %v2870_v25, %v2867_v30  ;;  %8225 = vmatmul.mubr.msk.bf16.gmra.mrb[52].mxu1 %vm3638_vm4, %v8612_v54 }
 0x6d3   :  { %8228 = vmatprep.mubr.msk.bf16.mxu1 %vm3638_vm4, %v8614_v35 }
 0x6d4   :  { %7411 = vmatmul.mubr.msk.bf16.gmra.mrb[24].mxu0 %vm3063_vm5, %v3015_v52 }
 0x6d5   :  { %v2649_v47 = vpop.f32.mrb[204].mxu1  ;;  %3245 = vmatprep.mubr.bf16.mxu0 %v12714_v8 }
 0x6d6   :  { %v2875_v4 = vadd.f32 %v10662_v45, %v2649_v47  ;;  %v2651_v16 = vpop.f32.mrb[205].mxu1  ;;  %v8620_v45 = vld [vmem:[%s12447_s12] sm:$0xff]  }
 0x6d7   :  { %v2652_v28 = vpop.f32.mrb[206].mxu1  ;;  %8236 = vmatprep.subr.bf16.mxu1 %v8620_v45  ;;  %v8625_v16 = vld [vmem:[%s12447_s12 + $0x18] sm:$0xff]  }
 0x6d8   :  { %v2878_v22 = vadd.f32 %v10666_v9, %v2652_v28  ;;  %v2654_v44 = vpop.f32.mrb[207].mxu1  ;;  %v8619_v9 = vld [vmem:[#allocation9 + $0x28] sm:$0xff]   ;;  %8237 = vmatpush3.bf16.msra.mxu1 %v8620_v45 }
 0x6d9   :  { %8238 = vmatprep.subr.bf16.mxu1 %v8621_v49  ;;  %4674 = vmatpush1.bf16.msra.mxu0 %v8619_v9 }
 0x6da   :  { %v3016_v20 = vpack.c.bf16 %v2878_v22, %v2875_v4  ;;  %8229 = vmatmul.mubr.msk.bf16.gmra.mrb[56].mxu1 %vm3638_vm4, %v8615_v17  ;;  %4675 = vmatprep.subr.bf16.mxu0 %v12714_v8 }
 0x6db   :  { %8232 = vmatprep.mubr.msk.bf16.mxu1 %vm3638_vm4, %v8617_v23  ;;  %v8624_v23 = vld [vmem:[#allocation9 + $0x38] sm:$0xff]  }
 0x6dc   :  { %7412 = vmatmul.mubr.msk.bf16.gmra.mrb[28].mxu0 %vm3063_vm5, %v3016_v20  ;;  %8239 = vmatpush3.bf16.msra.mxu1 %v8621_v49  ;;  %v8626_v49 = vld [vmem:[#allocation9 + $0x40] sm:$0xff]  }
 0x6dd   :  { %v2657_v34 = vpop.f32.mrb[208].mxu1  ;;  %3255 = vmatprep.mubr.bf16.mxu0 %v12714_v8  ;;  %8240 = vmatprep.subr.bf16.mxu1 %v8623_v7 }
 0x6de   :  { %v2883_v63 = vadd.f32 %v10674_v12, %v2657_v34  ;;  %v2659_v56 = vpop.f32.mrb[209].mxu1  ;;  %v8622_v12 = vld [vmem:[#allocation9 + $0x30] sm:$0xff]  }
 0x6df   :  { %v2660_v2 = vpop.f32.mrb[210].mxu1  ;;  %4676 = vmatpush1.bf16.msra.mxu0 %v8622_v12 }
 0x6e0   :  { %v2886_v18 = vadd.f32 %v10678_v51, %v2660_v2  ;;  %v2662_v61 = vpop.f32.mrb[211].mxu1  ;;  %4677 = vmatprep.subr.bf16.mxu0 %v12714_v8  ;;  %8241 = vmatpush3.bf16.msra.mxu1 %v8623_v7 }
 0x6e1   :  { %8242 = vmatprep.subr.bf16.mxu1 %v8625_v16 }
 0x6e2   :  { %v3017_v3 = vpack.c.bf16 %v2886_v18, %v2883_v63  ;;  %8233 = vmatmul.mubr.msk.bf16.gmra.mrb[60].mxu1 %vm3638_vm4, %v8618_v19 }
 0x6e3   :  { %4678 = vmatpush1.bf16.msra.mxu0 %v8624_v23 }
 0x6e4   :  { %7413 = vmatmul.mubr.msk.bf16.gmra.mrb[32].mxu0 %vm3063_vm5, %v3017_v3  ;;  %8243 = vmatpush3.bf16.msra.mxu1 %v8625_v16 }
 0x6e5   :  { %v2665_v27 = vpop.f32.mrb[212].mxu1  ;;  %3265 = vmatprep.mubr.bf16.mxu0 %v12714_v8  ;;  %4679 = vmatprep.subr.bf16.mxu0 %v12714_v8 }
 0x6e6   :  { %v2891_v51 = vadd.f32 %v10672_v36, %v2665_v27  ;;  %v2667_v30 = vpop.f32.mrb[213].mxu1 }
 0x6e7   :  { %v2668_v31 = vpop.f32.mrb[214].mxu1  ;;  %4680 = vmatpush1.bf16.msra.mxu0 %v8626_v49 }
 0x6e8   :  { %v2894_v54 = vadd.f32 %v10676_v11, %v2668_v31  ;;  %v2670_v37 = vpop.f32.mrb[215].mxu1  ;;  %v8627_v11 = vld [vmem:[%s12447_s12 + $0x20] sm:$0xff]   ;;  %4681 = vmatprep.subr.bf16.mxu0 %v12714_v8 }
 0x6e9   :  { %8244 = vmatprep.subr.bf16.mxu1 %v8627_v11 }
 0x6ea   :  { %v3018_v35 = vpack.c.bf16 %v2894_v54, %v2891_v51  ;;  %8245 = vmatpush3.bf16.msra.mxu1 %v8627_v11 }
 0x6eb   :  { %8246 = vmatprep.subr.bf16.mxu1 %v8629_v5 }
 0x6ec   :  { %7414 = vmatmul.mubr.msk.bf16.gmra.mrb[36].mxu0 %vm3063_vm5, %v3018_v35 }
 0x6ed   :  { %v2673_v25 = vpop.f32.mrb[216].mxu1  ;;  %3275 = vmatprep.mubr.bf16.mxu0 %v12714_v8 }
 0x6ee   :  { %v2899_v50 = vadd.f32 %v10687_v24, %v2673_v25  ;;  %v2675_v52 = vpop.f32.mrb[217].mxu1  ;;  %8247 = vmatpush3.bf16.msra.mxu1 %v8629_v5 }
 0x6ef   :  { %v2676_v47 = vpop.f32.mrb[218].mxu1 }
 0x6f0   :  { %v2902_v36 = vadd.f32 %v10694_v43, %v2676_v47  ;;  %v2678_v4 = vpop.f32.mrb[219].mxu1 }
 0x6f2   :  { %v3019_v17 = vpack.c.bf16 %v2902_v36, %v2899_v50 }
 0x6f4   :  { %7415 = vmatmul.mubr.msk.bf16.gmra.mrb[40].mxu0 %vm3063_vm5, %v3019_v17 }
 0x6f5   :  { %v2681_v28 = vpop.f32.mrb[220].mxu1  ;;  %3285 = vmatprep.mubr.bf16.mxu0 %v12714_v8 }
 0x6f6   :  { %v2907_v24 = vadd.f32 %v10685_v55, %v2681_v28  ;;  %v2683_v43 = vpop.f32.mrb[221].mxu1  ;;  %v8630_v55 = vld [vmem:[%s12447_s12 + $0x30] ss:$0 sps:$4 sm:$0x33]  }
 0x6f7   :  { %v2684_v22 = vpop.f32.mrb[222].mxu1  ;;  %8437 = vmatprep.subr.msk.bf16.mxu1 %vm4300_vm6, %v8630_v55  ;;  %v4302_v56 = vsel %vm4300_vm6, %v8630_v55, 0 }
 0x6f8   :  { %v2910_v44 = vadd.f32 %v10689_v57, %v2684_v22  ;;  %v2686_v20 = vpop.f32.mrb[223].mxu1  ;;  %v8628_v57 = vld [vmem:[#allocation9 + $0x48] ss:$0 sps:$4 sm:$0x77]   ;;  %8249 = vmatpush3.bf16.msra.mxu1 %v4302_v56 }
 0x6f9   :  { %v4661_v2 = vsel %vm4659_vm7, %v8628_v57, 0 }
 0x6fa   :  { %v3020_v45 = vpack.c.bf16 %v2910_v44, %v2907_v24  ;;  %4682 = vmatpush1.bf16.msra.mxu0 %v4661_v2 }
 0x6fc   :  { %7416 = vmatmul.mubr.msk.bf16.gmra.mrb[44].mxu0 %vm3063_vm5, %v3020_v45 }
 0x6fd   :  { %v2689_v34 = vpop.f32.mrb[224].mxu1  ;;  %3295 = vmatprep.mubr.bf16.mxu0 %v12714_v8 }
 0x6fe   :  { %v2915_v9 = vadd.f32 %v10703_v6, %v2689_v34  ;;  %v2691_v63 = vpop.f32.mrb[225].mxu1 }
 0x6ff   :  { %v2692_v19 = vpop.f32.mrb[226].mxu1 }
 0x700   :  { %v2918_v18 = vadd.f32 %v10710_v15, %v2692_v19  ;;  %v2694_v61 = vpop.f32.mrb[227].mxu1 }
 0x702   :  { %v3021_v7 = vpack.c.bf16 %v2918_v18, %v2915_v9 }
 0x704   :  { %7417 = vmatmul.mubr.msk.bf16.gmra.mrb[48].mxu0 %vm3063_vm5, %v3021_v7 }
 0x705   :  { %v2697_v12 = vpop.f32.mrb[228].mxu1  ;;  %3305 = vmatprep.mubr.bf16.mxu0 %v12714_v8 }
 0x706   :  { %v2923_v6 = vadd.f32 %v10701_v42, %v2697_v12  ;;  %v2699_v3 = vpop.f32.mrb[229].mxu1 }
 0x707   :  { %v2700_v27 = vpop.f32.mrb[230].mxu1 }
 0x708   :  { %v2926_v51 = vadd.f32 %v10705_v62, %v2700_v27  ;;  %v2702_v30 = vpop.f32.mrb[231].mxu1 }
 0x70a   :  { %v3022_v31 = vpack.c.bf16 %v2926_v51, %v2923_v6 }
 0x70c   :  { %7418 = vmatmul.mubr.msk.bf16.gmra.mrb[52].mxu0 %vm3063_vm5, %v3022_v31 }
 0x70d   :  { %v2705_v54 = vpop.f32.mrb[232].mxu1  ;;  %3315 = vmatprep.mubr.bf16.mxu0 %v12714_v8 }
 0x70e   :  { %v2931_v15 = vadd.f32 %v10719_v14, %v2705_v54  ;;  %v2707_v37 = vpop.f32.mrb[233].mxu1 }
 0x70f   :  { %v2708_v35 = vpop.f32.mrb[234].mxu1 }
 0x710   :  { %v2934_v25 = vadd.f32 %v10726_v10, %v2708_v35  ;;  %v2710_v50 = vpop.f32.mrb[235].mxu1 }
 0x712   :  { %v3023_v52 = vpack.c.bf16 %v2934_v25, %v2931_v15 }
 0x714   :  { %7419 = vmatmul.mubr.msk.bf16.gmra.mrb[56].mxu0 %vm3063_vm5, %v3023_v52 }
 0x715   :  { %v2713_v42 = vpop.f32.mrb[236].mxu1  ;;  %3325 = vmatprep.mubr.bf16.mxu0 %v12714_v8 }
 0x716   :  { %v2939_v62 = vadd.f32 %v10717_v39, %v2713_v42  ;;  %v2715_v47 = vpop.f32.mrb[237].mxu1 }
 0x717   :  { %v2716_v36 = vpop.f32.mrb[238].mxu1 }
 0x718   :  { %v2942_v4 = vadd.f32 %v10721_v21, %v2716_v36  ;;  %v2718_v16 = vpop.f32.mrb[239].mxu1 }
 0x71a   :  { %v3024_v17 = vpack.c.bf16 %v2942_v4, %v2939_v62 }
 0x71c   :  { %7420 = vmatmul.mubr.msk.bf16.gmra.mrb[60].mxu0 %vm3063_vm5, %v3024_v17 }
 0x71d   :  { %v2721_v14 = vpop.f32.mrb[240].mxu1  ;;  %3335 = vmatprep.mubr.bf16.mxu0 %v12714_v8 }
 0x71e   :  { %v2947_v10 = vadd.f32 %v10735_v41, %v2721_v14  ;;  %v2723_v11 = vpop.f32.mrb[241].mxu1 }
 0x71f   :  { %v2724_v28 = vpop.f32.mrb[242].mxu1 }
 0x720   :  { %v2950_v24 = vadd.f32 %v10742_v59, %v2724_v28  ;;  %v2726_v43 = vpop.f32.mrb[243].mxu1 }
 0x722   :  { %v3025_v23 = vpack.c.bf16 %v2950_v24, %v2947_v10 }
 0x724   :  { %7421 = vmatmul.mubr.msk.bf16.gmra.mrb[64].mxu0 %vm3063_vm5, %v3025_v23 }
 0x725   :  { %v2729_v39 = vpop.f32.mrb[244].mxu1  ;;  %3345 = vmatprep.mubr.bf16.mxu0 %v12714_v8 }
 0x726   :  { %v2955_v21 = vadd.f32 %v10733_v58, %v2729_v39  ;;  %v2731_v22 = vpop.f32.mrb[245].mxu1 }
 0x727   :  { %v2732_v44 = vpop.f32.mrb[246].mxu1 }
 0x728   :  { %v2958_v20 = vadd.f32 %v10737_v26, %v2732_v44  ;;  %v2734_v5 = vpop.f32.mrb[247].mxu1 }
 0x72a   :  { %v3026_v45 = vpack.c.bf16 %v2958_v20, %v2955_v21 }
 0x72c   :  { %7422 = vmatmul.mubr.msk.bf16.gmra.mrb[68].mxu0 %vm3063_vm5, %v3026_v45  ;;  %v3038_v45 = vlaneseq }
 0x72d   :  { %v2737_v41 = vpop.f32.mrb[248].mxu1  ;;  %3355 = vmatprep.mubr.bf16.mxu0 %v12714_v8 }
 0x72e   :  { %v2963_v59 = vadd.f32 %v10766_v13, %v2737_v41  ;;  %v2739_v49 = vpop.f32.mrb[249].mxu1 }
 0x72f   :  { %v2740_v55 = vpop.f32.mrb[250].mxu1 }
 0x730   :  { %v2966_v34 = vadd.f32 %v10772_v32, %v2740_v55  ;;  %v2742_v57 = vpop.f32.mrb[251].mxu1 }
 0x732   :  { %v3027_v9 = vpack.c.bf16 %v2966_v34, %v2963_v59 }
 0x734   :  { %7423 = vmatmul.mubr.msk.bf16.gmra.mrb[72].mxu0 %vm3063_vm5, %v3027_v9 }
 0x735   :  { %v2745_v58 = vpop.f32.mrb[252].mxu1  ;;  %3365 = vmatprep.mubr.bf16.mxu0 %v12714_v8 }
 0x736   :  { %v2971_v26 = vadd.f32 %v10762_v38, %v2745_v58  ;;  %v2747_v63 = vpop.f32.mrb[253].mxu1  ;;  %v3039_v58 = vshrl.u32 %v3038_v45, 7 }
 0x737   :  { %v2748_v56 = vpop.f32.mrb[254].mxu1 }
 0x738   :  { %v2974_v19 = vadd.f32 %v10769_v40, %v2748_v56  ;;  %v2750_v2 = vpop.f32.mrb[255].mxu1 }
 0x73a   :  { %v3028_v18 = vpack.c.bf16 %v2974_v19, %v2971_v26 }
 0x73c   :  { %7424 = vmatmul.mubr.msk.bf16.gmra.mrb[76].mxu0 %vm3063_vm5, %v3028_v18 }
 0x73d   :  { %v2753_v13 = vpop.f32.mrb[0].mxu1  ;;  %3375 = vmatprep.mubr.bf16.mxu0 %v12714_v8 }
 0x73e   :  { %v2979_v32 = vadd.f32 %v10799_v53, %v2753_v13  ;;  %v2755_v61 = vpop.f32.mrb[1].mxu1 }
 0x73f   :  { %v2756_v7 = vpop.f32.mrb[2].mxu1 }
 0x740   :  { %v2982_v12 = vadd.f32 %v10805_v60, %v2756_v7  ;;  %v2758_v6 = vpop.f32.mrb[3].mxu1 }
 0x741   :  { %v3036_v6 = vld [vmem:[%s12443_s8] sm:$0x3] }
 0x742   :  { %v3029_v3 = vpack.c.bf16 %v2982_v12, %v2979_v32  ;;  %v3040_v32 = vsub.s32 0, %v3039_v58 }
 0x744   :  { %7425 = vmatmul.mubr.msk.bf16.gmra.mrb[80].mxu0 %vm3063_vm5, %v3029_v3  ;;  %v3044_v3 = vsub.s32 1, %v3039_v58 }
 0x745   :  { %v2761_v38 = vpop.f32.mrb[4].mxu1  ;;  %3385 = vmatprep.mubr.bf16.mxu0 %v12714_v8 }
 0x746   :  { %v2987_v40 = vadd.f32 %v10796_v29, %v2761_v38  ;;  %v2763_v27 = vpop.f32.mrb[5].mxu1 }
 0x747   :  { %v2764_v51 = vpop.f32.mrb[6].mxu1 }
 0x748   :  { %v2990_v30 = vadd.f32 %v10802_v1, %v2764_v51  ;;  %v2766_v31 = vpop.f32.mrb[7].mxu1 }
 0x74a   :  { %v3030_v54 = vpack.c.bf16 %v2990_v30, %v2987_v40  ;;  %v10980_v30 = vrot.slane %v3036_v6, %v3040_v32 }
 0x74c   :  { %7426 = vmatmul.mubr.msk.bf16.gmra.mrb[84].mxu0 %vm3063_vm5, %v3030_v54  ;;  %v10982_v54 = vrot.slane %v3036_v6, %v3044_v3 }
 0x74d   :  { %v2769_v53 = vpop.f32.mrb[8].mxu1  ;;  %3395 = vmatprep.mubr.bf16.mxu0 %v12714_v8 }
 0x74e   :  { %v2995_v60 = vadd.f32 %v10834_v46, %v2769_v53  ;;  %v2771_v15 = vpop.f32.mrb[9].mxu1  ;;  %v10958_v46 = vld [vmem:[#allocation7] ss:$0 sm:$0xff] }
 0x74f   :  { %v2772_v37 = vpop.f32.mrb[10].mxu1 }
 0x750   :  { %v2998_v35 = vadd.f32 %v10845_v33, %v2772_v37  ;;  %v2774_v25 = vpop.f32.mrb[11].mxu1 }
 0x752   :  { %v3031_v50 = vpack.c.bf16 %v2998_v35, %v2995_v60 }
 0x754   :  { %7427 = vmatmul.mubr.msk.bf16.gmra.mrb[88].mxu0 %vm3063_vm5, %v3031_v50 }
 0x755   :  { %v2777_v29 = vpop.f32.mrb[12].mxu1  ;;  %3405 = vmatprep.mubr.bf16.mxu0 %v12714_v8 }
 0x756   :  { %v3003_v1 = vadd.f32 %v10829_v0, %v2777_v29  ;;  %v2779_v52 = vpop.f32.mrb[13].mxu1 }
 0x757   :  { %v2780_v42 = vpop.f32.mrb[14].mxu1 }
 0x758   :  { %v3006_v62 = vadd.f32 %v10840_v48, %v2780_v42  ;;  %v2782_v47 = vpop.f32.mrb[15].mxu1 }
 0x75a   :  { %v3032_v36 = vpack.c.bf16 %v3006_v62, %v3003_v1 }
 0x75c   :  { %7428 = vmatmul.mubr.msk.bf16.gmra.mrb[92].mxu0 %vm3063_vm5, %v3032_v36 }
 0x75d   :  { %v8190_v33 = vpop.f32.mrb[16].mxu1 }
 0x75e   :  { %v3758_v4 = vadd.f32 %v8190_v33, %v10958_v46  ;;  %v3749_v16 = vpop.f32.mrb[17].mxu1 }
 0x75f   :  { %v3750_v17 = vadd.f32 %v10958_v46, %v3749_v16  ;;  %v8191_v14 = vpop.f32.mrb[18].mxu1 }
 0x760   :  { %v4086_v10 = vmax.f32 %v3758_v4, 0.0  ;;  %v3761_v0 = vadd.f32 %v8191_v14, %v10958_v46  ;;  %v3752_v11 = vpop.f32.mrb[19].mxu1 }
 0x761   :  { %v4084_v28 = vmax.f32 %v3750_v17, 0.0  ;;  %v3753_v48 = vadd.f32 %v10958_v46, %v3752_v11 }
 0x762   :  { %v4087_v24 = vmax.f32 %v3761_v0, 0.0 }
 0x763   :  { %v4085_v43 = vmax.f32 %v3753_v48, 0.0 }
 0x764   :  { %v4133_v23 = vpack.c.bf16 %v4087_v24, %v4086_v10 }
 0x765   :  { %v4132_v39 = vpack.c.bf16 %v4085_v43, %v4084_v28  ;;  %v8194_v21 = vpop.f32.mrb[20].mxu1 }
 0x766   :  { %v3774_v22 = vadd.f32 %v8194_v21, %v10958_v46  ;;  %v3765_v44 = vpop.f32.mrb[21].mxu1 }
 0x767   :  { %8250 = vmatprep.mubr.msk.bf16.mxu1 %vm4227_vm8, %v4132_v39  ;;  %v3766_v20 = vadd.f32 %v10958_v46, %v3765_v44  ;;  %v8195_v5 = vpop.f32.mrb[22].mxu1 }
 0x768   :  { %8251 = vmatmul.mubr.msk.bf16.vlgmr.msra.gmra.mrb[64].mxu1 %vm4227_vm8, %v4133_v23  ;;  %v4090_v41 = vmax.f32 %v3774_v22, 0.0  ;;  %v3777_v59 = vadd.f32 %v8195_v5, %v10958_v46  ;;  %v3768_v49 = vpop.f32.mrb[23].mxu1 }
 0x769   :  { %v4088_v55 = vmax.f32 %v3766_v20, 0.0  ;;  %v3769_v34 = vadd.f32 %v10958_v46, %v3768_v49 }
 0x76a   :  { %v4091_v57 = vmax.f32 %v3777_v59, 0.0 }
 0x76b   :  { %v4089_v9 = vmax.f32 %v3769_v34, 0.0 }
 0x76c   :  { %v4135_v26 = vpack.c.bf16 %v4091_v57, %v4090_v41 }
 0x76d   :  { %v4134_v63 = vpack.c.bf16 %v4089_v9, %v4088_v55  ;;  %v8198_v56 = vpop.f32.mrb[24].mxu1 }
 0x76e   :  { %v3790_v19 = vadd.f32 %v8198_v56, %v10958_v46  ;;  %v3781_v2 = vpop.f32.mrb[25].mxu1 }
 0x76f   :  { %8254 = vmatprep.mubr.msk.bf16.mxu1 %vm4227_vm8, %v4134_v63  ;;  %v3782_v18 = vadd.f32 %v10958_v46, %v3781_v2  ;;  %v8199_v13 = vpop.f32.mrb[26].mxu1 }
 0x770   :  { %8255 = vmatmul.mubr.msk.bf16.gmra.mrb[68].mxu1 %vm4227_vm8, %v4135_v26  ;;  %v4094_v61 = vmax.f32 %v3790_v19, 0.0  ;;  %v3793_v7 = vadd.f32 %v8199_v13, %v10958_v46  ;;  %v3784_v12 = vpop.f32.mrb[27].mxu1 }
 0x771   :  { %v4092_v38 = vmax.f32 %v3782_v18, 0.0  ;;  %v3785_v40 = vadd.f32 %v10958_v46, %v3784_v12 }
 0x772   :  { %v4095_v27 = vmax.f32 %v3793_v7, 0.0 }
 0x773   :  { %v4093_v51 = vmax.f32 %v3785_v40, 0.0 }
 0x774   :  { %v4137_v31 = vpack.c.bf16 %v4095_v27, %v4094_v61 }
 0x775   :  { %v4136_v53 = vpack.c.bf16 %v4093_v51, %v4092_v38  ;;  %v8202_v60 = vpop.f32.mrb[28].mxu1 }
 0x776   :  { %v3806_v15 = vadd.f32 %v8202_v60, %v10958_v46  ;;  %v3797_v37 = vpop.f32.mrb[29].mxu1 }
 0x777   :  { %v3177_v35 = vpop.f32.mrb[0].mxu0  ;;  %8258 = vmatprep.mubr.msk.bf16.mxu1 %vm4227_vm8, %v4136_v53  ;;  %v3798_v25 = vadd.f32 %v10958_v46, %v3797_v37  ;;  %v8203_v50 = vpop.f32.mrb[30].mxu1 }
 0x778   :  { %v3178_v29 = vadd.f32 %v3177_v35, %v10980_v30  ;;  %v3179_v1 = vpop.f32.mrb[1].mxu0  ;;  %8259 = vmatmul.mubr.msk.bf16.gmra.mrb[72].mxu1 %vm4227_vm8, %v4137_v31  ;;  %v4098_v52 = vmax.f32 %v3806_v15, 0.0  ;;  %v3809_v42 = vadd.f32 %v8203_v50, %v10958_v46  ;;  %v3800_v62 = vpop.f32.mrb[31].mxu1 }
 0x779   :  { %v3180_v47 = vadd.f32 %v3179_v1, %v10982_v54  ;;  %v3181_v36 = vpop.f32.mrb[2].mxu0  ;;  %v4096_v33 = vmax.f32 %v3798_v25, 0.0  ;;  %v3801_v4 = vadd.f32 %v10958_v46, %v3800_v62 }
 0x77a   :  { %v3182_v16 = vadd.f32 %v3181_v36, %v10980_v30  ;;  %v3183_v17 = vpop.f32.mrb[3].mxu0  ;;  %v4099_v14 = vmax.f32 %v3809_v42, 0.0  ;;  %v3940_v11 = vmax.f32 %v3178_v29, 0.0 }
 0x77b   :  { %v3184_v10 = vadd.f32 %v3183_v17, %v10982_v54  ;;  %v4097_v0 = vmax.f32 %v3801_v4, 0.0  ;;  %v3941_v24 = vmax.f32 %v3180_v47, 0.0 }
 0x77c   :  { %v3942_v28 = vmax.f32 %v3182_v16, 0.0  ;;  %v4139_v48 = vpack.c.bf16 %v4099_v14, %v4098_v52 }
 0x77d   :  { %v3943_v43 = vmax.f32 %v3184_v10, 0.0  ;;  %v4138_v23 = vpack.c.bf16 %v4097_v0, %v4096_v33  ;;  %v8206_v39 = vpop.f32.mrb[32].mxu1 }
 0x77e   :  { %v4036_v21 = vpack.c.bf16 %v3942_v28, %v3940_v11  ;;  %v3822_v22 = vadd.f32 %v8206_v39, %v10958_v46  ;;  %v3813_v44 = vpop.f32.mrb[33].mxu1 }
 0x77f   :  { %v4037_v20 = vpack.c.bf16 %v3943_v43, %v3941_v24  ;;  %v3187_v5 = vpop.f32.mrb[4].mxu0  ;;  %8262 = vmatprep.mubr.msk.bf16.mxu1 %vm4227_vm8, %v4138_v23  ;;  %v3814_v45 = vadd.f32 %v10958_v46, %v3813_v44  ;;  %v8207_v41 = vpop.f32.mrb[34].mxu1 }
 0x780   :  { %v3188_v59 = vadd.f32 %v3187_v5, %v10980_v30  ;;  %v3189_v49 = vpop.f32.mrb[5].mxu0  ;;  %8263 = vmatmul.mubr.msk.bf16.gmra.mrb[76].mxu1 %vm4227_vm8, %v4139_v48  ;;  %v4102_v55 = vmax.f32 %v3822_v22, 0.0  ;;  %v3825_v34 = vadd.f32 %v8207_v41, %v10958_v46  ;;  %v3816_v57 = vpop.f32.mrb[35].mxu1 }
 0x781   :  { %v3190_v9 = vadd.f32 %v3189_v49, %v10982_v54  ;;  %v3191_v58 = vpop.f32.mrb[6].mxu0  ;;  %7525 = vmatprep.mubr.msk.bf16.mxu0 %vm4586_vm9, %v4037_v20  ;;  %v4100_v26 = vmax.f32 %v3814_v45, 0.0  ;;  %v3817_v63 = vadd.f32 %v10958_v46, %v3816_v57 }
 0x782   :  { %v3192_v56 = vadd.f32 %v3191_v58, %v10980_v30  ;;  %v3193_v19 = vpop.f32.mrb[7].mxu0  ;;  %4696 = vmatmul.mubr.bf16.vlgmr.msra.gmra.mrb[96].mxu0 %v4036_v21  ;;  %v4103_v2 = vmax.f32 %v3825_v34, 0.0  ;;  %v3944_v32 = vmax.f32 %v3188_v59, 0.0 }
 0x783   :  { %v3194_v18 = vadd.f32 %v3193_v19, %v10982_v54  ;;  %v4101_v13 = vmax.f32 %v3817_v63, 0.0  ;;  %v3945_v12 = vmax.f32 %v3190_v9, 0.0 }
 0x784   :  { %v3946_v61 = vmax.f32 %v3192_v56, 0.0  ;;  %v4141_v7 = vpack.c.bf16 %v4103_v2, %v4102_v55 }
 0x785   :  { %v3947_v6 = vmax.f32 %v3194_v18, 0.0  ;;  %v4140_v3 = vpack.c.bf16 %v4101_v13, %v4100_v26  ;;  %v8210_v38 = vpop.f32.mrb[36].mxu1 }
 0x786   :  { %v4038_v40 = vpack.c.bf16 %v3946_v61, %v3944_v32  ;;  %v3838_v27 = vadd.f32 %v8210_v38, %v10958_v46  ;;  %v3829_v51 = vpop.f32.mrb[37].mxu1 }
 0x787   :  { %v4039_v31 = vpack.c.bf16 %v3947_v6, %v3945_v12  ;;  %v3197_v53 = vpop.f32.mrb[8].mxu0  ;;  %8266 = vmatprep.mubr.msk.bf16.mxu1 %vm4227_vm8, %v4140_v3  ;;  %v3830_v60 = vadd.f32 %v10958_v46, %v3829_v51  ;;  %v8211_v15 = vpop.f32.mrb[38].mxu1 }
 0x788   :  { %v3198_v37 = vadd.f32 %v3197_v53, %v10980_v30  ;;  %v3199_v35 = vpop.f32.mrb[9].mxu0  ;;  %8267 = vmatmul.mubr.msk.bf16.gmra.mrb[80].mxu1 %vm4227_vm8, %v4141_v7  ;;  %v4106_v25 = vmax.f32 %v3838_v27, 0.0  ;;  %v3841_v50 = vadd.f32 %v8211_v15, %v10958_v46  ;;  %v3832_v29 = vpop.f32.mrb[39].mxu1 }
 0x789   :  { %v3200_v1 = vadd.f32 %v3199_v35, %v10982_v54  ;;  %v3201_v52 = vpop.f32.mrb[10].mxu0  ;;  %7526 = vmatprep.mubr.msk.bf16.mxu0 %vm4586_vm9, %v4039_v31  ;;  %v4104_v42 = vmax.f32 %v3830_v60, 0.0  ;;  %v3833_v62 = vadd.f32 %v10958_v46, %v3832_v29 }
 0x78a   :  { %v3202_v47 = vadd.f32 %v3201_v52, %v10980_v30  ;;  %v3203_v36 = vpop.f32.mrb[11].mxu0  ;;  %4704 = vmatmul.mubr.bf16.gmra.mrb[100].mxu0 %v4038_v40  ;;  %v4107_v33 = vmax.f32 %v3841_v50, 0.0  ;;  %v3948_v17 = vmax.f32 %v3198_v37, 0.0 }
 0x78b   :  { %v3204_v4 = vadd.f32 %v3203_v36, %v10982_v54  ;;  %v4105_v16 = vmax.f32 %v3833_v62, 0.0  ;;  %v3949_v0 = vmax.f32 %v3200_v1, 0.0 }
 0x78c   :  { %v3950_v14 = vmax.f32 %v3202_v47, 0.0  ;;  %v4143_v10 = vpack.c.bf16 %v4107_v33, %v4106_v25 }
 0x78d   :  { %v3951_v11 = vmax.f32 %v3204_v4, 0.0  ;;  %v4142_v28 = vpack.c.bf16 %v4105_v16, %v4104_v42  ;;  %v8214_v48 = vpop.f32.mrb[40].mxu1 }
 0x78e   :  { %v4040_v24 = vpack.c.bf16 %v3950_v14, %v3948_v17  ;;  %v3854_v43 = vadd.f32 %v8214_v48, %v10958_v46  ;;  %v3845_v23 = vpop.f32.mrb[41].mxu1 }
 0x78f   :  { %v4041_v39 = vpack.c.bf16 %v3951_v11, %v3949_v0  ;;  %v3207_v21 = vpop.f32.mrb[12].mxu0  ;;  %8270 = vmatprep.mubr.msk.bf16.mxu1 %vm4227_vm8, %v4142_v28  ;;  %v3846_v22 = vadd.f32 %v10958_v46, %v3845_v23  ;;  %v8215_v44 = vpop.f32.mrb[42].mxu1 }
 0x790   :  { %v3208_v20 = vadd.f32 %v3207_v21, %v10980_v30  ;;  %v3209_v5 = vpop.f32.mrb[13].mxu0  ;;  %8271 = vmatmul.mubr.msk.bf16.gmra.mrb[84].mxu1 %vm4227_vm8, %v4143_v10  ;;  %v4110_v45 = vmax.f32 %v3854_v43, 0.0  ;;  %v3857_v41 = vadd.f32 %v8215_v44, %v10958_v46  ;;  %v3848_v59 = vpop.f32.mrb[43].mxu1 }
 0x791   :  { %v3210_v49 = vadd.f32 %v3209_v5, %v10982_v54  ;;  %v3211_v55 = vpop.f32.mrb[14].mxu0  ;;  %7527 = vmatprep.mubr.msk.bf16.mxu0 %vm4586_vm9, %v4041_v39  ;;  %v4108_v34 = vmax.f32 %v3846_v22, 0.0  ;;  %v3849_v57 = vadd.f32 %v10958_v46, %v3848_v59 }
 0x792   :  { %v3212_v9 = vadd.f32 %v3211_v55, %v10980_v30  ;;  %v3213_v58 = vpop.f32.mrb[15].mxu0  ;;  %4712 = vmatmul.mubr.bf16.gmra.mrb[104].mxu0 %v4040_v24  ;;  %v4111_v26 = vmax.f32 %v3857_v41, 0.0  ;;  %v3952_v19 = vmax.f32 %v3208_v20, 0.0 }
 0x793   :  { %v3214_v63 = vadd.f32 %v3213_v58, %v10982_v54  ;;  %v4109_v56 = vmax.f32 %v3849_v57, 0.0  ;;  %v3953_v13 = vmax.f32 %v3210_v49, 0.0 }
 0x794   :  { %v3954_v2 = vmax.f32 %v3212_v9, 0.0  ;;  %v4145_v18 = vpack.c.bf16 %v4111_v26, %v4110_v45 }
 0x795   :  { %v3955_v32 = vmax.f32 %v3214_v63, 0.0  ;;  %v4144_v61 = vpack.c.bf16 %v4109_v56, %v4108_v34  ;;  %v8218_v7 = vpop.f32.mrb[44].mxu1 }
 0x796   :  { %v4042_v12 = vpack.c.bf16 %v3954_v2, %v3952_v19  ;;  %v3870_v6 = vadd.f32 %v8218_v7, %v10958_v46  ;;  %v3861_v3 = vpop.f32.mrb[45].mxu1 }
 0x797   :  { %v4043_v38 = vpack.c.bf16 %v3955_v32, %v3953_v13  ;;  %v3217_v40 = vpop.f32.mrb[16].mxu0  ;;  %8274 = vmatprep.mubr.msk.bf16.mxu1 %vm4227_vm8, %v4144_v61  ;;  %v3862_v27 = vadd.f32 %v10958_v46, %v3861_v3  ;;  %v8219_v51 = vpop.f32.mrb[46].mxu1 }
 0x798   :  { %v3218_v31 = vadd.f32 %v3217_v40, %v10980_v30  ;;  %v3219_v53 = vpop.f32.mrb[17].mxu0  ;;  %8275 = vmatmul.mubr.msk.bf16.gmra.mrb[88].mxu1 %vm4227_vm8, %v4145_v18  ;;  %v4114_v60 = vmax.f32 %v3870_v6, 0.0  ;;  %v3873_v15 = vadd.f32 %v8219_v51, %v10958_v46  ;;  %v3864_v37 = vpop.f32.mrb[47].mxu1 }
 0x799   :  { %v3220_v35 = vadd.f32 %v3219_v53, %v10982_v54  ;;  %v3221_v25 = vpop.f32.mrb[18].mxu0  ;;  %7528 = vmatprep.mubr.msk.bf16.mxu0 %vm4586_vm9, %v4043_v38  ;;  %v4112_v50 = vmax.f32 %v3862_v27, 0.0  ;;  %v3865_v29 = vadd.f32 %v10958_v46, %v3864_v37 }
 0x79a   :  { %v3222_v1 = vadd.f32 %v3221_v25, %v10980_v30  ;;  %v3223_v52 = vpop.f32.mrb[19].mxu0  ;;  %4720 = vmatmul.mubr.bf16.gmra.mrb[108].mxu0 %v4042_v12  ;;  %v4115_v42 = vmax.f32 %v3873_v15, 0.0  ;;  %v3956_v36 = vmax.f32 %v3218_v31, 0.0 }
 0x79b   :  { %v3224_v62 = vadd.f32 %v3223_v52, %v10982_v54  ;;  %v4113_v47 = vmax.f32 %v3865_v29, 0.0  ;;  %v3957_v16 = vmax.f32 %v3220_v35, 0.0 }
 0x79c   :  { %v3958_v33 = vmax.f32 %v3222_v1, 0.0  ;;  %v4147_v4 = vpack.c.bf16 %v4115_v42, %v4114_v60 }
 0x79d   :  { %v3959_v17 = vmax.f32 %v3224_v62, 0.0  ;;  %v4146_v14 = vpack.c.bf16 %v4113_v47, %v4112_v50  ;;  %v8222_v10 = vpop.f32.mrb[48].mxu1 }
 0x79e   :  { %v4044_v0 = vpack.c.bf16 %v3958_v33, %v3956_v36  ;;  %v3886_v11 = vadd.f32 %v8222_v10, %v10958_v46  ;;  %v3877_v28 = vpop.f32.mrb[49].mxu1 }
 0x79f   :  { %v4045_v48 = vpack.c.bf16 %v3959_v17, %v3957_v16  ;;  %v3227_v24 = vpop.f32.mrb[20].mxu0  ;;  %8278 = vmatprep.mubr.msk.bf16.mxu1 %vm4227_vm8, %v4146_v14  ;;  %v3878_v43 = vadd.f32 %v10958_v46, %v3877_v28  ;;  %v8223_v23 = vpop.f32.mrb[50].mxu1 }
 0x7a0   :  { %v3228_v39 = vadd.f32 %v3227_v24, %v10980_v30  ;;  %v3229_v21 = vpop.f32.mrb[21].mxu0  ;;  %8279 = vmatmul.mubr.msk.bf16.gmra.mrb[92].mxu1 %vm4227_vm8, %v4147_v4  ;;  %v4118_v22 = vmax.f32 %v3886_v11, 0.0  ;;  %v3889_v44 = vadd.f32 %v8223_v23, %v10958_v46  ;;  %v3880_v20 = vpop.f32.mrb[51].mxu1 }
 0x7a1   :  { %v3230_v5 = vadd.f32 %v3229_v21, %v10982_v54  ;;  %v3231_v45 = vpop.f32.mrb[22].mxu0  ;;  %7529 = vmatprep.mubr.msk.bf16.mxu0 %vm4586_vm9, %v4045_v48  ;;  %v4116_v41 = vmax.f32 %v3878_v43, 0.0  ;;  %v3881_v59 = vadd.f32 %v10958_v46, %v3880_v20 }
 0x7a2   :  { %v3232_v49 = vadd.f32 %v3231_v45, %v10980_v30  ;;  %v3233_v55 = vpop.f32.mrb[23].mxu0  ;;  %4728 = vmatmul.mubr.bf16.gmra.mrb[112].mxu0 %v4044_v0  ;;  %v4119_v34 = vmax.f32 %v3889_v44, 0.0  ;;  %v3960_v58 = vmax.f32 %v3228_v39, 0.0 }
 0x7a3   :  { %v3234_v57 = vadd.f32 %v3233_v55, %v10982_v54  ;;  %v4117_v9 = vmax.f32 %v3881_v59, 0.0  ;;  %v3961_v56 = vmax.f32 %v3230_v5, 0.0 }
 0x7a4   :  { %v3962_v26 = vmax.f32 %v3232_v49, 0.0  ;;  %v4149_v63 = vpack.c.bf16 %v4119_v34, %v4118_v22 }
 0x7a5   :  { %v3963_v19 = vmax.f32 %v3234_v57, 0.0  ;;  %v4148_v2 = vpack.c.bf16 %v4117_v9, %v4116_v41  ;;  %v8226_v18 = vpop.f32.mrb[52].mxu1 }
 0x7a6   :  { %v4046_v13 = vpack.c.bf16 %v3962_v26, %v3960_v58  ;;  %v3902_v32 = vadd.f32 %v8226_v18, %v10958_v46  ;;  %v3893_v61 = vpop.f32.mrb[53].mxu1 }
 0x7a7   :  { %v4047_v7 = vpack.c.bf16 %v3963_v19, %v3961_v56  ;;  %v3237_v12 = vpop.f32.mrb[24].mxu0  ;;  %8282 = vmatprep.mubr.msk.bf16.mxu1 %vm4227_vm8, %v4148_v2  ;;  %v3894_v6 = vadd.f32 %v10958_v46, %v3893_v61  ;;  %v8227_v3 = vpop.f32.mrb[54].mxu1 }
 0x7a8   :  { %v3238_v38 = vadd.f32 %v3237_v12, %v10980_v30  ;;  %v3239_v40 = vpop.f32.mrb[25].mxu0  ;;  %8283 = vmatmul.mubr.msk.bf16.gmra.mrb[96].mxu1 %vm4227_vm8, %v4149_v63  ;;  %v4122_v27 = vmax.f32 %v3902_v32, 0.0  ;;  %v3905_v51 = vadd.f32 %v8227_v3, %v10958_v46  ;;  %v3896_v31 = vpop.f32.mrb[55].mxu1 }
 0x7a9   :  { %v3240_v53 = vadd.f32 %v3239_v40, %v10982_v54  ;;  %v3241_v60 = vpop.f32.mrb[26].mxu0  ;;  %7530 = vmatprep.mubr.msk.bf16.mxu0 %vm4586_vm9, %v4047_v7  ;;  %v4120_v15 = vmax.f32 %v3894_v6, 0.0  ;;  %v3897_v37 = vadd.f32 %v10958_v46, %v3896_v31 }
 0x7aa   :  { %v3242_v35 = vadd.f32 %v3241_v60, %v10980_v30  ;;  %v3243_v25 = vpop.f32.mrb[27].mxu0  ;;  %4736 = vmatmul.mubr.bf16.gmra.mrb[116].mxu0 %v4046_v13  ;;  %v4123_v50 = vmax.f32 %v3905_v51, 0.0  ;;  %v3964_v52 = vmax.f32 %v3238_v38, 0.0 }
 0x7ab   :  { %v3244_v29 = vadd.f32 %v3243_v25, %v10982_v54  ;;  %v4121_v1 = vmax.f32 %v3897_v37, 0.0  ;;  %v3965_v47 = vmax.f32 %v3240_v53, 0.0  ;;  %v8631_v37 = vld [vmem:[%s12449_s14] sm:$0xff]  }
 0x7ac   :  { %v3966_v42 = vmax.f32 %v3242_v35, 0.0  ;;  %v4151_v62 = vpack.c.bf16 %v4123_v50, %v4122_v27  ;;  %v8632_v35 = vld [vmem:[%s12449_s14 + $0x8] sm:$0xff]   ;;  %8298 = vmatprep.subr.bf16.mxu1 %v8631_v37 }
 0x7ad   :  { %v3967_v36 = vmax.f32 %v3244_v29, 0.0  ;;  %v4150_v33 = vpack.c.bf16 %v4121_v1, %v4120_v15  ;;  %v8230_v4 = vpop.f32.mrb[56].mxu1  ;;  %8299 = vmatpush3.bf16.msra.mxu1 %v8631_v37 }
 0x7ae   :  { %v4048_v16 = vpack.c.bf16 %v3966_v42, %v3964_v52  ;;  %v3918_v17 = vadd.f32 %v8230_v4, %v10958_v46  ;;  %v3909_v14 = vpop.f32.mrb[57].mxu1  ;;  %8300 = vmatprep.subr.bf16.mxu1 %v8632_v35 }
 0x7af   :  { %v4049_v10 = vpack.c.bf16 %v3967_v36, %v3965_v47  ;;  %v3247_v0 = vpop.f32.mrb[28].mxu0  ;;  %8286 = vmatprep.mubr.msk.bf16.mxu1 %vm4227_vm8, %v4150_v33  ;;  %v3910_v11 = vadd.f32 %v10958_v46, %v3909_v14  ;;  %v8231_v28 = vpop.f32.mrb[58].mxu1  ;;  %v8633_v36 = vld [vmem:[%s12449_s14 + $0x10] sm:$0xff]  }
 0x7b0   :  { %v3248_v48 = vadd.f32 %v3247_v0, %v10980_v30  ;;  %v3249_v24 = vpop.f32.mrb[29].mxu0  ;;  %8287 = vmatmul.mubr.msk.bf16.gmra.mrb[100].mxu1 %vm4227_vm8, %v4151_v62  ;;  %v4126_v43 = vmax.f32 %v3918_v17, 0.0  ;;  %v3921_v23 = vadd.f32 %v8231_v28, %v10958_v46  ;;  %v3912_v39 = vpop.f32.mrb[59].mxu1  ;;  %v8634_v28 = vld [vmem:[%s12449_s14 + $0x18] sm:$0xff]  }
 0x7b1   :  { %v3250_v21 = vadd.f32 %v3249_v24, %v10982_v54  ;;  %v3251_v22 = vpop.f32.mrb[30].mxu0  ;;  %7531 = vmatprep.mubr.msk.bf16.mxu0 %vm4586_vm9, %v4049_v10  ;;  %v4124_v44 = vmax.f32 %v3910_v11, 0.0  ;;  %v3913_v20 = vadd.f32 %v10958_v46, %v3912_v39  ;;  %8301 = vmatpush3.bf16.msra.mxu1 %v8632_v35 }
 0x7b2   :  { %v3252_v5 = vadd.f32 %v3251_v22, %v10980_v30  ;;  %v3253_v45 = vpop.f32.mrb[31].mxu0  ;;  %4744 = vmatmul.mubr.bf16.gmra.mrb[120].mxu0 %v4048_v16  ;;  %v4127_v41 = vmax.f32 %v3921_v23, 0.0  ;;  %v3968_v55 = vmax.f32 %v3248_v48, 0.0  ;;  %8302 = vmatprep.subr.bf16.mxu1 %v8633_v36 }
 0x7b3   :  { %v3254_v59 = vadd.f32 %v3253_v45, %v10982_v54  ;;  %v4125_v49 = vmax.f32 %v3913_v20, 0.0  ;;  %v3969_v9 = vmax.f32 %v3250_v21, 0.0 }
 0x7b4   :  { %v3970_v34 = vmax.f32 %v3252_v5, 0.0  ;;  %v4153_v57 = vpack.c.bf16 %v4127_v41, %v4126_v43 }
 0x7b5   :  { %v3971_v58 = vmax.f32 %v3254_v59, 0.0  ;;  %v4152_v26 = vpack.c.bf16 %v4125_v49, %v4124_v44  ;;  %v8234_v63 = vpop.f32.mrb[60].mxu1  ;;  %8303 = vmatpush3.bf16.msra.mxu1 %v8633_v36  ;;  %v8636_v36 = vld [vmem:[%s12449_s14 + $0x28] sm:$0xff]  }
 0x7b6   :  { %v4050_v56 = vpack.c.bf16 %v3970_v34, %v3968_v55  ;;  %v3934_v19 = vadd.f32 %v8234_v63, %v10958_v46  ;;  %v3925_v2 = vpop.f32.mrb[61].mxu1  ;;  %8304 = vmatprep.subr.bf16.mxu1 %v8634_v28 }
 0x7b7   :  { %v4051_v18 = vpack.c.bf16 %v3971_v58, %v3969_v9  ;;  %v3257_v13 = vpop.f32.mrb[32].mxu0  ;;  %8290 = vmatprep.mubr.msk.bf16.mxu1 %vm4227_vm8, %v4152_v26  ;;  %v3926_v32 = vadd.f32 %v10958_v46, %v3925_v2  ;;  %v8235_v61 = vpop.f32.mrb[62].mxu1 }
 0x7b8   :  { %v3258_v7 = vadd.f32 %v3257_v13, %v10980_v30  ;;  %v3259_v12 = vpop.f32.mrb[33].mxu0  ;;  %8291 = vmatmul.mubr.msk.bf16.gmra.mrb[104].mxu1 %vm4227_vm8, %v4153_v57  ;;  %v4130_v6 = vmax.f32 %v3934_v19, 0.0  ;;  %v3937_v3 = vadd.f32 %v8235_v61, %v10958_v46  ;;  %v3928_v38 = vpop.f32.mrb[63].mxu1 }
 0x7b9   :  { %v3260_v40 = vadd.f32 %v3259_v12, %v10982_v54  ;;  %v3261_v27 = vpop.f32.mrb[34].mxu0  ;;  %7532 = vmatprep.mubr.msk.bf16.mxu0 %vm4586_vm9, %v4051_v18  ;;  %v4128_v51 = vmax.f32 %v3926_v32, 0.0  ;;  %v3929_v31 = vadd.f32 %v10958_v46, %v3928_v38  ;;  %8305 = vmatpush3.bf16.msra.mxu1 %v8634_v28 }
 0x7ba   :  { %v3262_v53 = vadd.f32 %v3261_v27, %v10980_v30  ;;  %v3263_v60 = vpop.f32.mrb[35].mxu0  ;;  %4752 = vmatmul.mubr.bf16.gmra.mrb[124].mxu0 %v4050_v56  ;;  %v4131_v15 = vmax.f32 %v3937_v3, 0.0  ;;  %v3972_v29 = vmax.f32 %v3258_v7, 0.0 }
 0x7bb   :  { %v3264_v25 = vadd.f32 %v3263_v60, %v10982_v54  ;;  %v4129_v50 = vmax.f32 %v3929_v31, 0.0  ;;  %v3973_v46 = vmax.f32 %v3260_v40, 0.0 }
 0x7bc   :  { %v3974_v1 = vmax.f32 %v3262_v53, 0.0  ;;  %v4155_v52 = vpack.c.bf16 %v4131_v15, %v4130_v6 }
 0x7bd   :  { %v3975_v42 = vmax.f32 %v3264_v25, 0.0  ;;  %v4154_v62 = vpack.c.bf16 %v4129_v50, %v4128_v51  ;;  %v8635_v25 = vld [vmem:[%s12449_s14 + $0x20] sm:$0xff]  }
 0x7be   :  { %v4052_v47 = vpack.c.bf16 %v3974_v1, %v3972_v29  ;;  %8306 = vmatprep.subr.bf16.mxu1 %v8635_v25 }
 0x7bf   :  { %v4053_v33 = vpack.c.bf16 %v3975_v42, %v3973_v46  ;;  %v3267_v4 = vpop.f32.mrb[36].mxu0  ;;  %8294 = vmatprep.mubr.msk.bf16.mxu1 %vm4227_vm8, %v4154_v62  ;;  %8307 = vmatpush3.bf16.msra.mxu1 %v8635_v25 }
 0x7c0   :  { %v3268_v16 = vadd.f32 %v3267_v4, %v10980_v30  ;;  %v3269_v17 = vpop.f32.mrb[37].mxu0  ;;  %8295 = vmatmul.mubr.msk.bf16.gmra.mrb[108].mxu1 %vm4227_vm8, %v4155_v52  ;;  %8308 = vmatprep.subr.bf16.mxu1 %v8636_v36 }
 0x7c1   :  { %v3270_v14 = vadd.f32 %v3269_v17, %v10982_v54  ;;  %v3271_v10 = vpop.f32.mrb[38].mxu0  ;;  %7533 = vmatprep.mubr.msk.bf16.mxu0 %vm4586_vm9, %v4053_v33 }
 0x7c2   :  { %v3272_v0 = vadd.f32 %v3271_v10, %v10980_v30  ;;  %v3273_v11 = vpop.f32.mrb[39].mxu0  ;;  %4760 = vmatmul.mubr.bf16.gmra.mrb[128].mxu0 %v4052_v47  ;;  %v3976_v24 = vmax.f32 %v3268_v16, 0.0 }
 0x7c3   :  { %v3274_v48 = vadd.f32 %v3273_v11, %v10982_v54  ;;  %v3977_v23 = vmax.f32 %v3270_v14, 0.0  ;;  %8309 = vmatpush3.bf16.msra.mxu1 %v8636_v36  ;;  %v8637_v11 = vld [vmem:[%s12449_s14 + $0x30] ss:$0 sps:$4 sm:$0x33]  }
 0x7c4   :  { %v3978_v43 = vmax.f32 %v3272_v0, 0.0  ;;  %8438 = vmatprep.subr.msk.bf16.mxu1 %vm4300_vm6, %v8637_v11 }
 0x7c5   :  { %v3979_v39 = vmax.f32 %v3274_v48, 0.0 }
 0x7c6   :  { %v4054_v21 = vpack.c.bf16 %v3978_v43, %v3976_v24 }
 0x7c7   :  { %v4055_v22 = vpack.c.bf16 %v3979_v39, %v3977_v23  ;;  %v3277_v44 = vpop.f32.mrb[40].mxu0  ;;  %v5147_v23 = vsel %vm4300_vm6, %v8637_v11, 0 }
 0x7c8   :  { %v3278_v20 = vadd.f32 %v3277_v44, %v10980_v30  ;;  %v3279_v5 = vpop.f32.mrb[41].mxu0  ;;  %8311 = vmatpush3.bf16.msra.mxu1 %v5147_v23 }
 0x7c9   :  { %v3280_v45 = vadd.f32 %v3279_v5, %v10982_v54  ;;  %v3281_v41 = vpop.f32.mrb[42].mxu0  ;;  %7534 = vmatprep.mubr.msk.bf16.mxu0 %vm4586_vm9, %v4055_v22 }
 0x7ca   :  { %v3282_v59 = vadd.f32 %v3281_v41, %v10980_v30  ;;  %v3283_v49 = vpop.f32.mrb[43].mxu0  ;;  %4768 = vmatmul.mubr.bf16.gmra.mrb[132].mxu0 %v4054_v21  ;;  %v3980_v34 = vmax.f32 %v3278_v20, 0.0 }
 0x7cb   :  { %v3284_v55 = vadd.f32 %v3283_v49, %v10982_v54  ;;  %v3981_v9 = vmax.f32 %v3280_v45, 0.0 }
 0x7cc   :  { %v3982_v57 = vmax.f32 %v3282_v59, 0.0 }
 0x7cd   :  { %v3983_v58 = vmax.f32 %v3284_v55, 0.0 }
 0x7ce   :  { %v4056_v26 = vpack.c.bf16 %v3982_v57, %v3980_v34 }
 0x7cf   :  { %v4057_v63 = vpack.c.bf16 %v3983_v58, %v3981_v9  ;;  %v3287_v56 = vpop.f32.mrb[44].mxu0 }
 0x7d0   :  { %v3288_v19 = vadd.f32 %v3287_v56, %v10980_v30  ;;  %v3289_v2 = vpop.f32.mrb[45].mxu0 }
 0x7d1   :  { %v3290_v18 = vadd.f32 %v3289_v2, %v10982_v54  ;;  %v3291_v13 = vpop.f32.mrb[46].mxu0  ;;  %7535 = vmatprep.mubr.msk.bf16.mxu0 %vm4586_vm9, %v4057_v63 }
 0x7d2   :  { %v3292_v32 = vadd.f32 %v3291_v13, %v10980_v30  ;;  %v3293_v61 = vpop.f32.mrb[47].mxu0  ;;  %4776 = vmatmul.mubr.bf16.gmra.mrb[136].mxu0 %v4056_v26  ;;  %v3984_v12 = vmax.f32 %v3288_v19, 0.0 }
 0x7d3   :  { %v3294_v7 = vadd.f32 %v3293_v61, %v10982_v54  ;;  %v3985_v3 = vmax.f32 %v3290_v18, 0.0 }
 0x7d4   :  { %v3986_v6 = vmax.f32 %v3292_v32, 0.0 }
 0x7d5   :  { %v3987_v38 = vmax.f32 %v3294_v7, 0.0 }
 0x7d6   :  { %v4058_v40 = vpack.c.bf16 %v3986_v6, %v3984_v12 }
 0x7d7   :  { %v4059_v27 = vpack.c.bf16 %v3987_v38, %v3985_v3  ;;  %v3297_v51 = vpop.f32.mrb[48].mxu0 }
 0x7d8   :  { %v3298_v31 = vadd.f32 %v3297_v51, %v10980_v30  ;;  %v3299_v53 = vpop.f32.mrb[49].mxu0 }
 0x7d9   :  { %v3300_v60 = vadd.f32 %v3299_v53, %v10982_v54  ;;  %v3301_v15 = vpop.f32.mrb[50].mxu0  ;;  %7536 = vmatprep.mubr.msk.bf16.mxu0 %vm4586_vm9, %v4059_v27 }
 0x7da   :  { %v3302_v37 = vadd.f32 %v3301_v15, %v10980_v30  ;;  %v3303_v35 = vpop.f32.mrb[51].mxu0  ;;  %4784 = vmatmul.mubr.bf16.gmra.mrb[140].mxu0 %v4058_v40  ;;  %v3988_v29 = vmax.f32 %v3298_v31, 0.0 }
 0x7db   :  { %v3304_v50 = vadd.f32 %v3303_v35, %v10982_v54  ;;  %v3989_v52 = vmax.f32 %v3300_v60, 0.0 }
 0x7dc   :  { %v3990_v1 = vmax.f32 %v3302_v37, 0.0 }
 0x7dd   :  { %v3991_v46 = vmax.f32 %v3304_v50, 0.0 }
 0x7de   :  { %v4060_v42 = vpack.c.bf16 %v3990_v1, %v3988_v29 }
 0x7df   :  { %v4061_v62 = vpack.c.bf16 %v3991_v46, %v3989_v52  ;;  %v3307_v47 = vpop.f32.mrb[52].mxu0 }
 0x7e0   :  { %v3308_v33 = vadd.f32 %v3307_v47, %v10980_v30  ;;  %v3309_v4 = vpop.f32.mrb[53].mxu0 }
 0x7e1   :  { %v3310_v16 = vadd.f32 %v3309_v4, %v10982_v54  ;;  %v3311_v17 = vpop.f32.mrb[54].mxu0  ;;  %7537 = vmatprep.mubr.msk.bf16.mxu0 %vm4586_vm9, %v4061_v62 }
 0x7e2   :  { %v3312_v14 = vadd.f32 %v3311_v17, %v10980_v30  ;;  %v3313_v10 = vpop.f32.mrb[55].mxu0  ;;  %4792 = vmatmul.mubr.bf16.gmra.mrb[144].mxu0 %v4060_v42  ;;  %v3992_v28 = vmax.f32 %v3308_v33, 0.0 }
 0x7e3   :  { %v3314_v0 = vadd.f32 %v3313_v10, %v10982_v54  ;;  %v3993_v24 = vmax.f32 %v3310_v16, 0.0 }
 0x7e4   :  { %v3994_v48 = vmax.f32 %v3312_v14, 0.0 }
 0x7e5   :  { %v3995_v43 = vmax.f32 %v3314_v0, 0.0 }
 0x7e6   :  { %v4062_v39 = vpack.c.bf16 %v3994_v48, %v3992_v28 }
 0x7e7   :  { %v4063_v21 = vpack.c.bf16 %v3995_v43, %v3993_v24  ;;  %v3317_v22 = vpop.f32.mrb[56].mxu0 }
 0x7e8   :  { %v3318_v44 = vadd.f32 %v3317_v22, %v10980_v30  ;;  %v3319_v20 = vpop.f32.mrb[57].mxu0 }
 0x7e9   :  { %v3320_v5 = vadd.f32 %v3319_v20, %v10982_v54  ;;  %v3321_v45 = vpop.f32.mrb[58].mxu0  ;;  %7538 = vmatprep.mubr.msk.bf16.mxu0 %vm4586_vm9, %v4063_v21 }
 0x7ea   :  { %v3322_v41 = vadd.f32 %v3321_v45, %v10980_v30  ;;  %v3323_v59 = vpop.f32.mrb[59].mxu0  ;;  %4800 = vmatmul.mubr.bf16.gmra.mrb[148].mxu0 %v4062_v39  ;;  %v3996_v55 = vmax.f32 %v3318_v44, 0.0 }
 0x7eb   :  { %v3324_v49 = vadd.f32 %v3323_v59, %v10982_v54  ;;  %v3997_v57 = vmax.f32 %v3320_v5, 0.0 }
 0x7ec   :  { %v3998_v34 = vmax.f32 %v3322_v41, 0.0 }
 0x7ed   :  { %v3999_v9 = vmax.f32 %v3324_v49, 0.0 }
 0x7ee   :  { %v4064_v58 = vpack.c.bf16 %v3998_v34, %v3996_v55 }
 0x7ef   :  { %v4065_v26 = vpack.c.bf16 %v3999_v9, %v3997_v57  ;;  %v3327_v63 = vpop.f32.mrb[60].mxu0 }
 0x7f0   :  { %v3328_v56 = vadd.f32 %v3327_v63, %v10980_v30  ;;  %v3329_v19 = vpop.f32.mrb[61].mxu0 }
 0x7f1   :  { %v3330_v2 = vadd.f32 %v3329_v19, %v10982_v54  ;;  %v3331_v18 = vpop.f32.mrb[62].mxu0  ;;  %7539 = vmatprep.mubr.msk.bf16.mxu0 %vm4586_vm9, %v4065_v26 }
 0x7f2   :  { %v3332_v13 = vadd.f32 %v3331_v18, %v10980_v30  ;;  %v3333_v32 = vpop.f32.mrb[63].mxu0  ;;  %4808 = vmatmul.mubr.bf16.gmra.mrb[152].mxu0 %v4064_v58  ;;  %v4000_v7 = vmax.f32 %v3328_v56, 0.0 }
 0x7f3   :  { %v3334_v61 = vadd.f32 %v3333_v32, %v10982_v54  ;;  %v4001_v6 = vmax.f32 %v3330_v2, 0.0 }
 0x7f4   :  { %v4002_v12 = vmax.f32 %v3332_v13, 0.0 }
 0x7f5   :  { %v4003_v3 = vmax.f32 %v3334_v61, 0.0 }
 0x7f6   :  { %v4066_v38 = vpack.c.bf16 %v4002_v12, %v4000_v7 }
 0x7f7   :  { %v4067_v40 = vpack.c.bf16 %v4003_v3, %v4001_v6  ;;  %v3337_v27 = vpop.f32.mrb[64].mxu0 }
 0x7f8   :  { %v3338_v51 = vadd.f32 %v3337_v27, %v10980_v30  ;;  %v3339_v31 = vpop.f32.mrb[65].mxu0 }
 0x7f9   :  { %v3340_v53 = vadd.f32 %v3339_v31, %v10982_v54  ;;  %v3341_v60 = vpop.f32.mrb[66].mxu0  ;;  %7540 = vmatprep.mubr.msk.bf16.mxu0 %vm4586_vm9, %v4067_v40 }
 0x7fa   :  { %v3342_v15 = vadd.f32 %v3341_v60, %v10980_v30  ;;  %v3343_v37 = vpop.f32.mrb[67].mxu0  ;;  %4816 = vmatmul.mubr.bf16.gmra.mrb[156].mxu0 %v4066_v38  ;;  %v4004_v25 = vmax.f32 %v3338_v51, 0.0 }
 0x7fb   :  { %v3344_v35 = vadd.f32 %v3343_v37, %v10982_v54  ;;  %v4005_v29 = vmax.f32 %v3340_v53, 0.0 }
 0x7fc   :  { %v4006_v50 = vmax.f32 %v3342_v15, 0.0 }
 0x7fd   :  { %v4007_v1 = vmax.f32 %v3344_v35, 0.0 }
 0x7fe   :  { %v4068_v52 = vpack.c.bf16 %v4006_v50, %v4004_v25 }
 0x7ff   :  { %v4069_v46 = vpack.c.bf16 %v4007_v1, %v4005_v29  ;;  %v3347_v42 = vpop.f32.mrb[68].mxu0 }
 0x800   :  { %v3348_v62 = vadd.f32 %v3347_v42, %v10980_v30  ;;  %v3349_v47 = vpop.f32.mrb[69].mxu0 }
 0x801   :  { %v3350_v36 = vadd.f32 %v3349_v47, %v10982_v54  ;;  %v3351_v33 = vpop.f32.mrb[70].mxu0  ;;  %7541 = vmatprep.mubr.msk.bf16.mxu0 %vm4586_vm9, %v4069_v46 }
 0x802   :  { %v3352_v4 = vadd.f32 %v3351_v33, %v10980_v30  ;;  %v3353_v16 = vpop.f32.mrb[71].mxu0  ;;  %4824 = vmatmul.mubr.bf16.gmra.mrb[160].mxu0 %v4068_v52  ;;  %v4008_v14 = vmax.f32 %v3348_v62, 0.0 }
 0x803   :  { %v3354_v17 = vadd.f32 %v3353_v16, %v10982_v54  ;;  %v4009_v0 = vmax.f32 %v3350_v36, 0.0 }
 0x804   :  { %v4010_v10 = vmax.f32 %v3352_v4, 0.0 }
 0x805   :  { %v4011_v11 = vmax.f32 %v3354_v17, 0.0 }
 0x806   :  { %v4070_v28 = vpack.c.bf16 %v4010_v10, %v4008_v14 }
 0x807   :  { %v4071_v48 = vpack.c.bf16 %v4011_v11, %v4009_v0  ;;  %v3357_v24 = vpop.f32.mrb[72].mxu0 }
 0x808   :  { %v3358_v43 = vadd.f32 %v3357_v24, %v10980_v30  ;;  %v3359_v23 = vpop.f32.mrb[73].mxu0 }
 0x809   :  { %v3360_v39 = vadd.f32 %v3359_v23, %v10982_v54  ;;  %v3361_v21 = vpop.f32.mrb[74].mxu0  ;;  %7542 = vmatprep.mubr.msk.bf16.mxu0 %vm4586_vm9, %v4071_v48 }
 0x80a   :  { %v3362_v22 = vadd.f32 %v3361_v21, %v10980_v30  ;;  %v3363_v44 = vpop.f32.mrb[75].mxu0  ;;  %4832 = vmatmul.mubr.bf16.gmra.mrb[164].mxu0 %v4070_v28  ;;  %v4012_v5 = vmax.f32 %v3358_v43, 0.0 }
 0x80b   :  { %v3364_v20 = vadd.f32 %v3363_v44, %v10982_v54  ;;  %v4013_v41 = vmax.f32 %v3360_v39, 0.0 }
 0x80c   :  { %v4014_v45 = vmax.f32 %v3362_v22, 0.0 }
 0x80d   :  { %v4015_v59 = vmax.f32 %v3364_v20, 0.0 }
 0x80e   :  { %v4072_v49 = vpack.c.bf16 %v4014_v45, %v4012_v5 }
 0x80f   :  { %v4073_v55 = vpack.c.bf16 %v4015_v59, %v4013_v41  ;;  %v3367_v34 = vpop.f32.mrb[76].mxu0 }
 0x810   :  { %v3368_v57 = vadd.f32 %v3367_v34, %v10980_v30  ;;  %v3369_v9 = vpop.f32.mrb[77].mxu0 }
 0x811   :  { %v3370_v58 = vadd.f32 %v3369_v9, %v10982_v54  ;;  %v3371_v26 = vpop.f32.mrb[78].mxu0  ;;  %7543 = vmatprep.mubr.msk.bf16.mxu0 %vm4586_vm9, %v4073_v55 }
 0x812   :  { %v3372_v63 = vadd.f32 %v3371_v26, %v10980_v30  ;;  %v3373_v56 = vpop.f32.mrb[79].mxu0  ;;  %4840 = vmatmul.mubr.bf16.gmra.mrb[168].mxu0 %v4072_v49  ;;  %v4016_v2 = vmax.f32 %v3368_v57, 0.0 }
 0x813   :  { %v3374_v19 = vadd.f32 %v3373_v56, %v10982_v54  ;;  %v4017_v13 = vmax.f32 %v3370_v58, 0.0 }
 0x814   :  { %v4018_v18 = vmax.f32 %v3372_v63, 0.0 }
 0x815   :  { %v4019_v32 = vmax.f32 %v3374_v19, 0.0 }
 0x816   :  { %v4074_v61 = vpack.c.bf16 %v4018_v18, %v4016_v2 }
 0x817   :  { %v4075_v7 = vpack.c.bf16 %v4019_v32, %v4017_v13  ;;  %v3377_v12 = vpop.f32.mrb[80].mxu0 }
 0x818   :  { %v3378_v6 = vadd.f32 %v3377_v12, %v10980_v30  ;;  %v3379_v3 = vpop.f32.mrb[81].mxu0 }
 0x819   :  { %v3380_v38 = vadd.f32 %v3379_v3, %v10982_v54  ;;  %v3381_v40 = vpop.f32.mrb[82].mxu0  ;;  %7544 = vmatprep.mubr.msk.bf16.mxu0 %vm4586_vm9, %v4075_v7 }
 0x81a   :  { %v3382_v27 = vadd.f32 %v3381_v40, %v10980_v30  ;;  %v3383_v51 = vpop.f32.mrb[83].mxu0  ;;  %4848 = vmatmul.mubr.bf16.gmra.mrb[172].mxu0 %v4074_v61  ;;  %v4020_v53 = vmax.f32 %v3378_v6, 0.0 }
 0x81b   :  { %v3384_v31 = vadd.f32 %v3383_v51, %v10982_v54  ;;  %v4021_v15 = vmax.f32 %v3380_v38, 0.0 }
 0x81c   :  { %v4022_v60 = vmax.f32 %v3382_v27, 0.0 }
 0x81d   :  { %v4023_v37 = vmax.f32 %v3384_v31, 0.0 }
 0x81e   :  { %v4076_v35 = vpack.c.bf16 %v4022_v60, %v4020_v53  ;;  %v11197_v53 = vld [vmem:[#allocation10] ss:$0 sm:$0xff] }
 0x81f   :  { %v4077_v25 = vpack.c.bf16 %v4023_v37, %v4021_v15  ;;  %v3387_v50 = vpop.f32.mrb[84].mxu0 }
 0x820   :  { %v3388_v29 = vadd.f32 %v3387_v50, %v10980_v30  ;;  %v3389_v1 = vpop.f32.mrb[85].mxu0 }
 0x821   :  { %v3390_v52 = vadd.f32 %v3389_v1, %v10982_v54  ;;  %v3391_v46 = vpop.f32.mrb[86].mxu0  ;;  %7545 = vmatprep.mubr.msk.bf16.mxu0 %vm4586_vm9, %v4077_v25 }
 0x822   :  { %v3392_v42 = vadd.f32 %v3391_v46, %v10980_v30  ;;  %v3393_v62 = vpop.f32.mrb[87].mxu0  ;;  %4856 = vmatmul.mubr.bf16.gmra.mrb[176].mxu0 %v4076_v35  ;;  %v4024_v36 = vmax.f32 %v3388_v29, 0.0 }
 0x823   :  { %v3394_v47 = vadd.f32 %v3393_v62, %v10982_v54  ;;  %v4025_v4 = vmax.f32 %v3390_v52, 0.0 }
 0x824   :  { %v4026_v33 = vmax.f32 %v3392_v42, 0.0 }
 0x825   :  { %v4027_v16 = vmax.f32 %v3394_v47, 0.0 }
 0x826   :  { %v4078_v17 = vpack.c.bf16 %v4026_v33, %v4024_v36 }
 0x827   :  { %v4079_v14 = vpack.c.bf16 %v4027_v16, %v4025_v4  ;;  %v3397_v10 = vpop.f32.mrb[88].mxu0 }
 0x828   :  { %v3398_v0 = vadd.f32 %v3397_v10, %v10980_v30  ;;  %v3399_v11 = vpop.f32.mrb[89].mxu0 }
 0x829   :  { %v3400_v28 = vadd.f32 %v3399_v11, %v10982_v54  ;;  %v3401_v48 = vpop.f32.mrb[90].mxu0  ;;  %7546 = vmatprep.mubr.msk.bf16.mxu0 %vm4586_vm9, %v4079_v14 }
 0x82a   :  { %v4028_v24 = vmax.f32 %v3398_v0, 0.0  ;;  %v3402_v43 = vadd.f32 %v3401_v48, %v10980_v30  ;;  %v3403_v23 = vpop.f32.mrb[91].mxu0  ;;  %4864 = vmatmul.mubr.bf16.gmra.mrb[180].mxu0 %v4078_v17 }
 0x82b   :  { %v4029_v39 = vmax.f32 %v3400_v28, 0.0  ;;  %v3404_v21 = vadd.f32 %v3403_v23, %v10982_v54 }
 0x82c   :  { %v4030_v22 = vmax.f32 %v3402_v43, 0.0 }
 0x82d   :  { %v4031_v44 = vmax.f32 %v3404_v21, 0.0 }
 0x82e   :  { %v4080_v20 = vpack.c.bf16 %v4030_v22, %v4028_v24 }
 0x82f   :  { %v4081_v5 = vpack.c.bf16 %v4031_v44, %v4029_v39  ;;  %v3407_v45 = vpop.f32.mrb[92].mxu0 }
 0x830   :  { %v3408_v41 = vadd.f32 %v3407_v45, %v10980_v30  ;;  %v3409_v59 = vpop.f32.mrb[93].mxu0 }
 0x831   :  { %v3410_v49 = vadd.f32 %v3409_v59, %v10982_v54  ;;  %v3411_v55 = vpop.f32.mrb[94].mxu0  ;;  %7547 = vmatprep.mubr.msk.bf16.mxu0 %vm4586_vm9, %v4081_v5 }
 0x832   :  { %v4032_v34 = vmax.f32 %v3408_v41, 0.0  ;;  %v3412_v57 = vadd.f32 %v3411_v55, %v10980_v30  ;;  %v3413_v9 = vpop.f32.mrb[95].mxu0  ;;  %4872 = vmatmul.mubr.bf16.gmra.mrb[184].mxu0 %v4080_v20 }
 0x833   :  { %v4033_v58 = vmax.f32 %v3410_v49, 0.0  ;;  %v3414_v26 = vadd.f32 %v3413_v9, %v10982_v54 }
 0x834   :  { %v4034_v63 = vmax.f32 %v3412_v57, 0.0 }
 0x835   :  { %v4035_v56 = vmax.f32 %v3414_v26, 0.0 }
 0x836   :  { %v4082_v19 = vpack.c.bf16 %v4034_v63, %v4032_v34 }
 0x837   :  { %v4083_v2 = vpack.c.bf16 %v4035_v56, %v4033_v58 }
 0x839   :  { %7548 = vmatprep.mubr.msk.bf16.mxu0 %vm4586_vm9, %v4083_v2 }
 0x83a   :  { %4880 = vmatmul.mubr.bf16.gmra.mrb[188].mxu0 %v4082_v19 }
 0x83b   :  { %v8252_v18 = vpop.f32.mrb[64].mxu1 }
 0x83c   :  { %v4338_v13 = vpop.f32.mrb[65].mxu1 }
 0x83d   :  { %v8253_v32 = vpop.f32.mrb[66].mxu1 }
 0x83e   :  { %v4341_v61 = vpop.f32.mrb[67].mxu1 }
 0x843   :  { %v8256_v7 = vpop.f32.mrb[68].mxu1 }
 0x844   :  { %v4354_v12 = vpop.f32.mrb[69].mxu1 }
 0x845   :  { %v11183_v6 = vpop.f32.mrb[70].mxu1 }
 0x846   :  { %v4357_v30 = vpop.f32.mrb[71].mxu1 }
 0x84b   :  { %v11185_v3 = vpop.f32.mrb[72].mxu1 }
 0x84c   :  { %v11187_v38 = vpop.f32.mrb[73].mxu1 }
 0x84d   :  { %v11189_v54 = vpop.f32.mrb[74].mxu1 }
 0x84e   :  { %v11191_v40 = vpop.f32.mrb[75].mxu1 }
 0x853   :  { %v11193_v27 = vpop.f32.mrb[76].mxu1 }
 0x854   :  { %v11195_v51 = vpop.f32.mrb[77].mxu1 }
 0x855   :  { %v4697_v31 = vpop.f32.mrb[96].mxu0  ;;  %v11199_v60 = vpop.f32.mrb[78].mxu1 }
 0x856   :  { %v4699_v15 = vpop.f32.mrb[97].mxu0  ;;  %v4698_v37 = vadd.f32 %v4697_v31, %v4338_v13  ;;  %v11201_v35 = vpop.f32.mrb[79].mxu1 }
 0x857   :  { %v4700_v25 = vpop.f32.mrb[98].mxu0 }
 0x858   :  { %v4895_v50 = vadd.f32 %v11197_v53, %v4698_v37  ;;  %v4702_v29 = vpop.f32.mrb[99].mxu0  ;;  %v4701_v1 = vadd.f32 %v4700_v25, %v4341_v61 }
 0x85a   :  { %v4896_v52 = vadd.f32 %v11197_v53, %v4701_v1  ;;  %v4943_v42 = vmax.f32 %v4895_v50, 0.0 }
 0x85b   :  { %v11205_v46 = vpop.f32.mrb[80].mxu1 }
 0x85c   :  { %v4944_v62 = vmax.f32 %v4896_v52, 0.0  ;;  %v11207_v47 = vpop.f32.mrb[81].mxu1 }
 0x85d   :  { %v4705_v36 = vpop.f32.mrb[100].mxu0  ;;  %v11209_v33 = vpop.f32.mrb[82].mxu1 }
 0x85e   :  { %v4706_v4 = vadd.f32 %v8252_v18, %v4705_v36  ;;  %v4991_v16 = vpack.c.bf16 %v4944_v62, %v4943_v42  ;;  %v4707_v17 = vpop.f32.mrb[101].mxu0  ;;  %v11211_v14 = vpop.f32.mrb[83].mxu1 }
 0x85f   :  { %v4708_v10 = vpop.f32.mrb[102].mxu0 }
 0x860   :  { %v4897_v0 = vadd.f32 %v11197_v53, %v4706_v4  ;;  %v4709_v11 = vadd.f32 %v8253_v32, %v4708_v10  ;;  %8312 = vmatprep.mubr.msk.bf16.mxu1 %vm4227_vm8, %v4991_v16  ;;  %v4710_v28 = vpop.f32.mrb[103].mxu0 }
 0x862   :  { %v4898_v48 = vadd.f32 %v11197_v53, %v4709_v11  ;;  %v4945_v43 = vmax.f32 %v4897_v0, 0.0 }
 0x863   :  { %v11216_v24 = vpop.f32.mrb[84].mxu1 }
 0x864   :  { %v4946_v23 = vmax.f32 %v4898_v48, 0.0  ;;  %v11218_v39 = vpop.f32.mrb[85].mxu1 }
 0x865   :  { %v4713_v21 = vpop.f32.mrb[104].mxu0  ;;  %v11220_v22 = vpop.f32.mrb[86].mxu1 }
 0x866   :  { %v4992_v44 = vpack.c.bf16 %v4946_v23, %v4945_v43  ;;  %v4715_v20 = vpop.f32.mrb[105].mxu0  ;;  %v4714_v5 = vadd.f32 %v4713_v21, %v4354_v12  ;;  %v11222_v45 = vpop.f32.mrb[87].mxu1 }
 0x867   :  { %v4716_v41 = vpop.f32.mrb[106].mxu0 }
 0x868   :  { %8313 = vmatmul.mubr.msk.bf16.vlgmr.msra.gmra.mrb[112].mxu1 %vm4227_vm8, %v4992_v44  ;;  %v4899_v59 = vadd.f32 %v11197_v53, %v4714_v5  ;;  %v4718_v49 = vpop.f32.mrb[107].mxu0  ;;  %v4717_v55 = vadd.f32 %v4716_v41, %v4357_v30 }
 0x86a   :  { %v4900_v34 = vadd.f32 %v11197_v53, %v4717_v55  ;;  %v4947_v9 = vmax.f32 %v4899_v59, 0.0 }
 0x86b   :  { %v11227_v57 = vpop.f32.mrb[88].mxu1 }
 0x86c   :  { %v4948_v58 = vmax.f32 %v4900_v34, 0.0  ;;  %v11229_v26 = vpop.f32.mrb[89].mxu1 }
 0x86d   :  { %v4721_v63 = vpop.f32.mrb[108].mxu0  ;;  %v11231_v56 = vpop.f32.mrb[90].mxu1 }
 0x86e   :  { %v4722_v19 = vadd.f32 %v8256_v7, %v4721_v63  ;;  %v4993_v2 = vpack.c.bf16 %v4948_v58, %v4947_v9  ;;  %v4723_v18 = vpop.f32.mrb[109].mxu0  ;;  %v11233_v13 = vpop.f32.mrb[91].mxu1 }
 0x86f   :  { %v4724_v32 = vpop.f32.mrb[110].mxu0 }
 0x870   :  { %v4901_v61 = vadd.f32 %v11197_v53, %v4722_v19  ;;  %v4725_v12 = vadd.f32 %v11183_v6, %v4724_v32  ;;  %8316 = vmatprep.mubr.msk.bf16.mxu1 %vm4227_vm8, %v4993_v2  ;;  %v4726_v30 = vpop.f32.mrb[111].mxu0 }
 0x872   :  { %v4902_v31 = vadd.f32 %v11197_v53, %v4725_v12  ;;  %v4949_v37 = vmax.f32 %v4901_v61, 0.0 }
 0x873   :  { %v11239_v15 = vpop.f32.mrb[92].mxu1 }
 0x874   :  { %v4950_v25 = vmax.f32 %v4902_v31, 0.0  ;;  %v11241_v50 = vpop.f32.mrb[93].mxu1 }
 0x875   :  { %v4729_v7 = vpop.f32.mrb[112].mxu0  ;;  %v11243_v29 = vpop.f32.mrb[94].mxu1 }
 0x876   :  { %v4994_v1 = vpack.c.bf16 %v4950_v25, %v4949_v37  ;;  %v4731_v52 = vpop.f32.mrb[113].mxu0  ;;  %v4730_v42 = vadd.f32 %v4729_v7, %v11187_v38  ;;  %v11246_v62 = vpop.f32.mrb[95].mxu1 }
 0x877   :  { %v4732_v6 = vpop.f32.mrb[114].mxu0 }
 0x878   :  { %8317 = vmatmul.mubr.msk.bf16.gmra.mrb[116].mxu1 %vm4227_vm8, %v4994_v1  ;;  %v4903_v36 = vadd.f32 %v11197_v53, %v4730_v42  ;;  %v4734_v4 = vpop.f32.mrb[115].mxu0  ;;  %v4733_v16 = vadd.f32 %v4732_v6, %v11191_v40 }
 0x87a   :  { %v4904_v17 = vadd.f32 %v11197_v53, %v4733_v16  ;;  %v4951_v0 = vmax.f32 %v4903_v36, 0.0 }
 0x87b   :  { %v11252_v10 = vpop.f32.mrb[96].mxu1 }
 0x87c   :  { %v4952_v11 = vmax.f32 %v4904_v17, 0.0  ;;  %v11254_v28 = vpop.f32.mrb[97].mxu1 }
 0x87d   :  { %v4737_v48 = vpop.f32.mrb[116].mxu0  ;;  %v11256_v38 = vpop.f32.mrb[98].mxu1 }
 0x87e   :  { %v4738_v43 = vadd.f32 %v11185_v3, %v4737_v48  ;;  %v4995_v23 = vpack.c.bf16 %v4952_v11, %v4951_v0  ;;  %v4739_v21 = vpop.f32.mrb[117].mxu0  ;;  %v11259_v44 = vpop.f32.mrb[99].mxu1 }
 0x87f   :  { %v4740_v20 = vpop.f32.mrb[118].mxu0 }
 0x880   :  { %v4905_v40 = vadd.f32 %v11197_v53, %v4738_v43  ;;  %v4741_v5 = vadd.f32 %v11189_v54, %v4740_v20  ;;  %8320 = vmatprep.mubr.msk.bf16.mxu1 %vm4227_vm8, %v4995_v23  ;;  %v4742_v41 = vpop.f32.mrb[119].mxu0 }
 0x882   :  { %v4906_v59 = vadd.f32 %v11197_v53, %v4741_v5  ;;  %v4953_v55 = vmax.f32 %v4905_v40, 0.0 }
 0x883   :  { %v11265_v49 = vpop.f32.mrb[100].mxu1 }
 0x884   :  { %v4954_v34 = vmax.f32 %v4906_v59, 0.0  ;;  %v11267_v9 = vpop.f32.mrb[101].mxu1 }
 0x885   :  { %v4745_v3 = vpop.f32.mrb[120].mxu0  ;;  %v11269_v58 = vpop.f32.mrb[102].mxu1 }
 0x886   :  { %v4996_v63 = vpack.c.bf16 %v4954_v34, %v4953_v55  ;;  %v4747_v19 = vpop.f32.mrb[121].mxu0  ;;  %v4746_v2 = vadd.f32 %v4745_v3, %v11195_v51  ;;  %v11272_v18 = vpop.f32.mrb[103].mxu1  ;;  %v8638_v3 = vld [vmem:[%s12451_s16] sm:$0xff]  }
 0x887   :  { %v4748_v54 = vpop.f32.mrb[122].mxu0  ;;  %8360 = vmatprep.subr.bf16.mxu1 %v8638_v3 }
 0x888   :  { %8321 = vmatmul.mubr.msk.bf16.gmra.mrb[120].mxu1 %vm4227_vm8, %v4996_v63  ;;  %v4907_v32 = vadd.f32 %v11197_v53, %v4746_v2  ;;  %v4750_v61 = vpop.f32.mrb[123].mxu0  ;;  %v4749_v12 = vadd.f32 %v4748_v54, %v11201_v35  ;;  %v8639_v63 = vld [vmem:[%s12451_s16 + $0x8] sm:$0xff]   ;;  %v8640_v54 = vld [vmem:[%s12451_s16 + $0x10] sm:$0xff]  }
 0x889   :  { %8361 = vmatpush3.bf16.msra.mxu1 %v8638_v3 }
 0x88a   :  { %v4908_v30 = vadd.f32 %v11197_v53, %v4749_v12  ;;  %v4955_v37 = vmax.f32 %v4907_v32, 0.0  ;;  %8362 = vmatprep.subr.bf16.mxu1 %v8639_v63 }
 0x88b   :  { %v11278_v31 = vpop.f32.mrb[104].mxu1 }
 0x88c   :  { %v4956_v25 = vmax.f32 %v4908_v30, 0.0  ;;  %v11280_v7 = vpop.f32.mrb[105].mxu1 }
 0x88d   :  { %v4753_v1 = vpop.f32.mrb[124].mxu0  ;;  %v11282_v51 = vpop.f32.mrb[106].mxu1  ;;  %8363 = vmatpush3.bf16.msra.mxu1 %v8639_v63 }
 0x88e   :  { %v4754_v52 = vadd.f32 %v11193_v27, %v4753_v1  ;;  %v4997_v42 = vpack.c.bf16 %v4956_v25, %v4955_v37  ;;  %v4755_v6 = vpop.f32.mrb[125].mxu0  ;;  %v11285_v36 = vpop.f32.mrb[107].mxu1  ;;  %8364 = vmatprep.subr.bf16.mxu1 %v8640_v54 }
 0x88f   :  { %v4756_v4 = vpop.f32.mrb[126].mxu0 }
 0x890   :  { %v4909_v35 = vadd.f32 %v11197_v53, %v4754_v52  ;;  %v4757_v16 = vadd.f32 %v11199_v60, %v4756_v4  ;;  %8324 = vmatprep.mubr.msk.bf16.mxu1 %vm4227_vm8, %v4997_v42  ;;  %v4758_v17 = vpop.f32.mrb[127].mxu0  ;;  %v8641_v52 = vld [vmem:[%s12451_s16 + $0x18] sm:$0xff]  }
 0x891   :  { %8365 = vmatpush3.bf16.msra.mxu1 %v8640_v54 }
 0x892   :  { %v4910_v0 = vadd.f32 %v11197_v53, %v4757_v16  ;;  %v4957_v48 = vmax.f32 %v4909_v35, 0.0  ;;  %8366 = vmatprep.subr.bf16.mxu1 %v8641_v52 }
 0x893   :  { %v11291_v11 = vpop.f32.mrb[108].mxu1 }
 0x894   :  { %v4958_v43 = vmax.f32 %v4910_v0, 0.0  ;;  %v11293_v23 = vpop.f32.mrb[109].mxu1 }
 0x895   :  { %v4761_v27 = vpop.f32.mrb[128].mxu0  ;;  %v11295_v21 = vpop.f32.mrb[110].mxu1  ;;  %8367 = vmatpush3.bf16.msra.mxu1 %v8641_v52  ;;  %v8642_v52 = vld [vmem:[%s12451_s16 + $0x20] sm:$0xff]  }
 0x896   :  { %v4998_v20 = vpack.c.bf16 %v4958_v43, %v4957_v48  ;;  %v4763_v40 = vpop.f32.mrb[129].mxu0  ;;  %v4762_v5 = vadd.f32 %v4761_v27, %v11207_v47  ;;  %v11298_v41 = vpop.f32.mrb[111].mxu1  ;;  %8368 = vmatprep.subr.bf16.mxu1 %v8642_v52 }
 0x897   :  { %v4764_v60 = vpop.f32.mrb[130].mxu0 }
 0x898   :  { %8325 = vmatmul.mubr.msk.bf16.gmra.mrb[124].mxu1 %vm4227_vm8, %v4998_v20  ;;  %v4911_v59 = vadd.f32 %v11197_v53, %v4762_v5  ;;  %v4766_v55 = vpop.f32.mrb[131].mxu0  ;;  %v4765_v34 = vadd.f32 %v4764_v60, %v11211_v14 }
 0x899   :  { %8369 = vmatpush3.bf16.msra.mxu1 %v8642_v52 }
 0x89a   :  { %v4912_v47 = vadd.f32 %v11197_v53, %v4765_v34  ;;  %v4959_v19 = vmax.f32 %v4911_v59, 0.0 }
 0x89c   :  { %v4960_v2 = vmax.f32 %v4912_v47, 0.0 }
 0x89d   :  { %v4769_v14 = vpop.f32.mrb[132].mxu0 }
 0x89e   :  { %v4770_v32 = vadd.f32 %v11205_v46, %v4769_v14  ;;  %v4999_v61 = vpack.c.bf16 %v4960_v2, %v4959_v19  ;;  %v4771_v12 = vpop.f32.mrb[133].mxu0 }
 0x89f   :  { %v4772_v30 = vpop.f32.mrb[134].mxu0 }
 0x8a0   :  { %v4913_v37 = vadd.f32 %v11197_v53, %v4770_v32  ;;  %v4773_v25 = vadd.f32 %v11209_v33, %v4772_v30  ;;  %8328 = vmatprep.mubr.msk.bf16.mxu1 %vm4227_vm8, %v4999_v61  ;;  %v4774_v1 = vpop.f32.mrb[135].mxu0 }
 0x8a2   :  { %v4914_v42 = vadd.f32 %v11197_v53, %v4773_v25  ;;  %v4961_v46 = vmax.f32 %v4913_v37, 0.0 }
 0x8a4   :  { %v4962_v6 = vmax.f32 %v4914_v42, 0.0 }
 0x8a5   :  { %v4777_v4 = vpop.f32.mrb[136].mxu0 }
 0x8a6   :  { %v5000_v35 = vpack.c.bf16 %v4962_v6, %v4961_v46  ;;  %v4779_v16 = vpop.f32.mrb[137].mxu0  ;;  %v4778_v17 = vadd.f32 %v4777_v4, %v11218_v39  ;;  %v8643_v4 = vld [vmem:[%s12451_s16 + $0x28] ss:$0 sps:$4 sm:$0x11]   ;;  %s9204_s16 = smov 127  }
 0x8a7   :  { %v4780_v33 = vpop.f32.mrb[138].mxu0 }
 0x8a8   :  { %8329 = vmatmul.mubr.msk.bf16.gmra.mrb[128].mxu1 %vm4227_vm8, %v5000_v35  ;;  %v4915_v0 = vadd.f32 %v11197_v53, %v4778_v17  ;;  %v4782_v48 = vpop.f32.mrb[139].mxu0  ;;  %v4781_v43 = vadd.f32 %v4780_v33, %v11222_v45  ;;  %v5572_v17 = vsel %vm5570_vm10, 65535, %v12714_v8 }
 0x8aa   :  { %v4916_v27 = vadd.f32 %v11197_v53, %v4781_v43  ;;  %v4963_v20 = vmax.f32 %v4915_v0, 0.0 }
 0x8ac   :  { %v4964_v40 = vmax.f32 %v4916_v27, 0.0 }
 0x8ad   :  { %v4785_v5 = vpop.f32.mrb[140].mxu0 }
 0x8ae   :  { %v4786_v60 = vadd.f32 %v11216_v24, %v4785_v5  ;;  %v5001_v59 = vpack.c.bf16 %v4964_v40, %v4963_v20  ;;  %v4787_v55 = vpop.f32.mrb[141].mxu0 }
 0x8af   :  { %v4788_v34 = vpop.f32.mrb[142].mxu0 }
 0x8b0   :  { %v4917_v39 = vadd.f32 %v11197_v53, %v4786_v60  ;;  %v4789_v3 = vadd.f32 %v11220_v22, %v4788_v34  ;;  %8332 = vmatprep.mubr.msk.bf16.mxu1 %vm4227_vm8, %v5001_v59  ;;  %v4790_v63 = vpop.f32.mrb[143].mxu0 }
 0x8b2   :  { %v4918_v47 = vadd.f32 %v11197_v53, %v4789_v3  ;;  %v4965_v45 = vmax.f32 %v4917_v39, 0.0 }
 0x8b4   :  { %v4966_v19 = vmax.f32 %v4918_v47, 0.0 }
 0x8b5   :  { %v4793_v2 = vpop.f32.mrb[144].mxu0 }
 0x8b6   :  { %v5002_v54 = vpack.c.bf16 %v4966_v19, %v4965_v45  ;;  %v4795_v14 = vpop.f32.mrb[145].mxu0  ;;  %v4794_v32 = vadd.f32 %v4793_v2, %v11229_v26 }
 0x8b7   :  { %v4796_v24 = vpop.f32.mrb[146].mxu0 }
 0x8b8   :  { %8333 = vmatmul.mubr.msk.bf16.gmra.mrb[132].mxu1 %vm4227_vm8, %v5002_v54  ;;  %v4919_v61 = vadd.f32 %v11197_v53, %v4794_v32  ;;  %v4798_v12 = vpop.f32.mrb[147].mxu0  ;;  %v4797_v22 = vadd.f32 %v4796_v24, %v11233_v13 }
 0x8ba   :  { %v4920_v30 = vadd.f32 %v11197_v53, %v4797_v22  ;;  %v4967_v37 = vmax.f32 %v4919_v61, 0.0 }
 0x8bc   :  { %v4968_v25 = vmax.f32 %v4920_v30, 0.0 }
 0x8bd   :  { %v4801_v1 = vpop.f32.mrb[148].mxu0 }
 0x8be   :  { %v4802_v42 = vadd.f32 %v11227_v57, %v4801_v1  ;;  %v5003_v26 = vpack.c.bf16 %v4968_v25, %v4967_v37  ;;  %v4803_v46 = vpop.f32.mrb[149].mxu0  ;;  %v5574_v57 = vand.u32 %v8643_v4, %v5572_v17 }
 0x8bf   :  { %v4804_v6 = vpop.f32.mrb[150].mxu0 }
 0x8c0   :  { %v4921_v13 = vadd.f32 %v11197_v53, %v4802_v42  ;;  %v4805_v35 = vadd.f32 %v11231_v56, %v4804_v6  ;;  %8336 = vmatprep.mubr.msk.bf16.mxu1 %vm4227_vm8, %v5003_v26  ;;  %v4806_v16 = vpop.f32.mrb[151].mxu0  ;;  %8370 = vmatprep.subr.bf16.mxu1 %v5574_v57 }
 0x8c1   :  { %8371 = vmatpush3.bf16.msra.mxu1 %v5574_v57 }
 0x8c2   :  { %v4922_v33 = vadd.f32 %v11197_v53, %v4805_v35  ;;  %v4969_v0 = vmax.f32 %v4921_v13, 0.0 }
 0x8c4   :  { %v4970_v48 = vmax.f32 %v4922_v33, 0.0 }
 0x8c5   :  { %v4809_v43 = vpop.f32.mrb[152].mxu0 }
 0x8c6   :  { %v5004_v27 = vpack.c.bf16 %v4970_v48, %v4969_v0  ;;  %v4811_v20 = vpop.f32.mrb[153].mxu0  ;;  %v4810_v40 = vadd.f32 %v4809_v43, %v11241_v50 }
 0x8c7   :  { %v4812_v5 = vpop.f32.mrb[154].mxu0 }
 0x8c8   :  { %8337 = vmatmul.mubr.msk.bf16.gmra.mrb[136].mxu1 %vm4227_vm8, %v5004_v27  ;;  %v4923_v56 = vadd.f32 %v11197_v53, %v4810_v40  ;;  %v4814_v60 = vpop.f32.mrb[155].mxu0  ;;  %v4813_v8 = vadd.f32 %v4812_v5, %v11246_v62 }
 0x8ca   :  { %v4924_v59 = vadd.f32 %v11197_v53, %v4813_v8  ;;  %v4971_v55 = vmax.f32 %v4923_v56, 0.0 }
 0x8cc   :  { %v4972_v34 = vmax.f32 %v4924_v59, 0.0 }
 0x8cd   :  { %v4817_v39 = vpop.f32.mrb[156].mxu0 }
 0x8ce   :  { %v4818_v3 = vadd.f32 %v11239_v15, %v4817_v39  ;;  %v5005_v63 = vpack.c.bf16 %v4972_v34, %v4971_v55  ;;  %v4819_v47 = vpop.f32.mrb[157].mxu0 }
 0x8cf   :  { %v4820_v45 = vpop.f32.mrb[158].mxu0 }
 0x8d0   :  { %v4925_v50 = vadd.f32 %v11197_v53, %v4818_v3  ;;  %v4821_v19 = vadd.f32 %v11243_v29, %v4820_v45  ;;  %8340 = vmatprep.mubr.msk.bf16.mxu1 %vm4227_vm8, %v5005_v63  ;;  %v4822_v2 = vpop.f32.mrb[159].mxu0 }
 0x8d2   :  { %v4926_v54 = vadd.f32 %v11197_v53, %v4821_v19  ;;  %v4973_v62 = vmax.f32 %v4925_v50, 0.0 }
 0x8d4   :  { %v4974_v14 = vmax.f32 %v4926_v54, 0.0 }
 0x8d5   :  { %v4825_v32 = vpop.f32.mrb[160].mxu0 }
 0x8d6   :  { %v5006_v24 = vpack.c.bf16 %v4974_v14, %v4973_v62  ;;  %v4827_v61 = vpop.f32.mrb[161].mxu0  ;;  %v4826_v12 = vadd.f32 %v4825_v32, %v11254_v28 }
 0x8d7   :  { %v4828_v15 = vpop.f32.mrb[162].mxu0 }
 0x8d8   :  { %8341 = vmatmul.mubr.msk.bf16.gmra.mrb[140].mxu1 %vm4227_vm8, %v5006_v24  ;;  %v4927_v22 = vadd.f32 %v11197_v53, %v4826_v12  ;;  %v4830_v30 = vpop.f32.mrb[163].mxu0  ;;  %v4829_v29 = vadd.f32 %v4828_v15, %v11259_v44 }
 0x8da   :  { %v4928_v37 = vadd.f32 %v11197_v53, %v4829_v29  ;;  %v4975_v25 = vmax.f32 %v4927_v22, 0.0 }
 0x8dc   :  { %v4976_v1 = vmax.f32 %v4928_v37, 0.0 }
 0x8dd   :  { %v4833_v52 = vpop.f32.mrb[164].mxu0 }
 0x8de   :  { %v4834_v42 = vadd.f32 %v11252_v10, %v4833_v52  ;;  %v5007_v26 = vpack.c.bf16 %v4976_v1, %v4975_v25  ;;  %v4835_v46 = vpop.f32.mrb[165].mxu0 }
 0x8df   :  { %v4836_v6 = vpop.f32.mrb[166].mxu0 }
 0x8e0   :  { %v4929_v28 = vadd.f32 %v11197_v53, %v4834_v42  ;;  %v4837_v4 = vadd.f32 %v11256_v38, %v4836_v6  ;;  %8344 = vmatprep.mubr.msk.bf16.mxu1 %vm4227_vm8, %v5007_v26  ;;  %v4838_v13 = vpop.f32.mrb[167].mxu0 }
 0x8e2   :  { %v4930_v35 = vadd.f32 %v11197_v53, %v4837_v4  ;;  %v4977_v44 = vmax.f32 %v4929_v28, 0.0 }
 0x8e4   :  { %v4978_v16 = vmax.f32 %v4930_v35, 0.0 }
 0x8e5   :  { %v4841_v17 = vpop.f32.mrb[168].mxu0 }
 0x8e6   :  { %v5008_v57 = vpack.c.bf16 %v4978_v16, %v4977_v44  ;;  %v4843_v33 = vpop.f32.mrb[169].mxu0  ;;  %v4842_v0 = vadd.f32 %v4841_v17, %v11267_v9 }
 0x8e7   :  { %v4844_v10 = vpop.f32.mrb[170].mxu0 }
 0x8e8   :  { %8345 = vmatmul.mubr.msk.bf16.gmra.mrb[144].mxu1 %vm4227_vm8, %v5008_v57  ;;  %v4931_v48 = vadd.f32 %v11197_v53, %v4842_v0  ;;  %v4846_v43 = vpop.f32.mrb[171].mxu0  ;;  %v4845_v38 = vadd.f32 %v4844_v10, %v11272_v18 }
 0x8e9   :  { %v11399_v43 = vld [vmem:[#allocation12] ss:$0 sm:$0xff] }
 0x8ea   :  { %v4932_v27 = vadd.f32 %v11197_v53, %v4845_v38  ;;  %v4979_v20 = vmax.f32 %v4931_v48, 0.0 }
 0x8ec   :  { %v4980_v40 = vmax.f32 %v4932_v27, 0.0 }
 0x8ed   :  { %v4849_v5 = vpop.f32.mrb[172].mxu0 }
 0x8ee   :  { %v4850_v56 = vadd.f32 %v11265_v49, %v4849_v5  ;;  %v5009_v60 = vpack.c.bf16 %v4980_v40, %v4979_v20  ;;  %v4851_v8 = vpop.f32.mrb[173].mxu0 }
 0x8ef   :  { %v4852_v59 = vpop.f32.mrb[174].mxu0 }
 0x8f0   :  { %v4933_v9 = vadd.f32 %v11197_v53, %v4850_v56  ;;  %v4853_v55 = vadd.f32 %v11269_v58, %v4852_v59  ;;  %8348 = vmatprep.mubr.msk.bf16.mxu1 %vm4227_vm8, %v5009_v60  ;;  %v4854_v34 = vpop.f32.mrb[175].mxu0 }
 0x8f2   :  { %v4934_v39 = vadd.f32 %v11197_v53, %v4853_v55  ;;  %v4981_v18 = vmax.f32 %v4933_v9, 0.0 }
 0x8f4   :  { %v4982_v3 = vmax.f32 %v4934_v39, 0.0 }
 0x8f5   :  { %v4857_v63 = vpop.f32.mrb[176].mxu0 }
 0x8f6   :  { %v5010_v47 = vpack.c.bf16 %v4982_v3, %v4981_v18  ;;  %v4859_v45 = vpop.f32.mrb[177].mxu0  ;;  %v4858_v50 = vadd.f32 %v4857_v63, %v11280_v7 }
 0x8f7   :  { %v4860_v49 = vpop.f32.mrb[178].mxu0 }
 0x8f8   :  { %8349 = vmatmul.mubr.msk.bf16.gmra.mrb[148].mxu1 %vm4227_vm8, %v5010_v47  ;;  %v4935_v19 = vadd.f32 %v11197_v53, %v4858_v50  ;;  %v4862_v2 = vpop.f32.mrb[179].mxu0  ;;  %v4861_v58 = vadd.f32 %v4860_v49, %v11285_v36 }
 0x8fa   :  { %v4936_v54 = vadd.f32 %v11197_v53, %v4861_v58  ;;  %v4983_v62 = vmax.f32 %v4935_v19, 0.0 }
 0x8fc   :  { %v4984_v14 = vmax.f32 %v4936_v54, 0.0 }
 0x8fd   :  { %v4865_v32 = vpop.f32.mrb[180].mxu0 }
 0x8fe   :  { %v4866_v24 = vadd.f32 %v11278_v31, %v4865_v32  ;;  %v5011_v61 = vpack.c.bf16 %v4984_v14, %v4983_v62  ;;  %v4867_v12 = vpop.f32.mrb[181].mxu0 }
 0x8ff   :  { %v4868_v15 = vpop.f32.mrb[182].mxu0 }
 0x900   :  { %v4937_v7 = vadd.f32 %v11197_v53, %v4866_v24  ;;  %v4869_v22 = vadd.f32 %v11282_v51, %v4868_v15  ;;  %8352 = vmatprep.mubr.msk.bf16.mxu1 %vm4227_vm8, %v5011_v61  ;;  %v4870_v30 = vpop.f32.mrb[183].mxu0 }
 0x902   :  { %v4938_v29 = vadd.f32 %v11197_v53, %v4869_v22  ;;  %v4985_v36 = vmax.f32 %v4937_v7, 0.0 }
 0x904   :  { %v4986_v37 = vmax.f32 %v4938_v29, 0.0 }
 0x905   :  { %v4873_v25 = vpop.f32.mrb[184].mxu0 }
 0x906   :  { %v5012_v1 = vpack.c.bf16 %v4986_v37, %v4985_v36  ;;  %v4875_v52 = vpop.f32.mrb[185].mxu0  ;;  %v4874_v42 = vadd.f32 %v4873_v25, %v11293_v23 }
 0x907   :  { %v4876_v31 = vpop.f32.mrb[186].mxu0 }
 0x908   :  { %8353 = vmatmul.mubr.msk.bf16.gmra.mrb[152].mxu1 %vm4227_vm8, %v5012_v1  ;;  %v4939_v26 = vadd.f32 %v11197_v53, %v4874_v42  ;;  %v4878_v46 = vpop.f32.mrb[187].mxu0  ;;  %v4877_v51 = vadd.f32 %v4876_v31, %v11298_v41 }
 0x90a   :  { %v4987_v6 = vmax.f32 %v4939_v26, 0.0  ;;  %v4940_v28 = vadd.f32 %v11197_v53, %v4877_v51 }
 0x90c   :  { %v4988_v4 = vmax.f32 %v4940_v28, 0.0 }
 0x90d   :  { %v4881_v13 = vpop.f32.mrb[188].mxu0 }
 0x90e   :  { %v4882_v35 = vadd.f32 %v11291_v11, %v4881_v13  ;;  %v5013_v44 = vpack.c.bf16 %v4988_v4, %v4987_v6  ;;  %v4883_v16 = vpop.f32.mrb[189].mxu0 }
 0x90f   :  { %v4884_v17 = vpop.f32.mrb[190].mxu0 }
 0x910   :  { %v4941_v23 = vadd.f32 %v11197_v53, %v4882_v35  ;;  %v4885_v57 = vadd.f32 %v11295_v21, %v4884_v17  ;;  %8356 = vmatprep.mubr.msk.bf16.mxu1 %vm4227_vm8, %v5013_v44  ;;  %v4886_v33 = vpop.f32.mrb[191].mxu0 }
 0x912   :  { %v4942_v0 = vadd.f32 %v11197_v53, %v4885_v57  ;;  %v4989_v41 = vmax.f32 %v4941_v23, 0.0 }
 0x914   :  { %v4990_v10 = vmax.f32 %v4942_v0, 0.0 }
 0x916   :  { %v5014_v48 = vpack.c.bf16 %v4990_v10, %v4989_v41 }
 0x918   :  { %8357 = vmatmul.mubr.msk.bf16.gmra.mrb[156].mxu1 %vm4227_vm8, %v5014_v48 }
 0x93b   :  { %v8314_v11 = vpop.f32.mrb[112].mxu1 }
 0x93c   :  { %v5192_v38 = vadd.f32 %v8314_v11, %v11399_v43  ;;  %v5183_v27 = vpop.f32.mrb[113].mxu1 }
 0x93d   :  { %v5184_v20 = vadd.f32 %v11399_v43, %v5183_v27  ;;  %v8315_v40 = vpop.f32.mrb[114].mxu1 }
 0x93e   :  { %v5195_v21 = vadd.f32 %v8315_v40, %v11399_v43  ;;  %v5186_v5 = vpop.f32.mrb[115].mxu1  ;;  %v5376_v53 = vmax.f32 %v5192_v38, 0.0 }
 0x93f   :  { %v5187_v56 = vadd.f32 %v11399_v43, %v5186_v5  ;;  %v5374_v8 = vmax.f32 %v5184_v20, 0.0 }
 0x940   :  { %v5377_v60 = vmax.f32 %v5195_v21, 0.0 }
 0x941   :  { %v5375_v59 = vmax.f32 %v5187_v56, 0.0 }
 0x942   :  { %v5423_v9 = vpack.c.bf16 %v5377_v60, %v5376_v53 }
 0x943   :  { %v5422_v55 = vpack.c.bf16 %v5375_v59, %v5374_v8 }
 0x945   :  { %8372 = vmatprep.mubr.msk.bf16.mxu1 %vm5497_vm11, %v5422_v55 }
 0x946   :  { %8373 = vmatmul.mubr.msk.bf16.vlgmr.msra.gmra.mrb[160].mxu1 %vm5497_vm11, %v5423_v9 }
 0x94b   :  { %v8318_v34 = vpop.f32.mrb[116].mxu1 }
 0x94c   :  { %v5208_v39 = vadd.f32 %v8318_v34, %v11399_v43  ;;  %v5199_v18 = vpop.f32.mrb[117].mxu1 }
 0x94d   :  { %v5200_v3 = vadd.f32 %v11399_v43, %v5199_v18  ;;  %v8319_v63 = vpop.f32.mrb[118].mxu1 }
 0x94e   :  { %v5211_v47 = vadd.f32 %v8319_v63, %v11399_v43  ;;  %v5202_v45 = vpop.f32.mrb[119].mxu1  ;;  %v5380_v49 = vmax.f32 %v5208_v39, 0.0 }
 0x94f   :  { %v5203_v50 = vadd.f32 %v11399_v43, %v5202_v45  ;;  %v5378_v2 = vmax.f32 %v5200_v3, 0.0 }
 0x950   :  { %v5381_v19 = vmax.f32 %v5211_v47, 0.0 }
 0x951   :  { %v5379_v58 = vmax.f32 %v5203_v50, 0.0 }
 0x952   :  { %v5425_v54 = vpack.c.bf16 %v5381_v19, %v5380_v49 }
 0x953   :  { %v5424_v62 = vpack.c.bf16 %v5379_v58, %v5378_v2 }
 0x955   :  { %8376 = vmatprep.mubr.msk.bf16.mxu1 %vm5497_vm11, %v5424_v62 }
 0x956   :  { %8377 = vmatmul.mubr.msk.bf16.gmra.mrb[164].mxu1 %vm5497_vm11, %v5425_v54 }
 0x95b   :  { %v8322_v14 = vpop.f32.mrb[120].mxu1 }
 0x95c   :  { %v5224_v32 = vadd.f32 %v8322_v14, %v11399_v43  ;;  %v5215_v24 = vpop.f32.mrb[121].mxu1 }
 0x95d   :  { %v5216_v61 = vadd.f32 %v11399_v43, %v5215_v24  ;;  %v8323_v12 = vpop.f32.mrb[122].mxu1 }
 0x95e   :  { %v5227_v15 = vadd.f32 %v8323_v12, %v11399_v43  ;;  %v5218_v7 = vpop.f32.mrb[123].mxu1  ;;  %v5384_v30 = vmax.f32 %v5224_v32, 0.0 }
 0x95f   :  { %v5219_v22 = vadd.f32 %v11399_v43, %v5218_v7  ;;  %v5382_v36 = vmax.f32 %v5216_v61, 0.0 }
 0x960   :  { %v5385_v29 = vmax.f32 %v5227_v15, 0.0 }
 0x961   :  { %v5383_v37 = vmax.f32 %v5219_v22, 0.0 }
 0x962   :  { %v5427_v25 = vpack.c.bf16 %v5385_v29, %v5384_v30 }
 0x963   :  { %v5426_v1 = vpack.c.bf16 %v5383_v37, %v5382_v36 }
 0x965   :  { %8380 = vmatprep.mubr.msk.bf16.mxu1 %vm5497_vm11, %v5426_v1 }
 0x966   :  { %8381 = vmatmul.mubr.msk.bf16.gmra.mrb[168].mxu1 %vm5497_vm11, %v5427_v25 }
 0x96b   :  { %v8326_v52 = vpop.f32.mrb[124].mxu1 }
 0x96c   :  { %v5240_v42 = vadd.f32 %v8326_v52, %v11399_v43  ;;  %v5231_v31 = vpop.f32.mrb[125].mxu1 }
 0x96d   :  { %v5232_v26 = vadd.f32 %v11399_v43, %v5231_v31  ;;  %v8327_v46 = vpop.f32.mrb[126].mxu1 }
 0x96e   :  { %v5243_v51 = vadd.f32 %v8327_v46, %v11399_v43  ;;  %v5234_v6 = vpop.f32.mrb[127].mxu1  ;;  %v5388_v4 = vmax.f32 %v5240_v42, 0.0 }
 0x96f   :  { %v5235_v28 = vadd.f32 %v11399_v43, %v5234_v6  ;;  %v5386_v35 = vmax.f32 %v5232_v26, 0.0 }
 0x970   :  { %v5389_v13 = vmax.f32 %v5243_v51, 0.0 }
 0x971   :  { %v5387_v44 = vmax.f32 %v5235_v28, 0.0 }
 0x972   :  { %v5429_v16 = vpack.c.bf16 %v5389_v13, %v5388_v4 }
 0x973   :  { %v5428_v17 = vpack.c.bf16 %v5387_v44, %v5386_v35 }
 0x975   :  { %8384 = vmatprep.mubr.msk.bf16.mxu1 %vm5497_vm11, %v5428_v17 }
 0x976   :  { %8385 = vmatmul.mubr.msk.bf16.gmra.mrb[172].mxu1 %vm5497_vm11, %v5429_v16 }
 0x97b   :  { %v8330_v23 = vpop.f32.mrb[128].mxu1 }
 0x97c   :  { %v5256_v57 = vadd.f32 %v8330_v23, %v11399_v43  ;;  %v5247_v33 = vpop.f32.mrb[129].mxu1 }
 0x97d   :  { %v5248_v0 = vadd.f32 %v11399_v43, %v5247_v33  ;;  %v8331_v41 = vpop.f32.mrb[130].mxu1 }
 0x97e   :  { %v5259_v10 = vadd.f32 %v8331_v41, %v11399_v43  ;;  %v5250_v48 = vpop.f32.mrb[131].mxu1  ;;  %v5392_v38 = vmax.f32 %v5256_v57, 0.0 }
 0x97f   :  { %v5251_v11 = vadd.f32 %v11399_v43, %v5250_v48  ;;  %v5390_v20 = vmax.f32 %v5248_v0, 0.0 }
 0x980   :  { %v5393_v27 = vmax.f32 %v5259_v10, 0.0 }
 0x981   :  { %v5391_v40 = vmax.f32 %v5251_v11, 0.0 }
 0x982   :  { %v5431_v21 = vpack.c.bf16 %v5393_v27, %v5392_v38 }
 0x983   :  { %v5430_v5 = vpack.c.bf16 %v5391_v40, %v5390_v20 }
 0x985   :  { %8388 = vmatprep.mubr.msk.bf16.mxu1 %vm5497_vm11, %v5430_v5 }
 0x986   :  { %8389 = vmatmul.mubr.msk.bf16.gmra.mrb[176].mxu1 %vm5497_vm11, %v5431_v21 }
 0x98b   :  { %v8334_v56 = vpop.f32.mrb[132].mxu1 }
 0x98c   :  { %v5272_v53 = vadd.f32 %v8334_v56, %v11399_v43  ;;  %v5263_v60 = vpop.f32.mrb[133].mxu1 }
 0x98d   :  { %v5264_v8 = vadd.f32 %v11399_v43, %v5263_v60  ;;  %v8335_v59 = vpop.f32.mrb[134].mxu1 }
 0x98e   :  { %v5275_v9 = vadd.f32 %v8335_v59, %v11399_v43  ;;  %v5266_v55 = vpop.f32.mrb[135].mxu1  ;;  %v5396_v39 = vmax.f32 %v5272_v53, 0.0 }
 0x98f   :  { %v5267_v34 = vadd.f32 %v11399_v43, %v5266_v55  ;;  %v5394_v3 = vmax.f32 %v5264_v8, 0.0 }
 0x990   :  { %v5397_v18 = vmax.f32 %v5275_v9, 0.0 }
 0x991   :  { %v5395_v63 = vmax.f32 %v5267_v34, 0.0 }
 0x992   :  { %v5433_v47 = vpack.c.bf16 %v5397_v18, %v5396_v39 }
 0x993   :  { %v5432_v45 = vpack.c.bf16 %v5395_v63, %v5394_v3 }
 0x995   :  { %8392 = vmatprep.mubr.msk.bf16.mxu1 %vm5497_vm11, %v5432_v45 }
 0x996   :  { %8393 = vmatmul.mubr.msk.bf16.gmra.mrb[180].mxu1 %vm5497_vm11, %v5433_v47 }
 0x99b   :  { %v8338_v50 = vpop.f32.mrb[136].mxu1 }
 0x99c   :  { %v5288_v49 = vadd.f32 %v8338_v50, %v11399_v43  ;;  %v5279_v19 = vpop.f32.mrb[137].mxu1 }
 0x99d   :  { %v5280_v2 = vadd.f32 %v11399_v43, %v5279_v19  ;;  %v8339_v58 = vpop.f32.mrb[138].mxu1 }
 0x99e   :  { %v5291_v54 = vadd.f32 %v8339_v58, %v11399_v43  ;;  %v5282_v62 = vpop.f32.mrb[139].mxu1  ;;  %v5400_v32 = vmax.f32 %v5288_v49, 0.0 }
 0x99f   :  { %v5283_v14 = vadd.f32 %v11399_v43, %v5282_v62  ;;  %v5398_v61 = vmax.f32 %v5280_v2, 0.0 }
 0x9a0   :  { %v5401_v24 = vmax.f32 %v5291_v54, 0.0 }
 0x9a1   :  { %v5399_v12 = vmax.f32 %v5283_v14, 0.0 }
 0x9a2   :  { %v5435_v15 = vpack.c.bf16 %v5401_v24, %v5400_v32 }
 0x9a3   :  { %v5434_v7 = vpack.c.bf16 %v5399_v12, %v5398_v61 }
 0x9a5   :  { %8396 = vmatprep.mubr.msk.bf16.mxu1 %vm5497_vm11, %v5434_v7 }
 0x9a6   :  { %8397 = vmatmul.mubr.msk.bf16.gmra.mrb[184].mxu1 %vm5497_vm11, %v5435_v15 }
 0x9ab   :  { %v8342_v22 = vpop.f32.mrb[140].mxu1 }
 0x9ac   :  { %v5304_v30 = vadd.f32 %v8342_v22, %v11399_v43  ;;  %v5295_v29 = vpop.f32.mrb[141].mxu1 }
 0x9ad   :  { %v5296_v36 = vadd.f32 %v11399_v43, %v5295_v29  ;;  %v8343_v37 = vpop.f32.mrb[142].mxu1 }
 0x9ae   :  { %v5307_v25 = vadd.f32 %v8343_v37, %v11399_v43  ;;  %v5298_v1 = vpop.f32.mrb[143].mxu1  ;;  %v5404_v42 = vmax.f32 %v5304_v30, 0.0 }
 0x9af   :  { %v5299_v52 = vadd.f32 %v11399_v43, %v5298_v1  ;;  %v5402_v26 = vmax.f32 %v5296_v36, 0.0 }
 0x9b0   :  { %v5405_v31 = vmax.f32 %v5307_v25, 0.0 }
 0x9b1   :  { %v5403_v46 = vmax.f32 %v5299_v52, 0.0  ;;  %v11473_v52 = vld [vmem:[#allocation13] ss:$0 sm:$0xff] }
 0x9b2   :  { %v5437_v51 = vpack.c.bf16 %v5405_v31, %v5404_v42 }
 0x9b3   :  { %v5436_v6 = vpack.c.bf16 %v5403_v46, %v5402_v26 }
 0x9b5   :  { %8400 = vmatprep.mubr.msk.bf16.mxu1 %vm5497_vm11, %v5436_v6 }
 0x9b6   :  { %8401 = vmatmul.mubr.msk.bf16.gmra.mrb[188].mxu1 %vm5497_vm11, %v5437_v51 }
 0x9bb   :  { %v8346_v28 = vpop.f32.mrb[144].mxu1 }
 0x9bc   :  { %v5320_v4 = vadd.f32 %v8346_v28, %v11399_v43  ;;  %v5311_v13 = vpop.f32.mrb[145].mxu1 }
 0x9bd   :  { %v5312_v35 = vadd.f32 %v11399_v43, %v5311_v13  ;;  %v8347_v44 = vpop.f32.mrb[146].mxu1 }
 0x9be   :  { %v5323_v16 = vadd.f32 %v8347_v44, %v11399_v43  ;;  %v5314_v17 = vpop.f32.mrb[147].mxu1  ;;  %v5408_v57 = vmax.f32 %v5320_v4, 0.0 }
 0x9bf   :  { %v5315_v23 = vadd.f32 %v11399_v43, %v5314_v17  ;;  %v5406_v0 = vmax.f32 %v5312_v35, 0.0 }
 0x9c0   :  { %v5409_v33 = vmax.f32 %v5323_v16, 0.0 }
 0x9c1   :  { %v5407_v41 = vmax.f32 %v5315_v23, 0.0 }
 0x9c2   :  { %v5439_v10 = vpack.c.bf16 %v5409_v33, %v5408_v57 }
 0x9c3   :  { %v5438_v48 = vpack.c.bf16 %v5407_v41, %v5406_v0 }
 0x9c5   :  { %8404 = vmatprep.mubr.msk.bf16.mxu1 %vm5497_vm11, %v5438_v48 }
 0x9c6   :  { %8405 = vmatmul.mubr.msk.bf16.gmra.mrb[192].mxu1 %vm5497_vm11, %v5439_v10 }
 0x9cb   :  { %v8350_v11 = vpop.f32.mrb[148].mxu1 }
 0x9cc   :  { %v5336_v38 = vadd.f32 %v8350_v11, %v11399_v43  ;;  %v5327_v27 = vpop.f32.mrb[149].mxu1 }
 0x9cd   :  { %v5328_v20 = vadd.f32 %v11399_v43, %v5327_v27  ;;  %v8351_v40 = vpop.f32.mrb[150].mxu1 }
 0x9ce   :  { %v5339_v21 = vadd.f32 %v8351_v40, %v11399_v43  ;;  %v5330_v5 = vpop.f32.mrb[151].mxu1  ;;  %v5412_v53 = vmax.f32 %v5336_v38, 0.0 }
 0x9cf   :  { %v5331_v56 = vadd.f32 %v11399_v43, %v5330_v5  ;;  %v5410_v8 = vmax.f32 %v5328_v20, 0.0 }
 0x9d0   :  { %v5413_v60 = vmax.f32 %v5339_v21, 0.0 }
 0x9d1   :  { %v5411_v59 = vmax.f32 %v5331_v56, 0.0 }
 0x9d2   :  { %v5441_v9 = vpack.c.bf16 %v5413_v60, %v5412_v53 }
 0x9d3   :  { %v5440_v55 = vpack.c.bf16 %v5411_v59, %v5410_v8 }
 0x9d5   :  { %8408 = vmatprep.mubr.msk.bf16.mxu1 %vm5497_vm11, %v5440_v55 }
 0x9d6   :  { %8409 = vmatmul.mubr.msk.bf16.gmra.mrb[196].mxu1 %vm5497_vm11, %v5441_v9 }
 0x9db   :  { %v8354_v34 = vpop.f32.mrb[152].mxu1 }
 0x9dc   :  { %v5352_v39 = vadd.f32 %v8354_v34, %v11399_v43  ;;  %v5343_v18 = vpop.f32.mrb[153].mxu1 }
 0x9dd   :  { %v5344_v3 = vadd.f32 %v11399_v43, %v5343_v18  ;;  %v8355_v63 = vpop.f32.mrb[154].mxu1 }
 0x9de   :  { %v5355_v47 = vadd.f32 %v8355_v63, %v11399_v43  ;;  %v5346_v45 = vpop.f32.mrb[155].mxu1  ;;  %v5416_v49 = vmax.f32 %v5352_v39, 0.0 }
 0x9df   :  { %v5347_v50 = vadd.f32 %v11399_v43, %v5346_v45  ;;  %v5414_v2 = vmax.f32 %v5344_v3, 0.0 }
 0x9e0   :  { %v5417_v19 = vmax.f32 %v5355_v47, 0.0 }
 0x9e1   :  { %v5415_v58 = vmax.f32 %v5347_v50, 0.0 }
 0x9e2   :  { %v5443_v54 = vpack.c.bf16 %v5417_v19, %v5416_v49 }
 0x9e3   :  { %v5442_v62 = vpack.c.bf16 %v5415_v58, %v5414_v2 }
 0x9e5   :  { %8412 = vmatprep.mubr.msk.bf16.mxu1 %vm5497_vm11, %v5442_v62 }
 0x9e6   :  { %8413 = vmatmul.mubr.msk.bf16.gmra.mrb[200].mxu1 %vm5497_vm11, %v5443_v54 }
 0x9eb   :  { %v8358_v14 = vpop.f32.mrb[156].mxu1 }
 0x9ec   :  { %v5368_v32 = vadd.f32 %v8358_v14, %v11399_v43  ;;  %v5359_v24 = vpop.f32.mrb[157].mxu1 }
 0x9ed   :  { %v5360_v61 = vadd.f32 %v11399_v43, %v5359_v24  ;;  %v8359_v12 = vpop.f32.mrb[158].mxu1 }
 0x9ee   :  { %v5371_v15 = vadd.f32 %v8359_v12, %v11399_v43  ;;  %v5362_v7 = vpop.f32.mrb[159].mxu1  ;;  %v5420_v30 = vmax.f32 %v5368_v32, 0.0 }
 0x9ef   :  { %v5363_v22 = vadd.f32 %v11399_v43, %v5362_v7  ;;  %v5418_v36 = vmax.f32 %v5360_v61, 0.0 }
 0x9f0   :  { %v5421_v29 = vmax.f32 %v5371_v15, 0.0 }
 0x9f1   :  { %v5419_v37 = vmax.f32 %v5363_v22, 0.0 }
 0x9f2   :  { %v5445_v25 = vpack.c.bf16 %v5421_v29, %v5420_v30 }
 0x9f3   :  { %v5444_v1 = vpack.c.bf16 %v5419_v37, %v5418_v36 }
 0x9f5   :  { %8416 = vmatprep.mubr.msk.bf16.mxu1 %vm5497_vm11, %v5444_v1 }
 0x9f6   :  { %8417 = vmatmul.mubr.msk.bf16.gmra.mrb[204].mxu1 %vm5497_vm11, %v5445_v25 }
 0xa19   :  { %v8374_v42 = vpop.f32.mrb[160].mxu1 }
 0xa1a   :  { %v11476_v31 = vadd.f32 %v8374_v42, %v11473_v52  ;;  %v5610_v26 = vpop.f32.mrb[161].mxu1 }
 0xa1b   :  { %v11479_v46 = vadd.f32 %v11473_v52, %v5610_v26  ;;  %v8375_v43 = vpop.f32.mrb[162].mxu1 }
 0xa1c   :  { %12780 = vst [vmem:[#allocation40_spill] sm:$0xff] %v11476_v31  ;;  %5853 = vrot.lane.b32.xlu1 %v11476_v31, %s9204_s16  ;;  %v5613_v51 = vpop.f32.mrb[163].mxu1  ;;  %v11486_v6 = vadd.f32 %v8375_v43, %v11473_v52 }
 0xa1d   :  { %12781 = vst [vmem:[#allocation79_spill] sm:$0xff] %v11479_v46  ;;  %5849 = vrot.lane.b32.xlu0 %v11479_v46, %s9204_s16  ;;  %v11489_v28 = vadd.f32 %v11473_v52, %v5613_v51 }
 0xa1e   :  { %12782 = vst [vmem:[#allocation80_spill] sm:$0xff] %v11486_v6 }
 0xa1f   :  { %12783 = vst [vmem:[#allocation43_spill] sm:$0xff] %v11489_v28 }
 0xa20   :  { %5855 = vrot.lane.b32.xlu1 %v11486_v6, %s9204_s16 }
 0xa21   :  { %5851 = vrot.lane.b32.xlu0 %v11489_v28, %s9204_s16 }
 0xa29   :  { %v8378_v4 = vpop.f32.mrb[164].mxu1 }
 0xa2a   :  { %v11496_v13 = vadd.f32 %v8378_v4, %v11473_v52  ;;  %v5626_v35 = vpop.f32.mrb[165].mxu1 }
 0xa2b   :  { %v8379_v44 = vpop.f32.mrb[166].mxu1  ;;  %v11504_v23 = vadd.f32 %v11473_v52, %v5626_v35 }
 0xa2c   :  { %12784 = vst [vmem:[#allocation44_spill] sm:$0xff] %v11496_v13  ;;  %v11499_v16 = vadd.f32 %v8379_v44, %v11473_v52  ;;  %5861 = vrot.lane.b32.xlu0 %v11496_v13, %s9204_s16  ;;  %v5629_v17 = vpop.f32.mrb[167].mxu1 }
 0xa2d   :  { %12786 = vst [vmem:[#allocation82_spill] sm:$0xff] %v11504_v23  ;;  %v11509_v57 = vadd.f32 %v11473_v52, %v5629_v17 }
 0xa2e   :  { %12785 = vst [vmem:[#allocation81_spill] sm:$0xff] %v11499_v16  ;;  %5863 = vrot.lane.b32.xlu1 %v11499_v16, %s9204_s16 }
 0xa2f   :  { %12787 = vst [vmem:[#allocation47_spill] sm:$0xff] %v11509_v57 }
 0xa30   :  { %5857 = vrot.lane.b32.xlu0 %v11504_v23, %s9204_s16 }
 0xa32   :  { %5859 = vrot.lane.b32.xlu1 %v11509_v57, %s9204_s16 }
 0xa39   :  { %v8382_v33 = vpop.f32.mrb[168].mxu1 }
 0xa3a   :  { %v11516_v0 = vadd.f32 %v8382_v33, %v11473_v52  ;;  %v5642_v41 = vpop.f32.mrb[169].mxu1 }
 0xa3b   :  { %v8383_v10 = vpop.f32.mrb[170].mxu1  ;;  %v11524_v38 = vadd.f32 %v11473_v52, %v5642_v41 }
 0xa3c   :  { %v11519_v48 = vadd.f32 %v8383_v10, %v11473_v52  ;;  %5869 = vrot.lane.b32.xlu0 %v11516_v0, %s9204_s16  ;;  %v5645_v11 = vpop.f32.mrb[171].mxu1 }
 0xa3d   :  { %12789 = vst [vmem:[#allocation83_spill] sm:$0xff] %v11524_v38  ;;  %v11529_v27 = vadd.f32 %v11473_v52, %v5645_v11 }
 0xa3e   :  { %12788 = vst [vmem:[#allocation48_spill] sm:$0xff] %v11519_v48  ;;  %5871 = vrot.lane.b32.xlu1 %v11519_v48, %s9204_s16 }
 0xa40   :  { %5865 = vrot.lane.b32.xlu0 %v11524_v38, %s9204_s16 }
 0xa42   :  { %5867 = vrot.lane.b32.xlu1 %v11529_v27, %s9204_s16 }
 0xa49   :  { %v8386_v20 = vpop.f32.mrb[172].mxu1 }
 0xa4a   :  { %v11536_v40 = vadd.f32 %v8386_v20, %v11473_v52  ;;  %v5658_v21 = vpop.f32.mrb[173].mxu1 }
 0xa4b   :  { %v8387_v5 = vpop.f32.mrb[174].mxu1  ;;  %v11544_v60 = vadd.f32 %v11473_v52, %v5658_v21 }
 0xa4c   :  { %12790 = vst [vmem:[#allocation51_spill] sm:$0xff] %v11536_v40  ;;  %v11539_v56 = vadd.f32 %v8387_v5, %v11473_v52  ;;  %5877 = vrot.lane.b32.xlu0 %v11536_v40, %s9204_s16  ;;  %v5661_v53 = vpop.f32.mrb[175].mxu1 }
 0xa4d   :  { %12792 = vst [vmem:[#allocation20_spill] sm:$0xff] %v11544_v60  ;;  %v11549_v8 = vadd.f32 %v11473_v52, %v5661_v53 }
 0xa4e   :  { %12791 = vst [vmem:[#allocation52_spill] sm:$0xff] %v11539_v56  ;;  %5879 = vrot.lane.b32.xlu1 %v11539_v56, %s9204_s16 }
 0xa4f   :  { %12793 = vst [vmem:[#allocation21_spill] sm:$0xff] %v11549_v8 }
 0xa50   :  { %5873 = vrot.lane.b32.xlu0 %v11544_v60, %s9204_s16 }
 0xa52   :  { %5875 = vrot.lane.b32.xlu1 %v11549_v8, %s9204_s16 }
 0xa59   :  { %v8390_v59 = vpop.f32.mrb[176].mxu1 }
 0xa5a   :  { %v11556_v9 = vadd.f32 %v8390_v59, %v11473_v52  ;;  %v5674_v55 = vpop.f32.mrb[177].mxu1 }
 0xa5b   :  { %v8391_v34 = vpop.f32.mrb[178].mxu1  ;;  %v11564_v3 = vadd.f32 %v11473_v52, %v5674_v55 }
 0xa5c   :  { %12794 = vst [vmem:[#allocation55_spill] sm:$0xff] %v11556_v9  ;;  %v11559_v39 = vadd.f32 %v8391_v34, %v11473_v52  ;;  %5885 = vrot.lane.b32.xlu0 %v11556_v9, %s9204_s16  ;;  %v5677_v18 = vpop.f32.mrb[179].mxu1 }
 0xa5d   :  { %v11569_v63 = vadd.f32 %v11473_v52, %v5677_v18 }
 0xa5e   :  { %5887 = vrot.lane.b32.xlu1 %v11559_v39, %s9204_s16 }
 0xa60   :  { %5881 = vrot.lane.b32.xlu0 %v11564_v3, %s9204_s16 }
 0xa62   :  { %5883 = vrot.lane.b32.xlu1 %v11569_v63, %s9204_s16 }
 0xa69   :  { %v8394_v47 = vpop.f32.mrb[180].mxu1 }
 0xa6a   :  { %v11576_v45 = vadd.f32 %v8394_v47, %v11473_v52  ;;  %v5690_v50 = vpop.f32.mrb[181].mxu1 }
 0xa6b   :  { %v8395_v49 = vpop.f32.mrb[182].mxu1  ;;  %v11584_v58 = vadd.f32 %v11473_v52, %v5690_v50 }
 0xa6c   :  { %v11579_v19 = vadd.f32 %v8395_v49, %v11473_v52  ;;  %5893 = vrot.lane.b32.xlu0 %v11576_v45, %s9204_s16  ;;  %v5693_v2 = vpop.f32.mrb[183].mxu1 }
 0xa6d   :  { %v11589_v54 = vadd.f32 %v11473_v52, %v5693_v2 }
 0xa6e   :  { %5895 = vrot.lane.b32.xlu1 %v11579_v19, %s9204_s16 }
 0xa70   :  { %5889 = vrot.lane.b32.xlu0 %v11584_v58, %s9204_s16 }
 0xa72   :  { %5891 = vrot.lane.b32.xlu1 %v11589_v54, %s9204_s16 }
 0xa79   :  { %v8398_v62 = vpop.f32.mrb[184].mxu1 }
 0xa7a   :  { %v11596_v14 = vadd.f32 %v8398_v62, %v11473_v52  ;;  %v5706_v32 = vpop.f32.mrb[185].mxu1 }
 0xa7b   :  { %v8399_v24 = vpop.f32.mrb[186].mxu1  ;;  %v11604_v15 = vadd.f32 %v11473_v52, %v5706_v32 }
 0xa7c   :  { %v11599_v61 = vadd.f32 %v8399_v24, %v11473_v52  ;;  %5901 = vrot.lane.b32.xlu0 %v11596_v14, %s9204_s16  ;;  %v5709_v12 = vpop.f32.mrb[187].mxu1 }
 0xa7d   :  { %v11609_v7 = vadd.f32 %v11473_v52, %v5709_v12 }
 0xa7e   :  { %5903 = vrot.lane.b32.xlu1 %v11599_v61, %s9204_s16 }
 0xa80   :  { %5897 = vrot.lane.b32.xlu0 %v11604_v15, %s9204_s16 }
 0xa82   :  { %5899 = vrot.lane.b32.xlu1 %v11609_v7, %s9204_s16 }
 0xa89   :  { %v8402_v22 = vpop.f32.mrb[188].mxu1 }
 0xa8a   :  { %v11616_v30 = vadd.f32 %v8402_v22, %v11473_v52  ;;  %v5722_v29 = vpop.f32.mrb[189].mxu1 }
 0xa8b   :  { %v8403_v36 = vpop.f32.mrb[190].mxu1  ;;  %v11624_v1 = vadd.f32 %v11473_v52, %v5722_v29 }
 0xa8c   :  { %v11619_v37 = vadd.f32 %v8403_v36, %v11473_v52  ;;  %5909 = vrot.lane.b32.xlu0 %v11616_v30, %s9204_s16  ;;  %v5725_v25 = vpop.f32.mrb[191].mxu1 }
 0xa8d   :  { %v11629_v43 = vadd.f32 %v11473_v52, %v5725_v25 }
 0xa8e   :  { %v5854_v42 = vpop.permute.xlu1 %5853  ;;  %5911 = vrot.lane.b32.xlu1 %v11619_v37, %s9204_s16 }
 0xa8f   :  { %v5850_v26 = vpop.permute.xlu0 %5849  ;;  %v11634_v51 = vmax.f32 %v11476_v31, %v5854_v42 }
 0xa90   :  { %5905 = vrot.lane.b32.xlu0 %v11624_v1, %s9204_s16  ;;  %v11644_v17 = vmax.f32 %v11479_v46, %v5850_v26 }
 0xa92   :  { %v5856_v4 = vpop.permute.xlu1 %5855  ;;  %5907 = vrot.lane.b32.xlu1 %v11629_v43, %s9204_s16  ;;  %12796 = vst [vmem:[#allocation22_spill] sm:$0xff] %v11644_v17 }
 0xa93   :  { %v11639_v35 = vmax.f32 %v11486_v6, %v5856_v4  ;;  %v5852_v44 = vpop.permute.xlu0 %5851 }
 0xa94   :  { %6237 = vrot.lane.b32.xlu0 %v11634_v51, %s9205_s1  ;;  %v11649_v33 = vmax.f32 %v11489_v28, %v5852_v44 }
 0xa95   :  { %12795 = vst [vmem:[#allocation56_spill] sm:$0xff] %v11639_v35 }
 0xa96   :  { %6239 = vrot.lane.b32.xlu1 %v11639_v35, %s9205_s1  ;;  %12797 = vst [vmem:[#allocation23_spill] sm:$0xff] %v11649_v33 }
 0xa98   :  { %6233 = vrot.lane.b32.xlu0 %v11644_v17, %s9205_s1 }
 0xa99   :  { %v8406_v41 = vpop.f32.mrb[192].mxu1 }
 0xa9a   :  { %v11654_v10 = vadd.f32 %v8406_v41, %v11473_v52  ;;  %v5738_v11 = vpop.f32.mrb[193].mxu1  ;;  %6235 = vrot.lane.b32.xlu1 %v11649_v33, %s9205_s1 }
 0xa9b   :  { %v8407_v20 = vpop.f32.mrb[194].mxu1  ;;  %v11664_v53 = vadd.f32 %v11473_v52, %v5738_v11 }
 0xa9c   :  { %12798 = vst [vmem:[#allocation59_spill] sm:$0xff] %v11654_v10  ;;  %v11659_v21 = vadd.f32 %v8407_v20, %v11473_v52  ;;  %5917 = vrot.lane.b32.xlu0 %v11654_v10, %s9204_s16  ;;  %v5741_v5 = vpop.f32.mrb[195].mxu1 }
 0xa9d   :  { %12800 = vst [vmem:[#allocation24_spill] sm:$0xff] %v11664_v53  ;;  %v11669_v55 = vadd.f32 %v11473_v52, %v5741_v5 }
 0xa9e   :  { %12799 = vst [vmem:[#allocation60_spill] sm:$0xff] %v11659_v21  ;;  %5919 = vrot.lane.b32.xlu1 %v11659_v21, %s9204_s16  ;;  %v5862_v59 = vpop.permute.xlu0 %5861 }
 0xa9f   :  { %12801 = vst [vmem:[#allocation25_spill] sm:$0xff] %v11669_v55  ;;  %v11674_v18 = vmax.f32 %v11496_v13, %v5862_v59 }
 0xaa0   :  { %v5864_v34 = vpop.permute.xlu1 %5863  ;;  %5913 = vrot.lane.b32.xlu0 %v11664_v53, %s9204_s16 }
 0xaa1   :  { %12802 = vst [vmem:[#allocation63_spill] sm:$0xff] %v11674_v18  ;;  %v11679_v50 = vmax.f32 %v11499_v16, %v5864_v34 }
 0xaa2   :  { %5915 = vrot.lane.b32.xlu1 %v11669_v55, %s9204_s16  ;;  %v5858_v47 = vpop.permute.xlu0 %5857 }
 0xaa3   :  { %12803 = vst [vmem:[#allocation26_spill] sm:$0xff] %v11679_v50  ;;  %v11684_v2 = vmax.f32 %v11504_v23, %v5858_v47 }
 0xaa4   :  { %6245 = vrot.lane.b32.xlu0 %v11674_v18, %s9205_s1  ;;  %v5860_v49 = vpop.permute.xlu1 %5859 }
 0xaa5   :  { %12804 = vst [vmem:[#allocation27_spill] sm:$0xff] %v11684_v2  ;;  %v11689_v62 = vmax.f32 %v11509_v57, %v5860_v49 }
 0xaa6   :  { %6247 = vrot.lane.b32.xlu1 %v11679_v50, %s9205_s1 }
 0xaa7   :  { %12805 = vst [vmem:[#allocation28_spill] sm:$0xff] %v11689_v62 }
 0xaa8   :  { %6241 = vrot.lane.b32.xlu0 %v11684_v2, %s9205_s1 }
 0xaa9   :  { %v8410_v32 = vpop.f32.mrb[196].mxu1 }
 0xaaa   :  { %v11694_v24 = vadd.f32 %v8410_v32, %v11473_v52  ;;  %v5754_v12 = vpop.f32.mrb[197].mxu1  ;;  %6243 = vrot.lane.b32.xlu1 %v11689_v62, %s9205_s1 }
 0xaab   :  { %v8411_v22 = vpop.f32.mrb[198].mxu1  ;;  %v11704_v25 = vadd.f32 %v11473_v52, %v5754_v12 }
 0xaac   :  { %12806 = vst [vmem:[#allocation29_spill] sm:$0xff] %v11694_v24  ;;  %v11699_v29 = vadd.f32 %v8411_v22, %v11473_v52  ;;  %5925 = vrot.lane.b32.xlu0 %v11694_v24, %s9204_s16  ;;  %v5757_v36 = vpop.f32.mrb[199].mxu1 }
 0xaad   :  { %12807 = vst [vmem:[#allocation30_spill] sm:$0xff] %v11704_v25  ;;  %v11709_v26 = vadd.f32 %v11473_v52, %v5757_v36 }
 0xaae   :  { %5927 = vrot.lane.b32.xlu1 %v11699_v29, %s9204_s16  ;;  %v5870_v42 = vpop.permute.xlu0 %5869 }
 0xaaf   :  { %12808 = vst [vmem:[#allocation31_spill] sm:$0xff] %v11709_v26  ;;  %v11714_v44 = vmax.f32 %v11516_v0, %v5870_v42 }
 0xab0   :  { %v5872_v4 = vpop.permute.xlu1 %5871  ;;  %5921 = vrot.lane.b32.xlu0 %v11704_v25, %s9204_s16 }
 0xab1   :  { %12809 = vst [vmem:[#allocation32_spill] sm:$0xff] %v11714_v44  ;;  %v11719_v11 = vmax.f32 %v11519_v48, %v5872_v4 }
 0xab2   :  { %5923 = vrot.lane.b32.xlu1 %v11709_v26, %s9204_s16  ;;  %v5866_v41 = vpop.permute.xlu0 %5865 }
 0xab3   :  { %12810 = vst [vmem:[#allocation33_spill] sm:$0xff] %v11719_v11  ;;  %v11724_v5 = vmax.f32 %v11524_v38, %v5866_v41 }
 0xab4   :  { %6253 = vrot.lane.b32.xlu0 %v11714_v44, %s9205_s1  ;;  %v5868_v20 = vpop.permute.xlu1 %5867 }
 0xab5   :  { %12811 = vst [vmem:[#allocation34_spill] sm:$0xff] %v11724_v5  ;;  %v11729_v59 = vmax.f32 %v11529_v27, %v5868_v20 }
 0xab6   :  { %6255 = vrot.lane.b32.xlu1 %v11719_v11, %s9205_s1 }
 0xab7   :  { %12812 = vst [vmem:[#allocation35_spill] sm:$0xff] %v11729_v59 }
 0xab8   :  { %6249 = vrot.lane.b32.xlu0 %v11724_v5, %s9205_s1 }
 0xab9   :  { %v8414_v34 = vpop.f32.mrb[200].mxu1 }
 0xaba   :  { %v11734_v47 = vadd.f32 %v8414_v34, %v11473_v52  ;;  %v5770_v49 = vpop.f32.mrb[201].mxu1  ;;  %6251 = vrot.lane.b32.xlu1 %v11729_v59, %s9205_s1 }
 0xabb   :  { %v8415_v32 = vpop.f32.mrb[202].mxu1  ;;  %v11744_v36 = vadd.f32 %v11473_v52, %v5770_v49 }
 0xabc   :  { %v11739_v12 = vadd.f32 %v8415_v32, %v11473_v52  ;;  %5933 = vrot.lane.b32.xlu0 %v11734_v47, %s9204_s16  ;;  %v5773_v22 = vpop.f32.mrb[203].mxu1 }
 0xabd   :  { %v11749_v4 = vadd.f32 %v11473_v52, %v5773_v22 }
 0xabe   :  { %5935 = vrot.lane.b32.xlu1 %v11739_v12, %s9204_s16  ;;  %v5878_v42 = vpop.permute.xlu0 %5877 }
 0xabf   :  { %v11754_v20 = vmax.f32 %v11536_v40, %v5878_v42 }
 0xac0   :  { %v5880_v41 = vpop.permute.xlu1 %5879  ;;  %5929 = vrot.lane.b32.xlu0 %v11744_v36, %s9204_s16 }
 0xac1   :  { %12813 = vst [vmem:[#allocation36_spill] sm:$0xff] %v11754_v20  ;;  %v11759_v49 = vmax.f32 %v11539_v56, %v5880_v41 }
 0xac2   :  { %5931 = vrot.lane.b32.xlu1 %v11749_v4, %s9204_s16  ;;  %v5874_v34 = vpop.permute.xlu0 %5873 }
 0xac3   :  { %12814 = vst [vmem:[#allocation37_spill] sm:$0xff] %v11759_v49  ;;  %v11764_v22 = vmax.f32 %v11544_v60, %v5874_v34 }
 0xac4   :  { %6261 = vrot.lane.b32.xlu0 %v11754_v20, %s9205_s1  ;;  %v5876_v32 = vpop.permute.xlu1 %5875 }
 0xac5   :  { %12815 = vst [vmem:[#allocation38_spill] sm:$0xff] %v11764_v22  ;;  %v11769_v42 = vmax.f32 %v11549_v8, %v5876_v32 }
 0xac6   :  { %6263 = vrot.lane.b32.xlu1 %v11759_v49, %s9205_s1 }
 0xac7   :  { %12816 = vst [vmem:[#allocation39_spill] sm:$0xff] %v11769_v42 }
 0xac8   :  { %6257 = vrot.lane.b32.xlu0 %v11764_v22, %s9205_s1 }
 0xac9   :  { %v8418_v11 = vpop.f32.mrb[204].mxu1 }
 0xaca   :  { %v11774_v41 = vadd.f32 %v8418_v11, %v11473_v52  ;;  %6259 = vrot.lane.b32.xlu1 %v11769_v42, %s9205_s1  ;;  %v5786_v20 = vpop.f32.mrb[205].mxu1 }
 0xacb   :  { %v8419_v44 = vpop.f32.mrb[206].mxu1  ;;  %v11784_v49 = vadd.f32 %v11473_v52, %v5786_v20 }
 0xacc   :  { %12817 = vst [vmem:[#allocation41_spill] sm:$0xff] %v11774_v41  ;;  %v11779_v34 = vadd.f32 %v8419_v44, %v11473_v52  ;;  %5941 = vrot.lane.b32.xlu0 %v11774_v41, %s9204_s16  ;;  %v5789_v32 = vpop.f32.mrb[207].mxu1 }
 0xacd   :  { %v11789_v11 = vadd.f32 %v11473_v52, %v5789_v32 }
 0xace   :  { %12818 = vst [vmem:[#allocation42_spill] sm:$0xff] %v11779_v34  ;;  %v5886_v22 = vpop.permute.xlu0 %5885  ;;  %5943 = vrot.lane.b32.xlu1 %v11779_v34, %s9204_s16 }
 0xacf   :  { %v11794_v44 = vmax.f32 %v11556_v9, %v5886_v22 }
 0xad0   :  { %v5888_v42 = vpop.permute.xlu1 %5887  ;;  %5937 = vrot.lane.b32.xlu0 %v11784_v49, %s9204_s16 }
 0xad1   :  { %12819 = vst [vmem:[#allocation45_spill] sm:$0xff] %v11794_v44  ;;  %v11799_v20 = vmax.f32 %v11559_v39, %v5888_v42 }
 0xad2   :  { %5939 = vrot.lane.b32.xlu1 %v11789_v11, %s9204_s16  ;;  %v5882_v59 = vpop.permute.xlu0 %5881 }
 0xad3   :  { %12820 = vst [vmem:[#allocation46_spill] sm:$0xff] %v11799_v20  ;;  %v11804_v52 = vmax.f32 %v11564_v3, %v5882_v59 }
 0xad4   :  { %6269 = vrot.lane.b32.xlu0 %v11794_v44, %s9205_s1  ;;  %v5884_v5 = vpop.permute.xlu1 %5883 }
 0xad5   :  { %12821 = vst [vmem:[#allocation49_spill] sm:$0xff] %v11804_v52  ;;  %v11809_v22 = vmax.f32 %v11569_v63, %v5884_v5 }
 0xad6   :  { %6271 = vrot.lane.b32.xlu1 %v11799_v20, %s9205_s1 }
 0xad7   :  { %12822 = vst [vmem:[#allocation50_spill] sm:$0xff] %v11809_v22 }
 0xad8   :  { %6265 = vrot.lane.b32.xlu0 %v11804_v52, %s9205_s1 }
 0xada   :  { %6267 = vrot.lane.b32.xlu1 %v11809_v22, %s9205_s1 }
 0xade   :  { %v5894_v42 = vpop.permute.xlu0 %5893 }
 0xadf   :  { %v11816_v32 = vmax.f32 %v11576_v45, %v5894_v42 }
 0xae0   :  { %v5896_v44 = vpop.permute.xlu1 %5895 }
 0xae1   :  { %12823 = vst [vmem:[#allocation53_spill] sm:$0xff] %v11816_v32  ;;  %v11819_v59 = vmax.f32 %v11579_v19, %v5896_v44  ;;  %6277 = vrot.lane.b32.xlu0 %v11816_v32, %s9205_s1 }
 0xae2   :  { %v5890_v20 = vpop.permute.xlu0 %5889 }
 0xae3   :  { %12824 = vst [vmem:[#allocation54_spill] sm:$0xff] %v11819_v59  ;;  %v11824_v5 = vmax.f32 %v11584_v58, %v5890_v20  ;;  %6279 = vrot.lane.b32.xlu1 %v11819_v59, %s9205_s1 }
 0xae4   :  { %v5892_v52 = vpop.permute.xlu1 %5891 }
 0xae5   :  { %12825 = vst [vmem:[#allocation57_spill] sm:$0xff] %v11824_v5  ;;  %v11829_v22 = vmax.f32 %v11589_v54, %v5892_v52  ;;  %6273 = vrot.lane.b32.xlu0 %v11824_v5, %s9205_s1 }
 0xae7   :  { %12826 = vst [vmem:[#allocation58_spill] sm:$0xff] %v11829_v22  ;;  %6275 = vrot.lane.b32.xlu1 %v11829_v22, %s9205_s1 }
 0xaee   :  { %v5902_v44 = vpop.permute.xlu0 %5901 }
 0xaef   :  { %v11836_v42 = vmax.f32 %v11596_v14, %v5902_v44 }
 0xaf0   :  { %v5904_v32 = vpop.permute.xlu1 %5903 }
 0xaf1   :  { %12827 = vst [vmem:[#allocation61_spill] sm:$0xff] %v11836_v42  ;;  %v11839_v20 = vmax.f32 %v11599_v61, %v5904_v32  ;;  %6285 = vrot.lane.b32.xlu0 %v11836_v42, %s9205_s1 }
 0xaf2   :  { %v5898_v59 = vpop.permute.xlu0 %5897 }
 0xaf3   :  { %12828 = vst [vmem:[#allocation62_spill] sm:$0xff] %v11839_v20  ;;  %v11844_v52 = vmax.f32 %v11604_v15, %v5898_v59  ;;  %6287 = vrot.lane.b32.xlu1 %v11839_v20, %s9205_s1 }
 0xaf4   :  { %v5900_v5 = vpop.permute.xlu1 %5899 }
 0xaf5   :  { %12829 = vst [vmem:[#allocation64_spill] sm:$0xff] %v11844_v52  ;;  %v11849_v22 = vmax.f32 %v11609_v7, %v5900_v5  ;;  %6281 = vrot.lane.b32.xlu0 %v11844_v52, %s9205_s1 }
 0xaf7   :  { %12830 = vst [vmem:[#allocation65_spill] sm:$0xff] %v11849_v22  ;;  %6283 = vrot.lane.b32.xlu1 %v11849_v22, %s9205_s1 }
 0xafe   :  { %v5910_v32 = vpop.permute.xlu0 %5909 }
 0xaff   :  { %v11856_v44 = vmax.f32 %v11616_v30, %v5910_v32 }
 0xb00   :  { %v5912_v42 = vpop.permute.xlu1 %5911 }
 0xb01   :  { %12831 = vst [vmem:[#allocation66_spill] sm:$0xff] %v11856_v44  ;;  %v11859_v59 = vmax.f32 %v11619_v37, %v5912_v42  ;;  %6293 = vrot.lane.b32.xlu0 %v11856_v44, %s9205_s1 }
 0xb02   :  { %v5906_v20 = vpop.permute.xlu0 %5905 }
 0xb03   :  { %12832 = vst [vmem:[#allocation67_spill] sm:$0xff] %v11859_v59  ;;  %v11864_v5 = vmax.f32 %v11624_v1, %v5906_v20  ;;  %6295 = vrot.lane.b32.xlu1 %v11859_v59, %s9205_s1 }
 0xb04   :  { %v5908_v52 = vpop.permute.xlu1 %5907 }
 0xb05   :  { %12833 = vst [vmem:[#allocation68_spill] sm:$0xff] %v11864_v5  ;;  %v11869_v22 = vmax.f32 %v11629_v43, %v5908_v52  ;;  %6289 = vrot.lane.b32.xlu0 %v11864_v5, %s9205_s1 }
 0xb06   :  { %v6238_v32 = vpop.permute.xlu0 %6237 }
 0xb07   :  { %12834 = vst [vmem:[#allocation69_spill] sm:$0xff] %v11869_v22  ;;  %v6379_v42 = vsub.f32 %v11476_v31, %v6238_v32  ;;  %6291 = vrot.lane.b32.xlu1 %v11869_v22, %s9205_s1 }
 0xb08   :  { %v6240_v44 = vpop.permute.xlu1 %6239 }
 0xb09   :  { %v6380_v20 = vsub.f32 %v11486_v6, %v6240_v44  ;;  %v6429_v62 = vmul.f32 1.442695, %v6379_v42 }
 0xb0a   :  { %v6234_v2 = vpop.permute.xlu0 %6233 }
 0xb0b   :  { %v6377_v59 = vsub.f32 %v11479_v46, %v6234_v2  ;;  %v6431_v50 = vmul.f32 1.442695, %v6380_v20  ;;  %8644 = vpow2.f32 %v6429_v62 }
 0xb0c   :  { %v6236_v18 = vpop.permute.xlu1 %6235 }
 0xb0d   :  { %v6378_v52 = vsub.f32 %v11489_v28, %v6236_v18  ;;  %v6425_v33 = vmul.f32 1.442695, %v6377_v59  ;;  %8646 = vpow2.f32 %v6431_v50 }
 0xb0e   :  { %v5918_v5 = vpop.permute.xlu0 %5917 }
 0xb0f   :  { %v11880_v17 = vmax.f32 %v11654_v10, %v5918_v5  ;;  %v6427_v32 = vmul.f32 1.442695, %v6378_v52  ;;  %8648 = vpow2.f32 %v6425_v33 }
 0xb10   :  { %v5920_v22 = vpop.permute.xlu1 %5919 }
 0xb11   :  { %12835 = vst [vmem:[#allocation70_spill] sm:$0xff] %v11880_v17  ;;  %v11883_v35 = vmax.f32 %v11659_v21, %v5920_v22  ;;  %6301 = vrot.lane.b32.xlu0 %v11880_v17, %s9205_s1  ;;  %8650 = vpow2.f32 %v6427_v32  ;;  %v12853_v17 = vld [vmem:[#allocation23_spill] sm:$0xff] }
 0xb12   :  { %v5914_v2 = vpop.permute.xlu0 %5913 }
 0xb13   :  { %12836 = vst [vmem:[#allocation71_spill] sm:$0xff] %v11883_v35  ;;  %v11888_v44 = vmax.f32 %v11664_v53, %v5914_v2  ;;  %6303 = vrot.lane.b32.xlu1 %v11883_v35, %s9205_s1 }
 0xb14   :  { %v5916_v18 = vpop.permute.xlu1 %5915 }
 0xb15   :  { %12837 = vst [vmem:[#allocation72_spill] sm:$0xff] %v11888_v44  ;;  %v11893_v50 = vmax.f32 %v11669_v55, %v5916_v18  ;;  %6297 = vrot.lane.b32.xlu0 %v11888_v44, %s9205_s1  ;;  %v8645_v33 = vpop.eup %8644 }
 0xb16   :  { %v6246_v62 = vpop.permute.xlu0 %6245 }
 0xb17   :  { %12838 = vst [vmem:[#allocation73_spill] sm:$0xff] %v11893_v50  ;;  %v6383_v22 = vsub.f32 %v11496_v13, %v6246_v62  ;;  %6299 = vrot.lane.b32.xlu1 %v11893_v50, %s9205_s1  ;;  %v8647_v42 = vpop.eup %8646 }
 0xb18   :  { %v6248_v59 = vpop.permute.xlu1 %6247 }
 0xb19   :  { %v6384_v5 = vsub.f32 %v11499_v16, %v6248_v59  ;;  %6573 = vrot.lane.b32.xlu0 %v8645_v33, %s9204_s16  ;;  %v6437_v20 = vmul.f32 1.442695, %v6383_v22  ;;  %v8649_v2 = vpop.eup %8648 }
 0xb1a   :  { %v6242_v52 = vpop.permute.xlu0 %6241 }
 0xb1b   :  { %v6381_v32 = vsub.f32 %v11504_v23, %v6242_v52  ;;  %6575 = vrot.lane.b32.xlu1 %v8647_v42, %s9204_s16  ;;  %v6439_v18 = vmul.f32 1.442695, %v6384_v5  ;;  %v8651_v50 = vpop.eup %8650  ;;  %8652 = vpow2.f32 %v6437_v20 }
 0xb1c   :  { %v6244_v44 = vpop.permute.xlu1 %6243 }
 0xb1d   :  { %v6382_v62 = vsub.f32 %v11509_v57, %v6244_v44  ;;  %6569 = vrot.lane.b32.xlu0 %v8649_v2, %s9204_s16  ;;  %v6433_v35 = vmul.f32 1.442695, %v6381_v32  ;;  %8654 = vpow2.f32 %v6439_v18 }
 0xb1e   :  { %v5926_v59 = vpop.permute.xlu0 %5925 }
 0xb1f   :  { %v11907_v33 = vmax.f32 %v11694_v24, %v5926_v59  ;;  %6571 = vrot.lane.b32.xlu1 %v8651_v50, %s9204_s16  ;;  %v6435_v22 = vmul.f32 1.442695, %v6382_v62  ;;  %8656 = vpow2.f32 %v6433_v35 }
 0xb20   :  { %v5928_v52 = vpop.permute.xlu1 %5927 }
 0xb21   :  { %12839 = vst [vmem:[#allocation74_spill] sm:$0xff] %v11907_v33  ;;  %v11911_v42 = vmax.f32 %v11699_v29, %v5928_v52  ;;  %6309 = vrot.lane.b32.xlu0 %v11907_v33, %s9205_s1  ;;  %8658 = vpow2.f32 %v6435_v22 }
 0xb22   :  { %v5922_v44 = vpop.permute.xlu0 %5921 }
 0xb23   :  { %12840 = vst [vmem:[#allocation75_spill] sm:$0xff] %v11911_v42  ;;  %v11916_v5 = vmax.f32 %v11704_v25, %v5922_v44  ;;  %6311 = vrot.lane.b32.xlu1 %v11911_v42, %s9205_s1 }
 0xb24   :  { %v5924_v20 = vpop.permute.xlu1 %5923 }
 0xb25   :  { %12841 = vst [vmem:[#allocation76_spill] sm:$0xff] %v11916_v5  ;;  %v11921_v50 = vmax.f32 %v11709_v26, %v5924_v20  ;;  %6305 = vrot.lane.b32.xlu0 %v11916_v5, %s9205_s1  ;;  %v8653_v35 = vpop.eup %8652 }
 0xb26   :  { %v6254_v32 = vpop.permute.xlu0 %6253 }
 0xb27   :  { %12842 = vst [vmem:[#allocation77_spill] sm:$0xff] %v11921_v50  ;;  %v6387_v2 = vsub.f32 %v11516_v0, %v6254_v32  ;;  %6307 = vrot.lane.b32.xlu1 %v11921_v50, %s9205_s1  ;;  %v8655_v59 = vpop.eup %8654 }
 0xb28   :  { %v6256_v18 = vpop.permute.xlu1 %6255 }
 0xb29   :  { %v6388_v62 = vsub.f32 %v11519_v48, %v6256_v18  ;;  %6581 = vrot.lane.b32.xlu0 %v8653_v35, %s9204_s16  ;;  %v6445_v22 = vmul.f32 1.442695, %v6387_v2  ;;  %v8657_v20 = vpop.eup %8656 }
 0xb2a   :  { %v6250_v52 = vpop.permute.xlu0 %6249 }
 0xb2b   :  { %v6385_v44 = vsub.f32 %v11524_v38, %v6250_v52  ;;  %6583 = vrot.lane.b32.xlu1 %v8655_v59, %s9204_s16  ;;  %v6447_v5 = vmul.f32 1.442695, %v6388_v62  ;;  %v8659_v50 = vpop.eup %8658  ;;  %8660 = vpow2.f32 %v6445_v22 }
 0xb2c   :  { %v6252_v33 = vpop.permute.xlu1 %6251 }
 0xb2d   :  { %v6386_v32 = vsub.f32 %v11529_v27, %v6252_v33  ;;  %6577 = vrot.lane.b32.xlu0 %v8657_v20, %s9204_s16  ;;  %v6441_v42 = vmul.f32 1.442695, %v6385_v44  ;;  %8662 = vpow2.f32 %v6447_v5 }
 0xb2e   :  { %v5934_v18 = vpop.permute.xlu0 %5933 }
 0xb2f   :  { %v11935_v35 = vmax.f32 %v11734_v47, %v5934_v18  ;;  %6579 = vrot.lane.b32.xlu1 %v8659_v50, %s9204_s16  ;;  %v6443_v2 = vmul.f32 1.442695, %v6386_v32  ;;  %8664 = vpow2.f32 %v6441_v42 }
 0xb30   :  { %v5936_v52 = vpop.permute.xlu1 %5935 }
 0xb31   :  { %12843 = vst [vmem:[#allocation78_spill] sm:$0xff] %v11935_v35  ;;  %v11939_v59 = vmax.f32 %v11739_v12, %v5936_v52  ;;  %6317 = vrot.lane.b32.xlu0 %v11935_v35, %s9205_s1  ;;  %8666 = vpow2.f32 %v6443_v2 }
 0xb32   :  { %v5930_v33 = vpop.permute.xlu0 %5929 }
 0xb33   :  { %12844 = vst [vmem:[#allocation84_spill] sm:$0xff] %v11939_v59  ;;  %v11944_v62 = vmax.f32 %v11744_v36, %v5930_v33  ;;  %6319 = vrot.lane.b32.xlu1 %v11939_v59, %s9205_s1 }
 0xb34   :  { %v5932_v22 = vpop.permute.xlu1 %5931 }
 0xb35   :  { %12845 = vst [vmem:[#allocation85_spill] sm:$0xff] %v11944_v62  ;;  %v11949_v5 = vmax.f32 %v11749_v4, %v5932_v22  ;;  %6313 = vrot.lane.b32.xlu0 %v11944_v62, %s9205_s1  ;;  %v8661_v42 = vpop.eup %8660 }
 0xb36   :  { %v6262_v50 = vpop.permute.xlu0 %6261 }
 0xb37   :  { %12846 = vst [vmem:[#allocation86_spill] sm:$0xff] %v11949_v5  ;;  %v6391_v44 = vsub.f32 %v11536_v40, %v6262_v50  ;;  %6315 = vrot.lane.b32.xlu1 %v11949_v5, %s9205_s1  ;;  %v8663_v18 = vpop.eup %8662 }
 0xb38   :  { %v6264_v20 = vpop.permute.xlu1 %6263 }
 0xb39   :  { %v6392_v32 = vsub.f32 %v11539_v56, %v6264_v20  ;;  %6589 = vrot.lane.b32.xlu0 %v8661_v42, %s9204_s16  ;;  %v6453_v2 = vmul.f32 1.442695, %v6391_v44  ;;  %v8665_v22 = vpop.eup %8664 }
 0xb3a   :  { %v6258_v52 = vpop.permute.xlu0 %6257 }
 0xb3b   :  { %v6389_v33 = vsub.f32 %v11544_v60, %v6258_v52  ;;  %6591 = vrot.lane.b32.xlu1 %v8663_v18, %s9204_s16  ;;  %v6455_v62 = vmul.f32 1.442695, %v6392_v32  ;;  %v8667_v5 = vpop.eup %8666  ;;  %8668 = vpow2.f32 %v6453_v2 }
 0xb3c   :  { %v6260_v35 = vpop.permute.xlu1 %6259 }
 0xb3d   :  { %v6390_v50 = vsub.f32 %v11549_v8, %v6260_v35  ;;  %6585 = vrot.lane.b32.xlu0 %v8665_v22, %s9204_s16  ;;  %v6449_v59 = vmul.f32 1.442695, %v6389_v33  ;;  %8670 = vpow2.f32 %v6455_v62 }
 0xb3e   :  { %v5942_v20 = vpop.permute.xlu0 %5941 }
 0xb3f   :  { %v11963_v42 = vmax.f32 %v11774_v41, %v5942_v20  ;;  %6587 = vrot.lane.b32.xlu1 %v8667_v5, %s9204_s16  ;;  %v6451_v44 = vmul.f32 1.442695, %v6390_v50  ;;  %8672 = vpow2.f32 %v6449_v59 }
 0xb40   :  { %v5944_v52 = vpop.permute.xlu1 %5943 }
 0xb41   :  { %12847 = vst [vmem:[#allocation87_spill] sm:$0xff] %v11963_v42  ;;  %v11967_v18 = vmax.f32 %v11779_v34, %v5944_v52  ;;  %6325 = vrot.lane.b32.xlu0 %v11963_v42, %s9205_s1  ;;  %8674 = vpow2.f32 %v6451_v44 }
 0xb42   :  { %v5938_v35 = vpop.permute.xlu0 %5937 }
 0xb43   :  { %12848 = vst [vmem:[#allocation88_spill] sm:$0xff] %v11967_v18  ;;  %v11972_v32 = vmax.f32 %v11784_v49, %v5938_v35  ;;  %6327 = vrot.lane.b32.xlu1 %v11967_v18, %s9205_s1 }
 0xb44   :  { %v5940_v2 = vpop.permute.xlu1 %5939 }
 0xb45   :  { %12849 = vst [vmem:[#allocation89_spill] sm:$0xff] %v11972_v32  ;;  %v11977_v62 = vmax.f32 %v11789_v11, %v5940_v2  ;;  %6321 = vrot.lane.b32.xlu0 %v11972_v32, %s9205_s1  ;;  %v8669_v59 = vpop.eup %8668 }
 0xb46   :  { %v6270_v5 = vpop.permute.xlu0 %6269 }
 0xb47   :  { %12850 = vst [vmem:[#allocation90_spill] sm:$0xff] %v11977_v62  ;;  %v6395_v33 = vsub.f32 %v11556_v9, %v6270_v5  ;;  %6323 = vrot.lane.b32.xlu1 %v11977_v62, %s9205_s1  ;;  %v8671_v44 = vpop.eup %8670 }
 0xb48   :  { %v6272_v22 = vpop.permute.xlu1 %6271 }
 0xb49   :  { %v6461_v50 = vmul.f32 1.442695, %v6395_v33  ;;  %v6396_v20 = vsub.f32 %v11559_v39, %v6272_v22  ;;  %6597 = vrot.lane.b32.xlu0 %v8669_v59, %s9204_s16  ;;  %v8673_v32 = vpop.eup %8672 }
 0xb4a   :  { %v6266_v52 = vpop.permute.xlu0 %6265 }
 0xb4b   :  { %v6463_v35 = vmul.f32 1.442695, %v6396_v20  ;;  %v6393_v2 = vsub.f32 %v11564_v3, %v6266_v52  ;;  %6599 = vrot.lane.b32.xlu1 %v8671_v44, %s9204_s16  ;;  %8676 = vpow2.f32 %v6461_v50  ;;  %v8675_v33 = vpop.eup %8674 }
 0xb4c   :  { %v6268_v5 = vpop.permute.xlu1 %6267 }
 0xb4d   :  { %8678 = vpow2.f32 %v6463_v35  ;;  %v6457_v42 = vmul.f32 1.442695, %v6393_v2  ;;  %v6394_v62 = vsub.f32 %v11569_v63, %v6268_v5  ;;  %6593 = vrot.lane.b32.xlu0 %v8673_v32, %s9204_s16 }
 0xb4f   :  { %8680 = vpow2.f32 %v6457_v42  ;;  %v6459_v22 = vmul.f32 1.442695, %v6394_v62  ;;  %6595 = vrot.lane.b32.xlu1 %v8675_v33, %s9204_s16 }
 0xb51   :  { %8682 = vpow2.f32 %v6459_v22 }
 0xb53   :  { %v6278_v59 = vpop.permute.xlu0 %6277 }
 0xb54   :  { %v6399_v20 = vsub.f32 %v11576_v45, %v6278_v59 }
 0xb55   :  { %v6280_v52 = vpop.permute.xlu1 %6279  ;;  %v8677_v44 = vpop.eup %8676 }
 0xb56   :  { %v6469_v18 = vmul.f32 1.442695, %v6399_v20  ;;  %v6400_v50 = vsub.f32 %v11579_v19, %v6280_v52  ;;  %6605 = vrot.lane.b32.xlu0 %v8677_v44, %s9204_s16 }
 0xb57   :  { %v8679_v35 = vpop.eup %8678  ;;  %v6274_v2 = vpop.permute.xlu0 %6273 }
 0xb58   :  { %8684 = vpow2.f32 %v6469_v18  ;;  %v6471_v32 = vmul.f32 1.442695, %v6400_v50  ;;  %v6397_v42 = vsub.f32 %v11584_v58, %v6274_v2  ;;  %6607 = vrot.lane.b32.xlu1 %v8679_v35, %s9204_s16 }
 0xb59   :  { %v8681_v62 = vpop.eup %8680  ;;  %v6276_v5 = vpop.permute.xlu1 %6275 }
 0xb5a   :  { %8686 = vpow2.f32 %v6471_v32  ;;  %v6465_v33 = vmul.f32 1.442695, %v6397_v42  ;;  %v6398_v22 = vsub.f32 %v11589_v54, %v6276_v5  ;;  %6601 = vrot.lane.b32.xlu0 %v8681_v62, %s9204_s16 }
 0xb5b   :  { %v8683_v59 = vpop.eup %8682 }
 0xb5c   :  { %8688 = vpow2.f32 %v6465_v33  ;;  %v6467_v20 = vmul.f32 1.442695, %v6398_v22  ;;  %6603 = vrot.lane.b32.xlu1 %v8683_v59, %s9204_s16 }
 0xb5e   :  { %8690 = vpow2.f32 %v6467_v20 }
 0xb62   :  { %v8685_v18 = vpop.eup %8684 }
 0xb63   :  { %6613 = vrot.lane.b32.xlu0 %v8685_v18, %s9204_s16  ;;  %v6286_v52 = vpop.permute.xlu0 %6285 }
 0xb64   :  { %v8687_v44 = vpop.eup %8686  ;;  %v6403_v50 = vsub.f32 %v11596_v14, %v6286_v52 }
 0xb65   :  { %6615 = vrot.lane.b32.xlu1 %v8687_v44, %s9204_s16  ;;  %v6288_v35 = vpop.permute.xlu1 %6287 }
 0xb66   :  { %v8689_v2 = vpop.eup %8688  ;;  %v6477_v32 = vmul.f32 1.442695, %v6403_v50  ;;  %v6404_v42 = vsub.f32 %v11599_v61, %v6288_v35 }
 0xb67   :  { %6609 = vrot.lane.b32.xlu0 %v8689_v2, %s9204_s16  ;;  %v6282_v62 = vpop.permute.xlu0 %6281 }
 0xb68   :  { %v8691_v5 = vpop.eup %8690  ;;  %8692 = vpow2.f32 %v6477_v32  ;;  %v6479_v33 = vmul.f32 1.442695, %v6404_v42  ;;  %v6401_v22 = vsub.f32 %v11604_v15, %v6282_v62 }
 0xb69   :  { %6611 = vrot.lane.b32.xlu1 %v8691_v5, %s9204_s16  ;;  %v6284_v59 = vpop.permute.xlu1 %6283 }
 0xb6a   :  { %8694 = vpow2.f32 %v6479_v33  ;;  %v6473_v20 = vmul.f32 1.442695, %v6401_v22  ;;  %v6402_v18 = vsub.f32 %v11609_v7, %v6284_v59 }
 0xb6c   :  { %8696 = vpow2.f32 %v6473_v20  ;;  %v6475_v52 = vmul.f32 1.442695, %v6402_v18  ;;  %v6043_v18 = vsub.f32 %v11476_v31, %v11634_v51  ;;  %v6042_v31 = vsub.f32 %v11489_v28, %v12853_v17 }
 0xb6e   :  { %8698 = vpow2.f32 %v6475_v52 }
 0xb72   :  { %v8693_v44 = vpop.eup %8692 }
 0xb73   :  { %6621 = vrot.lane.b32.xlu0 %v8693_v44, %s9204_s16  ;;  %v6294_v50 = vpop.permute.xlu0 %6293 }
 0xb74   :  { %v8695_v35 = vpop.eup %8694  ;;  %v6407_v2 = vsub.f32 %v11616_v30, %v6294_v50 }
 0xb75   :  { %6623 = vrot.lane.b32.xlu1 %v8695_v35, %s9204_s16  ;;  %v6296_v32 = vpop.permute.xlu1 %6295  ;;  %v12851_v35 = vld [vmem:[#allocation56_spill] sm:$0xff] }
 0xb76   :  { %v8697_v42 = vpop.eup %8696  ;;  %v6485_v62 = vmul.f32 1.442695, %v6407_v2  ;;  %v6408_v5 = vsub.f32 %v11619_v37, %v6296_v32  ;;  %v6044_v2 = vsub.f32 %v11486_v6, %v12851_v35 }
 0xb77   :  { %6617 = vrot.lane.b32.xlu0 %v8697_v42, %s9204_s16  ;;  %v6290_v33 = vpop.permute.xlu0 %6289  ;;  %v6093_v42 = vmul.f32 1.442695, %v6043_v18 }
 0xb78   :  { %v8699_v22 = vpop.eup %8698  ;;  %8700 = vpow2.f32 %v6485_v62  ;;  %v6487_v59 = vmul.f32 1.442695, %v6408_v5  ;;  %v6405_v20 = vsub.f32 %v11624_v1, %v6290_v33  ;;  %v12852_v62 = vld [vmem:[#allocation22_spill] sm:$0xff]  ;;  %v6095_v33 = vmul.f32 1.442695, %v6044_v2 }
 0xb79   :  { %6619 = vrot.lane.b32.xlu1 %v8699_v22, %s9204_s16  ;;  %v6292_v52 = vpop.permute.xlu1 %6291  ;;  %v6041_v5 = vsub.f32 %v11479_v46, %v12852_v62 }
 0xb7a   :  { %8702 = vpow2.f32 %v6487_v59  ;;  %v6481_v44 = vmul.f32 1.442695, %v6405_v20  ;;  %v6406_v50 = vsub.f32 %v11629_v43, %v6292_v52  ;;  %v6091_v20 = vmul.f32 1.442695, %v6042_v31  ;;  %v12854_v31 = vld [vmem:[#allocation63_spill] sm:$0xff] }
 0xb7b   :  { %v6089_v22 = vmul.f32 1.442695, %v6041_v5 }
 0xb7c   :  { %8704 = vpow2.f32 %v6481_v44  ;;  %v6483_v32 = vmul.f32 1.442695, %v6406_v50 }
 0xb7e   :  { %8706 = vpow2.f32 %v6483_v32 }
 0xb7f   :  { %8708 = vpow2.f32 %v6093_v42 }
 0xb80   :  { %8710 = vpow2.f32 %v6095_v33  ;;  %v6047_v33 = vsub.f32 %v11496_v13, %v12854_v31 }
 0xb81   :  { %8712 = vpow2.f32 %v6089_v22 }
 0xb82   :  { %v8701_v59 = vpop.eup %8700  ;;  %8714 = vpow2.f32 %v6091_v20  ;;  %v12855_v20 = vld [vmem:[#allocation26_spill] sm:$0xff]  ;;  %v6101_v46 = vmul.f32 1.442695, %v6047_v33 }
 0xb83   :  { %6629 = vrot.lane.b32.xlu0 %v8701_v59, %s9204_s16  ;;  %v6302_v52 = vpop.permute.xlu0 %6301 }
 0xb84   :  { %v8703_v6 = vpop.eup %8702  ;;  %v6411_v44 = vsub.f32 %v11654_v10, %v6302_v52  ;;  %v12857_v10 = vld [vmem:[#allocation28_spill] sm:$0xff] }
 0xb85   :  { %6631 = vrot.lane.b32.xlu1 %v8703_v6, %s9204_s16  ;;  %v6304_v18 = vpop.permute.xlu1 %6303 }
 0xb86   :  { %v8705_v50 = vpop.eup %8704  ;;  %v6493_v2 = vmul.f32 1.442695, %v6411_v44  ;;  %v6412_v32 = vsub.f32 %v11659_v21, %v6304_v18 }
 0xb87   :  { %6625 = vrot.lane.b32.xlu0 %v8705_v50, %s9204_s16  ;;  %v6298_v42 = vpop.permute.xlu0 %6297  ;;  %v6048_v50 = vsub.f32 %v11499_v16, %v12855_v20 }
 0xb88   :  { %v8707_v5 = vpop.eup %8706  ;;  %8716 = vpow2.f32 %v6493_v2  ;;  %v6495_v59 = vmul.f32 1.442695, %v6412_v32  ;;  %v6409_v52 = vsub.f32 %v11664_v53, %v6298_v42  ;;  %v12856_v32 = vld [vmem:[#allocation27_spill] sm:$0xff] }
 0xb89   :  { %6627 = vrot.lane.b32.xlu1 %v8707_v5, %s9204_s16  ;;  %v6300_v6 = vpop.permute.xlu1 %6299  ;;  %v8709_v18 = vpop.eup %8708  ;;  %v6045_v42 = vsub.f32 %v11504_v23, %v12856_v32 }
 0xb8a   :  { %8718 = vpow2.f32 %v6495_v59  ;;  %v6489_v22 = vmul.f32 1.442695, %v6409_v52  ;;  %v6410_v44 = vsub.f32 %v11669_v55, %v6300_v6  ;;  %v8711_v2 = vpop.eup %8710  ;;  %v6103_v52 = vmul.f32 1.442695, %v6048_v50 }
 0xb8b   :  { %v6574_v28 = vpop.permute.xlu0 %6573  ;;  %v8713_v59 = vpop.eup %8712  ;;  %v6046_v6 = vsub.f32 %v11509_v57, %v12857_v10 }
 0xb8c   :  { %8720 = vpow2.f32 %v6489_v22  ;;  %v6491_v21 = vmul.f32 1.442695, %v6410_v44  ;;  %v6715_v13 = vadd.f32 %v8709_v18, %v6574_v28  ;;  %v8715_v33 = vpop.eup %8714  ;;  %v6097_v22 = vmul.f32 1.442695, %v6045_v42 }
 0xb8d   :  { %v6576_v53 = vpop.permute.xlu1 %6575  ;;  %v6099_v23 = vmul.f32 1.442695, %v6046_v6 }
 0xb8e   :  { %8722 = vpow2.f32 %v6491_v21  ;;  %v6716_v5 = vadd.f32 %v8711_v2, %v6576_v53 }
 0xb8f   :  { %8724 = vlog2.f32 %v6715_v13  ;;  %v6570_v55 = vpop.permute.xlu0 %6569 }
 0xb90   :  { %8726 = vpow2.f32 %v6101_v46  ;;  %v6713_v16 = vadd.f32 %v8713_v59, %v6570_v55 }
 0xb91   :  { %8728 = vlog2.f32 %v6716_v5  ;;  %v6572_v28 = vpop.permute.xlu1 %6571 }
 0xb92   :  { %v8717_v44 = vpop.eup %8716  ;;  %8730 = vlog2.f32 %v6713_v16  ;;  %v6714_v18 = vadd.f32 %v8715_v33, %v6572_v28 }
 0xb93   :  { %8732 = vpow2.f32 %v6103_v52  ;;  %6637 = vrot.lane.b32.xlu0 %v8717_v44, %s9204_s16  ;;  %v6310_v21 = vpop.permute.xlu0 %6309 }
 0xb94   :  { %v8719_v53 = vpop.eup %8718  ;;  %8734 = vlog2.f32 %v6714_v18  ;;  %v6415_v13 = vsub.f32 %v11694_v24, %v6310_v21 }
 0xb95   :  { %8736 = vpow2.f32 %v6097_v22  ;;  %6639 = vrot.lane.b32.xlu1 %v8719_v53, %s9204_s16  ;;  %v6312_v46 = vpop.permute.xlu1 %6311 }
 0xb96   :  { %v8721_v55 = vpop.eup %8720  ;;  %v6416_v50 = vsub.f32 %v11699_v29, %v6312_v46  ;;  %8738 = vpow2.f32 %v6099_v23  ;;  %v6501_v59 = vmul.f32 1.442695, %v6415_v13 }
 0xb97   :  { %6633 = vrot.lane.b32.xlu0 %v8721_v55, %s9204_s16  ;;  %v6306_v16 = vpop.permute.xlu0 %6305 }
 0xb98   :  { %v8723_v2 = vpop.eup %8722  ;;  %v6503_v42 = vmul.f32 1.442695, %v6416_v50  ;;  %v6413_v52 = vsub.f32 %v11704_v25, %v6306_v16  ;;  %v12858_v50 = vld [vmem:[#allocation34_spill] sm:$0xff] }
 0xb99   :  { %v8725_v5 = vpop.eup %8724  ;;  %6635 = vrot.lane.b32.xlu1 %v8723_v2, %s9204_s16  ;;  %v6308_v6 = vpop.permute.xlu1 %6307  ;;  %v6049_v13 = vsub.f32 %v11524_v38, %v12858_v50 }
 0xb9a   :  { %v8727_v33 = vpop.eup %8726  ;;  %v6766_v22 = vmul.f32 0.6931472, %v8725_v5  ;;  %v6414_v28 = vsub.f32 %v11709_v26, %v6308_v6  ;;  %8740 = vpow2.f32 %v6503_v42  ;;  %v6497_v2 = vmul.f32 1.442695, %v6413_v52  ;;  %v12859_v5 = vld [vmem:[#allocation35_spill] sm:$0xff] }
 0xb9b   :  { %v8729_v44 = vpop.eup %8728  ;;  %v6582_v18 = vpop.permute.xlu0 %6581  ;;  %8742 = vpow2.f32 %v6501_v59  ;;  %v6050_v6 = vsub.f32 %v11529_v27, %v12859_v5  ;;  %v12860_v59 = vld [vmem:[#allocation32_spill] sm:$0xff] }
 0xb9c   :  { %v8731_v21 = vpop.eup %8730  ;;  %v6859_v23 = vadd.f32 %v6766_v22, %v11634_v51  ;;  %v6499_v53 = vmul.f32 1.442695, %v6414_v28  ;;  %v6719_v46 = vadd.f32 %v8727_v33, %v6582_v18  ;;  %v6768_v51 = vmul.f32 0.6931472, %v8729_v44 }
 0xb9d   :  { %v8733_v55 = vpop.eup %8732  ;;  %v6762_v16 = vmul.f32 0.6931472, %v8731_v21  ;;  %v6584_v57 = vpop.permute.xlu1 %6583  ;;  %v6051_v52 = vsub.f32 %v11516_v0, %v12860_v59  ;;  %v6105_v21 = vmul.f32 1.442695, %v6049_v13 }
 0xb9e   :  { %v8735_v25 = vpop.eup %8734  ;;  %8744 = vpow2.f32 %v6499_v53  ;;  %v6720_v26 = vadd.f32 %v8733_v55, %v6584_v57  ;;  %6917 = vperm.xlu1 %8454, %v6859_v23   ;;  %v12861_v57 = vld [vmem:[#allocation33_spill] sm:$0xff]  ;;  %v12862_v23 = vld [vmem:[#allocation36_spill] sm:$0xff] }
 0xb9f   :  { %v8737_v24 = vpop.eup %8736  ;;  %v6857_v42 = vadd.f32 %v6762_v16, %v12852_v62  ;;  %v6764_v33 = vmul.f32 0.6931472, %v8735_v25  ;;  %8746 = vlog2.f32 %v6719_v46  ;;  %v6578_v22 = vpop.permute.xlu0 %6577  ;;  %v6052_v44 = vsub.f32 %v11519_v48, %v12861_v57 }
 0xba0   :  { %8748 = vlog2.f32 %v6720_v26  ;;  %v6717_v28 = vadd.f32 %v8737_v24, %v6578_v22  ;;  %v8739_v18 = vpop.eup %8738  ;;  %v6107_v25 = vmul.f32 1.442695, %v6050_v6  ;;  %v6055_v26 = vsub.f32 %v11536_v40, %v12862_v23 }
 0xba1   :  { %v6858_v38 = vadd.f32 %v6764_v33, %v12853_v17  ;;  %8750 = vpow2.f32 %v6497_v2  ;;  %v6580_v53 = vpop.permute.xlu1 %6579  ;;  %6907 = vperm.xlu0 %8455, %v6857_v42   ;;  %v6860_v24 = vadd.f32 %v6768_v51, %v12851_v35  ;;  %v6109_v55 = vmul.f32 1.442695, %v6051_v52 }
 0xba2   :  { %8752 = vlog2.f32 %v6717_v28  ;;  %v6718_v62 = vadd.f32 %v8739_v18, %v6580_v53  ;;  %v6111_v16 = vmul.f32 1.442695, %v6052_v44  ;;  %v6117_v6 = vmul.f32 1.442695, %v6055_v26 }
 0xba3   :  { %6912 = vperm.xlu1 %8454, %v6858_v38   ;;  %v6318_v46 = vpop.permute.xlu0 %6317 }
 0xba4   :  { %8754 = vlog2.f32 %v6718_v62  ;;  %v8741_v13 = vpop.eup %8740  ;;  %v6419_v2 = vsub.f32 %v11734_v47, %v6318_v46 }
 0xba5   :  { %8756 = vpow2.f32 %v6105_v21  ;;  %v6320_v17 = vpop.permute.xlu1 %6319  ;;  %6922 = vperm.xlu0 %8455, %v6860_v24   ;;  %v8743_v33 = vpop.eup %8742 }
 0xba6   :  { %v6420_v42 = vsub.f32 %v11739_v12, %v6320_v17  ;;  %8758 = vpow2.f32 %v6107_v25  ;;  %v6509_v53 = vmul.f32 1.442695, %v6419_v2  ;;  %v12863_v25 = vld [vmem:[#allocation37_spill] sm:$0xff] }
 0xba7   :  { %6647 = vrot.lane.b32.xlu1 %v8741_v13, %s9204_s16  ;;  %v6314_v22 = vpop.permute.xlu0 %6313  ;;  %8760 = vpow2.f32 %v6109_v55  ;;  %v6056_v26 = vsub.f32 %v11539_v56, %v12863_v25  ;;  %v12864_v13 = vld [vmem:[#allocation38_spill] sm:$0xff]  ;;  %v12866_v56 = vld [vmem:[#allocation45_spill] sm:$0xff] }
 0xba8   :  { %v8745_v35 = vpop.eup %8744  ;;  %v6511_v38 = vmul.f32 1.442695, %v6420_v42  ;;  %v6417_v28 = vsub.f32 %v11744_v36, %v6314_v22  ;;  %8762 = vpow2.f32 %v6111_v16  ;;  %v6053_v42 = vsub.f32 %v11544_v60, %v12864_v13 }
 0xba9   :  { %v8747_v51 = vpop.eup %8746  ;;  %v6316_v18 = vpop.permute.xlu1 %6315  ;;  %6645 = vrot.lane.b32.xlu0 %v8743_v33, %s9204_s16  ;;  %8764 = vpow2.f32 %v6117_v6 }
 0xbaa   :  { %v8749_v52 = vpop.eup %8748  ;;  %v6774_v21 = vmul.f32 0.6931472, %v8747_v51  ;;  %v6418_v44 = vsub.f32 %v11749_v4, %v6316_v18  ;;  %8766 = vpow2.f32 %v6511_v38  ;;  %v6505_v33 = vmul.f32 1.442695, %v6417_v28  ;;  %v12865_v51 = vld [vmem:[#allocation39_spill] sm:$0xff] }
 0xbab   :  { %v8751_v62 = vpop.eup %8750  ;;  %v6776_v24 = vmul.f32 0.6931472, %v8749_v52  ;;  %6643 = vrot.lane.b32.xlu1 %v8745_v35, %s9204_s16  ;;  %v6590_v46 = vpop.permute.xlu0 %6589  ;;  %v6054_v18 = vsub.f32 %v11549_v8, %v12865_v51  ;;  %8768 = vpow2.f32 %v6509_v53  ;;  %v6119_v52 = vmul.f32 1.442695, %v6056_v26 }
 0xbac   :  { %v8753_v55 = vpop.eup %8752  ;;  %v6507_v17 = vmul.f32 1.442695, %v6418_v44  ;;  %v6863_v16 = vadd.f32 %v6774_v21, %v12854_v31  ;;  %v6059_v38 = vsub.f32 %v11556_v9, %v12866_v56  ;;  %v12867_v21 = vld [vmem:[#allocation46_spill] sm:$0xff]  ;;  %v6113_v40 = vmul.f32 1.442695, %v6053_v42 }
 0xbad   :  { %v6770_v2 = vmul.f32 0.6931472, %v8753_v55  ;;  %v6592_v22 = vpop.permute.xlu1 %6591  ;;  %6641 = vrot.lane.b32.xlu0 %v8751_v62, %s9204_s16  ;;  %v6864_v44 = vadd.f32 %v6776_v24, %v12855_v20  ;;  %v6060_v28 = vsub.f32 %v11559_v39, %v12867_v21  ;;  %v6115_v26 = vmul.f32 1.442695, %v6054_v18 }
 0xbae   :  { %v8755_v6 = vpop.eup %8754  ;;  %8770 = vpow2.f32 %v6507_v17  ;;  %v6125_v20 = vmul.f32 1.442695, %v6059_v38 }
 0xbaf   :  { %v8757_v35 = vpop.eup %8756  ;;  %v6772_v60 = vmul.f32 0.6931472, %v8755_v6  ;;  %6937 = vperm.xlu1 %8454, %v6863_v16   ;;  %v6586_v31 = vpop.permute.xlu0 %6585  ;;  %v6861_v8 = vadd.f32 %v6770_v2, %v12856_v32  ;;  %8772 = vpow2.f32 %v6505_v33  ;;  %v6127_v17 = vmul.f32 1.442695, %v6060_v28 }
 0xbb0   :  { %v6721_v62 = vadd.f32 %v8757_v35, %v6586_v31  ;;  %v8759_v55 = vpop.eup %8758 }
 0xbb1   :  { %v6588_v53 = vpop.permute.xlu1 %6587  ;;  %6942 = vperm.xlu0 %8455, %v6864_v44   ;;  %v8761_v48 = vpop.eup %8760  ;;  %v6862_v24 = vadd.f32 %v6772_v60, %v12857_v10  ;;  %v12868_v44 = vld [vmem:[#allocation49_spill] sm:$0xff] }
 0xbb2   :  { %8774 = vlog2.f32 %v6721_v62  ;;  %v6722_v9 = vadd.f32 %v8759_v55, %v6588_v53  ;;  %v8763_v6 = vpop.eup %8762  ;;  %v6723_v32 = vadd.f32 %v8761_v48, %v6590_v46  ;;  %v6057_v48 = vsub.f32 %v11564_v3, %v12868_v44  ;;  %v12869_v62 = vld [vmem:[#allocation50_spill] sm:$0xff] }
 0xbb3   :  { %8776 = vpow2.f32 %v6119_v52  ;;  %6927 = vperm.xlu1 %8454, %v6861_v8   ;;  %v6326_v16 = vpop.permute.xlu0 %6325  ;;  %v8765_v35 = vpop.eup %8764  ;;  %v6724_v52 = vadd.f32 %v8763_v6, %v6592_v22  ;;  %v6058_v55 = vsub.f32 %v11569_v63, %v12869_v62 }
 0xbb4   :  { %8778 = vlog2.f32 %v6722_v9  ;;  %v6423_v42 = vsub.f32 %v11774_v41, %v6326_v16  ;;  %v8767_v33 = vpop.eup %8766  ;;  %v6121_v6 = vmul.f32 1.442695, %v6057_v48 }
 0xbb5   :  { %8780 = vpow2.f32 %v6113_v40  ;;  %v6328_v2 = vpop.permute.xlu1 %6327  ;;  %6932 = vperm.xlu0 %8455, %v6862_v24   ;;  %v8769_v8 = vpop.eup %8768 }
 0xbb6   :  { %8782 = vpow2.f32 %v6115_v26  ;;  %v6424_v18 = vsub.f32 %v11779_v34, %v6328_v2  ;;  %v6517_v10 = vmul.f32 1.442695, %v6423_v42 }
 0xbb7   :  { %8784 = vpow2.f32 %v6125_v20  ;;  %6655 = vrot.lane.b32.xlu1 %v8767_v33, %s9204_s16  ;;  %v6322_v60 = vpop.permute.xlu0 %6321 }
 0xbb8   :  { %8786 = vpow2.f32 %v6127_v17  ;;  %v6519_v9 = vmul.f32 1.442695, %v6424_v18  ;;  %v6421_v38 = vsub.f32 %v11784_v49, %v6322_v60  ;;  %v8771_v46 = vpop.eup %8770  ;;  %v6123_v18 = vmul.f32 1.442695, %v6058_v55 }
 0xbb9   :  { %8788 = vlog2.f32 %v6723_v32  ;;  %v6324_v40 = vpop.permute.xlu1 %6323  ;;  %6653 = vrot.lane.b32.xlu0 %v8769_v8, %s9204_s16  ;;  %v8773_v28 = vpop.eup %8772 }
 0xbba   :  { %8790 = vpow2.f32 %v6519_v9  ;;  %v6513_v31 = vmul.f32 1.442695, %v6421_v38  ;;  %v6422_v22 = vsub.f32 %v11789_v11, %v6324_v40  ;;  %v12870_v38 = vld [vmem:[#allocation53_spill] sm:$0xff] }
 0xbbb   :  { %8792 = vlog2.f32 %v6724_v52  ;;  %6651 = vrot.lane.b32.xlu1 %v8771_v46, %s9204_s16  ;;  %v6598_v53 = vpop.permute.xlu0 %6597  ;;  %v6063_v48 = vsub.f32 %v11576_v45, %v12870_v38 }
 0xbbc   :  { %v8775_v26 = vpop.eup %8774  ;;  %8794 = vpow2.f32 %v6517_v10  ;;  %v6515_v20 = vmul.f32 1.442695, %v6422_v22  ;;  %v6727_v24 = vadd.f32 %v8765_v35, %v6598_v53  ;;  %v12871_v22 = vld [vmem:[#allocation54_spill] sm:$0xff] }
 0xbbd   :  { %v8777_v16 = vpop.eup %8776  ;;  %v6778_v17 = vmul.f32 0.6931472, %v8775_v26  ;;  %8796 = vpow2.f32 %v6513_v31  ;;  %v6600_v42 = vpop.permute.xlu1 %6599  ;;  %6649 = vrot.lane.b32.xlu0 %v8773_v28, %s9204_s16  ;;  %v6064_v28 = vsub.f32 %v11579_v19, %v12871_v22 }
 0xbbe   :  { %v8779_v32 = vpop.eup %8778  ;;  %8798 = vpow2.f32 %v6515_v20  ;;  %v6728_v2 = vadd.f32 %v8777_v16, %v6600_v42  ;;  %v6133_v20 = vmul.f32 1.442695, %v6063_v48  ;;  %v12873_v42 = vld [vmem:[#allocation58_spill] sm:$0xff] }
 0xbbf   :  { %v8781_v33 = vpop.eup %8780  ;;  %v6865_v52 = vadd.f32 %v6778_v17, %v12858_v50  ;;  %v6780_v60 = vmul.f32 0.6931472, %v8779_v32  ;;  %8800 = vlog2.f32 %v6727_v24  ;;  %v6594_v8 = vpop.permute.xlu0 %6593  ;;  %v6135_v16 = vmul.f32 1.442695, %v6064_v28 }
 0xbc0   :  { %v8783_v10 = vpop.eup %8782  ;;  %8802 = vlog2.f32 %v6728_v2  ;;  %v6725_v35 = vadd.f32 %v8781_v33, %v6594_v8  ;;  %v6062_v32 = vsub.f32 %v11589_v54, %v12873_v42 }
 0xbc1   :  { %v8785_v9 = vpop.eup %8784  ;;  %8804 = vpow2.f32 %v6121_v6  ;;  %v6866_v40 = vadd.f32 %v6780_v60, %v12859_v5  ;;  %v6596_v46 = vpop.permute.xlu1 %6595  ;;  %6947 = vperm.xlu1 %8454, %v6865_v52   ;;  %v12872_v5 = vld [vmem:[#allocation57_spill] sm:$0xff] }
 0xbc2   :  { %v8787_v31 = vpop.eup %8786  ;;  %8806 = vlog2.f32 %v6725_v35  ;;  %v6726_v50 = vadd.f32 %v8783_v10, %v6596_v46  ;;  %v6061_v6 = vsub.f32 %v11584_v58, %v12872_v5  ;;  %v6131_v46 = vmul.f32 1.442695, %v6062_v32 }
 0xbc3   :  { %v8789_v55 = vpop.eup %8788  ;;  %8808 = vpow2.f32 %v6123_v18  ;;  %6952 = vperm.xlu0 %8455, %v6866_v40  }
 0xbc4   :  { %v8791_v53 = vpop.eup %8790  ;;  %8810 = vlog2.f32 %v6726_v50  ;;  %v6782_v2 = vmul.f32 0.6931472, %v8789_v55  ;;  %v6129_v10 = vmul.f32 1.442695, %v6061_v6 }
 0xbc5   :  { %v8793_v26 = vpop.eup %8792  ;;  %6663 = vrot.lane.b32.xlu1 %v8791_v53, %s9204_s16  ;;  %8812 = vpow2.f32 %v6133_v20 }
 0xbc6   :  { %v8795_v24 = vpop.eup %8794  ;;  %v6784_v52 = vmul.f32 0.6931472, %v8793_v26  ;;  %8814 = vpow2.f32 %v6135_v16  ;;  %v6867_v28 = vadd.f32 %v6782_v2, %v12860_v59 }
 0xbc7   :  { %v8797_v17 = vpop.eup %8796  ;;  %6661 = vrot.lane.b32.xlu0 %v8795_v24, %s9204_s16 }
 0xbc8   :  { %v8799_v33 = vpop.eup %8798  ;;  %v6606_v60 = vpop.permute.xlu0 %6605  ;;  %v6868_v26 = vadd.f32 %v6784_v52, %v12861_v57 }
 0xbc9   :  { %v8801_v18 = vpop.eup %8800  ;;  %6659 = vrot.lane.b32.xlu1 %v8799_v33, %s9204_s16  ;;  %v6731_v35 = vadd.f32 %v8785_v9, %v6606_v60 }
 0xbca   :  { %v8803_v8 = vpop.eup %8802  ;;  %v6608_v48 = vpop.permute.xlu1 %6607  ;;  %v6790_v50 = vmul.f32 0.6931472, %v8801_v18  ;;  %v12874_v18 = vld [vmem:[#allocation61_spill] sm:$0xff] }
 0xbcb   :  { %v8805_v40 = vpop.eup %8804  ;;  %v6732_v55 = vadd.f32 %v8787_v31, %v6608_v48  ;;  %6657 = vrot.lane.b32.xlu0 %v8797_v17, %s9204_s16  ;;  %8816 = vlog2.f32 %v6731_v35  ;;  %v6792_v24 = vmul.f32 0.6931472, %v8803_v8  ;;  %v6067_v52 = vsub.f32 %v11596_v14, %v12874_v18 }
 0xbcc   :  { %v8807_v53 = vpop.eup %8806  ;;  %v6602_v33 = vpop.permute.xlu0 %6601  ;;  %v6871_v59 = vadd.f32 %v6790_v50, %v12862_v23  ;;  %v12876_v50 = vld [vmem:[#allocation64_spill] sm:$0xff] }
 0xbcd   :  { %v8809_v20 = vpop.eup %8808  ;;  %8818 = vlog2.f32 %v6732_v55  ;;  %6957 = vperm.xlu1 %8454, %v6867_v28   ;;  %v6729_v9 = vadd.f32 %v8805_v40, %v6602_v33  ;;  %v6786_v32 = vmul.f32 0.6931472, %v8807_v53  ;;  %v6872_v17 = vadd.f32 %v6792_v24, %v12863_v25 }
 0xbce   :  { %v8811_v16 = vpop.eup %8810  ;;  %8820 = vpow2.f32 %v6129_v10  ;;  %v6604_v6 = vpop.permute.xlu1 %6603  ;;  %v12875_v10 = vld [vmem:[#allocation62_spill] sm:$0xff]  ;;  %v6141_v28 = vmul.f32 1.442695, %v6067_v52  ;;  %v6065_v55 = vsub.f32 %v11604_v15, %v12876_v50 }
 0xbcf   :  { %8822 = vpow2.f32 %v6131_v46  ;;  %v6730_v31 = vadd.f32 %v8809_v20, %v6604_v6  ;;  %6962 = vperm.xlu0 %8455, %v6868_v26   ;;  %v6788_v2 = vmul.f32 0.6931472, %v8811_v16  ;;  %v8813_v57 = vpop.eup %8812  ;;  %v6869_v60 = vadd.f32 %v6786_v32, %v12864_v13 }
 0xbd0   :  { %8824 = vlog2.f32 %v6729_v9  ;;  %v8815_v8 = vpop.eup %8814  ;;  %v6068_v23 = vsub.f32 %v11599_v61, %v12875_v10  ;;  %v12877_v9 = vld [vmem:[#allocation65_spill] sm:$0xff] }
 0xbd1   :  { %8826 = vlog2.f32 %v6730_v31  ;;  %6977 = vperm.xlu1 %8454, %v6871_v59   ;;  %v6870_v35 = vadd.f32 %v6788_v2, %v12865_v51  ;;  %v6066_v51 = vsub.f32 %v11609_v7, %v12877_v9 }
 0xbd2   :  { %v6143_v16 = vmul.f32 1.442695, %v6068_v23 }
 0xbd3   :  { %6982 = vperm.xlu0 %8455, %v6872_v17  }
 0xbd5   :  { %6967 = vperm.xlu1 %8454, %v6869_v60   ;;  %v6614_v48 = vpop.permute.xlu0 %6613  ;;  %v8817_v40 = vpop.eup %8816 }
 0xbd6   :  { %v6735_v25 = vadd.f32 %v8813_v57, %v6614_v48  ;;  %v6798_v53 = vmul.f32 0.6931472, %v8817_v40  ;;  %v6137_v57 = vmul.f32 1.442695, %v6065_v55  ;;  %v12878_v40 = vld [vmem:[#allocation66_spill] sm:$0xff] }
 0xbd7   :  { %v8819_v46 = vpop.eup %8818  ;;  %v6616_v20 = vpop.permute.xlu1 %6615  ;;  %6972 = vperm.xlu0 %8455, %v6870_v35   ;;  %v6139_v35 = vmul.f32 1.442695, %v6066_v51  ;;  %v12880_v51 = vld [vmem:[#allocation68_spill] sm:$0xff] }
 0xbd8   :  { %v8821_v13 = vpop.eup %8820  ;;  %v6800_v26 = vmul.f32 0.6931472, %v8819_v46  ;;  %8828 = vlog2.f32 %v6735_v25  ;;  %v6736_v24 = vadd.f32 %v8815_v8, %v6616_v20  ;;  %v6875_v6 = vadd.f32 %v6798_v53, %v12866_v56  ;;  %v12879_v53 = vld [vmem:[#allocation67_spill] sm:$0xff] }
 0xbd9   :  { %v8823_v33 = vpop.eup %8822  ;;  %v6610_v59 = vpop.permute.xlu0 %6609  ;;  %v6071_v25 = vsub.f32 %v11616_v30, %v12878_v40  ;;  %v6072_v20 = vsub.f32 %v11619_v37, %v12879_v53 }
 0xbda   :  { %v8825_v32 = vpop.eup %8824  ;;  %v6876_v31 = vadd.f32 %v6800_v26, %v12867_v21  ;;  %8830 = vlog2.f32 %v6736_v24  ;;  %v6733_v17 = vadd.f32 %v8821_v13, %v6610_v59  ;;  %6997 = vperm.xlu1 %8454, %v6875_v6   ;;  %v6069_v6 = vsub.f32 %v11624_v1, %v12880_v51 }
 0xbdb   :  { %v8827_v2 = vpop.eup %8826  ;;  %8832 = vpow2.f32 %v6141_v28  ;;  %v6794_v52 = vmul.f32 0.6931472, %v8825_v32  ;;  %v6612_v60 = vpop.permute.xlu1 %6611 }
 0xbdc   :  { %v6796_v8 = vmul.f32 0.6931472, %v8827_v2  ;;  %8834 = vlog2.f32 %v6733_v17  ;;  %v6734_v23 = vadd.f32 %v8823_v33, %v6612_v60  ;;  %7002 = vperm.xlu0 %8455, %v6876_v31  }
 0xbdd   :  { %8836 = vpow2.f32 %v6143_v16  ;;  %v6873_v56 = vadd.f32 %v6794_v52, %v12868_v44  ;;  %v6149_v16 = vmul.f32 1.442695, %v6071_v25  ;;  %v6151_v52 = vmul.f32 1.442695, %v6072_v20  ;;  %v12883_v20 = vld [vmem:[#allocation59_spill] sm:$0xff] }
 0xbde   :  { %v6874_v48 = vadd.f32 %v6796_v8, %v12869_v62  ;;  %8838 = vlog2.f32 %v6734_v23 }
 0xbdf   :  { %8840 = vpow2.f32 %v6137_v57  ;;  %6987 = vperm.xlu1 %8454, %v6873_v56  }
 0xbe0   :  { %6992 = vperm.xlu0 %8455, %v6874_v48   ;;  %8842 = vpow2.f32 %v6139_v35 }
 0xbe2   :  { %v8829_v21 = vpop.eup %8828 }
 0xbe3   :  { %v6806_v46 = vmul.f32 0.6931472, %v8829_v21 }
 0xbe4   :  { %v8831_v28 = vpop.eup %8830 }
 0xbe5   :  { %v8833_v55 = vpop.eup %8832  ;;  %v6879_v13 = vadd.f32 %v6806_v46, %v12870_v38  ;;  %v6808_v44 = vmul.f32 0.6931472, %v8831_v28  ;;  %v6622_v26 = vpop.permute.xlu0 %6621  ;;  %v12881_v38 = vld [vmem:[#allocation69_spill] sm:$0xff] }
 0xbe6   :  { %v8835_v62 = vpop.eup %8834  ;;  %v6739_v24 = vadd.f32 %v8833_v55, %v6622_v26  ;;  %v6070_v60 = vsub.f32 %v11629_v43, %v12881_v38  ;;  %v12882_v55 = vld [vmem:[#allocation70_spill] sm:$0xff] }
 0xbe7   :  { %v8837_v33 = vpop.eup %8836  ;;  %v6880_v59 = vadd.f32 %v6808_v44, %v12871_v22  ;;  %v6802_v32 = vmul.f32 0.6931472, %v8835_v62  ;;  %v6624_v31 = vpop.permute.xlu1 %6623  ;;  %7017 = vperm.xlu1 %8454, %v6879_v13   ;;  %v6145_v22 = vmul.f32 1.442695, %v6069_v6  ;;  %v6075_v13 = vsub.f32 %v12883_v20, %v12882_v55 }
 0xbe8   :  { %v8839_v17 = vpop.eup %8838  ;;  %8844 = vlog2.f32 %v6739_v24  ;;  %v6740_v2 = vadd.f32 %v8837_v33, %v6624_v31  ;;  %v6147_v28 = vmul.f32 1.442695, %v6070_v60  ;;  %v12884_v24 = vld [vmem:[#allocation71_spill] sm:$0xff]  ;;  %v12885_v33 = vld [vmem:[#allocation60_spill] sm:$0xff] }
 0xbe9   :  { %v8841_v57 = vpop.eup %8840  ;;  %v6877_v8 = vadd.f32 %v6802_v32, %v12872_v5  ;;  %v6804_v23 = vmul.f32 0.6931472, %v8839_v17  ;;  %7022 = vperm.xlu0 %8455, %v6880_v59   ;;  %v6618_v35 = vpop.permute.xlu0 %6617 }
 0xbea   :  { %8846 = vlog2.f32 %v6740_v2  ;;  %v6737_v56 = vadd.f32 %v8841_v57, %v6618_v35  ;;  %v8843_v48 = vpop.eup %8842  ;;  %v6157_v2 = vmul.f32 1.442695, %v6075_v13  ;;  %v12886_v57 = vld [vmem:[#allocation72_spill] sm:$0xff] }
 0xbeb   :  { %8848 = vpow2.f32 %v6149_v16  ;;  %v6878_v21 = vadd.f32 %v6804_v23, %v12873_v42  ;;  %v6620_v25 = vpop.permute.xlu1 %6619  ;;  %7007 = vperm.xlu1 %8454, %v6877_v8   ;;  %v6076_v42 = vsub.f32 %v12885_v33, %v12884_v24 }
 0xbec   :  { %8850 = vlog2.f32 %v6737_v56  ;;  %v6738_v46 = vadd.f32 %v8843_v48, %v6620_v25  ;;  %v12889_v25 = vld [vmem:[#allocation25_spill] sm:$0xff] }
 0xbed   :  { %8852 = vpow2.f32 %v6151_v52  ;;  %7012 = vperm.xlu0 %8455, %v6878_v21   ;;  %v12887_v52 = vld [vmem:[#allocation24_spill] sm:$0xff]  ;;  %v6159_v21 = vmul.f32 1.442695, %v6076_v42 }
 0xbee   :  { %8854 = vlog2.f32 %v6738_v46  ;;  %v6073_v60 = vsub.f32 %v12887_v52, %v12886_v57 }
 0xbef   :  { %8856 = vpow2.f32 %v6145_v22 }
 0xbf0   :  { %8858 = vpow2.f32 %v6147_v28 }
 0xbf2   :  { %v8845_v5 = vpop.eup %8844 }
 0xbf3   :  { %v6814_v44 = vmul.f32 0.6931472, %v8845_v5 }
 0xbf4   :  { %v8847_v26 = vpop.eup %8846 }
 0xbf5   :  { %v8849_v62 = vpop.eup %8848  ;;  %v6883_v16 = vadd.f32 %v6814_v44, %v12874_v18  ;;  %v6816_v6 = vmul.f32 0.6931472, %v8847_v26  ;;  %v6630_v59 = vpop.permute.xlu0 %6629  ;;  %v12888_v18 = vld [vmem:[#allocation73_spill] sm:$0xff] }
 0xbf6   :  { %v8851_v32 = vpop.eup %8850  ;;  %v6743_v31 = vadd.f32 %v8849_v62, %v6630_v59  ;;  %v6074_v46 = vsub.f32 %v12889_v25, %v12888_v18 }
 0xbf7   :  { %v8853_v17 = vpop.eup %8852  ;;  %v6884_v8 = vadd.f32 %v6816_v6, %v12875_v10  ;;  %v6810_v23 = vmul.f32 0.6931472, %v8851_v32  ;;  %v6632_v35 = vpop.permute.xlu1 %6631  ;;  %7037 = vperm.xlu1 %8454, %v6883_v16   ;;  %v6153_v10 = vmul.f32 1.442695, %v6073_v60 }
 0xbf8   :  { %v8855_v56 = vpop.eup %8854  ;;  %8860 = vlog2.f32 %v6743_v31  ;;  %v6744_v48 = vadd.f32 %v8853_v17, %v6632_v35  ;;  %v6155_v42 = vmul.f32 1.442695, %v6074_v46 }
 0xbf9   :  { %v8857_v22 = vpop.eup %8856  ;;  %v6881_v28 = vadd.f32 %v6810_v23, %v12876_v50  ;;  %v6812_v5 = vmul.f32 0.6931472, %v8855_v56  ;;  %7042 = vperm.xlu0 %8455, %v6884_v8   ;;  %v6626_v13 = vpop.permute.xlu0 %6625 }
 0xbfa   :  { %8862 = vlog2.f32 %v6744_v48  ;;  %v6741_v44 = vadd.f32 %v8857_v22, %v6626_v13  ;;  %v8859_v26 = vpop.eup %8858 }
 0xbfb   :  { %8864 = vpow2.f32 %v6157_v2  ;;  %v6882_v62 = vadd.f32 %v6812_v5, %v12877_v9  ;;  %v6628_v16 = vpop.permute.xlu1 %6627  ;;  %7027 = vperm.xlu1 %8454, %v6881_v28  }
 0xbfc   :  { %8866 = vlog2.f32 %v6741_v44  ;;  %v6742_v6 = vadd.f32 %v8859_v26, %v6628_v16 }
 0xbfd   :  { %8868 = vpow2.f32 %v6159_v21  ;;  %7032 = vperm.xlu0 %8455, %v6882_v62  }
 0xbfe   :  { %8870 = vlog2.f32 %v6742_v6 }
 0xbff   :  { %8872 = vpow2.f32 %v6153_v10 }
 0xc00   :  { %8874 = vpow2.f32 %v6155_v42  ;;  %v12890_v42 = vld [vmem:[#allocation75_spill] sm:$0xff] }
 0xc02   :  { %v8861_v50 = vpop.eup %8860 }
 0xc03   :  { %v6822_v59 = vmul.f32 0.6931472, %v8861_v50 }
 0xc04   :  { %v8863_v32 = vpop.eup %8862 }
 0xc05   :  { %v8865_v31 = vpop.eup %8864  ;;  %v6887_v17 = vadd.f32 %v6822_v59, %v12878_v40  ;;  %v6824_v2 = vmul.f32 0.6931472, %v8863_v32  ;;  %v6638_v60 = vpop.permute.xlu0 %6637 }
 0xc06   :  { %v8867_v8 = vpop.eup %8866  ;;  %v6747_v9 = vadd.f32 %v8865_v31, %v6638_v60  ;;  %v12891_v31 = vld [vmem:[#allocation74_spill] sm:$0xff] }
 0xc07   :  { %v8869_v23 = vpop.eup %8868  ;;  %v6888_v35 = vadd.f32 %v6824_v2, %v12879_v53  ;;  %v6818_v56 = vmul.f32 0.6931472, %v8867_v8  ;;  %v6640_v48 = vpop.permute.xlu1 %6639  ;;  %7057 = vperm.xlu1 %8454, %v6887_v17   ;;  %v12892_v17 = vld [vmem:[#allocation29_spill] sm:$0xff] }
 0xc08   :  { %v8871_v22 = vpop.eup %8870  ;;  %8876 = vlog2.f32 %v6747_v9  ;;  %v6748_v21 = vadd.f32 %v8869_v23, %v6640_v48  ;;  %v6079_v2 = vsub.f32 %v12892_v17, %v12891_v31  ;;  %v12893_v23 = vld [vmem:[#allocation77_spill] sm:$0xff] }
 0xc09   :  { %v8873_v46 = vpop.eup %8872  ;;  %v6885_v28 = vadd.f32 %v6818_v56, %v12880_v51  ;;  %v6820_v5 = vmul.f32 0.6931472, %v8871_v22  ;;  %7062 = vperm.xlu0 %8455, %v6888_v35   ;;  %v6634_v13 = vpop.permute.xlu0 %6633  ;;  %v6080_v51 = vsub.f32 %v11699_v29, %v12890_v42  ;;  %v12894_v35 = vld [vmem:[#allocation31_spill] sm:$0xff] }
 0xc0a   :  { %8878 = vlog2.f32 %v6748_v21  ;;  %v6745_v40 = vadd.f32 %v8873_v46, %v6634_v13  ;;  %v8875_v44 = vpop.eup %8874  ;;  %v6078_v56 = vsub.f32 %v12894_v35, %v12893_v23  ;;  %v6165_v21 = vmul.f32 1.442695, %v6079_v2  ;;  %v12896_v46 = vld [vmem:[#allocation30_spill] sm:$0xff] }
 0xc0b   :  { %v6886_v26 = vadd.f32 %v6820_v5, %v12881_v38  ;;  %v6636_v10 = vpop.permute.xlu1 %6635  ;;  %7047 = vperm.xlu1 %8454, %v6885_v28   ;;  %v6167_v9 = vmul.f32 1.442695, %v6080_v51 }
 0xc0c   :  { %8880 = vlog2.f32 %v6745_v40  ;;  %v6746_v53 = vadd.f32 %v8875_v44, %v6636_v10  ;;  %v12897_v44 = vld [vmem:[#allocation40_spill] sm:$0xff]  ;;  %v12899_v10 = vld [vmem:[#allocation79_spill] sm:$0xff] }
 0xc0d   :  { %7052 = vperm.xlu0 %8455, %v6886_v26  }
 0xc0e   :  { %8882 = vlog2.f32 %v6746_v53 }
 0xc0f   :  { %8884 = vpow2.f32 %v6167_v9 }
 0xc10   :  { %8886 = vpow2.f32 %v6165_v21 }
 0xc12   :  { %v8877_v62 = vpop.eup %8876 }
 0xc13   :  { %v6830_v16 = vmul.f32 0.6931472, %v8877_v62  ;;  %v12900_v62 = vld [vmem:[#allocation43_spill] sm:$0xff] }
 0xc14   :  { %v8879_v6 = vpop.eup %8878 }
 0xc15   :  { %v6891_v50 = vadd.f32 %v6830_v16, %v12882_v55  ;;  %v6832_v59 = vmul.f32 0.6931472, %v8879_v6  ;;  %v12895_v55 = vld [vmem:[#allocation76_spill] sm:$0xff] }
 0xc16   :  { %v8881_v32 = vpop.eup %8880  ;;  %v6077_v28 = vsub.f32 %v12896_v46, %v12895_v55  ;;  %v12901_v6 = vld [vmem:[#allocation84_spill] sm:$0xff] }
 0xc17   :  { %v6892_v38 = vadd.f32 %v6832_v59, %v12884_v24  ;;  %v6826_v60 = vmul.f32 0.6931472, %v8881_v32  ;;  %7077 = vperm.xlu1 %8454, %v6891_v50   ;;  %v6163_v24 = vmul.f32 1.442695, %v6078_v56  ;;  %v6084_v51 = vsub.f32 %v11739_v12, %v12901_v6  ;;  %v12902_v59 = vld [vmem:[#allocation80_spill] sm:$0xff] }
 0xc18   :  { %v8883_v8 = vpop.eup %8882  ;;  %v6161_v40 = vmul.f32 1.442695, %v6077_v28 }
 0xc19   :  { %v6889_v48 = vadd.f32 %v6826_v60, %v12886_v57  ;;  %v6828_v22 = vmul.f32 0.6931472, %v8883_v8  ;;  %7082 = vperm.xlu0 %8455, %v6892_v38   ;;  %8888 = vpow2.f32 %v6163_v24  ;;  %v8885_v2 = vpop.eup %8884  ;;  %v12903_v38 = vld [vmem:[#allocation78_spill] sm:$0xff] }
 0xc1a   :  { %8890 = vpow2.f32 %v6161_v40  ;;  %v6083_v60 = vsub.f32 %v11734_v47, %v12903_v38  ;;  %v8887_v56 = vpop.eup %8886  ;;  %v12905_v40 = vld [vmem:[#allocation85_spill] sm:$0xff] }
 0xc1b   :  { %v6890_v5 = vadd.f32 %v6828_v22, %v12888_v18  ;;  %7067 = vperm.xlu1 %8454, %v6889_v48   ;;  %v6175_v48 = vmul.f32 1.442695, %v6084_v51  ;;  %v12904_v22 = vld [vmem:[#allocation86_spill] sm:$0xff] }
 0xc1c   :  { %v6082_v21 = vsub.f32 %v11749_v4, %v12904_v22 }
 0xc1d   :  { %v6918_v13 = vpop.permute.xlu1 %6917  ;;  %7072 = vperm.xlu0 %8455, %v6890_v5  }
 0xc1e   :  { %v7147_v26 = vsub.f32 %v12897_v44, %v6918_v13  ;;  %v6173_v13 = vmul.f32 1.442695, %v6083_v60  ;;  %v6081_v44 = vsub.f32 %v11744_v36, %v12905_v40 }
 0xc20   :  { %7196 = vst.msk [vmem:[%s12898_s2 + $0x10] sm:$0xff] %vm7193_vm12, %v7147_v26  ;;  %v6908_v57 = vpop.permute.xlu0 %6907 }
 0xc21   :  { %v7145_v53 = vsub.f32 %v12899_v10, %v6908_v57 }
 0xc22   :  { %v6913_v18 = vpop.permute.xlu1 %6912 }
 0xc23   :  { %7194 = vst.msk [vmem:[%s12898_s2] sm:$0xff] %vm7193_vm12, %v7145_v53  ;;  %v7146_v16 = vsub.f32 %v12900_v62, %v6913_v18  ;;  %v8889_v24 = vpop.eup %8888  ;;  %v6171_v53 = vmul.f32 1.442695, %v6082_v21  ;;  %v12909_v21 = vld [vmem:[#allocation82_spill] sm:$0xff] }
 0xc24   :  { %v6923_v50 = vpop.permute.xlu0 %6922  ;;  %v8891_v10 = vpop.eup %8890 }
 0xc25   :  { %7195 = vst.msk [vmem:[%s12898_s2 + $0x8] sm:$0xff] %vm7193_vm12, %v7146_v16  ;;  %v7148_v32 = vsub.f32 %v12902_v59, %v6923_v50  ;;  %v6169_v16 = vmul.f32 1.442695, %v6081_v44  ;;  %v12906_v50 = vld [vmem:[#allocation44_spill] sm:$0xff] }
 0xc26   :  { %v6648_v8 = vpop.permute.xlu1 %6647 }
 0xc27   :  { %7197 = vst.msk [vmem:[%s12898_s2 + $0x18] sm:$0xff] %vm7193_vm12, %v7148_v32  ;;  %v6752_v9 = vadd.f32 %v8885_v2, %v6648_v8  ;;  %v12907_v2 = vld [vmem:[#allocation81_spill] sm:$0xff]  ;;  %v12908_v8 = vld [vmem:[#allocation88_spill] sm:$0xff] }
 0xc28   :  { %v6646_v28 = vpop.permute.xlu0 %6645 }
 0xc29   :  { %8892 = vlog2.f32 %v6752_v9  ;;  %v6751_v5 = vadd.f32 %v8887_v56, %v6646_v28  ;;  %v6088_v9 = vsub.f32 %v11779_v34, %v12908_v8 }
 0xc2a   :  { %v6644_v26 = vpop.permute.xlu1 %6643 }
 0xc2b   :  { %8894 = vlog2.f32 %v6751_v5  ;;  %v6750_v57 = vadd.f32 %v8889_v24, %v6644_v26  ;;  %v12910_v5 = vld [vmem:[#allocation87_spill] sm:$0xff] }
 0xc2c   :  { %8896 = vpow2.f32 %v6175_v48  ;;  %v6642_v18 = vpop.permute.xlu0 %6641  ;;  %v6087_v24 = vsub.f32 %v11774_v41, %v12910_v5 }
 0xc2d   :  { %8898 = vlog2.f32 %v6750_v57  ;;  %v6749_v62 = vadd.f32 %v8891_v10, %v6642_v18  ;;  %v12911_v57 = vld [vmem:[#allocation47_spill] sm:$0xff]  ;;  %v6183_v18 = vmul.f32 1.442695, %v6088_v9 }
 0xc2e   :  { %8900 = vpow2.f32 %v6173_v13  ;;  %v6938_v51 = vpop.permute.xlu1 %6937 }
 0xc2f   :  { %8902 = vlog2.f32 %v6749_v62  ;;  %v7151_v59 = vsub.f32 %v12906_v50, %v6938_v51  ;;  %v12912_v62 = vld [vmem:[#allocation90_spill] sm:$0xff] }
 0xc30   :  { %8904 = vpow2.f32 %v6171_v53  ;;  %v6943_v32 = vpop.permute.xlu0 %6942 }
 0xc31   :  { %7200 = vst.msk [vmem:[%s12898_s2 + $0x30] sm:$0xff] %vm7193_vm12, %v7151_v59  ;;  %v7152_v60 = vsub.f32 %v12907_v2, %v6943_v32  ;;  %8906 = vpow2.f32 %v6169_v16  ;;  %v6086_v16 = vsub.f32 %v11789_v11, %v12912_v62 }
 0xc32   :  { %v6928_v56 = vpop.permute.xlu1 %6927 }
 0xc33   :  { %v8893_v48 = vpop.eup %8892  ;;  %7201 = vst.msk [vmem:[%s12898_s2 + $0x38] sm:$0xff] %vm7193_vm12, %v7152_v60  ;;  %v7149_v28 = vsub.f32 %v12909_v21, %v6928_v56  ;;  %v6181_v56 = vmul.f32 1.442695, %v6087_v24 }
 0xc34   :  { %v6840_v13 = vmul.f32 0.6931472, %v8893_v48  ;;  %v6933_v44 = vpop.permute.xlu0 %6932  ;;  %v12913_v48 = vld [vmem:[#allocation89_spill] sm:$0xff] }
 0xc35   :  { %v8895_v26 = vpop.eup %8894  ;;  %7198 = vst.msk [vmem:[%s12898_s2 + $0x20] sm:$0xff] %vm7193_vm12, %v7149_v28  ;;  %v7150_v10 = vsub.f32 %v12911_v57, %v6933_v44  ;;  %v6085_v21 = vsub.f32 %v11784_v49, %v12913_v48  ;;  %v6179_v57 = vmul.f32 1.442695, %v6086_v16 }
 0xc36   :  { %v8897_v53 = vpop.eup %8896  ;;  %v6896_v51 = vadd.f32 %v6840_v13, %v12890_v42  ;;  %v6838_v50 = vmul.f32 0.6931472, %v8895_v26  ;;  %v6656_v59 = vpop.permute.xlu1 %6655 }
 0xc37   :  { %v8899_v32 = vpop.eup %8898  ;;  %7199 = vst.msk [vmem:[%s12898_s2 + $0x28] sm:$0xff] %vm7193_vm12, %v7150_v10  ;;  %v6756_v2 = vadd.f32 %v8897_v53, %v6656_v59  ;;  %v6177_v34 = vmul.f32 1.442695, %v6085_v21 }
 0xc38   :  { %v8901_v60 = vpop.eup %8900  ;;  %v6895_v9 = vadd.f32 %v6838_v50, %v12891_v31  ;;  %v6836_v28 = vmul.f32 0.6931472, %v8899_v32  ;;  %7102 = vperm.xlu0 %8455, %v6896_v51   ;;  %v6654_v44 = vpop.permute.xlu0 %6653 }
 0xc39   :  { %v8903_v42 = vpop.eup %8902  ;;  %8908 = vlog2.f32 %v6756_v2  ;;  %v6755_v13 = vadd.f32 %v8901_v60, %v6654_v44 }
 0xc3a   :  { %v8905_v26 = vpop.eup %8904  ;;  %8910 = vpow2.f32 %v6183_v18  ;;  %v6894_v41 = vadd.f32 %v6836_v28, %v12893_v23  ;;  %v6834_v10 = vmul.f32 0.6931472, %v8903_v42  ;;  %v6652_v53 = vpop.permute.xlu1 %6651  ;;  %7097 = vperm.xlu1 %8454, %v6895_v9   ;;  %v12914_v23 = vld [vmem:[#allocation83_spill] sm:$0xff] }
 0xc3b   :  { %8912 = vlog2.f32 %v6755_v13  ;;  %v6754_v24 = vadd.f32 %v8905_v26, %v6652_v53  ;;  %v8907_v59 = vpop.eup %8906 }
 0xc3c   :  { %8914 = vpow2.f32 %v6181_v56  ;;  %v6893_v31 = vadd.f32 %v6834_v10, %v12895_v55  ;;  %7092 = vperm.xlu0 %8455, %v6894_v41   ;;  %v6650_v51 = vpop.permute.xlu0 %6649 }
 0xc3d   :  { %8916 = vlog2.f32 %v6754_v24  ;;  %v6753_v50 = vadd.f32 %v8907_v59, %v6650_v51 }
 0xc3e   :  { %8918 = vpow2.f32 %v6179_v57  ;;  %7087 = vperm.xlu1 %8454, %v6893_v31  }
 0xc3f   :  { %8920 = vlog2.f32 %v6753_v50 }
 0xc40   :  { %8922 = vpow2.f32 %v6177_v34  ;;  %v6948_v18 = vpop.permute.xlu1 %6947 }
 0xc41   :  { %v7153_v16 = vsub.f32 %v12914_v23, %v6948_v18 }
 0xc42   :  { %v6953_v32 = vpop.permute.xlu0 %6952 }
 0xc43   :  { %v8909_v2 = vpop.eup %8908  ;;  %7202 = vst.msk [vmem:[%s12898_s2 + $0x40] sm:$0xff] %vm7193_vm12, %v7153_v16  ;;  %v7154_v55 = vsub.f32 %v11529_v27, %v6953_v32 }
 0xc44   :  { %v8911_v41 = vpop.eup %8910  ;;  %v6848_v60 = vmul.f32 0.6931472, %v8909_v2  ;;  %v6664_v56 = vpop.permute.xlu1 %6663 }
 0xc45   :  { %v8913_v21 = vpop.eup %8912  ;;  %7203 = vst.msk [vmem:[%s12898_s2 + $0x48] sm:$0xff] %vm7193_vm12, %v7154_v55  ;;  %v6760_v44 = vadd.f32 %v8911_v41, %v6664_v56 }
 0xc46   :  { %v8915_v34 = vpop.eup %8914  ;;  %v6900_v9 = vadd.f32 %v6848_v60, %v12901_v6  ;;  %v6846_v28 = vmul.f32 0.6931472, %v8913_v21  ;;  %v6662_v42 = vpop.permute.xlu0 %6661 }
 0xc47   :  { %v8917_v13 = vpop.eup %8916  ;;  %v6759_v10 = vadd.f32 %v8915_v34, %v6662_v42  ;;  %8924 = vlog2.f32 %v6760_v44 }
 0xc48   :  { %v8919_v26 = vpop.eup %8918  ;;  %v6899_v57 = vadd.f32 %v6846_v28, %v12903_v38  ;;  %v6844_v27 = vmul.f32 0.6931472, %v8917_v13  ;;  %v6660_v53 = vpop.permute.xlu1 %6659  ;;  %7122 = vperm.xlu0 %8455, %v6900_v9   ;;  %v12918_v28 = vld [vmem:[#allocation20_spill] sm:$0xff] }
 0xc49   :  { %v8921_v24 = vpop.eup %8920  ;;  %v6758_v59 = vadd.f32 %v8919_v26, %v6660_v53 }
 0xc4a   :  { %v8923_v31 = vpop.eup %8922  ;;  %v6898_v51 = vadd.f32 %v6844_v27, %v12904_v22  ;;  %v6842_v50 = vmul.f32 0.6931472, %v8921_v24  ;;  %7117 = vperm.xlu1 %8454, %v6899_v57   ;;  %v6658_v6 = vpop.permute.xlu0 %6657  ;;  %v12915_v22 = vld [vmem:[#allocation48_spill] sm:$0xff]  ;;  %v12919_v27 = vld [vmem:[#allocation21_spill] sm:$0xff] }
 0xc4b   :  { %8926 = vlog2.f32 %v6758_v59  ;;  %v6757_v18 = vadd.f32 %v8923_v31, %v6658_v6  ;;  %v12920_v6 = vld [vmem:[#allocation55_spill] sm:$0xff] }
 0xc4c   :  { %v6897_v23 = vadd.f32 %v6842_v50, %v12905_v40  ;;  %8928 = vlog2.f32 %v6759_v10  ;;  %v6958_v16 = vpop.permute.xlu1 %6957  ;;  %7112 = vperm.xlu0 %8455, %v6898_v51   ;;  %v12916_v40 = vld [vmem:[#allocation51_spill] sm:$0xff] }
 0xc4d   :  { %8930 = vlog2.f32 %v6757_v18  ;;  %v7155_v38 = vsub.f32 %v11516_v0, %v6958_v16  ;;  %v12917_v0 = vld [vmem:[#allocation52_spill] sm:$0xff] }
 0xc4e   :  { %7107 = vperm.xlu1 %8454, %v6897_v23   ;;  %v6963_v32 = vpop.permute.xlu0 %6962 }
 0xc4f   :  { %7204 = vst.msk [vmem:[%s12898_s2 + $0x50] sm:$0xff] %vm7193_vm12, %v7155_v38  ;;  %v7156_v2 = vsub.f32 %v12915_v22, %v6963_v32 }
 0xc50   :  { %v6978_v55 = vpop.permute.xlu1 %6977 }
 0xc51   :  { %7205 = vst.msk [vmem:[%s12898_s2 + $0x58] sm:$0xff] %vm7193_vm12, %v7156_v2  ;;  %v7159_v41 = vsub.f32 %v12916_v40, %v6978_v55  ;;  %v8925_v21 = vpop.eup %8924 }
 0xc52   :  { %v6983_v60 = vpop.permute.xlu0 %6982  ;;  %v6856_v53 = vmul.f32 0.6931472, %v8925_v21 }
 0xc53   :  { %7208 = vst.msk [vmem:[%s12898_s2 + $0x70] sm:$0xff] %vm7193_vm12, %v7159_v41  ;;  %v7160_v56 = vsub.f32 %v12917_v0, %v6983_v60 }
 0xc54   :  { %v6968_v34 = vpop.permute.xlu1 %6967  ;;  %v6904_v16 = vadd.f32 %v6856_v53, %v12908_v8 }
 0xc55   :  { %v8927_v9 = vpop.eup %8926  ;;  %7209 = vst.msk [vmem:[%s12898_s2 + $0x78] sm:$0xff] %vm7193_vm12, %v7160_v56  ;;  %v7157_v44 = vsub.f32 %v12918_v28, %v6968_v34 }
 0xc56   :  { %v8929_v42 = vpop.eup %8928  ;;  %v6852_v13 = vmul.f32 0.6931472, %v8927_v9  ;;  %v6973_v26 = vpop.permute.xlu0 %6972 }
 0xc57   :  { %v8931_v57 = vpop.eup %8930  ;;  %7206 = vst.msk [vmem:[%s12898_s2 + $0x60] sm:$0xff] %vm7193_vm12, %v7157_v44  ;;  %v7158_v10 = vsub.f32 %v12919_v27, %v6973_v26  ;;  %v6854_v31 = vmul.f32 0.6931472, %v8929_v42 }
 0xc58   :  { %v6902_v24 = vadd.f32 %v6852_v13, %v12912_v62  ;;  %v6850_v59 = vmul.f32 0.6931472, %v8931_v57 }
 0xc59   :  { %7207 = vst.msk [vmem:[%s12898_s2 + $0x68] sm:$0xff] %vm7193_vm12, %v7158_v10  ;;  %v6998_v50 = vpop.permute.xlu1 %6997  ;;  %v6903_v62 = vadd.f32 %v6854_v31, %v12910_v5 }
 0xc5a   :  { %v6901_v51 = vadd.f32 %v6850_v59, %v12913_v48  ;;  %7132 = vperm.xlu0 %8455, %v6902_v24   ;;  %v7163_v18 = vsub.f32 %v12920_v6, %v6998_v50 }
 0xc5b   :  { %v7003_v23 = vpop.permute.xlu0 %7002 }
 0xc5c   :  { %v7164_v38 = vsub.f32 %v11559_v39, %v7003_v23  ;;  %7127 = vperm.xlu1 %8454, %v6901_v51   ;;  %7212 = vst.msk [vmem:[%s12898_s2 + $0x90] sm:$0xff] %vm7193_vm12, %v7163_v18 }
 0xc5e   :  { %7213 = vst.msk [vmem:[%s12898_s2 + $0x98] sm:$0xff] %vm7193_vm12, %v7164_v38  ;;  %v6988_v48 = vpop.permute.xlu1 %6987  ;;  %7142 = vperm.xlu0 %8455, %v6904_v16  }
 0xc5f   :  { %v7161_v32 = vsub.f32 %v11564_v3, %v6988_v48  ;;  %v6993_v8 = vpop.permute.xlu0 %6992 }
 0xc60   :  { %v7162_v39 = vsub.f32 %v11569_v63, %v6993_v8  ;;  %7137 = vperm.xlu1 %8454, %v6903_v62  }
 0xc61   :  { %7210 = vst.msk [vmem:[%s12898_s2 + $0x80] sm:$0xff] %vm7193_vm12, %v7161_v32 }
 0xc62   :  { %7211 = vst.msk [vmem:[%s12898_s2 + $0x88] sm:$0xff] %vm7193_vm12, %v7162_v39 }
 0xc66   :  { %v7018_v5 = vpop.permute.xlu1 %7017 }
 0xc67   :  { %v7167_v22 = vsub.f32 %v11576_v45, %v7018_v5 }
 0xc68   :  { %v7023_v2 = vpop.permute.xlu0 %7022 }
 0xc69   :  { %7216 = vst.msk [vmem:[%s12898_s2 + $0xb0] sm:$0xff] %vm7193_vm12, %v7167_v22  ;;  %v7168_v3 = vsub.f32 %v11579_v19, %v7023_v2 }
 0xc6a   :  { %v7008_v63 = vpop.permute.xlu1 %7007 }
 0xc6b   :  { %7217 = vst.msk [vmem:[%s12898_s2 + $0xb8] sm:$0xff] %vm7193_vm12, %v7168_v3  ;;  %v7165_v55 = vsub.f32 %v11584_v58, %v7008_v63 }
 0xc6c   :  { %v7013_v40 = vpop.permute.xlu0 %7012 }
 0xc6d   :  { %7214 = vst.msk [vmem:[%s12898_s2 + $0xa0] sm:$0xff] %vm7193_vm12, %v7165_v55  ;;  %v7166_v45 = vsub.f32 %v11589_v54, %v7013_v40 }
 0xc6f   :  { %7215 = vst.msk [vmem:[%s12898_s2 + $0xa8] sm:$0xff] %vm7193_vm12, %v7166_v45 }
 0xc76   :  { %v7038_v19 = vpop.permute.xlu1 %7037 }
 0xc77   :  { %v7171_v41 = vsub.f32 %v11596_v14, %v7038_v19 }
 0xc78   :  { %v7043_v60 = vpop.permute.xlu0 %7042 }
 0xc79   :  { %7220 = vst.msk [vmem:[%s12898_s2 + $0xd0] sm:$0xff] %vm7193_vm12, %v7171_v41  ;;  %v7172_v58 = vsub.f32 %v11599_v61, %v7043_v60 }
 0xc7a   :  { %v7028_v0 = vpop.permute.xlu1 %7027 }
 0xc7b   :  { %7221 = vst.msk [vmem:[%s12898_s2 + $0xd8] sm:$0xff] %vm7193_vm12, %v7172_v58  ;;  %v7169_v54 = vsub.f32 %v11604_v15, %v7028_v0 }
 0xc7c   :  { %v7033_v56 = vpop.permute.xlu0 %7032 }
 0xc7d   :  { %7218 = vst.msk [vmem:[%s12898_s2 + $0xc0] sm:$0xff] %vm7193_vm12, %v7169_v54  ;;  %v7170_v14 = vsub.f32 %v11609_v7, %v7033_v56 }
 0xc7f   :  { %7219 = vst.msk [vmem:[%s12898_s2 + $0xc8] sm:$0xff] %vm7193_vm12, %v7170_v14 }
 0xc86   :  { %v7058_v61 = vpop.permute.xlu1 %7057 }
 0xc87   :  { %v7175_v21 = vsub.f32 %v11616_v30, %v7058_v61 }
 0xc88   :  { %v7063_v34 = vpop.permute.xlu0 %7062 }
 0xc89   :  { %7224 = vst.msk [vmem:[%s12898_s2 + $0xf0] sm:$0xff] %vm7193_vm12, %v7175_v21  ;;  %v7176_v15 = vsub.f32 %v11619_v37, %v7063_v34 }
 0xc8a   :  { %v7048_v9 = vpop.permute.xlu1 %7047 }
 0xc8b   :  { %7225 = vst.msk [vmem:[%s12898_s2 + $0xf8] sm:$0xff] %vm7193_vm12, %v7176_v15  ;;  %v7173_v7 = vsub.f32 %v11624_v1, %v7048_v9 }
 0xc8c   :  { %v7053_v28 = vpop.permute.xlu0 %7052 }
 0xc8d   :  { %7222 = vst.msk [vmem:[%s12898_s2 + $0xe0] sm:$0xff] %vm7193_vm12, %v7173_v7  ;;  %v7174_v30 = vsub.f32 %v11629_v43, %v7053_v28 }
 0xc8f   :  { %7223 = vst.msk [vmem:[%s12898_s2 + $0xe8] sm:$0xff] %vm7193_vm12, %v7174_v30 }
 0xc96   :  { %v7078_v37 = vpop.permute.xlu1 %7077 }
 0xc97   :  { %v7179_v44 = vsub.f32 %v12883_v20, %v7078_v37 }
 0xc98   :  { %v7083_v42 = vpop.permute.xlu0 %7082 }
 0xc99   :  { %7228 = vst.msk [vmem:[%s12898_s2 + $0x110] sm:$0xff] %vm7193_vm12, %v7179_v44  ;;  %v7180_v1 = vsub.f32 %v12885_v33, %v7083_v42 }
 0xc9a   :  { %v7068_v13 = vpop.permute.xlu1 %7067 }
 0xc9b   :  { %7229 = vst.msk [vmem:[%s12898_s2 + $0x118] sm:$0xff] %vm7193_vm12, %v7180_v1  ;;  %v7177_v43 = vsub.f32 %v12887_v52, %v7068_v13 }
 0xc9c   :  { %v7073_v26 = vpop.permute.xlu0 %7072 }
 0xc9d   :  { %7226 = vst.msk [vmem:[%s12898_s2 + $0x100] sm:$0xff] %vm7193_vm12, %v7177_v43  ;;  %v7178_v20 = vsub.f32 %v12889_v25, %v7073_v26 }
 0xc9f   :  { %7227 = vst.msk [vmem:[%s12898_s2 + $0x108] sm:$0xff] %vm7193_vm12, %v7178_v20 }
 0xcb7   :  { %v7103_v33 = vpop.permute.xlu0 %7102 }
 0xcb8   :  { %v7184_v57 = vsub.f32 %v11699_v29, %v7103_v33 }
 0xcb9   :  { %v7098_v27 = vpop.permute.xlu1 %7097 }
 0xcba   :  { %7233 = vst.msk [vmem:[%s12898_s2 + $0x138] sm:$0xff] %vm7193_vm12, %v7184_v57  ;;  %v7183_v52 = vsub.f32 %v12892_v17, %v7098_v27 }
 0xcbb   :  { %v7093_v10 = vpop.permute.xlu0 %7092 }
 0xcbc   :  { %7232 = vst.msk [vmem:[%s12898_s2 + $0x130] sm:$0xff] %vm7193_vm12, %v7183_v52  ;;  %v7182_v25 = vsub.f32 %v12894_v35, %v7093_v10 }
 0xcbd   :  { %v7088_v53 = vpop.permute.xlu1 %7087 }
 0xcbe   :  { %7231 = vst.msk [vmem:[%s12898_s2 + $0x128] sm:$0xff] %vm7193_vm12, %v7182_v25  ;;  %v7181_v29 = vsub.f32 %v12896_v46, %v7088_v53 }
 0xcc0   :  { %7230 = vst.msk [vmem:[%s12898_s2 + $0x120] sm:$0xff] %vm7193_vm12, %v7181_v29 }
 0xcc7   :  { %v7123_v17 = vpop.permute.xlu0 %7122 }
 0xcc8   :  { %v7188_v24 = vsub.f32 %v11739_v12, %v7123_v17 }
 0xcc9   :  { %v7118_v59 = vpop.permute.xlu1 %7117 }
 0xcca   :  { %7237 = vst.msk [vmem:[%s12898_s2 + $0x158] sm:$0xff] %vm7193_vm12, %v7188_v24  ;;  %v7187_v35 = vsub.f32 %v11734_v47, %v7118_v59 }
 0xccb   :  { %v7113_v31 = vpop.permute.xlu0 %7112 }
 0xccc   :  { %7236 = vst.msk [vmem:[%s12898_s2 + $0x150] sm:$0xff] %vm7193_vm12, %v7187_v35  ;;  %v7186_v46 = vsub.f32 %v11749_v4, %v7113_v31 }
 0xccd   :  { %v7108_v51 = vpop.permute.xlu1 %7107 }
 0xcce   :  { %7235 = vst.msk [vmem:[%s12898_s2 + $0x148] sm:$0xff] %vm7193_vm12, %v7186_v46  ;;  %v7185_v12 = vsub.f32 %v11744_v36, %v7108_v51  ;;  %v12921_v36 = vld [vmem:[#allocation42_spill] sm:$0xff] }
 0xcd0   :  { %7234 = vst.msk [vmem:[%s12898_s2 + $0x140] sm:$0xff] %vm7193_vm12, %v7185_v12 }
 0xcd9   :  { %v7133_v47 = vpop.permute.xlu0 %7132 }
 0xcda   :  { %v7190_v50 = vsub.f32 %v11789_v11, %v7133_v47  ;;  %v12922_v11 = vld [vmem:[#allocation41_spill] sm:$0xff] }
 0xcdb   :  { %v7128_v6 = vpop.permute.xlu1 %7127 }
 0xcdc   :  { %7239 = vst.msk [vmem:[%s12898_s2 + $0x168] sm:$0xff] %vm7193_vm12, %v7190_v50  ;;  %v7189_v4 = vsub.f32 %v11784_v49, %v7128_v6 }
 0xcdd   :  { %v7143_v18 = vpop.permute.xlu0 %7142 }
 0xcde   :  { %7238 = vst.msk [vmem:[%s12898_s2 + $0x160] sm:$0xff] %vm7193_vm12, %v7189_v4  ;;  %v7192_v23 = vsub.f32 %v12921_v36, %v7143_v18 }
 0xcdf   :  { %v7138_v16 = vpop.permute.xlu1 %7137 }
 0xce0   :  { %7241 = vst.msk [vmem:[%s12898_s2 + $0x178] sm:$0xff] %vm7193_vm12, %v7192_v23  ;;  %v7191_v38 = vsub.f32 %v12922_v11, %v7138_v16 }
 0xce2   :  { %7240 = vst.msk [vmem:[%s12898_s2 + $0x170] sm:$0xff] %vm7193_vm12, %v7191_v38 }
 0xce3   :  { %7246 = vsyncpa [#allocation3], 1 }
 0xce4   :  { %7247 = vsyncpa [#allocation5], 1 }
 0xce5   :  { %7248 = vsyncpa [#allocation8], 1 }
 0xce6   :  { %7249 = vsyncpa [#allocation11], 1 }
 0xce7   :  { %7250 = vsyncpa [#allocation14], 1 }

</bundles_post_ra>
